<compile_context>
chip_gen: v7x
topology: tpu7x:2x2x1
jax: 0.10.0
libtpu: 0.0.40
codegen_flags: <defaults>
</compile_context>

<pallas_src>
import functools

import jax
import jax.numpy as jnp
from jax.experimental import pallas as pl
from jax.experimental.pallas import tpu as pltpu

BN_EPS = 1e-5


# ----------------------- small helpers -----------------------

def _round_up(x, m):
    return (x + m - 1) // m * m


def _pad_to(a, axis, size):
    cur = a.shape[axis]
    if cur == size:
        return a
    widths = [(0, 0)] * a.ndim
    widths[axis] = (0, size - cur)
    return jnp.pad(a, widths)


def _choose_tile_rows(hw):
    # Largest row tile in {1024, 512, 256, 128}; tiny maps use one 8-aligned
    # block. 1024 rows x 256ch (in+out, double-buffered) is ~2 MiB: far below
    # the VMEM limit on v5e/v6e/v7x.
    for tm in (1024, 512, 256, 128):
        if hw >= tm:
            return tm
    return _round_up(max(hw, 8), 8)


def fold_bn(gamma, beta, mean, var, eps=BN_EPS):
    scale = gamma / jnp.sqrt(var + eps)
    bias = beta - mean * scale
    return scale, bias


# ----------------------- Pallas kernels -----------------------

def _aspp_project_kernel(x_ref, c1_ref, c2_ref, c3_ref,
                         w0_ref, w1_ref, w2_ref, w3_ref,
                         bb_ref, wp_ref, pb_ref, o_ref):
    # Fused ASPP: relu(branch_i) computed in-kernel (never written to HBM),
    # concatenated to K=1024 and projected with a single resident-weight dot.
    # The pooled branch + projection BN bias arrive as a per-image bias.
    bb = bb_ref[...]  # (1, 256) f32: branch BN bias (shared by all branches)

    def branch(a_ref, w_ref):
        acc = jnp.dot(a_ref[0], w_ref[...], preferred_element_type=jnp.float32)
        return jnp.maximum(acc + bb, 0.0).astype(jnp.bfloat16)

    cat = jnp.concatenate(
        [branch(x_ref, w0_ref), branch(c1_ref, w1_ref),
         branch(c2_ref, w2_ref), branch(c3_ref, w3_ref)], axis=-1)  # (tm, 1024)
    proj = jnp.dot(cat, wp_ref[...], preferred_element_type=jnp.float32)
    proj = jnp.maximum(proj + pb_ref[0], 0.0)
    o_ref[0] = proj.astype(o_ref.dtype)


def fused_aspp_project(x3, c1, c2, c3, w0, w1, w2, w3, branch_bias, wp,
                       pool_bias, out_dtype=jnp.bfloat16):
    """proj = relu( concat_i relu(conv_i(x)) @ Wp + pool_bias ), per row-tile."""
    N, HW, Cin = x3.shape
    K9 = c1.shape[-1]
    K4, C = wp.shape
    tm = _choose_tile_rows(HW)
    HW_pad = _round_up(HW, tm)
    x3, c1, c2, c3 = (_pad_to(a, 1, HW_pad) for a in (x3, c1, c2, c3))
    bb = branch_bias.reshape(1, C).astype(jnp.float32)
    pb = pool_bias.reshape(N, 1, C).astype(jnp.float32)

    def row_spec(ch):
        return pl.BlockSpec((1, tm, ch), lambda n, i: (n, i, 0))

    def full_spec(shape):
        return pl.BlockSpec(shape, lambda n, i: (0,) * len(shape))

    flops = 2 * N * HW_pad * C * (Cin + 3 * K9 + K4)
    bytes_accessed = (2 * N * HW_pad * (Cin + 3 * K9)          # activations in
                      + 2 * (Cin + 3 * K9 + K4) * C            # weights
                      + 4 * (N + 1) * C                        # biases
                      + 2 * N * HW_pad * C)                    # proj out

    out = pl.pallas_call(
        _aspp_project_kernel,
        out_shape=jax.ShapeDtypeStruct((N, HW_pad, C), out_dtype),
        grid_spec=pltpu.PrefetchScalarGridSpec(
            num_scalar_prefetch=0,
            grid=(N, HW_pad // tm),
            in_specs=[row_spec(Cin), row_spec(K9), row_spec(K9), row_spec(K9),
                      full_spec((Cin, C)), full_spec((K9, C)),
                      full_spec((K9, C)), full_spec((K9, C)),
                      full_spec((1, C)), full_spec((K4, C)),
                      pl.BlockSpec((1, 1, C), lambda n, i: (n, 0, 0))],
            out_specs=pl.BlockSpec((1, tm, C), lambda n, i: (n, i, 0)),
        ),
        compiler_params=pltpu.CompilerParams(
            dimension_semantics=("parallel", "parallel")),
        cost_estimate=pl.CostEstimate(flops=flops, transcendentals=0,
                                      bytes_accessed=bytes_accessed),
    )(x3, c1, c2, c3, w0, w1, w2, w3, bb, wp, pb)
    return out[:, :HW, :]


def _head_cls_kernel(xp_ref, wh_ref, bh_ref, wc_ref, bc_ref, o_ref, *, H, W):
    # 3x3 head conv: the 9 taps are accumulated in-kernel from shifted windows
    # of the spatially padded projection (no im2col in HBM). Epilogue: BN bias
    # + ReLU fused with the 1x1 classifier; lane-padded f32 logits.
    C = wh_ref.shape[-2]
    acc = None
    for kh in range(3):
        for kw in range(3):
            tap = xp_ref[0, kh:kh + H, kw:kw + W, :].reshape(H * W, C)
            d = jnp.dot(tap, wh_ref[kh * 3 + kw],
                        preferred_element_type=jnp.float32)
            acc = d if acc is None else acc + d
    head = jnp.maximum(acc + bh_ref[...], 0.0)
    logits = jnp.dot(head.astype(wc_ref.dtype), wc_ref[...],
                     preferred_element_type=jnp.float32) + bc_ref[...]
    o_ref[0] = logits.astype(o_ref.dtype)


def head3x3_and_classify(proj_pad, w_taps, b_head, w_cls, b_cls, *, H, W):
    """logits = relu(conv3x3(proj) + b_head) @ w_cls + b_cls, one image/step."""
    N = proj_pad.shape[0]
    C = w_taps.shape[-1]
    NC = w_cls.shape[-1]
    NC_pad = _round_up(max(NC, 128), 128)

    wh = w_taps.astype(jnp.bfloat16)                            # (9, C, C)
    bh = b_head.reshape(1, C).astype(jnp.float32)
    wc = _pad_to(w_cls.astype(jnp.bfloat16), 1, NC_pad)         # (C, NC_pad)
    bc = _pad_to(b_cls.reshape(1, NC).astype(jnp.float32), 1, NC_pad)

    flops = N * (9 * 2 * H * W * C * C + 2 * H * W * C * NC_pad)
    bytes_accessed = (2 * N * (H + 2) * (W + 2) * C             # padded proj in
                      + 2 * 9 * C * C + 2 * C * NC_pad          # weights
                      + 4 * N * H * W * NC_pad)                 # logits out

    # TODO(synk): for large H*W, tile over row bands with a manual halo DMA
    # (pl.ANY + pltpu.make_async_copy) instead of whole-image blocks.
    out = pl.pallas_call(
        functools.partial(_head_cls_kernel, H=H, W=W),
        out_shape=jax.ShapeDtypeStruct((N, H * W, NC_pad), jnp.float32),
        grid_spec=pltpu.PrefetchScalarGridSpec(
            num_scalar_prefetch=0,
            grid=(N,),
            in_specs=[
                pl.BlockSpec((1, H + 2, W + 2, C), lambda n: (n, 0, 0, 0)),
                pl.BlockSpec((9, C, C), lambda n: (0, 0, 0)),
                pl.BlockSpec((1, C), lambda n: (0, 0)),
                pl.BlockSpec((C, NC_pad), lambda n: (0, 0)),
                pl.BlockSpec((1, NC_pad), lambda n: (0, 0)),
            ],
            out_specs=pl.BlockSpec((1, H * W, NC_pad), lambda n: (n, 0, 0)),
        ),
        compiler_params=pltpu.CompilerParams(
            dimension_semantics=("parallel",)),
        cost_estimate=pl.CostEstimate(flops=flops, transcendentals=0,
                                      bytes_accessed=bytes_accessed),
    )(proj_pad, wh, bh, wc, bc)
    return out[:, :, :NC]


# ----------------------- glue (plain JAX) -----------------------

def im2col_3x3(x_nhwc, dilation):
    """SAME-size dilated 3x3 patches (padding = dilation), tap-major order.
    Only used for the low-channel-count dilated ASPP branches (9*Cin wide)."""
    N, H, W, C = x_nhwc.shape
    d = dilation
    xp = jnp.pad(x_nhwc, ((0, 0), (d, d), (d, d), (0, 0)))
    cols = []
    for kh in (0, 1, 2):
        for kw in (0, 1, 2):
            cols.append(xp[:, kh * d:kh * d + H, kw * d:kw * d + W, :])
    return jnp.concatenate(cols, axis=-1)  # (N, H, W, 9*C)


def conv1x1_weight(w, bn_scale):
    # (Cout, Cin, 1, 1) -> (Cin, Cout) with BN scale folded into out channels.
    return w.reshape(w.shape[0], w.shape[1]).T * bn_scale[None, :]


def conv3x3_weight(w, bn_scale):
    # (Cout, Cin, 3, 3) -> (9*Cin, Cout), tap-major to match im2col ordering.
    wm = jnp.transpose(w, (2, 3, 1, 0)).reshape(-1, w.shape[0])
    return wm * bn_scale[None, :]


def conv3x3_tap_weights(w, bn_scale):
    # (Cout, Cin, 3, 3) -> (9, Cin, Cout), tap-major, BN scale folded on Cout.
    wt = jnp.transpose(w, (2, 3, 1, 0)).reshape(9, w.shape[1], w.shape[0])
    return wt * bn_scale[None, None, :]


def kaiming_normal(key, shape):
    fan_in = shape[1] * shape[2] * shape[3]
    std = (2.0 / fan_in) ** 0.5
    return std * jax.random.normal(key, shape, dtype=jnp.float32)


# ----------------------- DeepLabHead forward -----------------------

def deeplab_head_forward(x_nchw, params, num_classes):
    x_f32 = jnp.transpose(x_nchw, (0, 2, 3, 1)).astype(jnp.float32)   # NHWC
    x_bf = x_f32.astype(jnp.bfloat16)
    N, H, W, Cin = x_bf.shape
    HW = H * W

    # BN (inference) fold using the module's initialized stats.
    ones = jnp.ones((256,), jnp.float32)
    zeros = jnp.zeros((256,), jnp.float32)
    bn_scale, bn_bias = fold_bn(ones, zeros, zeros, ones)

    # ---- ASPP branch weights (BN scale folded), bf16 MXU operands ----
    w0 = conv1x1_weight(params["aspp_c0"], bn_scale).astype(jnp.bfloat16)
    w1 = conv3x3_weight(params["aspp_c1"], bn_scale).astype(jnp.bfloat16)
    w2 = conv3x3_weight(params["aspp_c2"], bn_scale).astype(jnp.bfloat16)
    w3 = conv3x3_weight(params["aspp_c3"], bn_scale).astype(jnp.bfloat16)

    # ---- Projection weight over the 5-way concat: the 4 spatial branches are
    # stacked into one resident (1024, 256) weight; the pooled branch (bilinear
    # upsample of a 1x1 map = per-image constant) folds into a per-image bias.
    wproj = params["project"].reshape(256, 5 * 256)
    wp = (wproj[:, :1024].T * bn_scale[None, :]).astype(jnp.bfloat16)   # (1024, 256)
    w4 = (wproj[:, 1024:].T * bn_scale[None, :]).astype(jnp.float32)    # (256, 256)

    # Pooling branch (tiny): global avg pool -> 1x1 conv + BN + ReLU, plain JAX.
    pooled = jnp.mean(x_f32, axis=(1, 2))                               # (N, Cin)
    wpool = conv1x1_weight(params["aspp_pool"], bn_scale).astype(jnp.float32)
    p = jnp.maximum(pooled @ wpool + bn_bias, 0.0)                      # (N, 256)
    pool_bias = p @ w4 + bn_bias                                        # (N, 256)

    # Dilated-branch patches: only 9*Cin channels wide (not 9*256).
    c1 = im2col_3x3(x_bf, 12).reshape(N, HW, 9 * Cin)
    c2 = im2col_3x3(x_bf, 24).reshape(N, HW, 9 * Cin)
    c3 = im2col_3x3(x_bf, 36).reshape(N, HW, 9 * Cin)
    x3 = x_bf.reshape(N, HW, Cin)

    # ---- Fused ASPP branches + projection (Dropout(0.1) = identity) ----
    proj = fused_aspp_project(x3, c1, c2, c3, w0, w1, w2, w3,
                              bn_bias, wp, pool_bias)                   # (N, HW, 256) bf16
    proj_pad = jnp.pad(proj.reshape(N, H, W, 256),
                       ((0, 0), (1, 1), (1, 1), (0, 0)))                # (N, H+2, W+2, 256)

    # ---- 3x3 head conv + BN + ReLU fused with the final 1x1 classifier ----
    wh = conv3x3_tap_weights(params["head3x3"], bn_scale)               # (9, 256, 256)
    wc = params["final_w"].reshape(num_classes, 256).T                  # (256, NC)
    logits = head3x3_and_classify(proj_pad, wh, bn_bias, wc,
                                  params["final_b"], H=H, W=W)          # (N, HW, NC) f32
    logits = logits.reshape(N, H, W, num_classes)
    return jnp.transpose(logits, (0, 3, 1, 2))                          # NCHW


if __name__ == "__main__":
    in_channels, num_classes = 4, 6
    N, H, W = 2, 16, 16

    keys = jax.random.split(jax.random.PRNGKey(0), 9)
    params = {
        "aspp_c0":   kaiming_normal(keys[0], (256, in_channels, 1, 1)),
        "aspp_c1":   kaiming_normal(keys[1], (256, in_channels, 3, 3)),
        "aspp_c2":   kaiming_normal(keys[2], (256, in_channels, 3, 3)),
        "aspp_c3":   kaiming_normal(keys[3], (256, in_channels, 3, 3)),
        "aspp_pool": kaiming_normal(keys[4], (256, in_channels, 1, 1)),
        "project":   kaiming_normal(keys[5], (256, 5 * 256, 1, 1)),
        "head3x3":   kaiming_normal(keys[6], (256, 256, 3, 3)),
        "final_w":   kaiming_normal(keys[7], (num_classes, 256, 1, 1)),
        "final_b":   jnp.zeros((num_classes,), jnp.float32),
    }

    x = jax.random.normal(keys[8], (N, in_channels, H, W), jnp.float32)

    fwd = jax.jit(lambda xx, pp: deeplab_head_forward(xx, pp, num_classes))
    out = fwd(x, params)
    jax.block_until_ready(out)
    assert out.shape == (N, num_classes, H, W), out.shape
    assert out.dtype == jnp.float32
    print("KERNEL_OK")
</pallas_src>

<mosaic_0001>
module attributes {stable_mosaic.version = 11 : i64} {
  func.func @_aspp_project_kernel(%arg0: i32, %arg1: i32, %arg2: memref<1x256x4xbf16, #tpu.memory_space<vmem>>, %arg3: memref<1x256x36xbf16, #tpu.memory_space<vmem>>, %arg4: memref<1x256x36xbf16, #tpu.memory_space<vmem>>, %arg5: memref<1x256x36xbf16, #tpu.memory_space<vmem>>, %arg6: memref<4x256xbf16, #tpu.memory_space<vmem>>, %arg7: memref<36x256xbf16, #tpu.memory_space<vmem>>, %arg8: memref<36x256xbf16, #tpu.memory_space<vmem>>, %arg9: memref<36x256xbf16, #tpu.memory_space<vmem>>, %arg10: memref<1x256xf32, #tpu.memory_space<vmem>>, %arg11: memref<1024x256xbf16, #tpu.memory_space<vmem>>, %arg12: memref<1x1x256xf32, #tpu.memory_space<vmem>>, %arg13: memref<1x256x256xbf16, #tpu.memory_space<vmem>>) attributes {dimension_semantics = [#tpu.dimension_semantics<parallel>, #tpu.dimension_semantics<parallel>], iteration_bounds = array<i64: 2, 1>, scalar_prefetch = 0 : i64, scratch_operands = 0 : i64, tpu.core_type = #tpu.core_type<tc>, window_params = [{transform_indices = @transform_0, window_bounds = array<i64: 1, 256, 4>}, {transform_indices = @transform_1, window_bounds = array<i64: 1, 256, 36>}, {transform_indices = @transform_2, window_bounds = array<i64: 1, 256, 36>}, {transform_indices = @transform_3, window_bounds = array<i64: 1, 256, 36>}, {pipeline_mode = #tpu.pipeline_mode<synchronous>, transform_indices = @transform_4, window_bounds = array<i64: 4, 256>}, {pipeline_mode = #tpu.pipeline_mode<synchronous>, transform_indices = @transform_5, window_bounds = array<i64: 36, 256>}, {pipeline_mode = #tpu.pipeline_mode<synchronous>, transform_indices = @transform_6, window_bounds = array<i64: 36, 256>}, {pipeline_mode = #tpu.pipeline_mode<synchronous>, transform_indices = @transform_7, window_bounds = array<i64: 36, 256>}, {pipeline_mode = #tpu.pipeline_mode<synchronous>, transform_indices = @transform_8, window_bounds = array<i64: 1, 256>}, {pipeline_mode = #tpu.pipeline_mode<synchronous>, transform_indices = @transform_9, window_bounds = array<i64: 1024, 256>}, {transform_indices = @transform_10, window_bounds = array<i64: 1, 1, 256>}, {transform_indices = @transform_11, window_bounds = array<i64: 1, 256, 256>}]} {
    %c0 = arith.constant 0 : index
    %c0_0 = arith.constant 0 : index
    %0 = vector.load %arg10[%c0, %c0_0] : memref<1x256xf32, #tpu.memory_space<vmem>>, vector<1x256xf32>
    %c0_1 = arith.constant 0 : index
    %c0_2 = arith.constant 0 : index
    %c0_3 = arith.constant 0 : index
    %1 = vector.load %arg2[%c0_1, %c0_2, %c0_3] : memref<1x256x4xbf16, #tpu.memory_space<vmem>>, vector<1x256x4xbf16>
    %2 = vector.shape_cast %1 : vector<1x256x4xbf16> to vector<256x4xbf16>
    %c0_4 = arith.constant 0 : index
    %c0_5 = arith.constant 0 : index
    %3 = vector.load %arg6[%c0_4, %c0_5] : memref<4x256xbf16, #tpu.memory_space<vmem>>, vector<4x256xbf16>
    %cst = arith.constant dense<0.000000e+00> : vector<256x256xf32>
    %4 = tpu.matmul %2, %3, %cst {dimension_numbers = #tpu.dot_dimension_numbers<[1], [0], [0], [1], [0, 0, 1, 1], [], []>} : vector<256x4xbf16>, vector<4x256xbf16>, vector<256x256xf32> -> vector<256x256xf32>
    %5 = vector.broadcast %0 : vector<1x256xf32> to vector<256x256xf32>
    %6 = arith.addf %4, %5 : vector<256x256xf32>
    %cst_6 = arith.constant 0.000000e+00 : f32
    %7 = vector.broadcast %cst_6 : f32 to vector<256x256xf32>
    %8 = arith.maximumf %6, %7 : vector<256x256xf32>
    %9 = arith.truncf %8 : vector<256x256xf32> to vector<256x256xbf16>
    %c0_7 = arith.constant 0 : index
    %c0_8 = arith.constant 0 : index
    %c0_9 = arith.constant 0 : index
    %10 = vector.load %arg3[%c0_7, %c0_8, %c0_9] : memref<1x256x36xbf16, #tpu.memory_space<vmem>>, vector<1x256x36xbf16>
    %11 = vector.shape_cast %10 : vector<1x256x36xbf16> to vector<256x36xbf16>
    %c0_10 = arith.constant 0 : index
    %c0_11 = arith.constant 0 : index
    %12 = vector.load %arg7[%c0_10, %c0_11] : memref<36x256xbf16, #tpu.memory_space<vmem>>, vector<36x256xbf16>
    %cst_12 = arith.constant dense<0.000000e+00> : vector<256x256xf32>
    %13 = tpu.matmul %11, %12, %cst_12 {dimension_numbers = #tpu.dot_dimension_numbers<[1], [0], [0], [1], [0, 0, 1, 1], [], []>} : vector<256x36xbf16>, vector<36x256xbf16>, vector<256x256xf32> -> vector<256x256xf32>
    %14 = vector.broadcast %0 : vector<1x256xf32> to vector<256x256xf32>
    %15 = arith.addf %13, %14 : vector<256x256xf32>
    %cst_13 = arith.constant 0.000000e+00 : f32
    %16 = vector.broadcast %cst_13 : f32 to vector<256x256xf32>
    %17 = arith.maximumf %15, %16 : vector<256x256xf32>
    %18 = arith.truncf %17 : vector<256x256xf32> to vector<256x256xbf16>
    %c0_14 = arith.constant 0 : index
    %c0_15 = arith.constant 0 : index
    %c0_16 = arith.constant 0 : index
    %19 = vector.load %arg4[%c0_14, %c0_15, %c0_16] : memref<1x256x36xbf16, #tpu.memory_space<vmem>>, vector<1x256x36xbf16>
    %20 = vector.shape_cast %19 : vector<1x256x36xbf16> to vector<256x36xbf16>
    %c0_17 = arith.constant 0 : index
    %c0_18 = arith.constant 0 : index
    %21 = vector.load %arg8[%c0_17, %c0_18] : memref<36x256xbf16, #tpu.memory_space<vmem>>, vector<36x256xbf16>
    %cst_19 = arith.constant dense<0.000000e+00> : vector<256x256xf32>
    %22 = tpu.matmul %20, %21, %cst_19 {dimension_numbers = #tpu.dot_dimension_numbers<[1], [0], [0], [1], [0, 0, 1, 1], [], []>} : vector<256x36xbf16>, vector<36x256xbf16>, vector<256x256xf32> -> vector<256x256xf32>
    %23 = vector.broadcast %0 : vector<1x256xf32> to vector<256x256xf32>
    %24 = arith.addf %22, %23 : vector<256x256xf32>
    %cst_20 = arith.constant 0.000000e+00 : f32
    %25 = vector.broadcast %cst_20 : f32 to vector<256x256xf32>
    %26 = arith.maximumf %24, %25 : vector<256x256xf32>
    %27 = arith.truncf %26 : vector<256x256xf32> to vector<256x256xbf16>
    %c0_21 = arith.constant 0 : index
    %c0_22 = arith.constant 0 : index
    %c0_23 = arith.constant 0 : index
    %28 = vector.load %arg5[%c0_21, %c0_22, %c0_23] : memref<1x256x36xbf16, #tpu.memory_space<vmem>>, vector<1x256x36xbf16>
    %29 = vector.shape_cast %28 : vector<1x256x36xbf16> to vector<256x36xbf16>
    %c0_24 = arith.constant 0 : index
    %c0_25 = arith.constant 0 : index
    %30 = vector.load %arg9[%c0_24, %c0_25] : memref<36x256xbf16, #tpu.memory_space<vmem>>, vector<36x256xbf16>
    %cst_26 = arith.constant dense<0.000000e+00> : vector<256x256xf32>
    %31 = tpu.matmul %29, %30, %cst_26 {dimension_numbers = #tpu.dot_dimension_numbers<[1], [0], [0], [1], [0, 0, 1, 1], [], []>} : vector<256x36xbf16>, vector<36x256xbf16>, vector<256x256xf32> -> vector<256x256xf32>
    %32 = vector.broadcast %0 : vector<1x256xf32> to vector<256x256xf32>
    %33 = arith.addf %31, %32 : vector<256x256xf32>
    %cst_27 = arith.constant 0.000000e+00 : f32
    %34 = vector.broadcast %cst_27 : f32 to vector<256x256xf32>
    %35 = arith.maximumf %33, %34 : vector<256x256xf32>
    %36 = arith.truncf %35 : vector<256x256xf32> to vector<256x256xbf16>
    %37 = tpu.concatenate %9, %18, %27, %36 in 1 : vector<256x256xbf16>, vector<256x256xbf16>, vector<256x256xbf16>, vector<256x256xbf16> -> vector<256x1024xbf16>
    %c0_28 = arith.constant 0 : index
    %c0_29 = arith.constant 0 : index
    %38 = vector.load %arg11[%c0_28, %c0_29] : memref<1024x256xbf16, #tpu.memory_space<vmem>>, vector<1024x256xbf16>
    %cst_30 = arith.constant dense<0.000000e+00> : vector<256x256xf32>
    %39 = tpu.matmul %37, %38, %cst_30 {dimension_numbers = #tpu.dot_dimension_numbers<[1], [0], [0], [1], [0, 0, 1, 1], [], []>} : vector<256x1024xbf16>, vector<1024x256xbf16>, vector<256x256xf32> -> vector<256x256xf32>
    %c0_31 = arith.constant 0 : index
    %c0_32 = arith.constant 0 : index
    %c0_33 = arith.constant 0 : index
    %40 = vector.load %arg12[%c0_31, %c0_32, %c0_33] : memref<1x1x256xf32, #tpu.memory_space<vmem>>, vector<1x1x256xf32>
    %41 = vector.shape_cast %40 : vector<1x1x256xf32> to vector<1x256xf32>
    %42 = vector.broadcast %41 : vector<1x256xf32> to vector<256x256xf32>
    %43 = arith.addf %39, %42 : vector<256x256xf32>
    %cst_34 = arith.constant 0.000000e+00 : f32
    %44 = vector.broadcast %cst_34 : f32 to vector<256x256xf32>
    %45 = arith.maximumf %43, %44 : vector<256x256xf32>
    %46 = arith.truncf %45 : vector<256x256xf32> to vector<256x256xbf16>
    %c0_35 = arith.constant 0 : index
    %c0_36 = arith.constant 0 : index
    %c0_37 = arith.constant 0 : index
    %47 = vector.load %arg13[%c0_35, %c0_36, %c0_37] : memref<1x256x256xbf16, #tpu.memory_space<vmem>>, vector<1x256x256xbf16>
    %48 = vector.shape_cast %47 : vector<1x256x256xbf16> to vector<256x256xbf16>
    %49 = vector.shape_cast %46 : vector<256x256xbf16> to vector<1x256x256xbf16>
    tpu.vector_store %arg13[%c0_35, %c0_36, %c0_37], %49 {strides = array<i32>} : memref<1x256x256xbf16, #tpu.memory_space<vmem>>, vector<1x256x256xbf16>,
    return
  }
  func.func @transform_0(%arg0: i32, %arg1: i32) -> (i32, i32, i32) {
    %c0_i32 = arith.constant 0 : i32
    %c0_i32_0 = arith.constant 0 : i32
    return %arg0, %arg1, %c0_i32 : i32, i32, i32
  }
  func.func @transform_1(%arg0: i32, %arg1: i32) -> (i32, i32, i32) {
    %c0_i32 = arith.constant 0 : i32
    %c0_i32_0 = arith.constant 0 : i32
    return %arg0, %arg1, %c0_i32 : i32, i32, i32
  }
  func.func @transform_2(%arg0: i32, %arg1: i32) -> (i32, i32, i32) {
    %c0_i32 = arith.constant 0 : i32
    %c0_i32_0 = arith.constant 0 : i32
    return %arg0, %arg1, %c0_i32 : i32, i32, i32
  }
  func.func @transform_3(%arg0: i32, %arg1: i32) -> (i32, i32, i32) {
    %c0_i32 = arith.constant 0 : i32
    %c0_i32_0 = arith.constant 0 : i32
    return %arg0, %arg1, %c0_i32 : i32, i32, i32
  }
  func.func @transform_4(%arg0: i32, %arg1: i32) -> (i32, i32) {
    %c0_i32 = arith.constant 0 : i32
    %c0_i32_0 = arith.constant 0 : i32
    %c0_i32_1 = arith.constant 0 : i32
    return %c0_i32, %c0_i32_0 : i32, i32
  }
  func.func @transform_5(%arg0: i32, %arg1: i32) -> (i32, i32) {
    %c0_i32 = arith.constant 0 : i32
    %c0_i32_0 = arith.constant 0 : i32
    %c0_i32_1 = arith.constant 0 : i32
    return %c0_i32, %c0_i32_0 : i32, i32
  }
  func.func @transform_6(%arg0: i32, %arg1: i32) -> (i32, i32) {
    %c0_i32 = arith.constant 0 : i32
    %c0_i32_0 = arith.constant 0 : i32
    %c0_i32_1 = arith.constant 0 : i32
    return %c0_i32, %c0_i32_0 : i32, i32
  }
  func.func @transform_7(%arg0: i32, %arg1: i32) -> (i32, i32) {
    %c0_i32 = arith.constant 0 : i32
    %c0_i32_0 = arith.constant 0 : i32
    %c0_i32_1 = arith.constant 0 : i32
    return %c0_i32, %c0_i32_0 : i32, i32
  }
  func.func @transform_8(%arg0: i32, %arg1: i32) -> (i32, i32) {
    %c0_i32 = arith.constant 0 : i32
    %c0_i32_0 = arith.constant 0 : i32
    %c0_i32_1 = arith.constant 0 : i32
    return %c0_i32, %c0_i32_0 : i32, i32
  }
  func.func @transform_9(%arg0: i32, %arg1: i32) -> (i32, i32) {
    %c0_i32 = arith.constant 0 : i32
    %c0_i32_0 = arith.constant 0 : i32
    %c0_i32_1 = arith.constant 0 : i32
    return %c0_i32, %c0_i32_0 : i32, i32
  }
  func.func @transform_10(%arg0: i32, %arg1: i32) -> (i32, i32, i32) {
    %c0_i32 = arith.constant 0 : i32
    %c0_i32_0 = arith.constant 0 : i32
    %c0_i32_1 = arith.constant 0 : i32
    return %arg0, %c0_i32, %c0_i32_0 : i32, i32, i32
  }
  func.func @transform_11(%arg0: i32, %arg1: i32) -> (i32, i32, i32) {
    %c0_i32 = arith.constant 0 : i32
    %c0_i32_0 = arith.constant 0 : i32
    return %arg0, %arg1, %c0_i32 : i32, i32, i32
  }
}

module attributes {stable_mosaic.version = 11 : i64} {
  func.func @_head_cls_kernel(%arg0: i32, %arg1: memref<1x18x18x256xbf16, #tpu.memory_space<vmem>>, %arg2: memref<9x256x256xbf16, #tpu.memory_space<vmem>>, %arg3: memref<1x256xf32, #tpu.memory_space<vmem>>, %arg4: memref<256x128xbf16, #tpu.memory_space<vmem>>, %arg5: memref<1x128xf32, #tpu.memory_space<vmem>>, %arg6: memref<1x256x128xf32, #tpu.memory_space<vmem>>) attributes {dimension_semantics = [#tpu.dimension_semantics<parallel>], iteration_bounds = array<i64: 2>, scalar_prefetch = 0 : i64, scratch_operands = 0 : i64, tpu.core_type = #tpu.core_type<tc>, window_params = [{transform_indices = @transform_0, window_bounds = array<i64: 1, 18, 18, 256>}, {pipeline_mode = #tpu.pipeline_mode<synchronous>, transform_indices = @transform_1, window_bounds = array<i64: 9, 256, 256>}, {pipeline_mode = #tpu.pipeline_mode<synchronous>, transform_indices = @transform_2, window_bounds = array<i64: 1, 256>}, {pipeline_mode = #tpu.pipeline_mode<synchronous>, transform_indices = @transform_3, window_bounds = array<i64: 256, 128>}, {pipeline_mode = #tpu.pipeline_mode<synchronous>, transform_indices = @transform_4, window_bounds = array<i64: 1, 128>}, {transform_indices = @transform_5, window_bounds = array<i64: 1, 256, 128>}]} {
    %c0 = arith.constant 0 : index
    %c0_0 = arith.constant 0 : index
    %c0_1 = arith.constant 0 : index
    %c0_2 = arith.constant 0 : index
    %0 = vector.load %arg1[%c0, %c0_0, %c0_1, %c0_2] : memref<1x18x18x256xbf16, #tpu.memory_space<vmem>>, vector<1x16x16x256xbf16>
    %1 = vector.shape_cast %0 : vector<1x16x16x256xbf16> to vector<16x16x256xbf16>
    %2 = vector.shape_cast %1 : vector<16x16x256xbf16> to vector<256x256xbf16>
    %c0_3 = arith.constant 0 : index
    %c0_4 = arith.constant 0 : index
    %c0_5 = arith.constant 0 : index
    %3 = vector.load %arg2[%c0_3, %c0_4, %c0_5] : memref<9x256x256xbf16, #tpu.memory_space<vmem>>, vector<1x256x256xbf16>
    %4 = vector.shape_cast %3 : vector<1x256x256xbf16> to vector<256x256xbf16>
    %cst = arith.constant dense<0.000000e+00> : vector<256x256xf32>
    %5 = tpu.matmul %2, %4, %cst {dimension_numbers = #tpu.dot_dimension_numbers<[1], [0], [0], [1], [0, 0, 1, 1], [], []>} : vector<256x256xbf16>, vector<256x256xbf16>, vector<256x256xf32> -> vector<256x256xf32>
    %c0_6 = arith.constant 0 : index
    %c0_7 = arith.constant 0 : index
    %c1 = arith.constant 1 : index
    %c0_8 = arith.constant 0 : index
    %6 = vector.load %arg1[%c0_6, %c0_7, %c1, %c0_8] : memref<1x18x18x256xbf16, #tpu.memory_space<vmem>>, vector<1x16x16x256xbf16>
    %7 = vector.shape_cast %6 : vector<1x16x16x256xbf16> to vector<16x16x256xbf16>
    %8 = vector.shape_cast %7 : vector<16x16x256xbf16> to vector<256x256xbf16>
    %c1_9 = arith.constant 1 : index
    %c0_10 = arith.constant 0 : index
    %c0_11 = arith.constant 0 : index
    %9 = vector.load %arg2[%c1_9, %c0_10, %c0_11] : memref<9x256x256xbf16, #tpu.memory_space<vmem>>, vector<1x256x256xbf16>
    %10 = vector.shape_cast %9 : vector<1x256x256xbf16> to vector<256x256xbf16>
    %cst_12 = arith.constant dense<0.000000e+00> : vector<256x256xf32>
    %11 = tpu.matmul %8, %10, %cst_12 {dimension_numbers = #tpu.dot_dimension_numbers<[1], [0], [0], [1], [0, 0, 1, 1], [], []>} : vector<256x256xbf16>, vector<256x256xbf16>, vector<256x256xf32> -> vector<256x256xf32>
    %12 = arith.addf %5, %11 : vector<256x256xf32>
    %c0_13 = arith.constant 0 : index
    %c0_14 = arith.constant 0 : index
    %c2 = arith.constant 2 : index
    %c0_15 = arith.constant 0 : index
    %13 = vector.load %arg1[%c0_13, %c0_14, %c2, %c0_15] : memref<1x18x18x256xbf16, #tpu.memory_space<vmem>>, vector<1x16x16x256xbf16>
    %14 = vector.shape_cast %13 : vector<1x16x16x256xbf16> to vector<16x16x256xbf16>
    %15 = vector.shape_cast %14 : vector<16x16x256xbf16> to vector<256x256xbf16>
    %c2_16 = arith.constant 2 : index
    %c0_17 = arith.constant 0 : index
    %c0_18 = arith.constant 0 : index
    %16 = vector.load %arg2[%c2_16, %c0_17, %c0_18] : memref<9x256x256xbf16, #tpu.memory_space<vmem>>, vector<1x256x256xbf16>
    %17 = vector.shape_cast %16 : vector<1x256x256xbf16> to vector<256x256xbf16>
    %cst_19 = arith.constant dense<0.000000e+00> : vector<256x256xf32>
    %18 = tpu.matmul %15, %17, %cst_19 {dimension_numbers = #tpu.dot_dimension_numbers<[1], [0], [0], [1], [0, 0, 1, 1], [], []>} : vector<256x256xbf16>, vector<256x256xbf16>, vector<256x256xf32> -> vector<256x256xf32>
    %19 = arith.addf %12, %18 : vector<256x256xf32>
    %c0_20 = arith.constant 0 : index
    %c1_21 = arith.constant 1 : index
    %c0_22 = arith.constant 0 : index
    %c0_23 = arith.constant 0 : index
    %20 = vector.load %arg1[%c0_20, %c1_21, %c0_22, %c0_23] : memref<1x18x18x256xbf16, #tpu.memory_space<vmem>>, vector<1x16x16x256xbf16>
    %21 = vector.shape_cast %20 : vector<1x16x16x256xbf16> to vector<16x16x256xbf16>
    %22 = vector.shape_cast %21 : vector<16x16x256xbf16> to vector<256x256xbf16>
    %c3 = arith.constant 3 : index
    %c0_24 = arith.constant 0 : index
    %c0_25 = arith.constant 0 : index
    %23 = vector.load %arg2[%c3, %c0_24, %c0_25] : memref<9x256x256xbf16, #tpu.memory_space<vmem>>, vector<1x256x256xbf16>
    %24 = vector.shape_cast %23 : vector<1x256x256xbf16> to vector<256x256xbf16>
    %cst_26 = arith.constant dense<0.000000e+00> : vector<256x256xf32>
    %25 = tpu.matmul %22, %24, %cst_26 {dimension_numbers = #tpu.dot_dimension_numbers<[1], [0], [0], [1], [0, 0, 1, 1], [], []>} : vector<256x256xbf16>, vector<256x256xbf16>, vector<256x256xf32> -> vector<256x256xf32>
    %26 = arith.addf %19, %25 : vector<256x256xf32>
    %c0_27 = arith.constant 0 : index
    %c1_28 = arith.constant 1 : index
    %c1_29 = arith.constant 1 : index
    %c0_30 = arith.constant 0 : index
    %27 = vector.load %arg1[%c0_27, %c1_28, %c1_29, %c0_30] : memref<1x18x18x256xbf16, #tpu.memory_space<vmem>>, vector<1x16x16x256xbf16>
    %28 = vector.shape_cast %27 : vector<1x16x16x256xbf16> to vector<16x16x256xbf16>
    %29 = vector.shape_cast %28 : vector<16x16x256xbf16> to vector<256x256xbf16>
    %c4 = arith.constant 4 : index
    %c0_31 = arith.constant 0 : index
    %c0_32 = arith.constant 0 : index
    %30 = vector.load %arg2[%c4, %c0_31, %c0_32] : memref<9x256x256xbf16, #tpu.memory_space<vmem>>, vector<1x256x256xbf16>
    %31 = vector.shape_cast %30 : vector<1x256x256xbf16> to vector<256x256xbf16>
    %cst_33 = arith.constant dense<0.000000e+00> : vector<256x256xf32>
    %32 = tpu.matmul %29, %31, %cst_33 {dimension_numbers = #tpu.dot_dimension_numbers<[1], [0], [0], [1], [0, 0, 1, 1], [], []>} : vector<256x256xbf16>, vector<256x256xbf16>, vector<256x256xf32> -> vector<256x256xf32>
    %33 = arith.addf %26, %32 : vector<256x256xf32>
    %c0_34 = arith.constant 0 : index
    %c1_35 = arith.constant 1 : index
    %c2_36 = arith.constant 2 : index
    %c0_37 = arith.constant 0 : index
    %34 = vector.load %arg1[%c0_34, %c1_35, %c2_36, %c0_37] : memref<1x18x18x256xbf16, #tpu.memory_space<vmem>>, vector<1x16x16x256xbf16>
    %35 = vector.shape_cast %34 : vector<1x16x16x256xbf16> to vector<16x16x256xbf16>
    %36 = vector.shape_cast %35 : vector<16x16x256xbf16> to vector<256x256xbf16>
    %c5 = arith.constant 5 : index
    %c0_38 = arith.constant 0 : index
    %c0_39 = arith.constant 0 : index
    %37 = vector.load %arg2[%c5, %c0_38, %c0_39] : memref<9x256x256xbf16, #tpu.memory_space<vmem>>, vector<1x256x256xbf16>
    %38 = vector.shape_cast %37 : vector<1x256x256xbf16> to vector<256x256xbf16>
    %cst_40 = arith.constant dense<0.000000e+00> : vector<256x256xf32>
    %39 = tpu.matmul %36, %38, %cst_40 {dimension_numbers = #tpu.dot_dimension_numbers<[1], [0], [0], [1], [0, 0, 1, 1], [], []>} : vector<256x256xbf16>, vector<256x256xbf16>, vector<256x256xf32> -> vector<256x256xf32>
    %40 = arith.addf %33, %39 : vector<256x256xf32>
    %c0_41 = arith.constant 0 : index
    %c2_42 = arith.constant 2 : index
    %c0_43 = arith.constant 0 : index
    %c0_44 = arith.constant 0 : index
    %41 = vector.load %arg1[%c0_41, %c2_42, %c0_43, %c0_44] : memref<1x18x18x256xbf16, #tpu.memory_space<vmem>>, vector<1x16x16x256xbf16>
    %42 = vector.shape_cast %41 : vector<1x16x16x256xbf16> to vector<16x16x256xbf16>
    %43 = vector.shape_cast %42 : vector<16x16x256xbf16> to vector<256x256xbf16>
    %c6 = arith.constant 6 : index
    %c0_45 = arith.constant 0 : index
    %c0_46 = arith.constant 0 : index
    %44 = vector.load %arg2[%c6, %c0_45, %c0_46] : memref<9x256x256xbf16, #tpu.memory_space<vmem>>, vector<1x256x256xbf16>
    %45 = vector.shape_cast %44 : vector<1x256x256xbf16> to vector<256x256xbf16>
    %cst_47 = arith.constant dense<0.000000e+00> : vector<256x256xf32>
    %46 = tpu.matmul %43, %45, %cst_47 {dimension_numbers = #tpu.dot_dimension_numbers<[1], [0], [0], [1], [0, 0, 1, 1], [], []>} : vector<256x256xbf16>, vector<256x256xbf16>, vector<256x256xf32> -> vector<256x256xf32>
    %47 = arith.addf %40, %46 : vector<256x256xf32>
    %c0_48 = arith.constant 0 : index
    %c2_49 = arith.constant 2 : index
    %c1_50 = arith.constant 1 : index
    %c0_51 = arith.constant 0 : index
    %48 = vector.load %arg1[%c0_48, %c2_49, %c1_50, %c0_51] : memref<1x18x18x256xbf16, #tpu.memory_space<vmem>>, vector<1x16x16x256xbf16>
    %49 = vector.shape_cast %48 : vector<1x16x16x256xbf16> to vector<16x16x256xbf16>
    %50 = vector.shape_cast %49 : vector<16x16x256xbf16> to vector<256x256xbf16>
    %c7 = arith.constant 7 : index
    %c0_52 = arith.constant 0 : index
    %c0_53 = arith.constant 0 : index
    %51 = vector.load %arg2[%c7, %c0_52, %c0_53] : memref<9x256x256xbf16, #tpu.memory_space<vmem>>, vector<1x256x256xbf16>
    %52 = vector.shape_cast %51 : vector<1x256x256xbf16> to vector<256x256xbf16>
    %cst_54 = arith.constant dense<0.000000e+00> : vector<256x256xf32>
    %53 = tpu.matmul %50, %52, %cst_54 {dimension_numbers = #tpu.dot_dimension_numbers<[1], [0], [0], [1], [0, 0, 1, 1], [], []>} : vector<256x256xbf16>, vector<256x256xbf16>, vector<256x256xf32> -> vector<256x256xf32>
    %54 = arith.addf %47, %53 : vector<256x256xf32>
    %c0_55 = arith.constant 0 : index
    %c2_56 = arith.constant 2 : index
    %c2_57 = arith.constant 2 : index
    %c0_58 = arith.constant 0 : index
    %55 = vector.load %arg1[%c0_55, %c2_56, %c2_57, %c0_58] : memref<1x18x18x256xbf16, #tpu.memory_space<vmem>>, vector<1x16x16x256xbf16>
    %56 = vector.shape_cast %55 : vector<1x16x16x256xbf16> to vector<16x16x256xbf16>
    %57 = vector.shape_cast %56 : vector<16x16x256xbf16> to vector<256x256xbf16>
    %c8 = arith.constant 8 : index
    %c0_59 = arith.constant 0 : index
    %c0_60 = arith.constant 0 : index
    %58 = vector.load %arg2[%c8, %c0_59, %c0_60] : memref<9x256x256xbf16, #tpu.memory_space<vmem>>, vector<1x256x256xbf16>
    %59 = vector.shape_cast %58 : vector<1x256x256xbf16> to vector<256x256xbf16>
    %cst_61 = arith.constant dense<0.000000e+00> : vector<256x256xf32>
    %60 = tpu.matmul %57, %59, %cst_61 {dimension_numbers = #tpu.dot_dimension_numbers<[1], [0], [0], [1], [0, 0, 1, 1], [], []>} : vector<256x256xbf16>, vector<256x256xbf16>, vector<256x256xf32> -> vector<256x256xf32>
    %61 = arith.addf %54, %60 : vector<256x256xf32>
    %c0_62 = arith.constant 0 : index
    %c0_63 = arith.constant 0 : index
    %62 = vector.load %arg3[%c0_62, %c0_63] : memref<1x256xf32, #tpu.memory_space<vmem>>, vector<1x256xf32>
    %63 = vector.broadcast %62 : vector<1x256xf32> to vector<256x256xf32>
    %64 = arith.addf %61, %63 : vector<256x256xf32>
    %cst_64 = arith.constant 0.000000e+00 : f32
    %65 = vector.broadcast %cst_64 : f32 to vector<256x256xf32>
    %66 = arith.maximumf %64, %65 : vector<256x256xf32>
    %67 = arith.truncf %66 : vector<256x256xf32> to vector<256x256xbf16>
    %c0_65 = arith.constant 0 : index
    %c0_66 = arith.constant 0 : index
    %68 = vector.load %arg4[%c0_65, %c0_66] : memref<256x128xbf16, #tpu.memory_space<vmem>>, vector<256x128xbf16>
    %cst_67 = arith.constant dense<0.000000e+00> : vector<256x128xf32>
    %69 = tpu.matmul %67, %68, %cst_67 {dimension_numbers = #tpu.dot_dimension_numbers<[1], [0], [0], [1], [0, 0, 1, 1], [], []>} : vector<256x256xbf16>, vector<256x128xbf16>, vector<256x128xf32> -> vector<256x128xf32>
    %c0_68 = arith.constant 0 : index
    %c0_69 = arith.constant 0 : index
    %70 = vector.load %arg5[%c0_68, %c0_69] : memref<1x128xf32, #tpu.memory_space<vmem>>, vector<1x128xf32>
    %71 = vector.broadcast %70 : vector<1x128xf32> to vector<256x128xf32>
    %72 = arith.addf %69, %71 : vector<256x128xf32>
    %c0_70 = arith.constant 0 : index
    %c0_71 = arith.constant 0 : index
    %c0_72 = arith.constant 0 : index
    %73 = vector.load %arg6[%c0_70, %c0_71, %c0_72] : memref<1x256x128xf32, #tpu.memory_space<vmem>>, vector<1x256x128xf32>
    %74 = vector.shape_cast %73 : vector<1x256x128xf32> to vector<256x128xf32>
    %75 = vector.shape_cast %72 : vector<256x128xf32> to vector<1x256x128xf32>
    tpu.vector_store %arg6[%c0_70, %c0_71, %c0_72], %75 {strides = array<i32>} : memref<1x256x128xf32, #tpu.memory_space<vmem>>, vector<1x256x128xf32>,
    return
  }
  func.func @transform_0(%arg0: i32) -> (i32, i32, i32, i32) {
    %c0_i32 = arith.constant 0 : i32
    %c0_i32_0 = arith.constant 0 : i32
    %c0_i32_1 = arith.constant 0 : i32
    %c0_i32_2 = arith.constant 0 : i32
    return %arg0, %c0_i32, %c0_i32_0, %c0_i32_1 : i32, i32, i32, i32
  }
  func.func @transform_1(%arg0: i32) -> (i32, i32, i32) {
    %c0_i32 = arith.constant 0 : i32
    %c0_i32_0 = arith.constant 0 : i32
    %c0_i32_1 = arith.constant 0 : i32
    %c0_i32_2 = arith.constant 0 : i32
    return %c0_i32, %c0_i32_0, %c0_i32_1 : i32, i32, i32
  }
  func.func @transform_2(%arg0: i32) -> (i32, i32) {
    %c0_i32 = arith.constant 0 : i32
    %c0_i32_0 = arith.constant 0 : i32
    %c0_i32_1 = arith.constant 0 : i32
    return %c0_i32, %c0_i32_0 : i32, i32
  }
  func.func @transform_3(%arg0: i32) -> (i32, i32) {
    %c0_i32 = arith.constant 0 : i32
    %c0_i32_0 = arith.constant 0 : i32
    %c0_i32_1 = arith.constant 0 : i32
    return %c0_i32, %c0_i32_0 : i32, i32
  }
  func.func @transform_4(%arg0: i32) -> (i32, i32) {
    %c0_i32 = arith.constant 0 : i32
    %c0_i32_0 = arith.constant 0 : i32
    %c0_i32_1 = arith.constant 0 : i32
    return %c0_i32, %c0_i32_0 : i32, i32
  }
  func.func @transform_5(%arg0: i32) -> (i32, i32, i32) {
    %c0_i32 = arith.constant 0 : i32
    %c0_i32_0 = arith.constant 0 : i32
    %c0_i32_1 = arith.constant 0 : i32
    return %arg0, %c0_i32, %c0_i32_0 : i32, i32, i32
  }
}

</mosaic_0001>

<bundles_post_ra>
// kernel: _lambda_.2
= control target key start
LH: loop header
LB: loop body
LE: loop exit
PB: predicated region body
PF: predicated region fallthrough
CT: control target
= control target key end

     0   :  { %s5500_s17 = smov 0   ;;  %s5502_s18 = smov 0   ;;  %s6849_s0 = inlined_call_operand.vmem [shape: bf16[2,256,4], index: 0, kind: input, shape index: {}]   ;;  %s6850_s1 = inlined_call_operand.vmem [shape: bf16[2,256,36], index: 1, kind: input, shape index: {}]   ;;  %s6851_s2 = inlined_call_operand.vmem [shape: bf16[2,256,36], index: 2, kind: input, shape index: {}, may-alias: {2,3}]   ;;  %s6852_s3 = inlined_call_operand.vmem [shape: bf16[2,256,36], index: 3, kind: input, shape index: {}, may-alias: {2,3}]   ;;  %s6853_s4 = inlined_call_operand.vmem [shape: bf16[4,256], index: 4, kind: input, shape index: {}]   ;;  %s6854_s5 = inlined_call_operand.vmem [shape: bf16[36,256], index: 5, kind: input, shape index: {}]   ;;  %s6855_s6 = inlined_call_operand.vmem [shape: bf16[36,256], index: 6, kind: input, shape index: {}]   ;;  %s6856_s7 = inlined_call_operand.vmem [shape: bf16[36,256], index: 7, kind: input, shape index: {}]   ;;  %s6857_s8 = inlined_call_operand.vmem [shape: f32[1,256], index: 8, kind: input, shape index: {}]   ;;  %s6858_s9 = inlined_call_operand.vmem [shape: bf16[1024,256], index: 9, kind: input, shape index: {}]   ;;  %s6859_s10 = inlined_call_operand.vmem [shape: f32[2,1,256], index: 10, kind: input, shape index: {}]   ;;  %s6860_s11 = inlined_call_operand.vmem [shape: bf16[2,256,256], index: 11, kind: output, shape index: {}]  }
   0x1   :  { %s5504_s19 = smov 0  }
   0x2 LB: > { %s33_s20 = sadd.s32 1, %s5433_s18  ;;  %p4492_p0 = scmp.ge.s32.totalorder %s5437_s19, 1  ;;  %s5437_s19 = sphi %s5504_s19, %s21_s19   ;;  %s5433_s18 = sphi %s5502_s18, %s6866_s18   ;;  %s5429_s17 = sphi %s5500_s17, %s6865_s17  }
   0x3   : > { %p35_p1 = scmp.ge.s32.totalorder %s33_s20, 2  ;;  %p418_p2 = scmp.lt.s32.totalorder %s5437_s19, 3 }
   0x5   : > { %s6868_s20 = smov (%p35_p1, %s33_s20), 0  ;;  %p419_p3 = pnand %p4492_p0, %p418_p2 }
   0x7   : > { %422 = sbr.rel (%p419_p3) target bundleno = 848 (0x350), region = 64 }
   0xe   : > { %v5135_v0 = vld [vmem:[%s6854_s5 + $0x4] ss:$8 sps:$4 sm:$0xff]   ;;  %v5137_v1 = vld [vmem:[%s6854_s5] ss:$8 sps:$4 sm:$0xff]   ;;  %v5439_v2 = vmov 0   ;;  %p499_p4 = scmp.lt.s32.totalorder %s5429_s17, 1 }
   0xf   : > { %1262 = vmatprep.mubr.bf16.mxu1 %v5439_v2  ;;  %776 = vmatprep.mubr.bf16.mxu0 %v5439_v2  ;;  %v5138_v3 = vld [vmem:[%s6854_s5 + $0x14] ss:$8 sps:$4 sm:$0xff]   ;;  %v1069_v4 = vld [vmem:[%s6854_s5 + $0x20] sm:$0x33]  ;;  %v5140_v5 = vld [vmem:[%s6854_s5 + $0x10] ss:$8 sps:$4 sm:$0xff]  }
  0x10   : > { %1230 = vmatprep.subr.bf16.mxu1 %v5135_v0  ;;  %s6870_s17 = smov (!%p499_p4, %s5429_s17), 1  ;;  %v4559_v6 = vcombine.high %v1069_v4, %v1069_v4  ;;  %v4558_v7 = vcombine.low %v1069_v4, %v1069_v4  ;;  %vm737_vm0 = vcmask 1041408   ;;  %v5146_v8 = vld [vmem:[%s6855_s6 + $0x4] ss:$8 sps:$4 sm:$0xff]   ;;  %vm1175_vm1 = vcmask 293888  }
  0x11   : > { %1231 = vmatpush1.bf16.msra.mxu1 %v5137_v1  ;;  %s5538_s12 = sshll.u32 %s6870_s17, 7  ;;  %v4520_v9 = vld.sshfl [vmem:[%s6853_s4] sm:$0x33 pattern:$0x76325410]  ;;  %vm688_vm2 = vcmask 31744  }
  0x12   : > { %1232 = vmatprep.subr.bf16.mxu1 %v5138_v3  ;;  %s5544_s15 = scalar_lea.vmem %s6850_s1, %s5538_s12  ;;  %v687_v10 = vcombine.high %v4520_v9, %v4520_v9  ;;  %v739_v11 = vsel %vm737_vm0, %v4520_v9, 0  ;;  %v1225_v12 = vsel %vm737_vm0, %v4558_v7, 0  ;;  %v5144_v14 = vld [vmem:[%s6855_s6] ss:$8 sps:$4 sm:$0xff]   ;;  %v5154_v15 = vld [vmem:[%s6855_s6 + $0x14] ss:$8 sps:$4 sm:$0xff]   ;;  %s5575_s21 = scalar_lea.vmem %s6849_s0, %s5538_s12 }
  0x13   : > { %v5143_v13 = vld [vmem:[%s5544_s15] sm:$0xff]   ;;  %v5152_v17 = vld [vmem:[%s6855_s6 + $0x10] ss:$8 sps:$4 sm:$0xff]   ;;  %v5147_v20 = vld [vmem:[%s5544_s15 + $0x8] sm:$0xff]   ;;  %s5616_s26 = scalar_lea.vmem %s6851_s2, %s5538_s12  ;;  %s5714_s24 = scalar_lea.vmem %s6852_s3, %s5538_s12 }
  0x14   : > { %4521 = vmatprep.subr.msk.bf16.mxu0 %vm737_vm0, %v687_v10  ;;  %v1555_v16 = vld [vmem:[%s6855_s6 + $0x20] sm:$0x33]  ;;  %v5148_v25 = vld [vmem:[%s5544_s15 + $0x10] sm:$0xff]   ;;  %v5168_v27 = vld [vmem:[%s5575_s21 + $0x8] sm:$0xff]   ;;  %s4501_s13 = sshll.u32 %s6870_s17, 1  ;;  %s4821_s16 = sshll.u32 %s6870_s17, 8 }
  0x15   : > { %1233 = vmatpush1.bf16.msra.mxu1 %v5140_v5  ;;  %745 = vmatpush1.bf16.msra.mxu0 %v739_v11  ;;  %v4598_v18 = vcombine.high %v1555_v16, %v1555_v16  ;;  %v4597_v19 = vcombine.low %v1555_v16, %v1555_v16  ;;  %v5163_v21 = vld [vmem:[%s5575_s21] sm:$0xff]   ;;  %v5171_v26 = vld [vmem:[%s6858_s9 + $0x114] ss:$8 sps:$4 sm:$0xff]   ;;  %v5169_v28 = vld [vmem:[%s6858_s9 + $0x110] ss:$8 sps:$4 sm:$0xff]   ;;  %s6660_s25 = scalar_lea.vmem %s6860_s11, %s4821_s16 }
  0x16   : > { %4560 = vmatprep.subr.msk.bf16.mxu1 %vm737_vm0, %v4559_v6  ;;  %v5164_v23 = vld [vmem:[%s6858_s9 + $0x100] ss:$8 sps:$4 sm:$0xff]   ;;  %v5166_v24 = vld [vmem:[%s6858_s9 + $0x104] ss:$8 sps:$4 sm:$0xff]   ;;  %v5181_v31 = vld [vmem:[%s6858_s9 + $0x134] ss:$8 sps:$4 sm:$0xff]  }
  0x17   : > { %v1710_v22 = vsel %vm737_vm0, %v4597_v19, 0  ;;  %3462 = vmatprep.subr.bf16.mxu0 %v5166_v24  ;;  %v5176_v29 = vld [vmem:[%s6858_s9 + $0x124] ss:$8 sps:$4 sm:$0xff]   ;;  %v5174_v30 = vld [vmem:[%s6858_s9 + $0x120] ss:$8 sps:$4 sm:$0xff]   ;;  %v5173_v32 = vld [vmem:[%s5575_s21 + $0x10] sm:$0xff]  }
  0x18   : > { %4522 = vmatmul.mubr.msk.bf16.vlgmr.msra.gmra.mrb[0].mxu0 %vm688_vm2, %v5163_v21  ;;  %v5149_v33 = vld [vmem:[%s5544_s15 + $0x18] sm:$0xff]   ;;  %v5186_v35 = vld [vmem:[%s6858_s9 + $0x144] ss:$8 sps:$4 sm:$0xff]   ;;  %v5184_v37 = vld [vmem:[%s6858_s9 + $0x140] ss:$8 sps:$4 sm:$0xff]  }
  0x19   : > { %1235 = vmatpush1.bf16.msra.mxu1 %v1225_v12  ;;  %786 = vmatprep.mubr.bf16.mxu0 %v5439_v2  ;;  %v5179_v34 = vld [vmem:[%s6858_s9 + $0x130] ss:$8 sps:$4 sm:$0xff]   ;;  %v5190_v36 = vld [vmem:[%s6856_s7 + $0x4] ss:$8 sps:$4 sm:$0xff]   ;;  %v5194_v38 = vld [vmem:[%s6858_s9 + $0x154] ss:$8 sps:$4 sm:$0xff]  }
  0x1a   : > { %1715 = vmatprep.subr.bf16.mxu1 %v5146_v8  ;;  %3463 = vmatpush1.bf16.msra.mxu0 %v5164_v23  ;;  %v5178_v39 = vld [vmem:[%s5575_s21 + $0x18] sm:$0xff]   ;;  %v5150_v40 = vld [vmem:[%s5544_s15 + $0x20] sm:$0xff]   ;;  %v5151_v46 = vld [vmem:[%s5544_s15 + $0x28] sm:$0xff]  }
  0x1b   : > { %3464 = vmatprep.subr.bf16.mxu0 %v5171_v26  ;;  %v5192_v41 = vld [vmem:[%s6858_s9 + $0x150] ss:$8 sps:$4 sm:$0xff]   ;;  %v5199_v42 = vld [vmem:[%s6858_s9 + $0x164] ss:$8 sps:$4 sm:$0xff]   ;;  %v5197_v43 = vld [vmem:[%s6858_s9 + $0x160] ss:$8 sps:$4 sm:$0xff]  }
  0x1c   : > { %4561 = vmatmul.mubr.msk.bf16.vlgmr.msra.gmra.mrb[0].mxu1 %vm1175_vm1, %v5143_v13  ;;  %v5204_v44 = vld [vmem:[%s6858_s9 + $0x174] ss:$8 sps:$4 sm:$0xff]   ;;  %v5183_v45 = vld [vmem:[%s5575_s21 + $0x20] sm:$0xff]   ;;  %v5202_v47 = vld [vmem:[%s6858_s9 + $0x170] ss:$8 sps:$4 sm:$0xff]  }
  0x1d   : > { %1716 = vmatpush1.bf16.msra.mxu1 %v5144_v14  ;;  %1272 = vmatprep.mubr.bf16.mxu1 %v5439_v2  ;;  %v5209_v48 = vld [vmem:[%s6858_s9 + $0x184] ss:$8 sps:$4 sm:$0xff]   ;;  %v5207_v50 = vld [vmem:[%s6858_s9 + $0x180] ss:$8 sps:$4 sm:$0xff]   ;;  %v5155_v51 = vld [vmem:[%s5544_s15 + $0x30] sm:$0xff]  }
  0x1e   : > { %1717 = vmatprep.subr.bf16.mxu1 %v5154_v15  ;;  %3465 = vmatpush1.bf16.msra.mxu0 %v5169_v28  ;;  %v5191_v49 = vld [vmem:[%s5575_s21 + $0x28] sm:$0xff]   ;;  %v5214_v52 = vld [vmem:[%s6858_s9 + $0x194] ss:$8 sps:$4 sm:$0xff]   ;;  %v5212_v53 = vld [vmem:[%s6858_s9 + $0x190] ss:$8 sps:$4 sm:$0xff]  }
  0x1f   : > { %3466 = vmatprep.subr.bf16.mxu0 %v5176_v29  ;;  %v5222_v54 = vld [vmem:[%s6858_s9 + $0x1a4] ss:$8 sps:$4 sm:$0xff]   ;;  %v5220_v55 = vld [vmem:[%s6858_s9 + $0x1a0] ss:$8 sps:$4 sm:$0xff]   ;;  %v5196_v56 = vld [vmem:[%s5575_s21 + $0x30] sm:$0xff]  }
  0x20   : > { %4523 = vmatmul.mubr.msk.bf16.gmra.mrb[4].mxu0 %vm688_vm2, %v5168_v27  ;;  %v5227_v57 = vld [vmem:[%s6858_s9 + $0x1b4] ss:$8 sps:$4 sm:$0xff]   ;;  %v5225_v59 = vld [vmem:[%s6858_s9 + $0x1b0] ss:$8 sps:$4 sm:$0xff]   ;;  %v5232_v60 = vld [vmem:[%s6858_s9 + $0x1c4] ss:$8 sps:$4 sm:$0xff]  }
  0x21   : > { %1718 = vmatpush1.bf16.msra.mxu1 %v5152_v17  ;;  %796 = vmatprep.mubr.bf16.mxu0 %v5439_v2  ;;  %v5156_v58 = vld [vmem:[%s5544_s15 + $0x38] sm:$0xff]   ;;  %v5230_v62 = vld [vmem:[%s6858_s9 + $0x1c0] ss:$8 sps:$4 sm:$0xff]   ;;  %v5242_v6 = vld [vmem:[%s6858_s9 + $0x1e4] ss:$8 sps:$4 sm:$0xff]  }
  0x22   : > { %4599 = vmatprep.subr.msk.bf16.mxu1 %vm737_vm0, %v4598_v18  ;;  %3467 = vmatpush1.bf16.msra.mxu0 %v5174_v30  ;;  %v5201_v61 = vld [vmem:[%s5575_s21 + $0x38] sm:$0xff]   ;;  %v5157_v63 = vld [vmem:[%s5544_s15 + $0x40] sm:$0xff]   ;;  %v5158_v4 = vld [vmem:[%s5544_s15 + $0x48] sm:$0xff]  }
  0x23   : > { %3468 = vmatprep.subr.bf16.mxu0 %v5181_v31  ;;  %v5235_v0 = vld [vmem:[%s6858_s9 + $0x1d0] ss:$8 sps:$4 sm:$0xff]   ;;  %v5237_v1 = vld [vmem:[%s6858_s9 + $0x1d4] ss:$8 sps:$4 sm:$0xff]   ;;  %v5206_v3 = vld [vmem:[%s5575_s21 + $0x40] sm:$0xff]  }
  0x24   : > { %4562 = vmatmul.mubr.msk.bf16.gmra.mrb[4].mxu1 %vm1175_vm1, %v5147_v20  ;;  %v5240_v5 = vld [vmem:[%s6858_s9 + $0x1e0] ss:$8 sps:$4 sm:$0xff]   ;;  %v5159_v8 = vld [vmem:[%s5544_s15 + $0x50] sm:$0xff]   ;;  %v5162_v10 = vld [vmem:[%s5544_s15 + $0x58] sm:$0xff]  }
  0x25   : > { %1282 = vmatprep.mubr.bf16.mxu1 %v5439_v2  ;;  %1720 = vmatpush1.bf16.msra.mxu1 %v1710_v22  ;;  %v5211_v7 = vld [vmem:[%s5575_s21 + $0x48] sm:$0xff]   ;;  %v5219_v9 = vld [vmem:[%s5575_s21 + $0x50] sm:$0xff]   ;;  %v5167_v13 = vld [vmem:[%s5544_s15 + $0x60] sm:$0xff]  }
  0x26   : > { %3469 = vmatpush1.bf16.msra.mxu0 %v5179_v34  ;;  %2200 = vmatprep.subr.bf16.mxu1 %v5190_v36  ;;  %v5248_v11 = vld [vmem:[%s6858_s9 + $0x1f4] ss:$8 sps:$4 sm:$0xff]   ;;  %v5246_v12 = vld [vmem:[%s6858_s9 + $0x1f0] ss:$8 sps:$4 sm:$0xff]   ;;  %v5172_v15 = vld [vmem:[%s5544_s15 + $0x68] sm:$0xff]  }
  0x27   : > { %3470 = vmatprep.subr.bf16.mxu0 %v5186_v35  ;;  %v5224_v14 = vld [vmem:[%s5575_s21 + $0x58] sm:$0xff]   ;;  %v5229_v16 = vld [vmem:[%s5575_s21 + $0x60] sm:$0xff]   ;;  %v5177_v18 = vld [vmem:[%s5544_s15 + $0x70] sm:$0xff]  }
  0x28   : > { %4524 = vmatmul.mubr.msk.bf16.gmra.mrb[8].mxu0 %vm688_vm2, %v5173_v32  ;;  %v5253_v17 = vld [vmem:[%s6858_s9 + $0x204] ss:$8 sps:$4 sm:$0xff]   ;;  %v5239_v20 = vld [vmem:[%s5575_s21 + $0x70] sm:$0xff]   ;;  %v5182_v21 = vld [vmem:[%s5544_s15 + $0x78] sm:$0xff]  }
  0x29   : > { %806 = vmatprep.mubr.bf16.mxu0 %v5439_v2  ;;  %v5234_v19 = vld [vmem:[%s5575_s21 + $0x68] sm:$0xff]   ;;  %v5244_v22 = vld [vmem:[%s5575_s21 + $0x78] sm:$0xff]   ;;  %v5187_v23 = vld [vmem:[%s5616_s26] sm:$0xff]   ;;  %s541_s21 = scalar_lea.vmem %s6859_s10, %s4501_s13 }
  0x2a   : > { %3471 = vmatpush1.bf16.msra.mxu0 %v5184_v37  ;;  %v5188_v24 = vld [vmem:[%s6856_s7] ss:$8 sps:$4 sm:$0xff]   ;;  %v5216_v27 = vld [vmem:[%s6856_s7 + $0x10] ss:$8 sps:$4 sm:$0xff]  }
  0x2b   : > { %3472 = vmatprep.subr.bf16.mxu0 %v5194_v38  ;;  %v2040_v26 = vld [vmem:[%s6856_s7 + $0x20] sm:$0x33]  ;;  %v5195_v30 = vld [vmem:[%s5616_s26 + $0x8] sm:$0xff]   ;;  %v5200_v32 = vld [vmem:[%s5616_s26 + $0x10] sm:$0xff]  }
  0x2c   : > { %4563 = vmatmul.mubr.msk.bf16.gmra.mrb[8].mxu1 %vm1175_vm1, %v5148_v25  ;;  %v5218_v25 = vld [vmem:[%s6856_s7 + $0x14] ss:$8 sps:$4 sm:$0xff]   ;;  %v4637_v28 = vcombine.high %v2040_v26, %v2040_v26  ;;  %v4636_v29 = vcombine.low %v2040_v26, %v2040_v26  ;;  %v5210_v34 = vld [vmem:[%s5616_s26 + $0x20] sm:$0xff]   ;;  %v5215_v35 = vld [vmem:[%s5616_s26 + $0x28] sm:$0xff]  }
  0x2d   : > { %1292 = vmatprep.mubr.bf16.mxu1 %v5439_v2  ;;  %v5223_v36 = vld [vmem:[%s5616_s26 + $0x30] sm:$0xff]   ;;  %v5228_v37 = vld [vmem:[%s5616_s26 + $0x38] sm:$0xff]   ;;  %v5233_v38 = vld [vmem:[%s5616_s26 + $0x40] sm:$0xff]  }
  0x2e   : > { %3473 = vmatpush1.bf16.msra.mxu0 %v5192_v41  ;;  %v2195_v31 = vsel %vm737_vm0, %v4636_v29, 0  ;;  %v589_v41 = vlaneseq  ;;  %v5261_v26 = vld [vmem:[%s6858_s9 + $0x224] ss:$8 sps:$4 sm:$0xff]  }
  0x2f   : > { %3474 = vmatprep.subr.bf16.mxu0 %v5199_v42 }
  0x30   : > { %4525 = vmatmul.mubr.msk.bf16.gmra.mrb[12].mxu0 %vm688_vm2, %v5178_v39  ;;  %v5305_v39 = vld [vmem:[%s6858_s9 + $0x4] ss:$8 sps:$4 sm:$0xff]   ;;  %v5831_v42 = vshrl.u32 %v589_v41, 7 }
  0x31   : > { %816 = vmatprep.mubr.bf16.mxu0 %v5439_v2  ;;  %v5258_v41 = vld [vmem:[%s5616_s26 + $0x68] sm:$0xff]  }
  0x32   : > { %3475 = vmatpush1.bf16.msra.mxu0 %v5197_v43  ;;  %v5243_v43 = vld [vmem:[%s5616_s26 + $0x50] sm:$0xff]  }
  0x33   : > { %3476 = vmatprep.subr.bf16.mxu0 %v5204_v44  ;;  %v591_v44 = vsub.s32 0, %v5831_v42 }
  0x34   : > { %4564 = vmatmul.mubr.msk.bf16.gmra.mrb[12].mxu1 %vm1175_vm1, %v5149_v33  ;;  %v5205_v33 = vld [vmem:[%s5616_s26 + $0x18] sm:$0xff]  }
  0x35   : > { %1302 = vmatprep.mubr.bf16.mxu1 %v5439_v2 }
  0x36   : > { %3477 = vmatpush1.bf16.msra.mxu0 %v5202_v47 }
  0x37   : > { %3478 = vmatprep.subr.bf16.mxu0 %v5209_v48 }
  0x38   : > { %4526 = vmatmul.mubr.msk.bf16.gmra.mrb[16].mxu0 %vm688_vm2, %v5183_v45  ;;  %v554_v45 = vld [vmem:[%s6857_s8] sm:$0x3] }
  0x39   : > { %826 = vmatprep.mubr.bf16.mxu0 %v5439_v2  ;;  %v5843_v47 = vrot.slane %v554_v45, %v591_v44 }
  0x3a   : > { %3479 = vmatpush1.bf16.msra.mxu0 %v5207_v50 }
  0x3b   : > { %3480 = vmatprep.subr.bf16.mxu0 %v5214_v52  ;;  %v5250_v52 = vld [vmem:[%s5616_s26 + $0x58] sm:$0xff]  }
  0x3c   : > { %4565 = vmatmul.mubr.msk.bf16.gmra.mrb[16].mxu1 %vm1175_vm1, %v5150_v40  ;;  %v5238_v40 = vld [vmem:[%s5616_s26 + $0x48] sm:$0xff]  }
  0x3d   : > { %1312 = vmatprep.mubr.bf16.mxu1 %v5439_v2 }
  0x3e   : > { %3481 = vmatpush1.bf16.msra.mxu0 %v5212_v53 }
  0x3f   : > { %3482 = vmatprep.subr.bf16.mxu0 %v5222_v54 }
  0x40   : > { %4527 = vmatmul.mubr.msk.bf16.gmra.mrb[20].mxu0 %vm688_vm2, %v5191_v49 }
  0x41   : > { %836 = vmatprep.mubr.bf16.mxu0 %v5439_v2 }
  0x42   : > { %3483 = vmatpush1.bf16.msra.mxu0 %v5220_v55 }
  0x43   : > { %3484 = vmatprep.subr.bf16.mxu0 %v5227_v57 }
  0x44   : > { %4566 = vmatmul.mubr.msk.bf16.gmra.mrb[20].mxu1 %vm1175_vm1, %v5151_v46  ;;  %v595_v46 = vsub.s32 1, %v5831_v42 }
  0x45   : > { %1322 = vmatprep.mubr.bf16.mxu1 %v5439_v2 }
  0x46   : > { %3485 = vmatpush1.bf16.msra.mxu0 %v5225_v59  ;;  %v5847_v48 = vrot.slane %v554_v45, %v595_v46 }
  0x47   : > { %3486 = vmatprep.subr.bf16.mxu0 %v5232_v60 }
  0x48   : > { %4528 = vmatmul.mubr.msk.bf16.gmra.mrb[24].mxu0 %vm688_vm2, %v5196_v56 }
  0x49   : > { %846 = vmatprep.mubr.bf16.mxu0 %v5439_v2 }
  0x4a   : > { %3487 = vmatpush1.bf16.msra.mxu0 %v5230_v62 }
  0x4b   : > { %3488 = vmatprep.subr.bf16.mxu0 %v5237_v1 }
  0x4c   : > { %4567 = vmatmul.mubr.msk.bf16.gmra.mrb[24].mxu1 %vm1175_vm1, %v5155_v51 }
  0x4d   : > { %1332 = vmatprep.mubr.bf16.mxu1 %v5439_v2 }
  0x4e   : > { %3489 = vmatpush1.bf16.msra.mxu0 %v5235_v0 }
  0x4f   : > { %3490 = vmatprep.subr.bf16.mxu0 %v5242_v6 }
  0x50   : > { %4529 = vmatmul.mubr.msk.bf16.gmra.mrb[28].mxu0 %vm688_vm2, %v5201_v61 }
  0x51   : > { %856 = vmatprep.mubr.bf16.mxu0 %v5439_v2 }
  0x52   : > { %3491 = vmatpush1.bf16.msra.mxu0 %v5240_v5 }
  0x53   : > { %3492 = vmatprep.subr.bf16.mxu0 %v5248_v11 }
  0x54   : > { %4568 = vmatmul.mubr.msk.bf16.gmra.mrb[28].mxu1 %vm1175_vm1, %v5156_v58 }
  0x55   : > { %1342 = vmatprep.mubr.bf16.mxu1 %v5439_v2 }
  0x56   : > { %3493 = vmatpush1.bf16.msra.mxu0 %v5246_v12 }
  0x57   : > { %3655 = vmatprep.subr.bf16.mxu0 %v5253_v17 }
  0x58   : > { %4530 = vmatmul.mubr.msk.bf16.gmra.mrb[32].mxu0 %vm688_vm2, %v5206_v3  ;;  %v5251_v3 = vld [vmem:[%s6858_s9 + $0x200] ss:$8 sps:$4 sm:$0xff]  }
  0x59   : > { %866 = vmatprep.mubr.bf16.mxu0 %v5439_v2 }
  0x5c   : > { %4569 = vmatmul.mubr.msk.bf16.gmra.mrb[32].mxu1 %vm1175_vm1, %v5157_v63 }
  0x5d   : > { %1352 = vmatprep.mubr.bf16.mxu1 %v5439_v2 }
  0x60   : > { %4531 = vmatmul.mubr.msk.bf16.gmra.mrb[36].mxu0 %vm688_vm2, %v5211_v7 }
  0x61   : > { %876 = vmatprep.mubr.bf16.mxu0 %v5439_v2 }
  0x64   : > { %4570 = vmatmul.mubr.msk.bf16.gmra.mrb[36].mxu1 %vm1175_vm1, %v5158_v4 }
  0x65   : > { %1362 = vmatprep.mubr.bf16.mxu1 %v5439_v2 }
  0x68   : > { %4532 = vmatmul.mubr.msk.bf16.gmra.mrb[40].mxu0 %vm688_vm2, %v5219_v9  ;;  %v5257_v9 = vld [vmem:[%s6858_s9 + $0x214] ss:$8 sps:$4 sm:$0xff]  }
  0x69   : > { %886 = vmatprep.mubr.bf16.mxu0 %v5439_v2 }
  0x6c   : > { %4571 = vmatmul.mubr.msk.bf16.gmra.mrb[40].mxu1 %vm1175_vm1, %v5159_v8  ;;  %v5254_v8 = vld [vmem:[%s5616_s26 + $0x60] sm:$0xff]  }
  0x6d   : > { %1372 = vmatprep.mubr.bf16.mxu1 %v5439_v2 }
  0x70   : > { %4533 = vmatmul.mubr.msk.bf16.gmra.mrb[44].mxu0 %vm688_vm2, %v5224_v14 }
  0x71   : > { %896 = vmatprep.mubr.bf16.mxu0 %v5439_v2 }
  0x74   : > { %4572 = vmatmul.mubr.msk.bf16.gmra.mrb[44].mxu1 %vm1175_vm1, %v5162_v10 }
  0x75   : > { %1382 = vmatprep.mubr.bf16.mxu1 %v5439_v2 }
  0x78   : > { %4534 = vmatmul.mubr.msk.bf16.gmra.mrb[48].mxu0 %vm688_vm2, %v5229_v16 }
  0x79   : > { %906 = vmatprep.mubr.bf16.mxu0 %v5439_v2 }
  0x7c   : > { %4573 = vmatmul.mubr.msk.bf16.gmra.mrb[48].mxu1 %vm1175_vm1, %v5167_v13 }
  0x7d   : > { %1392 = vmatprep.mubr.bf16.mxu1 %v5439_v2 }
  0x80   : > { %4535 = vmatmul.mubr.msk.bf16.gmra.mrb[52].mxu0 %vm688_vm2, %v5234_v19 }
  0x81   : > { %916 = vmatprep.mubr.bf16.mxu0 %v5439_v2 }
  0x84   : > { %4574 = vmatmul.mubr.msk.bf16.gmra.mrb[52].mxu1 %vm1175_vm1, %v5172_v15 }
  0x85   : > { %1402 = vmatprep.mubr.bf16.mxu1 %v5439_v2 }
  0x88   : > { %4536 = vmatmul.mubr.msk.bf16.gmra.mrb[56].mxu0 %vm688_vm2, %v5239_v20 }
  0x89   : > { %926 = vmatprep.mubr.bf16.mxu0 %v5439_v2 }
  0x8c   : > { %4575 = vmatmul.mubr.msk.bf16.gmra.mrb[56].mxu1 %vm1175_vm1, %v5177_v18 }
  0x8d   : > { %1412 = vmatprep.mubr.bf16.mxu1 %v5439_v2 }
  0x90   : > { %4537 = vmatmul.mubr.msk.bf16.gmra.mrb[60].mxu0 %vm688_vm2, %v5244_v22  ;;  %v5255_v22 = vld [vmem:[%s6858_s9 + $0x210] ss:$8 sps:$4 sm:$0xff]  }
  0x94   : > { %4576 = vmatmul.mubr.msk.bf16.gmra.mrb[60].mxu1 %vm1175_vm1, %v5182_v21 }
  0x95   : > { %1747 = vmatprep.mubr.bf16.mxu1 %v5439_v2 }
  0x9c   : > { %4600 = vmatmul.mubr.msk.bf16.vlgmr.msra.gmra.mrb[64].mxu1 %vm1175_vm1, %v5187_v23 }
  0x9d   : > { %2201 = vmatpush1.bf16.msra.mxu1 %v5188_v24  ;;  %1757 = vmatprep.mubr.bf16.mxu1 %v5439_v2 }
  0x9e   : > { %2202 = vmatprep.subr.bf16.mxu1 %v5218_v25 }
  0xa1   : > { %2203 = vmatpush1.bf16.msra.mxu1 %v5216_v27 }
  0xa2   : > { %4638 = vmatprep.subr.msk.bf16.mxu1 %vm737_vm0, %v4637_v28 }
  0xa4   : > { %4601 = vmatmul.mubr.msk.bf16.gmra.mrb[68].mxu1 %vm1175_vm1, %v5195_v30 }
  0xa5   : > { %1767 = vmatprep.mubr.bf16.mxu1 %v5439_v2  ;;  %2205 = vmatpush1.bf16.msra.mxu1 %v2195_v31 }
  0xa6   : > { %3269 = vmatprep.subr.bf16.mxu1 %v5305_v39 }
  0xac   : > { %4602 = vmatmul.mubr.msk.bf16.gmra.mrb[72].mxu1 %vm1175_vm1, %v5200_v32 }
  0xad   : > { %1777 = vmatprep.mubr.bf16.mxu1 %v5439_v2 }
  0xb4   : > { %4603 = vmatmul.mubr.msk.bf16.gmra.mrb[76].mxu1 %vm1175_vm1, %v5205_v33 }
  0xb5   : > { %1787 = vmatprep.mubr.bf16.mxu1 %v5439_v2 }
  0xbc   : > { %4604 = vmatmul.mubr.msk.bf16.gmra.mrb[80].mxu1 %vm1175_vm1, %v5210_v34 }
  0xbd   : > { %1797 = vmatprep.mubr.bf16.mxu1 %v5439_v2 }
  0xc4   : > { %4605 = vmatmul.mubr.msk.bf16.gmra.mrb[84].mxu1 %vm1175_vm1, %v5215_v35 }
  0xc5   : > { %1807 = vmatprep.mubr.bf16.mxu1 %v5439_v2 }
  0xcc   : > { %4606 = vmatmul.mubr.msk.bf16.gmra.mrb[88].mxu1 %vm1175_vm1, %v5223_v36  ;;  %v5259_v36 = vld [vmem:[%s6858_s9 + $0x220] ss:$8 sps:$4 sm:$0xff]  }
  0xcd   : > { %1817 = vmatprep.mubr.bf16.mxu1 %v5439_v2 }
  0xd4   : > { %4607 = vmatmul.mubr.msk.bf16.gmra.mrb[92].mxu1 %vm1175_vm1, %v5228_v37 }
  0xd5   : > { %1827 = vmatprep.mubr.bf16.mxu1 %v5439_v2 }
  0xdc   : > { %4608 = vmatmul.mubr.msk.bf16.gmra.mrb[96].mxu1 %vm1175_vm1, %v5233_v38 }
  0xdd   : > { %1837 = vmatprep.mubr.bf16.mxu1 %v5439_v2 }
  0xe4   : > { %4609 = vmatmul.mubr.msk.bf16.gmra.mrb[100].mxu1 %vm1175_vm1, %v5238_v40 }
  0xe5   : > { %1847 = vmatprep.mubr.bf16.mxu1 %v5439_v2 }
  0xeb   : > { %v778_v63 = vpop.f32.mrb[0].mxu0 }
  0xec   : > { %4610 = vmatmul.mubr.msk.bf16.gmra.mrb[104].mxu1 %vm1175_vm1, %v5243_v43  ;;  %v779_v4 = vadd.f32 %v778_v63, %v5843_v47  ;;  %v780_v5 = vpop.f32.mrb[1].mxu0  ;;  %v5265_v43 = vld [vmem:[%s6858_s9 + $0x234] ss:$8 sps:$4 sm:$0xff]  }
  0xed   : > { %1857 = vmatprep.mubr.bf16.mxu1 %v5439_v2  ;;  %v781_v10 = vadd.f32 %v780_v5, %v5847_v48  ;;  %v782_v11 = vpop.f32.mrb[2].mxu0 }
  0xee   : > { %v937_v14 = vmax.f32 %v779_v4, 0.0  ;;  %v783_v15 = vadd.f32 %v782_v11, %v5843_v47  ;;  %v784_v16 = vpop.f32.mrb[3].mxu0  ;;  %v5267_v11 = vld [vmem:[%s6858_s9 + $0x240] ss:$8 sps:$4 sm:$0xff]  }
  0xef   : > { %v1264_v49 = vpop.f32.mrb[0].mxu1  ;;  %v938_v19 = vmax.f32 %v781_v10, 0.0  ;;  %v785_v20 = vadd.f32 %v784_v16, %v5847_v48  ;;  %v5262_v16 = vld [vmem:[%s5616_s26 + $0x70] sm:$0xff]  }
  0xf0   : > { %v1265_v50 = vadd.f32 %v1264_v49, %v5843_v47  ;;  %v1266_v51 = vpop.f32.mrb[1].mxu1  ;;  %v939_v23 = vmax.f32 %v783_v15, 0.0 }
  0xf1   : > { %v1267_v53 = vadd.f32 %v1266_v51, %v5847_v48  ;;  %v1268_v54 = vpop.f32.mrb[2].mxu1  ;;  %v940_v27 = vmax.f32 %v785_v20, 0.0 }
  0xf2   : > { %v1269_v55 = vadd.f32 %v1268_v54, %v5843_v47  ;;  %v1270_v56 = vpop.f32.mrb[3].mxu1  ;;  %v1423_v58 = vmax.f32 %v1265_v50, 0.0  ;;  %v5880_v30 = vpack.c.bf16 %v939_v23, %v937_v14 }
  0xf3   : > { %v1271_v57 = vadd.f32 %v1270_v56, %v5847_v48  ;;  %v1424_v60 = vmax.f32 %v1267_v53, 0.0  ;;  %v5882_v32 = vpack.c.bf16 %v940_v27, %v938_v19  ;;  %v788_v33 = vpop.f32.mrb[4].mxu0 }
  0xf4   : > { %v1425_v59 = vmax.f32 %v1269_v55, 0.0  ;;  %4611 = vmatmul.mubr.msk.bf16.gmra.mrb[108].mxu1 %vm1175_vm1, %v5250_v52  ;;  %v789_v37 = vadd.f32 %v788_v33, %v5843_v47  ;;  %v790_v38 = vpop.f32.mrb[5].mxu0 }
  0xf5   : > { %v1426_v61 = vmax.f32 %v1271_v57, 0.0  ;;  %1867 = vmatprep.mubr.bf16.mxu1 %v5439_v2  ;;  %v791_v45 = vadd.f32 %v790_v38, %v5847_v48  ;;  %v792_v49 = vpop.f32.mrb[6].mxu0 }
  0xf6   : > { %v1487_v62 = vpack.c.bf16 %v1425_v59, %v1423_v58  ;;  %v941_v52 = vmax.f32 %v789_v37, 0.0  ;;  %v793_v53 = vadd.f32 %v792_v49, %v5843_v47  ;;  %v794_v54 = vpop.f32.mrb[7].mxu0 }
  0xf7   : > { %v1488_v0 = vpack.c.bf16 %v1426_v61, %v1424_v60  ;;  %v1274_v1 = vpop.f32.mrb[4].mxu1  ;;  %v942_v57 = vmax.f32 %v791_v45, 0.0  ;;  %v795_v58 = vadd.f32 %v794_v54, %v5847_v48  ;;  %v5263_v60 = vld [vmem:[%s6858_s9 + $0x230] ss:$8 sps:$4 sm:$0xff]  }
  0xf8   : > { %v1275_v6 = vadd.f32 %v1274_v1, %v5843_v47  ;;  %v1276_v7 = vpop.f32.mrb[5].mxu1  ;;  %v943_v61 = vmax.f32 %v793_v53, 0.0 }
  0xf9   : > { %v1277_v12 = vadd.f32 %v1276_v7, %v5847_v48  ;;  %v1278_v13 = vpop.f32.mrb[6].mxu1  ;;  %3494 = vmatprep.mubr.bf16.mxu0 %v1488_v0  ;;  %v5269_v0 = vld [vmem:[%s6858_s9 + $0x244] ss:$8 sps:$4 sm:$0xff]   ;;  %v944_v1 = vmax.f32 %v795_v58, 0.0 }
  0xfa   : > { %v1279_v17 = vadd.f32 %v1278_v13, %v5843_v47  ;;  %v1280_v18 = vpop.f32.mrb[7].mxu1  ;;  %3495 = vmatmul.mubr.bf16.vlgmr.msra.gmra.mrb[64].mxu0 %v1487_v62  ;;  %v1427_v24 = vmax.f32 %v1275_v6, 0.0  ;;  %v5907_v5 = vpack.c.bf16 %v943_v61, %v941_v52 }
  0xfb   : > { %v1281_v21 = vadd.f32 %v1280_v18, %v5847_v48  ;;  %3656 = vmatpush1.bf16.msra.mxu0 %v5251_v3  ;;  %v1428_v28 = vmax.f32 %v1277_v12, 0.0  ;;  %v5909_v7 = vpack.c.bf16 %v944_v1, %v942_v57  ;;  %v5281_v57 = vld [vmem:[%s6858_s9 + $0x274] ss:$8 sps:$4 sm:$0xff]  }
  0xfc   : > { %v1429_v25 = vmax.f32 %v1279_v17, 0.0  ;;  %4612 = vmatmul.mubr.msk.bf16.gmra.mrb[112].mxu1 %vm1175_vm1, %v5254_v8  ;;  %3657 = vmatprep.subr.bf16.mxu0 %v5257_v9  ;;  %v798_v8 = vpop.f32.mrb[8].mxu0  ;;  %v5273_v17 = vld [vmem:[%s6858_s9 + $0x254] ss:$8 sps:$4 sm:$0xff]  }
  0xfd   : > { %v1430_v29 = vmax.f32 %v1281_v21, 0.0  ;;  %1877 = vmatprep.mubr.bf16.mxu1 %v5439_v2  ;;  %v799_v12 = vadd.f32 %v798_v8, %v5843_v47  ;;  %v800_v13 = vpop.f32.mrb[9].mxu0 }
  0xfe   : > { %v1489_v31 = vpack.c.bf16 %v1429_v25, %v1427_v24  ;;  %v801_v18 = vadd.f32 %v800_v13, %v5847_v48  ;;  %v802_v19 = vpop.f32.mrb[10].mxu0  ;;  %v5285_v13 = vld [vmem:[%s6858_s9 + $0x284] ss:$8 sps:$4 sm:$0xff]  }
  0xff   : > { %v1490_v34 = vpack.c.bf16 %v1430_v29, %v1428_v28  ;;  %v1284_v35 = vpop.f32.mrb[8].mxu1  ;;  %3658 = vmatpush1.bf16.msra.mxu0 %v5255_v22  ;;  %v945_v22 = vmax.f32 %v799_v12, 0.0  ;;  %v803_v23 = vadd.f32 %v802_v19, %v5843_v47  ;;  %v804_v24 = vpop.f32.mrb[11].mxu0 }
 0x100   : > { %v1285_v39 = vadd.f32 %v1284_v35, %v5843_v47  ;;  %v1286_v40 = vpop.f32.mrb[9].mxu1  ;;  %3659 = vmatprep.subr.bf16.mxu0 %v5261_v26  ;;  %v946_v27 = vmax.f32 %v801_v18, 0.0  ;;  %v805_v28 = vadd.f32 %v804_v24, %v5847_v48 }
 0x101   : > { %v1287_v50 = vadd.f32 %v1286_v40, %v5847_v48  ;;  %v1288_v51 = vpop.f32.mrb[10].mxu1  ;;  %3504 = vmatprep.mubr.bf16.mxu0 %v1490_v34  ;;  %v947_v33 = vmax.f32 %v803_v23, 0.0  ;;  %v5283_v23 = vld [vmem:[%s6858_s9 + $0x280] ss:$8 sps:$4 sm:$0xff]  }
 0x102   : > { %v1289_v55 = vadd.f32 %v1288_v51, %v5843_v47  ;;  %v1290_v56 = vpop.f32.mrb[11].mxu1  ;;  %3505 = vmatmul.mubr.bf16.gmra.mrb[68].mxu0 %v1489_v31  ;;  %v1431_v62 = vmax.f32 %v1285_v39, 0.0  ;;  %v5271_v31 = vld [vmem:[%s6858_s9 + $0x250] ss:$8 sps:$4 sm:$0xff]   ;;  %v948_v37 = vmax.f32 %v805_v28, 0.0  ;;  %v5270_v28 = vld [vmem:[%s5714_s24] sm:$0xff]  }
 0x103   : > { %v1291_v59 = vadd.f32 %v1290_v56, %v5847_v48  ;;  %3660 = vmatpush1.bf16.msra.mxu0 %v5259_v36  ;;  %v1432_v3 = vmax.f32 %v1287_v50, 0.0  ;;  %v5277_v36 = vld [vmem:[%s6858_s9 + $0x264] ss:$8 sps:$4 sm:$0xff]   ;;  %v5934_v40 = vpack.c.bf16 %v947_v33, %v945_v22  ;;  %v808_v45 = vpop.f32.mrb[12].mxu0  ;;  %v5275_v51 = vld [vmem:[%s6858_s9 + $0x260] ss:$8 sps:$4 sm:$0xff]  }
 0x104   : > { %v1433_v63 = vmax.f32 %v1289_v55, 0.0  ;;  %4613 = vmatmul.mubr.msk.bf16.gmra.mrb[116].mxu1 %vm1175_vm1, %v5258_v41  ;;  %3661 = vmatprep.subr.bf16.mxu0 %v5265_v43  ;;  %v5936_v43 = vpack.c.bf16 %v948_v37, %v946_v27  ;;  %v809_v52 = vadd.f32 %v808_v45, %v5843_v47  ;;  %v810_v53 = vpop.f32.mrb[13].mxu0  ;;  %v5266_v56 = vld [vmem:[%s5616_s26 + $0x78] sm:$0xff]  }
 0x105   : > { %v1434_v4 = vmax.f32 %v1291_v59, 0.0  ;;  %1887 = vmatprep.mubr.bf16.mxu1 %v5439_v2  ;;  %v811_v58 = vadd.f32 %v810_v53, %v5847_v48  ;;  %v812_v59 = vpop.f32.mrb[14].mxu0  ;;  %v5287_v53 = vld [vmem:[%s6858_s9 + $0x290] ss:$8 sps:$4 sm:$0xff]  }
 0x106   : > { %v1491_v6 = vpack.c.bf16 %v1433_v63, %v1431_v62  ;;  %v949_v62 = vmax.f32 %v809_v52, 0.0  ;;  %v813_v63 = vadd.f32 %v812_v59, %v5843_v47 }
 0x107   : > { %v1492_v9 = vpack.c.bf16 %v1434_v4, %v1432_v3  ;;  %v1294_v10 = vpop.f32.mrb[12].mxu1  ;;  %3662 = vmatpush1.bf16.msra.mxu0 %v5263_v60  ;;  %v950_v4 = vmax.f32 %v811_v58, 0.0 }
 0x108   : > { %v1295_v14 = vadd.f32 %v1294_v10, %v5843_v47  ;;  %v1296_v15 = vpop.f32.mrb[13].mxu1  ;;  %3663 = vmatprep.subr.bf16.mxu0 %v5269_v0  ;;  %v814_v0 = vpop.f32.mrb[15].mxu0  ;;  %v951_v10 = vmax.f32 %v813_v63, 0.0 }
 0x109   : > { %v1297_v20 = vadd.f32 %v1296_v15, %v5847_v48  ;;  %v1298_v21 = vpop.f32.mrb[14].mxu1  ;;  %3514 = vmatprep.mubr.bf16.mxu0 %v1492_v9  ;;  %v5279_v9 = vld [vmem:[%s6858_s9 + $0x270] ss:$8 sps:$4 sm:$0xff]  }
 0x10a   : > { %v1299_v25 = vadd.f32 %v1298_v21, %v5843_v47  ;;  %v1300_v26 = vpop.f32.mrb[15].mxu1  ;;  %3515 = vmatmul.mubr.bf16.gmra.mrb[72].mxu0 %v1491_v6  ;;  %v1435_v34 = vmax.f32 %v1295_v14, 0.0  ;;  %v815_v6 = vadd.f32 %v814_v0, %v5847_v48  ;;  %v5315_v0 = vld [vmem:[%s6858_s9 + $0x24] ss:$8 sps:$4 sm:$0xff]  }
 0x10b   : > { %v1301_v29 = vadd.f32 %v1300_v26, %v5847_v48  ;;  %3664 = vmatpush1.bf16.msra.mxu0 %v5267_v11  ;;  %v1436_v38 = vmax.f32 %v1297_v20, 0.0  ;;  %v818_v20 = vpop.f32.mrb[16].mxu0 }
 0x10c   : > { %v1437_v35 = vmax.f32 %v1299_v25, 0.0  ;;  %4614 = vmatmul.mubr.msk.bf16.gmra.mrb[120].mxu1 %vm1175_vm1, %v5262_v16  ;;  %3665 = vmatprep.subr.bf16.mxu0 %v5273_v17  ;;  %v952_v14 = vmax.f32 %v815_v6, 0.0  ;;  %v5961_v17 = vpack.c.bf16 %v951_v10, %v949_v62  ;;  %v819_v24 = vadd.f32 %v818_v20, %v5843_v47  ;;  %v820_v25 = vpop.f32.mrb[17].mxu0 }
 0x10d   : > { %v1438_v39 = vmax.f32 %v1301_v29, 0.0  ;;  %1897 = vmatprep.mubr.bf16.mxu1 %v5439_v2  ;;  %v5289_v29 = vld [vmem:[%s6858_s9 + $0x294] ss:$8 sps:$4 sm:$0xff]   ;;  %v822_v33 = vpop.f32.mrb[18].mxu0 }
 0x10e   : > { %v1493_v41 = vpack.c.bf16 %v1437_v35, %v1435_v34  ;;  %v5963_v19 = vpack.c.bf16 %v952_v14, %v950_v4  ;;  %v953_v37 = vmax.f32 %v819_v24, 0.0  ;;  %v5297_v14 = vld [vmem:[%s6858_s9 + $0x2b4] ss:$8 sps:$4 sm:$0xff]  }
 0x10f   : > { %v1494_v49 = vpack.c.bf16 %v1438_v39, %v1436_v38  ;;  %v1304_v50 = vpop.f32.mrb[16].mxu1  ;;  %3666 = vmatpush1.bf16.msra.mxu0 %v5271_v31  ;;  %v821_v31 = vadd.f32 %v820_v25, %v5847_v48  ;;  %v823_v38 = vadd.f32 %v822_v33, %v5843_v47  ;;  %v824_v39 = vpop.f32.mrb[19].mxu0  ;;  %v5295_v33 = vld [vmem:[%s6858_s9 + $0x2b0] ss:$8 sps:$4 sm:$0xff]  }
 0x110   : > { %v1305_v54 = vadd.f32 %v1304_v50, %v5843_v47  ;;  %v1306_v55 = vpop.f32.mrb[17].mxu1  ;;  %3667 = vmatprep.subr.bf16.mxu0 %v5277_v36  ;;  %v5303_v36 = vld [vmem:[%s6858_s9] ss:$8 sps:$4 sm:$0xff]  }
 0x111   : > { %v1307_v60 = vadd.f32 %v1306_v55, %v5847_v48  ;;  %v1308_v61 = vpop.f32.mrb[18].mxu1  ;;  %3524 = vmatprep.mubr.bf16.mxu0 %v1494_v49  ;;  %v5308_v49 = vld [vmem:[%s6858_s9 + $0x14] ss:$8 sps:$4 sm:$0xff]   ;;  %v954_v50 = vmax.f32 %v821_v31, 0.0 }
 0x112   : > { %v1309_v1 = vadd.f32 %v1308_v61, %v5843_v47  ;;  %v1310_v3 = vpop.f32.mrb[19].mxu1  ;;  %3525 = vmatmul.mubr.bf16.gmra.mrb[76].mxu0 %v1493_v41  ;;  %v1439_v11 = vmax.f32 %v1305_v54, 0.0  ;;  %v955_v54 = vmax.f32 %v823_v38, 0.0  ;;  %v5306_v61 = vld [vmem:[%s6858_s9 + $0x10] ss:$8 sps:$4 sm:$0xff]  }
 0x113   : > { %v1311_v8 = vadd.f32 %v1310_v3, %v5847_v48  ;;  %3668 = vmatpush1.bf16.msra.mxu0 %v5275_v51  ;;  %v1440_v15 = vmax.f32 %v1307_v60, 0.0  ;;  %v825_v51 = vadd.f32 %v824_v39, %v5847_v48  ;;  %v828_v3 = vpop.f32.mrb[20].mxu0 }
 0x114   : > { %v1441_v12 = vmax.f32 %v1309_v1, 0.0  ;;  %4615 = vmatmul.mubr.msk.bf16.gmra.mrb[124].mxu1 %vm1175_vm1, %v5266_v56  ;;  %3669 = vmatprep.subr.bf16.mxu0 %v5281_v57  ;;  %v5293_v57 = vld [vmem:[%s6858_s9 + $0x2a4] ss:$8 sps:$4 sm:$0xff]   ;;  %v5997_v62 = vpack.c.bf16 %v955_v54, %v953_v37  ;;  %v830_v10 = vpop.f32.mrb[21].mxu0 }
 0x115   : > { %v1442_v16 = vmax.f32 %v1311_v8, 0.0  ;;  %2232 = vmatprep.mubr.bf16.mxu1 %v5439_v2  ;;  %v956_v58 = vmax.f32 %v825_v51, 0.0  ;;  %v5291_v8 = vld [vmem:[%s6858_s9 + $0x2a0] ss:$8 sps:$4 sm:$0xff]   ;;  %v5301_v37 = vld [vmem:[%s6858_s9 + $0x2c4] ss:$8 sps:$4 sm:$0xff]  }
 0x116   : > { %v1495_v18 = vpack.c.bf16 %v1441_v12, %v1439_v11  ;;  %v5325_v51 = vld [vmem:[%s6858_s9 + $0x44] ss:$8 sps:$4 sm:$0xff]  }
 0x117   : > { %v1496_v21 = vpack.c.bf16 %v1442_v16, %v1440_v15  ;;  %v1314_v22 = vpop.f32.mrb[20].mxu1  ;;  %3670 = vmatpush1.bf16.msra.mxu0 %v5279_v9  ;;  %v6002_v1 = vpack.c.bf16 %v956_v58, %v954_v50  ;;  %v829_v9 = vadd.f32 %v828_v3, %v5843_v47  ;;  %v831_v15 = vadd.f32 %v830_v10, %v5847_v48  ;;  %v832_v16 = vpop.f32.mrb[22].mxu0 }
 0x118   : > { %v1315_v26 = vadd.f32 %v1314_v22, %v5843_v47  ;;  %v1316_v27 = vpop.f32.mrb[21].mxu1  ;;  %3671 = vmatprep.subr.bf16.mxu0 %v5285_v13  ;;  %v5274_v13 = vld [vmem:[%s5714_s24 + $0x8] sm:$0xff]   ;;  %v834_v24 = vpop.f32.mrb[23].mxu0 }
 0x119   : > { %v1317_v34 = vadd.f32 %v1316_v27, %v5847_v48  ;;  %v1318_v35 = vpop.f32.mrb[22].mxu1  ;;  %3534 = vmatprep.mubr.bf16.mxu0 %v1496_v21  ;;  %v5313_v21 = vld [vmem:[%s6858_s9 + $0x20] ss:$8 sps:$4 sm:$0xff]   ;;  %v957_v22 = vmax.f32 %v829_v9, 0.0  ;;  %v5318_v27 = vld [vmem:[%s6858_s9 + $0x34] ss:$8 sps:$4 sm:$0xff]  }
 0x11a   : > { %v1319_v41 = vadd.f32 %v1318_v35, %v5843_v47  ;;  %v1320_v45 = vpop.f32.mrb[23].mxu1  ;;  %3535 = vmatmul.mubr.bf16.gmra.mrb[80].mxu0 %v1495_v18  ;;  %v1443_v55 = vmax.f32 %v1315_v26, 0.0 }
 0x11b   : > { %v1321_v52 = vadd.f32 %v1320_v45, %v5847_v48  ;;  %3672 = vmatpush1.bf16.msra.mxu0 %v5283_v23  ;;  %v1444_v59 = vmax.f32 %v1317_v34, 0.0  ;;  %v833_v23 = vadd.f32 %v832_v16, %v5843_v47  ;;  %v5316_v45 = vld [vmem:[%s6858_s9 + $0x30] ss:$8 sps:$4 sm:$0xff]  }
 0x11c   : > { %v1445_v56 = vmax.f32 %v1319_v41, 0.0  ;;  %4639 = vmatmul.mubr.msk.bf16.vlgmr.msra.gmra.mrb[128].mxu1 %vm1175_vm1, %v5270_v28  ;;  %3673 = vmatprep.subr.bf16.mxu0 %v5289_v29  ;;  %v958_v28 = vmax.f32 %v831_v15, 0.0  ;;  %v835_v29 = vadd.f32 %v834_v24, %v5847_v48  ;;  %v5321_v24 = vld [vmem:[%s6858_s9 + $0x2e4] ss:$8 sps:$4 sm:$0xff]  }
 0x11d   : > { %v1446_v60 = vmax.f32 %v1321_v52, 0.0  ;;  %2242 = vmatprep.mubr.bf16.mxu1 %v5439_v2  ;;  %3270 = vmatpush1.bf16.msra.mxu1 %v5303_v36  ;;  %v959_v34 = vmax.f32 %v833_v23, 0.0 }
 0x11e   : > { %v1497_v63 = vpack.c.bf16 %v1445_v56, %v1443_v55  ;;  %3271 = vmatprep.subr.bf16.mxu1 %v5308_v49  ;;  %v960_v38 = vmax.f32 %v835_v29, 0.0  ;;  %v5299_v56 = vld [vmem:[%s6858_s9 + $0x2c0] ss:$8 sps:$4 sm:$0xff]  }
 0x11f   : > { %v1498_v4 = vpack.c.bf16 %v1446_v60, %v1444_v59  ;;  %v1324_v6 = vpop.f32.mrb[24].mxu1  ;;  %3674 = vmatpush1.bf16.msra.mxu0 %v5287_v53  ;;  %v6036_v49 = vpack.c.bf16 %v959_v34, %v957_v22  ;;  %v838_v53 = vpop.f32.mrb[24].mxu0 }
 0x120   : > { %v1325_v11 = vadd.f32 %v1324_v6, %v5843_v47  ;;  %v1326_v12 = vpop.f32.mrb[25].mxu1  ;;  %3675 = vmatprep.subr.bf16.mxu0 %v5293_v57  ;;  %v6041_v52 = vpack.c.bf16 %v960_v38, %v958_v28  ;;  %v839_v57 = vadd.f32 %v838_v53, %v5843_v47  ;;  %v840_v58 = vpop.f32.mrb[25].mxu0  ;;  %v5326_v28 = vld [vmem:[%s6858_s9 + $0x50] ss:$8 sps:$4 sm:$0xff]   ;;  %v5319_v38 = vld [vmem:[%s6858_s9 + $0x2e0] ss:$8 sps:$4 sm:$0xff]  }
 0x121   : > { %v1327_v18 = vadd.f32 %v1326_v12, %v5847_v48  ;;  %v1328_v20 = vpop.f32.mrb[26].mxu1  ;;  %3544 = vmatprep.mubr.bf16.mxu0 %v1498_v4  ;;  %3272 = vmatpush1.bf16.msra.mxu1 %v5306_v61  ;;  %v5278_v61 = vld [vmem:[%s5714_s24 + $0x10] sm:$0xff]   ;;  %v842_v3 = vpop.f32.mrb[26].mxu0 }
 0x122   : > { %v1329_v25 = vadd.f32 %v1328_v20, %v5843_v47  ;;  %v1330_v26 = vpop.f32.mrb[27].mxu1  ;;  %3545 = vmatmul.mubr.bf16.gmra.mrb[84].mxu0 %v1497_v63  ;;  %3273 = vmatprep.subr.bf16.mxu1 %v5315_v0  ;;  %v1447_v35 = vmax.f32 %v1325_v11, 0.0  ;;  %v5311_v63 = vld [vmem:[%s6858_s9 + $0x2d4] ss:$8 sps:$4 sm:$0xff]   ;;  %v841_v0 = vadd.f32 %v840_v58, %v5847_v48  ;;  %v961_v9 = vmax.f32 %v839_v57, 0.0  ;;  %v844_v11 = vpop.f32.mrb[27].mxu0 }
 0x123   : > { %v1331_v31 = vadd.f32 %v1330_v26, %v5847_v48  ;;  %3676 = vmatpush1.bf16.msra.mxu0 %v5291_v8  ;;  %v1448_v39 = vmax.f32 %v1327_v18, 0.0  ;;  %v5323_v8 = vld [vmem:[%s6858_s9 + $0x40] ss:$8 sps:$4 sm:$0xff]   ;;  %v843_v10 = vadd.f32 %v842_v3, %v5843_v47  ;;  %v845_v16 = vadd.f32 %v844_v11, %v5847_v48  ;;  %v5309_v20 = vld [vmem:[%s6858_s9 + $0x2d0] ss:$8 sps:$4 sm:$0xff]  }
 0x124   : > { %v1449_v36 = vmax.f32 %v1329_v25, 0.0  ;;  %4640 = vmatmul.mubr.msk.bf16.gmra.mrb[132].mxu1 %vm1175_vm1, %v5274_v13  ;;  %3677 = vmatprep.subr.bf16.mxu0 %v5297_v14  ;;  %v5328_v14 = vld [vmem:[%s6858_s9 + $0x54] ss:$8 sps:$4 sm:$0xff]   ;;  %v962_v15 = vmax.f32 %v841_v0, 0.0  ;;  %v5333_v58 = vld [vmem:[%s6858_s9 + $0x60] ss:$8 sps:$4 sm:$0xff]  }
 0x125   : > { %v1450_v41 = vmax.f32 %v1331_v31, 0.0  ;;  %2252 = vmatprep.mubr.bf16.mxu1 %v5439_v2  ;;  %3274 = vmatpush1.bf16.msra.mxu1 %v5313_v21  ;;  %v963_v21 = vmax.f32 %v843_v10, 0.0  ;;  %v964_v25 = vmax.f32 %v845_v16, 0.0  ;;  %v5331_v53 = vld [vmem:[%s6858_s9 + $0x2f4] ss:$8 sps:$4 sm:$0xff]  }
 0x126   : > { %v1499_v50 = vpack.c.bf16 %v1449_v36, %v1447_v35  ;;  %3275 = vmatprep.subr.bf16.mxu1 %v5318_v27  ;;  %v848_v35 = vpop.f32.mrb[28].mxu0  ;;  %v5338_v3 = vld [vmem:[%s6858_s9 + $0x74] ss:$8 sps:$4 sm:$0xff]  }
 0x127   : > { %v1500_v54 = vpack.c.bf16 %v1450_v41, %v1448_v39  ;;  %v1334_v55 = vpop.f32.mrb[28].mxu1  ;;  %3678 = vmatpush1.bf16.msra.mxu0 %v5295_v33  ;;  %v6075_v29 = vpack.c.bf16 %v963_v21, %v961_v9  ;;  %v5335_v33 = vld [vmem:[%s6858_s9 + $0x64] ss:$8 sps:$4 sm:$0xff]   ;;  %v6080_v34 = vpack.c.bf16 %v964_v25, %v962_v15  ;;  %v849_v39 = vadd.f32 %v848_v35, %v5843_v47  ;;  %v850_v41 = vpop.f32.mrb[29].mxu0  ;;  %v5329_v9 = vld [vmem:[%s6858_s9 + $0x2f0] ss:$8 sps:$4 sm:$0xff]  }
 0x128   : > { %v1335_v59 = vadd.f32 %v1334_v55, %v5843_v47  ;;  %v1336_v60 = vpop.f32.mrb[29].mxu1  ;;  %3679 = vmatprep.subr.bf16.mxu0 %v5301_v37  ;;  %v852_v55 = vpop.f32.mrb[30].mxu0  ;;  %v5286_v35 = vld [vmem:[%s5714_s24 + $0x20] sm:$0xff]  }
 0x129   : > { %v1337_v4 = vadd.f32 %v1336_v60, %v5847_v48  ;;  %v1338_v6 = vpop.f32.mrb[30].mxu1  ;;  %3554 = vmatprep.mubr.bf16.mxu0 %v1500_v54  ;;  %3276 = vmatpush1.bf16.msra.mxu1 %v5316_v45  ;;  %v851_v54 = vadd.f32 %v850_v41, %v5847_v48  ;;  %v853_v60 = vadd.f32 %v852_v55, %v5843_v47  ;;  %v5343_v41 = vld [vmem:[%s6858_s9 + $0x80] ss:$8 sps:$4 sm:$0xff]   ;;  %v5348_v55 = vld [vmem:[%s6858_s9 + $0x94] ss:$8 sps:$4 sm:$0xff]  }
 0x12a   : > { %v1339_v12 = vadd.f32 %v1338_v6, %v5843_v47  ;;  %v1340_v13 = vpop.f32.mrb[31].mxu1  ;;  %3555 = vmatmul.mubr.bf16.gmra.mrb[88].mxu0 %v1499_v50  ;;  %3277 = vmatprep.subr.bf16.mxu1 %v5325_v51  ;;  %v1451_v22 = vmax.f32 %v1335_v59, 0.0  ;;  %v5282_v51 = vld [vmem:[%s5714_s24 + $0x18] sm:$0xff]   ;;  %v965_v59 = vmax.f32 %v849_v39, 0.0 }
 0x12b   : > { %v1341_v18 = vadd.f32 %v1340_v13, %v5847_v48  ;;  %3680 = vmatpush1.bf16.msra.mxu0 %v5299_v56  ;;  %v1452_v26 = vmax.f32 %v1337_v4, 0.0  ;;  %v966_v4 = vmax.f32 %v851_v54, 0.0  ;;  %v967_v10 = vmax.f32 %v853_v60, 0.0  ;;  %v5341_v13 = vld [vmem:[%s6858_s9 + $0x304] ss:$8 sps:$4 sm:$0xff]  }
 0x12c   : > { %v1453_v23 = vmax.f32 %v1339_v12, 0.0  ;;  %4641 = vmatmul.mubr.msk.bf16.gmra.mrb[136].mxu1 %vm1175_vm1, %v5278_v61  ;;  %3681 = vmatprep.subr.bf16.mxu0 %v5311_v63  ;;  %v854_v61 = vpop.f32.mrb[31].mxu0 }
 0x12d   : > { %v1454_v27 = vmax.f32 %v1341_v18, 0.0  ;;  %2262 = vmatprep.mubr.bf16.mxu1 %v5439_v2  ;;  %3278 = vmatpush1.bf16.msra.mxu1 %v5323_v8  ;;  %v855_v6 = vadd.f32 %v854_v61, %v5847_v48  ;;  %v5336_v18 = vld [vmem:[%s6858_s9 + $0x70] ss:$8 sps:$4 sm:$0xff]  }
 0x12e   : > { %v1501_v31 = vpack.c.bf16 %v1453_v23, %v1451_v22  ;;  %3279 = vmatprep.subr.bf16.mxu1 %v5328_v14  ;;  %v5345_v22 = vld [vmem:[%s6858_s9 + $0x84] ss:$8 sps:$4 sm:$0xff]  }
 0x12f   : > { %v1502_v36 = vpack.c.bf16 %v1454_v27, %v1452_v26  ;;  %v1344_v37 = vpop.f32.mrb[32].mxu1  ;;  %3682 = vmatpush1.bf16.msra.mxu0 %v5309_v20  ;;  %v968_v14 = vmax.f32 %v855_v6, 0.0  ;;  %v6114_v20 = vpack.c.bf16 %v967_v10, %v965_v59 }
 0x130   : > { %v1345_v45 = vadd.f32 %v1344_v37, %v5843_v47  ;;  %v1346_v50 = vpop.f32.mrb[33].mxu1  ;;  %3683 = vmatprep.subr.bf16.mxu0 %v5321_v24  ;;  %v858_v24 = vpop.f32.mrb[32].mxu0 }
 0x131   : > { %v1347_v56 = vadd.f32 %v1346_v50, %v5847_v48  ;;  %v1348_v57 = vpop.f32.mrb[34].mxu1  ;;  %3564 = vmatprep.mubr.bf16.mxu0 %v1502_v36  ;;  %3280 = vmatpush1.bf16.msra.mxu1 %v5326_v28  ;;  %v6119_v23 = vpack.c.bf16 %v968_v14, %v966_v4  ;;  %v859_v27 = vadd.f32 %v858_v24, %v5843_v47  ;;  %v860_v28 = vpop.f32.mrb[33].mxu0  ;;  %v5346_v4 = vld [vmem:[%s6858_s9 + $0x90] ss:$8 sps:$4 sm:$0xff]  }
 0x132   : > { %v1349_v63 = vadd.f32 %v1348_v57, %v5843_v47  ;;  %v1350_v0 = vpop.f32.mrb[35].mxu1  ;;  %3565 = vmatmul.mubr.bf16.gmra.mrb[92].mxu0 %v1501_v31  ;;  %3281 = vmatprep.subr.bf16.mxu1 %v5335_v33  ;;  %v1455_v11 = vmax.f32 %v1345_v45, 0.0  ;;  %v861_v36 = vadd.f32 %v860_v28, %v5847_v48  ;;  %v862_v37 = vpop.f32.mrb[34].mxu0 }
 0x133   : > { %v1351_v8 = vadd.f32 %v1350_v0, %v5847_v48  ;;  %3684 = vmatpush1.bf16.msra.mxu0 %v5319_v38  ;;  %v1456_v15 = vmax.f32 %v1347_v56, 0.0  ;;  %v969_v45 = vmax.f32 %v859_v27, 0.0  ;;  %v863_v50 = vadd.f32 %v862_v37, %v5843_v47  ;;  %v5353_v27 = vld [vmem:[%s6858_s9 + $0xa0] ss:$8 sps:$4 sm:$0xff]   ;;  %v5358_v37 = vld [vmem:[%s6858_s9 + $0xb4] ss:$8 sps:$4 sm:$0xff]  }
 0x134   : > { %v1457_v12 = vmax.f32 %v1349_v63, 0.0  ;;  %4642 = vmatmul.mubr.msk.bf16.gmra.mrb[140].mxu1 %vm1175_vm1, %v5282_v51  ;;  %3685 = vmatprep.subr.bf16.mxu0 %v5331_v53  ;;  %v864_v51 = vpop.f32.mrb[35].mxu0  ;;  %v970_v56 = vmax.f32 %v861_v36, 0.0 }
 0x135   : > { %v1458_v16 = vmax.f32 %v1351_v8, 0.0  ;;  %2272 = vmatprep.mubr.bf16.mxu1 %v5439_v2  ;;  %3282 = vmatpush1.bf16.msra.mxu1 %v5333_v58  ;;  %v865_v57 = vadd.f32 %v864_v51, %v5847_v48  ;;  %v971_v59 = vmax.f32 %v863_v50, 0.0 }
 0x136   : > { %v1503_v21 = vpack.c.bf16 %v1457_v12, %v1455_v11  ;;  %3283 = vmatprep.subr.bf16.mxu1 %v5338_v3  ;;  %v868_v11 = vpop.f32.mrb[36].mxu0 }
 0x137   : > { %v1504_v25 = vpack.c.bf16 %v1458_v16, %v1456_v15  ;;  %v1354_v26 = vpop.f32.mrb[36].mxu1  ;;  %3686 = vmatpush1.bf16.msra.mxu0 %v5329_v9  ;;  %v972_v63 = vmax.f32 %v865_v57, 0.0  ;;  %v6141_v6 = vpack.c.bf16 %v971_v59, %v969_v45  ;;  %v5355_v9 = vld [vmem:[%s6858_s9 + $0xa4] ss:$8 sps:$4 sm:$0xff]   ;;  %v869_v14 = vadd.f32 %v868_v11, %v5843_v47  ;;  %v870_v15 = vpop.f32.mrb[37].mxu0  ;;  %v5294_v11 = vld [vmem:[%s5714_s24 + $0x30] sm:$0xff]  }
 0x138   : > { %v1355_v31 = vadd.f32 %v1354_v26, %v5843_v47  ;;  %v1356_v33 = vpop.f32.mrb[37].mxu1  ;;  %3848 = vmatprep.subr.bf16.mxu0 %v5341_v13  ;;  %v872_v24 = vpop.f32.mrb[38].mxu0  ;;  %v5365_v59 = vld [vmem:[%s6858_s9 + $0xc4] ss:$8 sps:$4 sm:$0xff]  }
 0x139   : > { %v1357_v38 = vadd.f32 %v1356_v33, %v5847_v48  ;;  %v1358_v39 = vpop.f32.mrb[38].mxu1  ;;  %3574 = vmatprep.mubr.bf16.mxu0 %v1504_v25  ;;  %3284 = vmatpush1.bf16.msra.mxu1 %v5336_v18  ;;  %v6146_v10 = vpack.c.bf16 %v972_v63, %v970_v56  ;;  %v973_v28 = vmax.f32 %v869_v14, 0.0  ;;  %v874_v33 = vpop.f32.mrb[39].mxu0  ;;  %v5356_v56 = vld [vmem:[%s6858_s9 + $0xb0] ss:$8 sps:$4 sm:$0xff]  }
 0x13a   : > { %v1359_v53 = vadd.f32 %v1358_v39, %v5843_v47  ;;  %v1360_v54 = vpop.f32.mrb[39].mxu1  ;;  %3575 = vmatmul.mubr.bf16.gmra.mrb[96].mxu0 %v1503_v21  ;;  %3285 = vmatprep.subr.bf16.mxu1 %v5345_v22  ;;  %v1459_v60 = vmax.f32 %v1355_v31, 0.0  ;;  %v5290_v21 = vld [vmem:[%s5714_s24 + $0x28] sm:$0xff]   ;;  %v871_v22 = vadd.f32 %v870_v15, %v5847_v48  ;;  %v873_v31 = vadd.f32 %v872_v24, %v5843_v47 }
 0x13b   : > { %v1361_v58 = vadd.f32 %v1360_v54, %v5847_v48  ;;  %v1460_v0 = vmax.f32 %v1357_v38, 0.0  ;;  %v875_v39 = vadd.f32 %v874_v33, %v5847_v48 }
 0x13c   : > { %v1461_v61 = vmax.f32 %v1359_v53, 0.0  ;;  %4643 = vmatmul.mubr.msk.bf16.gmra.mrb[144].mxu1 %vm1175_vm1, %v5286_v35  ;;  %v974_v38 = vmax.f32 %v871_v22, 0.0  ;;  %v975_v45 = vmax.f32 %v873_v31, 0.0 }
 0x13d   : > { %v1462_v3 = vmax.f32 %v1361_v58, 0.0  ;;  %2282 = vmatprep.mubr.bf16.mxu1 %v5439_v2  ;;  %3286 = vmatpush1.bf16.msra.mxu1 %v5343_v41  ;;  %v976_v53 = vmax.f32 %v875_v39, 0.0 }
 0x13e   : > { %v1505_v8 = vpack.c.bf16 %v1461_v61, %v1459_v60  ;;  %3287 = vmatprep.subr.bf16.mxu1 %v5348_v55  ;;  %v6168_v57 = vpack.c.bf16 %v975_v45, %v973_v28  ;;  %v878_v61 = vpop.f32.mrb[40].mxu0 }
 0x13f   : > { %v1506_v12 = vpack.c.bf16 %v1462_v3, %v1460_v0  ;;  %v1364_v13 = vpop.f32.mrb[40].mxu1  ;;  %v6173_v60 = vpack.c.bf16 %v976_v53, %v974_v38  ;;  %v879_v3 = vadd.f32 %v878_v61, %v5843_v47 }
 0x140   : > { %v1365_v16 = vadd.f32 %v1364_v13, %v5843_v47  ;;  %v1366_v18 = vpop.f32.mrb[41].mxu1 }
 0x141   : > { %v1367_v25 = vadd.f32 %v1366_v18, %v5847_v48  ;;  %v1368_v26 = vpop.f32.mrb[42].mxu1  ;;  %3584 = vmatprep.mubr.bf16.mxu0 %v1506_v12  ;;  %3288 = vmatpush1.bf16.msra.mxu1 %v5346_v4  ;;  %v880_v4 = vpop.f32.mrb[41].mxu0  ;;  %v977_v18 = vmax.f32 %v879_v3, 0.0 }
 0x142   : > { %v1369_v35 = vadd.f32 %v1368_v26, %v5843_v47  ;;  %v1370_v36 = vpop.f32.mrb[43].mxu1  ;;  %3585 = vmatmul.mubr.bf16.gmra.mrb[100].mxu0 %v1505_v8  ;;  %3289 = vmatprep.subr.bf16.mxu1 %v5355_v9  ;;  %v1463_v50 = vmax.f32 %v1365_v16, 0.0  ;;  %v881_v12 = vadd.f32 %v880_v4, %v5847_v48  ;;  %v882_v13 = vpop.f32.mrb[42].mxu0  ;;  %v5363_v16 = vld [vmem:[%s6858_s9 + $0xc0] ss:$8 sps:$4 sm:$0xff]  }
 0x143   : > { %v1371_v41 = vadd.f32 %v1370_v36, %v5847_v48  ;;  %v1464_v54 = vmax.f32 %v1367_v25, 0.0  ;;  %v884_v22 = vpop.f32.mrb[43].mxu0  ;;  %v5368_v26 = vld [vmem:[%s6858_s9 + $0xd4] ss:$8 sps:$4 sm:$0xff]  }
 0x144   : > { %v1465_v51 = vmax.f32 %v1369_v35, 0.0  ;;  %4644 = vmatmul.mubr.msk.bf16.gmra.mrb[148].mxu1 %vm1175_vm1, %v5290_v21  ;;  %v883_v21 = vadd.f32 %v882_v13, %v5843_v47  ;;  %v885_v28 = vadd.f32 %v884_v22, %v5847_v48 }
 0x145   : > { %v1466_v55 = vmax.f32 %v1371_v41, 0.0  ;;  %2292 = vmatprep.mubr.bf16.mxu1 %v5439_v2  ;;  %3290 = vmatpush1.bf16.msra.mxu1 %v5353_v27  ;;  %v978_v27 = vmax.f32 %v881_v12, 0.0  ;;  %v5366_v41 = vld [vmem:[%s6858_s9 + $0xd0] ss:$8 sps:$4 sm:$0xff]  }
 0x146   : > { %v1507_v58 = vpack.c.bf16 %v1465_v51, %v1463_v50  ;;  %3291 = vmatprep.subr.bf16.mxu1 %v5358_v37  ;;  %v979_v33 = vmax.f32 %v883_v21, 0.0  ;;  %v980_v37 = vmax.f32 %v885_v28, 0.0  ;;  %v5375_v51 = vld [vmem:[%s6858_s9 + $0xe4] ss:$8 sps:$4 sm:$0xff]  }
 0x147   : > { %v1508_v63 = vpack.c.bf16 %v1466_v55, %v1464_v54  ;;  %v1374_v0 = vpop.f32.mrb[44].mxu1  ;;  %v888_v54 = vpop.f32.mrb[44].mxu0 }
 0x148   : > { %v1375_v8 = vadd.f32 %v1374_v0, %v5843_v47  ;;  %v1376_v9 = vpop.f32.mrb[45].mxu1  ;;  %v6195_v45 = vpack.c.bf16 %v979_v33, %v977_v18  ;;  %v6200_v53 = vpack.c.bf16 %v980_v37, %v978_v27  ;;  %v5298_v0 = vld [vmem:[%s5714_s24 + $0x38] sm:$0xff]  }
 0x149   : > { %v1377_v14 = vadd.f32 %v1376_v9, %v5847_v48  ;;  %v1378_v15 = vpop.f32.mrb[46].mxu1  ;;  %3594 = vmatprep.mubr.bf16.mxu0 %v1508_v63  ;;  %3292 = vmatpush1.bf16.msra.mxu1 %v5356_v56  ;;  %v5378_v18 = vld [vmem:[%s6858_s9 + $0xf4] ss:$8 sps:$4 sm:$0xff]  }
 0x14a   : > { %v1379_v24 = vadd.f32 %v1378_v15, %v5843_v47  ;;  %v1380_v25 = vpop.f32.mrb[47].mxu1  ;;  %3595 = vmatmul.mubr.bf16.gmra.mrb[104].mxu0 %v1507_v58  ;;  %3293 = vmatprep.subr.bf16.mxu1 %v5365_v59  ;;  %v1467_v35 = vmax.f32 %v1375_v8, 0.0  ;;  %v889_v58 = vadd.f32 %v888_v54, %v5843_v47  ;;  %v890_v59 = vpop.f32.mrb[45].mxu0 }
 0x14b   : > { %v1381_v31 = vadd.f32 %v1380_v25, %v5847_v48  ;;  %v1468_v38 = vmax.f32 %v1377_v14, 0.0  ;;  %v891_v3 = vadd.f32 %v890_v59, %v5847_v48  ;;  %v892_v4 = vpop.f32.mrb[46].mxu0 }
 0x14c   : > { %v1469_v36 = vmax.f32 %v1379_v24, 0.0  ;;  %4645 = vmatmul.mubr.msk.bf16.gmra.mrb[152].mxu1 %vm1175_vm1, %v5294_v11  ;;  %v5373_v11 = vld [vmem:[%s6858_s9 + $0xe0] ss:$8 sps:$4 sm:$0xff]   ;;  %v981_v12 = vmax.f32 %v889_v58, 0.0  ;;  %v893_v13 = vadd.f32 %v892_v4, %v5843_v47  ;;  %v894_v14 = vpop.f32.mrb[47].mxu0 }
 0x14d   : > { %v1470_v39 = vmax.f32 %v1381_v31, 0.0  ;;  %2302 = vmatprep.mubr.bf16.mxu1 %v5439_v2  ;;  %3294 = vmatpush1.bf16.msra.mxu1 %v5363_v16  ;;  %v982_v21 = vmax.f32 %v891_v3, 0.0  ;;  %v895_v22 = vadd.f32 %v894_v14, %v5847_v48  ;;  %v5302_v58 = vld [vmem:[%s5714_s24 + $0x40] sm:$0xff]  }
 0x14e   : > { %v1509_v50 = vpack.c.bf16 %v1469_v36, %v1467_v35  ;;  %3295 = vmatprep.subr.bf16.mxu1 %v5368_v26  ;;  %v983_v25 = vmax.f32 %v893_v13, 0.0  ;;  %v5376_v35 = vld [vmem:[%s6858_s9 + $0xf0] ss:$8 sps:$4 sm:$0xff]  }
 0x14f   : > { %v1510_v55 = vpack.c.bf16 %v1470_v39, %v1468_v38  ;;  %v1384_v56 = vpop.f32.mrb[48].mxu1  ;;  %v984_v28 = vmax.f32 %v895_v22, 0.0  ;;  %v898_v39 = vpop.f32.mrb[48].mxu0 }
 0x150   : > { %v1385_v61 = vadd.f32 %v1384_v56, %v5843_v47  ;;  %v1386_v63 = vpop.f32.mrb[49].mxu1  ;;  %v6222_v36 = vpack.c.bf16 %v983_v25, %v981_v12  ;;  %v900_v54 = vpop.f32.mrb[49].mxu0 }
 0x151   : > { %v1387_v8 = vadd.f32 %v1386_v63, %v5847_v48  ;;  %v1388_v9 = vpop.f32.mrb[50].mxu1  ;;  %3604 = vmatprep.mubr.bf16.mxu0 %v1510_v55  ;;  %3296 = vmatpush1.bf16.msra.mxu1 %v5366_v41  ;;  %v6224_v38 = vpack.c.bf16 %v984_v28, %v982_v21  ;;  %v901_v59 = vadd.f32 %v900_v54, %v5847_v48 }
 0x152   : > { %v1389_v15 = vadd.f32 %v1388_v9, %v5843_v47  ;;  %v1390_v16 = vpop.f32.mrb[51].mxu1  ;;  %3605 = vmatmul.mubr.bf16.gmra.mrb[108].mxu0 %v1509_v50  ;;  %3297 = vmatprep.subr.bf16.mxu1 %v5375_v51  ;;  %v1471_v26 = vmax.f32 %v1385_v61, 0.0  ;;  %v899_v51 = vadd.f32 %v898_v39, %v5843_v47  ;;  %v902_v61 = vpop.f32.mrb[50].mxu0 }
 0x153   : > { %v1391_v24 = vadd.f32 %v1390_v16, %v5847_v48  ;;  %v1472_v31 = vmax.f32 %v1387_v8, 0.0  ;;  %v903_v4 = vadd.f32 %v902_v61, %v5843_v47  ;;  %v904_v8 = vpop.f32.mrb[51].mxu0  ;;  %v986_v12 = vmax.f32 %v901_v59, 0.0 }
 0x154   : > { %v1473_v27 = vmax.f32 %v1389_v15, 0.0  ;;  %4646 = vmatmul.mubr.msk.bf16.gmra.mrb[156].mxu1 %vm1175_vm1, %v5298_v0  ;;  %v985_v3 = vmax.f32 %v899_v51, 0.0  ;;  %v905_v13 = vadd.f32 %v904_v8, %v5847_v48  ;;  %v908_v28 = vpop.f32.mrb[52].mxu0 }
 0x155   : > { %v1474_v33 = vmax.f32 %v1391_v24, 0.0  ;;  %2312 = vmatprep.mubr.bf16.mxu1 %v5439_v2  ;;  %3298 = vmatpush1.bf16.msra.mxu1 %v5373_v11  ;;  %v987_v15 = vmax.f32 %v903_v4, 0.0 }
 0x156   : > { %v1511_v37 = vpack.c.bf16 %v1473_v27, %v1471_v26  ;;  %3299 = vmatprep.subr.bf16.mxu1 %v5378_v18  ;;  %v988_v21 = vmax.f32 %v905_v13, 0.0 }
 0x157   : > { %v1512_v41 = vpack.c.bf16 %v1474_v33, %v1472_v31  ;;  %v1394_v50 = vpop.f32.mrb[52].mxu1  ;;  %v6237_v25 = vpack.c.bf16 %v987_v15, %v985_v3 }
 0x158   : > { %v1395_v55 = vadd.f32 %v1394_v50, %v5843_v47  ;;  %v1396_v56 = vpop.f32.mrb[53].mxu1  ;;  %v6239_v27 = vpack.c.bf16 %v988_v21, %v986_v12  ;;  %v5312_v50 = vld [vmem:[%s5714_s24 + $0x48] sm:$0xff]  }
 0x159   : > { %v1397_v63 = vadd.f32 %v1396_v56, %v5847_v48  ;;  %v1398_v0 = vpop.f32.mrb[54].mxu1  ;;  %3614 = vmatprep.mubr.bf16.mxu0 %v1512_v41  ;;  %3300 = vmatpush1.bf16.msra.mxu1 %v5376_v35  ;;  %v909_v35 = vadd.f32 %v908_v28, %v5843_v47 }
 0x15a   : > { %v1399_v9 = vadd.f32 %v1398_v0, %v5843_v47  ;;  %v1400_v11 = vpop.f32.mrb[55].mxu1  ;;  %3615 = vmatmul.mubr.bf16.gmra.mrb[112].mxu0 %v1511_v37  ;;  %v1475_v16 = vmax.f32 %v1395_v55, 0.0  ;;  %v910_v37 = vpop.f32.mrb[53].mxu0 }
 0x15b   : > { %v1401_v14 = vadd.f32 %v1400_v11, %v5847_v48  ;;  %v1476_v22 = vmax.f32 %v1397_v63, 0.0  ;;  %v911_v51 = vadd.f32 %v910_v37, %v5847_v48  ;;  %v912_v54 = vpop.f32.mrb[54].mxu0  ;;  %v5322_v37 = vld [vmem:[%s5714_s24 + $0x50] sm:$0xff]  }
 0x15c   : > { %v1477_v18 = vmax.f32 %v1399_v9, 0.0  ;;  %4647 = vmatmul.mubr.msk.bf16.gmra.mrb[160].mxu1 %vm1175_vm1, %v5302_v58  ;;  %v989_v58 = vmax.f32 %v909_v35, 0.0  ;;  %v913_v59 = vadd.f32 %v912_v54, %v5843_v47  ;;  %v914_v61 = vpop.f32.mrb[55].mxu0 }
 0x15d   : > { %v1478_v24 = vmax.f32 %v1401_v14, 0.0  ;;  %2322 = vmatprep.mubr.bf16.mxu1 %v5439_v2  ;;  %v990_v3 = vmax.f32 %v911_v51, 0.0  ;;  %v915_v4 = vadd.f32 %v914_v61, %v5847_v48 }
 0x15e   : > { %v1513_v26 = vpack.c.bf16 %v1477_v18, %v1475_v16  ;;  %v991_v9 = vmax.f32 %v913_v59, 0.0 }
 0x15f   : > { %v1514_v31 = vpack.c.bf16 %v1478_v24, %v1476_v22  ;;  %v1404_v33 = vpop.f32.mrb[56].mxu1  ;;  %v992_v13 = vmax.f32 %v915_v4, 0.0  ;;  %v918_v22 = vpop.f32.mrb[56].mxu0 }
 0x160   : > { %v1405_v39 = vadd.f32 %v1404_v33, %v5843_v47  ;;  %v1406_v41 = vpop.f32.mrb[57].mxu1  ;;  %v6252_v16 = vpack.c.bf16 %v991_v9, %v989_v58  ;;  %v919_v28 = vadd.f32 %v918_v22, %v5843_v47 }
 0x161   : > { %v1407_v55 = vadd.f32 %v1406_v41, %v5847_v48  ;;  %v1408_v56 = vpop.f32.mrb[58].mxu1  ;;  %3624 = vmatprep.mubr.bf16.mxu0 %v1514_v31  ;;  %v6254_v21 = vpack.c.bf16 %v992_v13, %v990_v3  ;;  %v920_v31 = vpop.f32.mrb[57].mxu0 }
 0x162   : > { %v1409_v63 = vadd.f32 %v1408_v56, %v5843_v47  ;;  %v1410_v0 = vpop.f32.mrb[59].mxu1  ;;  %3625 = vmatmul.mubr.bf16.gmra.mrb[116].mxu0 %v1513_v26  ;;  %v1479_v11 = vmax.f32 %v1405_v39, 0.0  ;;  %v921_v39 = vadd.f32 %v920_v31, %v5847_v48  ;;  %v922_v41 = vpop.f32.mrb[58].mxu0  ;;  %v993_v54 = vmax.f32 %v919_v28, 0.0 }
 0x163   : > { %v1411_v8 = vadd.f32 %v1410_v0, %v5847_v48  ;;  %v1480_v14 = vmax.f32 %v1407_v55, 0.0  ;;  %v923_v55 = vadd.f32 %v922_v41, %v5843_v47  ;;  %v924_v56 = vpop.f32.mrb[59].mxu0 }
 0x164   : > { %v1481_v12 = vmax.f32 %v1409_v63, 0.0  ;;  %4648 = vmatmul.mubr.msk.bf16.gmra.mrb[164].mxu1 %vm1175_vm1, %v5312_v50  ;;  %v994_v61 = vmax.f32 %v921_v39, 0.0  ;;  %v925_v63 = vadd.f32 %v924_v56, %v5847_v48 }
 0x165   : > { %v1482_v15 = vmax.f32 %v1411_v8, 0.0  ;;  %2332 = vmatprep.mubr.bf16.mxu1 %v5439_v2  ;;  %v995_v3 = vmax.f32 %v923_v55, 0.0 }
 0x166   : > { %v1515_v18 = vpack.c.bf16 %v1481_v12, %v1479_v11  ;;  %v996_v9 = vmax.f32 %v925_v63, 0.0 }
 0x167   : > { %v1516_v24 = vpack.c.bf16 %v1482_v15, %v1480_v14  ;;  %v1414_v26 = vpop.f32.mrb[60].mxu1  ;;  %v6267_v13 = vpack.c.bf16 %v995_v3, %v993_v54 }
 0x168   : > { %v1415_v33 = vadd.f32 %v1414_v26, %v5843_v47  ;;  %v1416_v35 = vpop.f32.mrb[61].mxu1  ;;  %v6269_v15 = vpack.c.bf16 %v996_v9, %v994_v61 }
 0x169   : > { %v1417_v50 = vadd.f32 %v1416_v35, %v5847_v48  ;;  %v1418_v51 = vpop.f32.mrb[62].mxu1  ;;  %3634 = vmatprep.mubr.bf16.mxu0 %v1516_v24  ;;  %v5332_v35 = vld [vmem:[%s5714_s24 + $0x58] sm:$0xff]  }
 0x16a   : > { %v1419_v58 = vadd.f32 %v1418_v51, %v5843_v47  ;;  %v1420_v59 = vpop.f32.mrb[63].mxu1  ;;  %3635 = vmatmul.mubr.bf16.gmra.mrb[120].mxu0 %v1515_v18  ;;  %v1483_v4 = vmax.f32 %v1415_v33, 0.0  ;;  %v928_v18 = vpop.f32.mrb[60].mxu0 }
 0x16b   : > { %v1421_v0 = vadd.f32 %v1420_v59, %v5847_v48  ;;  %v1484_v11 = vmax.f32 %v1417_v50, 0.0  ;;  %v929_v26 = vadd.f32 %v928_v18, %v5843_v47  ;;  %v930_v28 = vpop.f32.mrb[61].mxu0 }
 0x16c   : > { %v1485_v8 = vmax.f32 %v1419_v58, 0.0  ;;  %4649 = vmatmul.mubr.msk.bf16.gmra.mrb[168].mxu1 %vm1175_vm1, %v5322_v37  ;;  %v931_v37 = vadd.f32 %v930_v28, %v5847_v48  ;;  %v932_v39 = vpop.f32.mrb[62].mxu0 }
 0x16d   : > { %v1486_v12 = vmax.f32 %v1421_v0, 0.0  ;;  %2342 = vmatprep.mubr.bf16.mxu1 %v5439_v2  ;;  %v997_v51 = vmax.f32 %v929_v26, 0.0  ;;  %v933_v54 = vadd.f32 %v932_v39, %v5843_v47  ;;  %v934_v55 = vpop.f32.mrb[63].mxu0  ;;  %v5339_v26 = vld [vmem:[%s6858_s9 + $0x300] ss:$8 sps:$4 sm:$0xff]  }
 0x16e   : > { %v1517_v14 = vpack.c.bf16 %v1485_v8, %v1483_v4  ;;  %v998_v59 = vmax.f32 %v931_v37, 0.0  ;;  %v935_v61 = vadd.f32 %v934_v55, %v5847_v48 }
 0x16f   : > { %v1518_v22 = vpack.c.bf16 %v1486_v12, %v1484_v11  ;;  %v1749_v24 = vpop.f32.mrb[64].mxu1  ;;  %v999_v0 = vmax.f32 %v933_v54, 0.0  ;;  %v5349_v54 = vld [vmem:[%s6858_s9 + $0x310] ss:$8 sps:$4 sm:$0xff]  }
 0x170   : > { %v1750_v31 = vadd.f32 %v1749_v24, %v5843_v47  ;;  %v1751_v33 = vpop.f32.mrb[65].mxu1  ;;  %v1000_v8 = vmax.f32 %v935_v61, 0.0 }
 0x171   : > { %v1752_v41 = vadd.f32 %v1751_v33, %v5847_v48  ;;  %v1753_v50 = vpop.f32.mrb[66].mxu1  ;;  %3644 = vmatprep.mubr.bf16.mxu0 %v1518_v22  ;;  %v6282_v12 = vpack.c.bf16 %v999_v0, %v997_v51  ;;  %v5342_v33 = vld [vmem:[%s5714_s24 + $0x60] sm:$0xff]  }
 0x172   : > { %v1754_v56 = vadd.f32 %v1753_v50, %v5843_v47  ;;  %v1755_v58 = vpop.f32.mrb[67].mxu1  ;;  %3645 = vmatmul.mubr.bf16.gmra.mrb[124].mxu0 %v1517_v14  ;;  %v1908_v3 = vmax.f32 %v1750_v31, 0.0  ;;  %v6284_v14 = vpack.c.bf16 %v1000_v8, %v998_v59 }
 0x173   : > { %v1756_v63 = vadd.f32 %v1755_v58, %v5847_v48  ;;  %v1909_v9 = vmax.f32 %v1752_v41, 0.0  ;;  %v5361_v58 = vld [vmem:[%s6858_s9 + $0x324] ss:$8 sps:$4 sm:$0xff]  }
 0x174   : > { %v1910_v4 = vmax.f32 %v1754_v56, 0.0  ;;  %4650 = vmatmul.mubr.msk.bf16.gmra.mrb[172].mxu1 %vm1175_vm1, %v5332_v35  ;;  %v5351_v35 = vld [vmem:[%s6858_s9 + $0x314] ss:$8 sps:$4 sm:$0xff]  }
 0x175   : > { %v1911_v11 = vmax.f32 %v1756_v63, 0.0  ;;  %2352 = vmatprep.mubr.bf16.mxu1 %v5439_v2 }
 0x176   : > { %v1972_v18 = vpack.c.bf16 %v1910_v4, %v1908_v3  ;;  %v5359_v4 = vld [vmem:[%s6858_s9 + $0x320] ss:$8 sps:$4 sm:$0xff]  }
 0x177   : > { %v1973_v22 = vpack.c.bf16 %v1911_v11, %v1909_v9  ;;  %v1759_v24 = vpop.f32.mrb[68].mxu1  ;;  %v5352_v11 = vld [vmem:[%s5714_s24 + $0x68] sm:$0xff]  }
 0x178   : > { %v1760_v28 = vadd.f32 %v1759_v24, %v5843_v47  ;;  %v1761_v31 = vpop.f32.mrb[69].mxu1 }
 0x179   : > { %v1762_v37 = vadd.f32 %v1761_v31, %v5847_v48  ;;  %v1763_v39 = vpop.f32.mrb[70].mxu1  ;;  %3687 = vmatprep.mubr.bf16.mxu0 %v1973_v22 }
 0x17a   : > { %v1764_v41 = vadd.f32 %v1763_v39, %v5843_v47  ;;  %v1765_v50 = vpop.f32.mrb[71].mxu1  ;;  %3688 = vmatmul.mubr.bf16.vlgmr.msra.gmra.mrb[64].mxu0 %v1972_v18  ;;  %v1912_v55 = vmax.f32 %v1760_v28, 0.0  ;;  %v5371_v18 = vld [vmem:[%s6858_s9 + $0x334] ss:$8 sps:$4 sm:$0xff]   ;;  %v5381_v39 = vld [vmem:[%s6858_s9 + $0x344] ss:$8 sps:$4 sm:$0xff]  }
 0x17b   : > { %v1766_v51 = vadd.f32 %v1765_v50, %v5847_v48  ;;  %3849 = vmatpush1.bf16.msra.mxu0 %v5339_v26  ;;  %v1913_v59 = vmax.f32 %v1762_v37, 0.0 }
 0x17c   : > { %v1914_v56 = vmax.f32 %v1764_v41, 0.0  ;;  %4651 = vmatmul.mubr.msk.bf16.gmra.mrb[176].mxu1 %vm1175_vm1, %v5342_v33  ;;  %3850 = vmatprep.subr.bf16.mxu0 %v5351_v35  ;;  %v5369_v33 = vld [vmem:[%s6858_s9 + $0x330] ss:$8 sps:$4 sm:$0xff]  }
 0x17d   : > { %v1915_v61 = vmax.f32 %v1766_v51, 0.0  ;;  %2362 = vmatprep.mubr.bf16.mxu1 %v5439_v2 }
 0x17e   : > { %v1974_v63 = vpack.c.bf16 %v1914_v56, %v1912_v55  ;;  %v5379_v56 = vld [vmem:[%s6858_s9 + $0x340] ss:$8 sps:$4 sm:$0xff]  }
 0x17f   : > { %v1975_v0 = vpack.c.bf16 %v1915_v61, %v1913_v59  ;;  %v1769_v3 = vpop.f32.mrb[72].mxu1  ;;  %3851 = vmatpush1.bf16.msra.mxu0 %v5349_v54  ;;  %v5362_v61 = vld [vmem:[%s5714_s24 + $0x70] sm:$0xff]  }
 0x180   : > { %v1770_v8 = vadd.f32 %v1769_v3, %v5843_v47  ;;  %v1771_v9 = vpop.f32.mrb[73].mxu1  ;;  %3852 = vmatprep.subr.bf16.mxu0 %v5361_v58 }
 0x181   : > { %v1772_v22 = vadd.f32 %v1771_v9, %v5847_v48  ;;  %v1773_v24 = vpop.f32.mrb[74].mxu1  ;;  %3697 = vmatprep.mubr.bf16.mxu0 %v1975_v0 }
 0x182   : > { %v1774_v26 = vadd.f32 %v1773_v24, %v5843_v47  ;;  %v1775_v28 = vpop.f32.mrb[75].mxu1  ;;  %3698 = vmatmul.mubr.bf16.gmra.mrb[68].mxu0 %v1974_v63  ;;  %v1916_v35 = vmax.f32 %v1770_v8, 0.0  ;;  %v5384_v63 = vld [vmem:[%s6858_s9 + $0x354] ss:$8 sps:$4 sm:$0xff]   ;;  %v5387_v24 = vld [vmem:[%s6858_s9 + $0x364] ss:$8 sps:$4 sm:$0xff]  }
 0x183   : > { %v1776_v31 = vadd.f32 %v1775_v28, %v5847_v48  ;;  %3853 = vmatpush1.bf16.msra.mxu0 %v5359_v4  ;;  %v1917_v41 = vmax.f32 %v1772_v22, 0.0 }
 0x184   : > { %v1918_v37 = vmax.f32 %v1774_v26, 0.0  ;;  %4652 = vmatmul.mubr.msk.bf16.gmra.mrb[180].mxu1 %vm1175_vm1, %v5352_v11  ;;  %3854 = vmatprep.subr.bf16.mxu0 %v5371_v18  ;;  %v5382_v11 = vld [vmem:[%s6858_s9 + $0x350] ss:$8 sps:$4 sm:$0xff]  }
 0x185   : > { %v1919_v50 = vmax.f32 %v1776_v31, 0.0  ;;  %2372 = vmatprep.mubr.bf16.mxu1 %v5439_v2 }
 0x186   : > { %v1976_v51 = vpack.c.bf16 %v1918_v37, %v1916_v35  ;;  %v5385_v37 = vld [vmem:[%s6858_s9 + $0x360] ss:$8 sps:$4 sm:$0xff]  }
 0x187   : > { %v1977_v54 = vpack.c.bf16 %v1919_v50, %v1917_v41  ;;  %v1779_v55 = vpop.f32.mrb[76].mxu1  ;;  %3855 = vmatpush1.bf16.msra.mxu0 %v5369_v33  ;;  %v5372_v50 = vld [vmem:[%s5714_s24 + $0x78] sm:$0xff]  }
 0x188   : > { %v1780_v58 = vadd.f32 %v1779_v55, %v5843_v47  ;;  %v1781_v59 = vpop.f32.mrb[77].mxu1  ;;  %3856 = vmatprep.subr.bf16.mxu0 %v5381_v39 }
 0x189   : > { %v1782_v0 = vadd.f32 %v1781_v59, %v5847_v48  ;;  %v1783_v3 = vpop.f32.mrb[78].mxu1  ;;  %3707 = vmatprep.mubr.bf16.mxu0 %v1977_v54  ;;  %v5388_v59 = vld [vmem:[%s6858_s9 + $0x370] ss:$8 sps:$4 sm:$0xff]  }
 0x18a   : > { %v1784_v4 = vadd.f32 %v1783_v3, %v5843_v47  ;;  %v1785_v8 = vpop.f32.mrb[79].mxu1  ;;  %3708 = vmatmul.mubr.bf16.gmra.mrb[72].mxu0 %v1976_v51  ;;  %v1920_v18 = vmax.f32 %v1780_v58, 0.0  ;;  %v5390_v51 = vld [vmem:[%s6858_s9 + $0x374] ss:$8 sps:$4 sm:$0xff]  }
 0x18b   : > { %v1786_v9 = vadd.f32 %v1785_v8, %v5847_v48  ;;  %3857 = vmatpush1.bf16.msra.mxu0 %v5379_v56  ;;  %v1921_v26 = vmax.f32 %v1782_v0, 0.0  ;;  %v5393_v0 = vld [vmem:[%s6858_s9 + $0x384] ss:$8 sps:$4 sm:$0xff]  }
 0x18c   : > { %v1922_v22 = vmax.f32 %v1784_v4, 0.0  ;;  %4653 = vmatmul.mubr.msk.bf16.gmra.mrb[184].mxu1 %vm1175_vm1, %v5362_v61  ;;  %3858 = vmatprep.subr.bf16.mxu0 %v5384_v63 }
 0x18d   : > { %v1923_v28 = vmax.f32 %v1786_v9, 0.0  ;;  %2382 = vmatprep.mubr.bf16.mxu1 %v5439_v2 }
 0x18e   : > { %v1978_v31 = vpack.c.bf16 %v1922_v22, %v1920_v18  ;;  %v5391_v18 = vld [vmem:[%s6858_s9 + $0x380] ss:$8 sps:$4 sm:$0xff]  }
 0x18f   : > { %v1979_v33 = vpack.c.bf16 %v1923_v28, %v1921_v26  ;;  %v1789_v35 = vpop.f32.mrb[80].mxu1  ;;  %3859 = vmatpush1.bf16.msra.mxu0 %v5382_v11  ;;  %v5396_v26 = vld [vmem:[%s6858_s9 + $0x394] ss:$8 sps:$4 sm:$0xff]  }
 0x190   : > { %v1790_v39 = vadd.f32 %v1789_v35, %v5843_v47  ;;  %v1791_v41 = vpop.f32.mrb[81].mxu1  ;;  %3860 = vmatprep.subr.bf16.mxu0 %v5387_v24 }
 0x191   : > { %v1792_v54 = vadd.f32 %v1791_v41, %v5847_v48  ;;  %v1793_v2 = vpop.f32.mrb[82].mxu1  ;;  %3717 = vmatprep.mubr.bf16.mxu0 %v1979_v33 }
 0x192   : > { %v1794_v55 = vadd.f32 %v1793_v2, %v5843_v47  ;;  %v1795_v56 = vpop.f32.mrb[83].mxu1  ;;  %3718 = vmatmul.mubr.bf16.gmra.mrb[76].mxu0 %v1978_v31  ;;  %v1924_v61 = vmax.f32 %v1790_v39, 0.0 }
 0x193   : > { %v1796_v58 = vadd.f32 %v1795_v56, %v5847_v48  ;;  %3861 = vmatpush1.bf16.msra.mxu0 %v5385_v37  ;;  %v1925_v3 = vmax.f32 %v1792_v54, 0.0  ;;  %v5394_v37 = vld [vmem:[%s6858_s9 + $0x390] ss:$8 sps:$4 sm:$0xff]  }
 0x194   : > { %v1926_v63 = vmax.f32 %v1794_v55, 0.0  ;;  %4654 = vmatmul.mubr.msk.bf16.gmra.mrb[188].mxu1 %vm1175_vm1, %v5372_v50  ;;  %3862 = vmatprep.subr.bf16.mxu0 %v5390_v51  ;;  %v5399_v50 = vld [vmem:[%s6858_s9 + $0x3a4] ss:$8 sps:$4 sm:$0xff]  }
 0x195   : > { %v1927_v4 = vmax.f32 %v1796_v58, 0.0  ;;  %3301 = vmatprep.mubr.bf16.mxu1 %v5882_v32  ;;  %v5397_v58 = vld [vmem:[%s6858_s9 + $0x3a0] ss:$8 sps:$4 sm:$0xff]  }
 0x196   : > { %v1980_v8 = vpack.c.bf16 %v1926_v63, %v1924_v61  ;;  %v5402_v61 = vld [vmem:[%s6858_s9 + $0x3b4] ss:$8 sps:$4 sm:$0xff]  }
 0x197   : > { %v1981_v9 = vpack.c.bf16 %v1927_v4, %v1925_v3  ;;  %v1799_v11 = vpop.f32.mrb[84].mxu1  ;;  %3863 = vmatpush1.bf16.msra.mxu0 %v5388_v59 }
 0x198   : > { %v1800_v22 = vadd.f32 %v1799_v11, %v5843_v47  ;;  %v1801_v24 = vpop.f32.mrb[85].mxu1  ;;  %3864 = vmatprep.subr.bf16.mxu0 %v5393_v0 }
 0x199   : > { %v1802_v28 = vadd.f32 %v1801_v24, %v5847_v48  ;;  %v1803_v31 = vpop.f32.mrb[86].mxu1  ;;  %3727 = vmatprep.mubr.bf16.mxu0 %v1981_v9 }
 0x19a   : > { %v1804_v32 = vadd.f32 %v1803_v31, %v5843_v47  ;;  %v1805_v33 = vpop.f32.mrb[87].mxu1  ;;  %3728 = vmatmul.mubr.bf16.gmra.mrb[80].mxu0 %v1980_v8  ;;  %v1928_v39 = vmax.f32 %v1800_v22, 0.0  ;;  %v5400_v8 = vld [vmem:[%s6858_s9 + $0x3b0] ss:$8 sps:$4 sm:$0xff]  }
 0x19b   : > { %v1806_v35 = vadd.f32 %v1805_v33, %v5847_v48  ;;  %3865 = vmatpush1.bf16.msra.mxu0 %v5391_v18  ;;  %v1929_v51 = vmax.f32 %v1802_v28, 0.0  ;;  %v5405_v18 = vld [vmem:[%s6858_s9 + $0x3c4] ss:$8 sps:$4 sm:$0xff]  }
 0x19c   : > { %v1930_v41 = vmax.f32 %v1804_v32, 0.0  ;;  %3302 = vmatmul.mubr.bf16.vlgmr.msra.gmra.mrb[192].mxu1 %v5880_v30  ;;  %3866 = vmatprep.subr.bf16.mxu0 %v5396_v26  ;;  %v5403_v32 = vld [vmem:[%s6858_s9 + $0x3c0] ss:$8 sps:$4 sm:$0xff]  }
 0x19d   : > { %v1931_v54 = vmax.f32 %v1806_v35, 0.0  ;;  %3311 = vmatprep.mubr.bf16.mxu1 %v5909_v7  ;;  %v5408_v35 = vld [vmem:[%s6858_s9 + $0x3d4] ss:$8 sps:$4 sm:$0xff]  }
 0x19e   : > { %v1982_v2 = vpack.c.bf16 %v1930_v41, %v1928_v39 }
 0x19f   : > { %v1983_v55 = vpack.c.bf16 %v1931_v54, %v1929_v51  ;;  %v1809_v56 = vpop.f32.mrb[88].mxu1  ;;  %3867 = vmatpush1.bf16.msra.mxu0 %v5394_v37  ;;  %v5406_v51 = vld [vmem:[%s6858_s9 + $0x3d0] ss:$8 sps:$4 sm:$0xff]  }
 0x1a0   : > { %v1810_v59 = vadd.f32 %v1809_v56, %v5843_v47  ;;  %v1811_v30 = vpop.f32.mrb[89].mxu1  ;;  %3868 = vmatprep.subr.bf16.mxu0 %v5399_v50 }
 0x1a1   : > { %v1812_v63 = vadd.f32 %v1811_v30, %v5847_v48  ;;  %v1813_v0 = vpop.f32.mrb[90].mxu1  ;;  %3737 = vmatprep.mubr.bf16.mxu0 %v1983_v55  ;;  %v5411_v55 = vld [vmem:[%s6858_s9 + $0x3e4] ss:$8 sps:$4 sm:$0xff]  }
 0x1a2   : > { %v1814_v7 = vadd.f32 %v1813_v0, %v5843_v47  ;;  %v1815_v3 = vpop.f32.mrb[91].mxu1  ;;  %3738 = vmatmul.mubr.bf16.gmra.mrb[84].mxu0 %v1982_v2  ;;  %v1932_v9 = vmax.f32 %v1810_v59, 0.0 }
 0x1a3   : > { %v1816_v4 = vadd.f32 %v1815_v3, %v5847_v48  ;;  %3869 = vmatpush1.bf16.msra.mxu0 %v5397_v58  ;;  %v1933_v22 = vmax.f32 %v1812_v63, 0.0  ;;  %v5409_v63 = vld [vmem:[%s6858_s9 + $0x3e0] ss:$8 sps:$4 sm:$0xff]  }
 0x1a4   : > { %v1934_v11 = vmax.f32 %v1814_v7, 0.0  ;;  %3312 = vmatmul.mubr.bf16.gmra.mrb[196].mxu1 %v5907_v5  ;;  %3870 = vmatprep.subr.bf16.mxu0 %v5402_v61  ;;  %v5414_v7 = vld [vmem:[%s6858_s9 + $0x3f4] ss:$8 sps:$4 sm:$0xff]  }
 0x1a5   : > { %v1935_v24 = vmax.f32 %v1816_v4, 0.0  ;;  %3321 = vmatprep.mubr.bf16.mxu1 %v5936_v43 }
 0x1a6   : > { %v1984_v26 = vpack.c.bf16 %v1934_v11, %v1932_v9  ;;  %v5412_v11 = vld [vmem:[%s6858_s9 + $0x3f0] ss:$8 sps:$4 sm:$0xff]  }
 0x1a7   : > { %v1985_v28 = vpack.c.bf16 %v1935_v24, %v1933_v22  ;;  %v1819_v31 = vpop.f32.mrb[92].mxu1  ;;  %3871 = vmatpush1.bf16.msra.mxu0 %v5400_v8 }
 0x1a8   : > { %v1820_v33 = vadd.f32 %v1819_v31, %v5843_v47  ;;  %v1821_v5 = vpop.f32.mrb[93].mxu1  ;;  %3872 = vmatprep.subr.bf16.mxu0 %v5405_v18 }
 0x1a9   : > { %v1822_v37 = vadd.f32 %v1821_v5, %v5847_v48  ;;  %v1823_v39 = vpop.f32.mrb[94].mxu1  ;;  %3747 = vmatprep.mubr.bf16.mxu0 %v1985_v28 }
 0x1aa   : > { %v1824_v43 = vadd.f32 %v1823_v39, %v5843_v47  ;;  %v1825_v41 = vpop.f32.mrb[95].mxu1  ;;  %3748 = vmatmul.mubr.bf16.gmra.mrb[88].mxu0 %v1984_v26  ;;  %v1936_v54 = vmax.f32 %v1820_v33, 0.0 }
 0x1ab   : > { %v1826_v50 = vadd.f32 %v1825_v41, %v5847_v48  ;;  %3873 = vmatpush1.bf16.msra.mxu0 %v5403_v32  ;;  %v1937_v56 = vmax.f32 %v1822_v37, 0.0 }
 0x1ac   : > { %v1938_v2 = vmax.f32 %v1824_v43, 0.0  ;;  %3322 = vmatmul.mubr.bf16.gmra.mrb[200].mxu1 %v5934_v40  ;;  %3874 = vmatprep.subr.bf16.mxu0 %v5408_v35 }
 0x1ad   : > { %v1939_v58 = vmax.f32 %v1826_v50, 0.0  ;;  %3331 = vmatprep.mubr.bf16.mxu1 %v5963_v19 }
 0x1ae   : > { %v1986_v59 = vpack.c.bf16 %v1938_v2, %v1936_v54 }
 0x1af   : > { %v1987_v30 = vpack.c.bf16 %v1939_v58, %v1937_v56  ;;  %v1829_v61 = vpop.f32.mrb[96].mxu1  ;;  %3875 = vmatpush1.bf16.msra.mxu0 %v5406_v51 }
 0x1b0   : > { %v1830_v0 = vadd.f32 %v1829_v61, %v5843_v47  ;;  %v1831_v40 = vpop.f32.mrb[97].mxu1  ;;  %3876 = vmatprep.subr.bf16.mxu0 %v5411_v55 }
 0x1b1   : > { %v1832_v3 = vadd.f32 %v1831_v40, %v5847_v48  ;;  %v1833_v4 = vpop.f32.mrb[98].mxu1  ;;  %3757 = vmatprep.mubr.bf16.mxu0 %v1987_v30 }
 0x1b2   : > { %v1834_v19 = vadd.f32 %v1833_v4, %v5843_v47  ;;  %v1835_v8 = vpop.f32.mrb[99].mxu1  ;;  %3758 = vmatmul.mubr.bf16.gmra.mrb[92].mxu0 %v1986_v59  ;;  %v1940_v18 = vmax.f32 %v1830_v0, 0.0 }
 0x1b3   : > { %v1836_v9 = vadd.f32 %v1835_v8, %v5847_v48  ;;  %3877 = vmatpush1.bf16.msra.mxu0 %v5409_v63  ;;  %v1941_v24 = vmax.f32 %v1832_v3, 0.0 }
 0x1b4   : > { %v1942_v22 = vmax.f32 %v1834_v19, 0.0  ;;  %3332 = vmatmul.mubr.bf16.gmra.mrb[204].mxu1 %v5961_v17  ;;  %3878 = vmatprep.subr.bf16.mxu0 %v5414_v7 }
 0x1b5   : > { %v1943_v26 = vmax.f32 %v1836_v9, 0.0  ;;  %3341 = vmatprep.mubr.bf16.mxu1 %v6002_v1 }
 0x1b6   : > { %v1988_v28 = vpack.c.bf16 %v1942_v22, %v1940_v18 }
 0x1b7   : > { %v1989_v31 = vpack.c.bf16 %v1943_v26, %v1941_v24  ;;  %v1839_v32 = vpop.f32.mrb[100].mxu1  ;;  %3879 = vmatpush1.bf16.msra.mxu0 %v5412_v11 }
 0x1b8   : > { %v1840_v33 = vadd.f32 %v1839_v32, %v5843_v47  ;;  %v1841_v5 = vpop.f32.mrb[101].mxu1 }
 0x1b9   : > { %v1842_v35 = vadd.f32 %v1841_v5, %v5847_v48  ;;  %v1843_v37 = vpop.f32.mrb[102].mxu1  ;;  %3767 = vmatprep.mubr.bf16.mxu0 %v1989_v31 }
 0x1ba   : > { %v1844_v39 = vadd.f32 %v1843_v37, %v5843_v47  ;;  %v1845_v43 = vpop.f32.mrb[103].mxu1  ;;  %3768 = vmatmul.mubr.bf16.gmra.mrb[96].mxu0 %v1988_v28  ;;  %v1944_v41 = vmax.f32 %v1840_v33, 0.0 }
 0x1bb   : > { %v1846_v17 = vadd.f32 %v1845_v43, %v5847_v48  ;;  %v1945_v1 = vmax.f32 %v1842_v35, 0.0 }
 0x1bc   : > { %v1946_v50 = vmax.f32 %v1844_v39, 0.0  ;;  %3342 = vmatmul.mubr.bf16.gmra.mrb[208].mxu1 %v5997_v62 }
 0x1bd   : > { %v1947_v51 = vmax.f32 %v1846_v17, 0.0  ;;  %3351 = vmatprep.mubr.bf16.mxu1 %v6041_v52 }
 0x1be   : > { %v1990_v54 = vpack.c.bf16 %v1946_v50, %v1944_v41 }
 0x1bf   : > { %v1991_v2 = vpack.c.bf16 %v1947_v51, %v1945_v1  ;;  %v1849_v55 = vpop.f32.mrb[104].mxu1 }
 0x1c0   : > { %v1850_v56 = vadd.f32 %v1849_v55, %v5843_v47  ;;  %v1851_v58 = vpop.f32.mrb[105].mxu1 }
 0x1c1   : > { %v1852_v59 = vadd.f32 %v1851_v58, %v5847_v48  ;;  %v1853_v30 = vpop.f32.mrb[106].mxu1  ;;  %3777 = vmatprep.mubr.bf16.mxu0 %v1991_v2 }
 0x1c2   : > { %v1854_v61 = vadd.f32 %v1853_v30, %v5843_v47  ;;  %v1855_v63 = vpop.f32.mrb[107].mxu1  ;;  %3778 = vmatmul.mubr.bf16.gmra.mrb[100].mxu0 %v1990_v54  ;;  %v1948_v0 = vmax.f32 %v1850_v56, 0.0 }
 0x1c3   : > { %v1856_v62 = vadd.f32 %v1855_v63, %v5847_v48  ;;  %v1949_v52 = vmax.f32 %v1852_v59, 0.0 }
 0x1c4   : > { %v1950_v40 = vmax.f32 %v1854_v61, 0.0  ;;  %3352 = vmatmul.mubr.bf16.gmra.mrb[212].mxu1 %v6036_v49 }
 0x1c5   : > { %v1951_v7 = vmax.f32 %v1856_v62, 0.0  ;;  %3361 = vmatprep.mubr.bf16.mxu1 %v6080_v34 }
 0x1c6   : > { %v1992_v3 = vpack.c.bf16 %v1950_v40, %v1948_v0 }
 0x1c7   : > { %v1993_v4 = vpack.c.bf16 %v1951_v7, %v1949_v52  ;;  %v1859_v19 = vpop.f32.mrb[108].mxu1 }
 0x1c8   : > { %v1860_v8 = vadd.f32 %v1859_v19, %v5843_v47  ;;  %v1861_v9 = vpop.f32.mrb[109].mxu1 }
 0x1c9   : > { %v1862_v11 = vadd.f32 %v1861_v9, %v5847_v48  ;;  %v1863_v18 = vpop.f32.mrb[110].mxu1  ;;  %3787 = vmatprep.mubr.bf16.mxu0 %v1993_v4 }
 0x1ca   : > { %v1864_v22 = vadd.f32 %v1863_v18, %v5843_v47  ;;  %v1865_v24 = vpop.f32.mrb[111].mxu1  ;;  %3788 = vmatmul.mubr.bf16.gmra.mrb[104].mxu0 %v1992_v3  ;;  %v1952_v26 = vmax.f32 %v1860_v8, 0.0 }
 0x1cb   : > { %v1866_v49 = vadd.f32 %v1865_v24, %v5847_v48  ;;  %v1953_v34 = vmax.f32 %v1862_v11, 0.0 }
 0x1cc   : > { %v1954_v28 = vmax.f32 %v1864_v22, 0.0  ;;  %3362 = vmatmul.mubr.bf16.gmra.mrb[216].mxu1 %v6075_v29 }
 0x1cd   : > { %v1955_v31 = vmax.f32 %v1866_v49, 0.0  ;;  %3371 = vmatprep.mubr.bf16.mxu1 %v6119_v23 }
 0x1ce   : > { %v1994_v32 = vpack.c.bf16 %v1954_v28, %v1952_v26 }
 0x1cf   : > { %v1995_v33 = vpack.c.bf16 %v1955_v31, %v1953_v34  ;;  %v1869_v5 = vpop.f32.mrb[112].mxu1 }
 0x1d0   : > { %v1870_v35 = vadd.f32 %v1869_v5, %v5843_v47  ;;  %v1871_v37 = vpop.f32.mrb[113].mxu1 }
 0x1d1   : > { %v1872_v39 = vadd.f32 %v1871_v37, %v5847_v48  ;;  %v1873_v43 = vpop.f32.mrb[114].mxu1  ;;  %3797 = vmatprep.mubr.bf16.mxu0 %v1995_v33 }
 0x1d2   : > { %v1874_v17 = vadd.f32 %v1873_v43, %v5843_v47  ;;  %v1875_v41 = vpop.f32.mrb[115].mxu1  ;;  %3798 = vmatmul.mubr.bf16.gmra.mrb[108].mxu0 %v1994_v32  ;;  %v1956_v50 = vmax.f32 %v1870_v35, 0.0 }
 0x1d3   : > { %v1876_v29 = vadd.f32 %v1875_v41, %v5847_v48  ;;  %v1957_v23 = vmax.f32 %v1872_v39, 0.0 }
 0x1d4   : > { %v1958_v1 = vmax.f32 %v1874_v17, 0.0  ;;  %3372 = vmatmul.mubr.bf16.gmra.mrb[220].mxu1 %v6114_v20 }
 0x1d5   : > { %v1959_v51 = vmax.f32 %v1876_v29, 0.0  ;;  %3381 = vmatprep.mubr.bf16.mxu1 %v6146_v10 }
 0x1d6   : > { %v1996_v54 = vpack.c.bf16 %v1958_v1, %v1956_v50 }
 0x1d7   : > { %v1997_v2 = vpack.c.bf16 %v1959_v51, %v1957_v23  ;;  %v1879_v55 = vpop.f32.mrb[116].mxu1 }
 0x1d8   : > { %v1880_v56 = vadd.f32 %v1879_v55, %v5843_v47  ;;  %v1881_v58 = vpop.f32.mrb[117].mxu1 }
 0x1d9   : > { %v1882_v59 = vadd.f32 %v1881_v58, %v5847_v48  ;;  %v1883_v30 = vpop.f32.mrb[118].mxu1  ;;  %3807 = vmatprep.mubr.bf16.mxu0 %v1997_v2 }
 0x1da   : > { %v1884_v61 = vadd.f32 %v1883_v30, %v5843_v47  ;;  %v1885_v63 = vpop.f32.mrb[119].mxu1  ;;  %3808 = vmatmul.mubr.bf16.gmra.mrb[112].mxu0 %v1996_v54  ;;  %v1960_v62 = vmax.f32 %v1880_v56, 0.0 }
 0x1db   : > { %v1886_v20 = vadd.f32 %v1885_v63, %v5847_v48  ;;  %v1961_v10 = vmax.f32 %v1882_v59, 0.0 }
 0x1dc   : > { %v1962_v0 = vmax.f32 %v1884_v61, 0.0  ;;  %3382 = vmatmul.mubr.bf16.gmra.mrb[224].mxu1 %v6141_v6 }
 0x1dd   : > { %v1963_v40 = vmax.f32 %v1886_v20, 0.0  ;;  %3391 = vmatprep.mubr.bf16.mxu1 %v6173_v60 }
 0x1de   : > { %v1998_v52 = vpack.c.bf16 %v1962_v0, %v1960_v62 }
 0x1df   : > { %v1999_v7 = vpack.c.bf16 %v1963_v40, %v1961_v10  ;;  %v1889_v3 = vpop.f32.mrb[120].mxu1 }
 0x1e0   : > { %v1890_v4 = vadd.f32 %v1889_v3, %v5843_v47  ;;  %v1891_v19 = vpop.f32.mrb[121].mxu1 }
 0x1e1   : > { %v1892_v8 = vadd.f32 %v1891_v19, %v5847_v48  ;;  %v1893_v9 = vpop.f32.mrb[122].mxu1  ;;  %3817 = vmatprep.mubr.bf16.mxu0 %v1999_v7 }
 0x1e2   : > { %v1894_v11 = vadd.f32 %v1893_v9, %v5843_v47  ;;  %v1895_v18 = vpop.f32.mrb[123].mxu1  ;;  %3818 = vmatmul.mubr.bf16.gmra.mrb[116].mxu0 %v1998_v52  ;;  %v1964_v22 = vmax.f32 %v1890_v4, 0.0 }
 0x1e3   : > { %v1896_v6 = vadd.f32 %v1895_v18, %v5847_v48  ;;  %v1965_v60 = vmax.f32 %v1892_v8, 0.0 }
 0x1e4   : > { %v1966_v24 = vmax.f32 %v1894_v11, 0.0  ;;  %3392 = vmatmul.mubr.bf16.gmra.mrb[228].mxu1 %v6168_v57 }
 0x1e5   : > { %v1967_v49 = vmax.f32 %v1896_v6, 0.0  ;;  %3401 = vmatprep.mubr.bf16.mxu1 %v6200_v53 }
 0x1e6   : > { %v2000_v26 = vpack.c.bf16 %v1966_v24, %v1964_v22 }
 0x1e7   : > { %v2001_v28 = vpack.c.bf16 %v1967_v49, %v1965_v60  ;;  %v1899_v34 = vpop.f32.mrb[124].mxu1 }
 0x1e8   : > { %v1900_v31 = vadd.f32 %v1899_v34, %v5843_v47  ;;  %v1901_v32 = vpop.f32.mrb[125].mxu1 }
 0x1e9   : > { %v1902_v33 = vadd.f32 %v1901_v32, %v5847_v48  ;;  %v1903_v5 = vpop.f32.mrb[126].mxu1  ;;  %3827 = vmatprep.mubr.bf16.mxu0 %v2001_v28 }
 0x1ea   : > { %v1904_v35 = vadd.f32 %v1903_v5, %v5843_v47  ;;  %v1905_v37 = vpop.f32.mrb[127].mxu1  ;;  %3828 = vmatmul.mubr.bf16.gmra.mrb[120].mxu0 %v2000_v26  ;;  %v1968_v39 = vmax.f32 %v1900_v31, 0.0 }
 0x1eb   : > { %v1906_v57 = vadd.f32 %v1905_v37, %v5847_v48  ;;  %v1969_v53 = vmax.f32 %v1902_v33, 0.0 }
 0x1ec   : > { %v1970_v43 = vmax.f32 %v1904_v35, 0.0  ;;  %3402 = vmatmul.mubr.bf16.gmra.mrb[232].mxu1 %v6195_v45 }
 0x1ed   : > { %v1971_v17 = vmax.f32 %v1906_v57, 0.0  ;;  %3411 = vmatprep.mubr.bf16.mxu1 %v6224_v38 }
 0x1ee   : > { %v2002_v41 = vpack.c.bf16 %v1970_v43, %v1968_v39 }
 0x1ef   : > { %v2003_v29 = vpack.c.bf16 %v1971_v17, %v1969_v53  ;;  %v2234_v50 = vpop.f32.mrb[128].mxu1 }
 0x1f0   : > { %v2235_v1 = vadd.f32 %v2234_v50, %v5843_v47  ;;  %v2236_v23 = vpop.f32.mrb[129].mxu1 }
 0x1f1   : > { %v2237_v51 = vadd.f32 %v2236_v23, %v5847_v48  ;;  %v2238_v54 = vpop.f32.mrb[130].mxu1  ;;  %3837 = vmatprep.mubr.bf16.mxu0 %v2003_v29 }
 0x1f2   : > { %v2239_v2 = vadd.f32 %v2238_v54, %v5843_v47  ;;  %v2240_v55 = vpop.f32.mrb[131].mxu1  ;;  %3838 = vmatmul.mubr.bf16.gmra.mrb[124].mxu0 %v2002_v41  ;;  %v2393_v56 = vmax.f32 %v2235_v1, 0.0 }
 0x1f3   : > { %v2241_v45 = vadd.f32 %v2240_v55, %v5847_v48  ;;  %v2394_v38 = vmax.f32 %v2237_v51, 0.0 }
 0x1f4   : > { %v2395_v58 = vmax.f32 %v2239_v2, 0.0  ;;  %3412 = vmatmul.mubr.bf16.gmra.mrb[236].mxu1 %v6222_v36 }
 0x1f5   : > { %v2396_v59 = vmax.f32 %v2241_v45, 0.0  ;;  %3421 = vmatprep.mubr.bf16.mxu1 %v6239_v27 }
 0x1f6   : > { %v2457_v30 = vpack.c.bf16 %v2395_v58, %v2393_v56 }
 0x1f7   : > { %v2458_v61 = vpack.c.bf16 %v2396_v59, %v2394_v38  ;;  %v2244_v63 = vpop.f32.mrb[132].mxu1 }
 0x1f8   : > { %v2245_v20 = vadd.f32 %v2244_v63, %v5843_v47  ;;  %v2246_v62 = vpop.f32.mrb[133].mxu1 }
 0x1f9   : > { %v2247_v0 = vadd.f32 %v2246_v62, %v5847_v48  ;;  %v2248_v10 = vpop.f32.mrb[134].mxu1  ;;  %3880 = vmatprep.mubr.bf16.mxu0 %v2458_v61 }
 0x1fa   : > { %v2249_v40 = vadd.f32 %v2248_v10, %v5843_v47  ;;  %v2250_v52 = vpop.f32.mrb[135].mxu1  ;;  %3881 = vmatmul.mubr.bf16.vlgmr.msra.gmra.mrb[64].mxu0 %v2457_v30  ;;  %v2397_v7 = vmax.f32 %v2245_v20, 0.0 }
 0x1fb   : > { %v2251_v36 = vadd.f32 %v2250_v52, %v5847_v48  ;;  %v2398_v27 = vmax.f32 %v2247_v0, 0.0 }
 0x1fc   : > { %v2399_v3 = vmax.f32 %v2249_v40, 0.0  ;;  %3422 = vmatmul.mubr.bf16.gmra.mrb[240].mxu1 %v6237_v25 }
 0x1fd   : > { %v2400_v4 = vmax.f32 %v2251_v36, 0.0  ;;  %3431 = vmatprep.mubr.bf16.mxu1 %v6254_v21 }
 0x1fe   : > { %v2459_v19 = vpack.c.bf16 %v2399_v3, %v2397_v7 }
 0x1ff   : > { %v2460_v8 = vpack.c.bf16 %v2400_v4, %v2398_v27  ;;  %v2254_v9 = vpop.f32.mrb[136].mxu1 }
 0x200   : > { %v2255_v11 = vadd.f32 %v2254_v9, %v5843_v47  ;;  %v2256_v18 = vpop.f32.mrb[137].mxu1 }
 0x201   : > { %v2257_v6 = vadd.f32 %v2256_v18, %v5847_v48  ;;  %v2258_v22 = vpop.f32.mrb[138].mxu1  ;;  %3890 = vmatprep.mubr.bf16.mxu0 %v2460_v8 }
 0x202   : > { %v2259_v24 = vadd.f32 %v2258_v22, %v5843_v47  ;;  %v2260_v60 = vpop.f32.mrb[139].mxu1  ;;  %3891 = vmatmul.mubr.bf16.gmra.mrb[68].mxu0 %v2459_v19  ;;  %v2401_v49 = vmax.f32 %v2255_v11, 0.0 }
 0x203   : > { %v2261_v25 = vadd.f32 %v2260_v60, %v5847_v48  ;;  %v2402_v21 = vmax.f32 %v2257_v6, 0.0 }
 0x204   : > { %v2403_v26 = vmax.f32 %v2259_v24, 0.0  ;;  %3432 = vmatmul.mubr.bf16.gmra.mrb[244].mxu1 %v6252_v16 }
 0x205   : > { %v2404_v28 = vmax.f32 %v2261_v25, 0.0  ;;  %3441 = vmatprep.mubr.bf16.mxu1 %v6269_v15 }
 0x206   : > { %v2461_v34 = vpack.c.bf16 %v2403_v26, %v2401_v49 }
 0x207   : > { %v2462_v31 = vpack.c.bf16 %v2404_v28, %v2402_v21  ;;  %v2264_v32 = vpop.f32.mrb[140].mxu1 }
 0x208   : > { %v2265_v33 = vadd.f32 %v2264_v32, %v5843_v47  ;;  %v2266_v5 = vpop.f32.mrb[141].mxu1 }
 0x209   : > { %v2267_v35 = vadd.f32 %v2266_v5, %v5847_v48  ;;  %v2268_v37 = vpop.f32.mrb[142].mxu1  ;;  %3900 = vmatprep.mubr.bf16.mxu0 %v2462_v31 }
 0x20a   : > { %v2269_v57 = vadd.f32 %v2268_v37, %v5843_v47  ;;  %v2270_v39 = vpop.f32.mrb[143].mxu1  ;;  %3901 = vmatmul.mubr.bf16.gmra.mrb[72].mxu0 %v2461_v34  ;;  %v2405_v43 = vmax.f32 %v2265_v33, 0.0 }
 0x20b   : > { %v2271_v16 = vadd.f32 %v2270_v39, %v5847_v48  ;;  %v2406_v15 = vmax.f32 %v2267_v35, 0.0 }
 0x20c   : > { %v2407_v53 = vmax.f32 %v2269_v57, 0.0  ;;  %3442 = vmatmul.mubr.bf16.gmra.mrb[248].mxu1 %v6267_v13 }
 0x20d   : > { %v2408_v17 = vmax.f32 %v2271_v16, 0.0  ;;  %3451 = vmatprep.mubr.bf16.mxu1 %v6284_v14 }
 0x20e   : > { %v2463_v41 = vpack.c.bf16 %v2407_v53, %v2405_v43 }
 0x20f   : > { %v2464_v29 = vpack.c.bf16 %v2408_v17, %v2406_v15  ;;  %v2274_v50 = vpop.f32.mrb[144].mxu1 }
 0x210   : > { %v2275_v1 = vadd.f32 %v2274_v50, %v5843_v47  ;;  %v2276_v23 = vpop.f32.mrb[145].mxu1 }
 0x211   : > { %v2277_v51 = vadd.f32 %v2276_v23, %v5847_v48  ;;  %v2278_v54 = vpop.f32.mrb[146].mxu1  ;;  %3910 = vmatprep.mubr.bf16.mxu0 %v2464_v29 }
 0x212   : > { %v2279_v2 = vadd.f32 %v2278_v54, %v5843_v47  ;;  %v2280_v55 = vpop.f32.mrb[147].mxu1  ;;  %3911 = vmatmul.mubr.bf16.gmra.mrb[76].mxu0 %v2463_v41  ;;  %v2409_v45 = vmax.f32 %v2275_v1, 0.0 }
 0x213   : > { %v2281_v13 = vadd.f32 %v2280_v55, %v5847_v48  ;;  %v2410_v14 = vmax.f32 %v2277_v51, 0.0 }
 0x214   : > { %v2411_v56 = vmax.f32 %v2279_v2, 0.0  ;;  %3452 = vmatmul.mubr.bf16.gmra.mrb[252].mxu1 %v6282_v12 }
 0x215   : > { %v2412_v58 = vmax.f32 %v2281_v13, 0.0 }
 0x216   : > { %v2465_v38 = vpack.c.bf16 %v2411_v56, %v2409_v45 }
 0x217   : > { %v2466_v59 = vpack.c.bf16 %v2412_v58, %v2410_v14  ;;  %v2284_v30 = vpop.f32.mrb[148].mxu1 }
 0x218   : > { %v2285_v61 = vadd.f32 %v2284_v30, %v5843_v47  ;;  %v2286_v63 = vpop.f32.mrb[149].mxu1 }
 0x219   : > { %v2287_v20 = vadd.f32 %v2286_v63, %v5847_v48  ;;  %v2288_v62 = vpop.f32.mrb[150].mxu1  ;;  %3920 = vmatprep.mubr.bf16.mxu0 %v2466_v59 }
 0x21a   : > { %v2289_v0 = vadd.f32 %v2288_v62, %v5843_v47  ;;  %v2290_v10 = vpop.f32.mrb[151].mxu1  ;;  %3921 = vmatmul.mubr.bf16.gmra.mrb[80].mxu0 %v2465_v38  ;;  %v2413_v52 = vmax.f32 %v2285_v61, 0.0 }
 0x21b   : > { %v2291_v40 = vadd.f32 %v2290_v10, %v5847_v48  ;;  %v2414_v36 = vmax.f32 %v2287_v20, 0.0 }
 0x21c   : > { %v2415_v12 = vmax.f32 %v2289_v0, 0.0 }
 0x21d   : > { %v2416_v7 = vmax.f32 %v2291_v40, 0.0 }
 0x21e   : > { %v2467_v3 = vpack.c.bf16 %v2415_v12, %v2413_v52 }
 0x21f   : > { %v2468_v27 = vpack.c.bf16 %v2416_v7, %v2414_v36  ;;  %v2294_v4 = vpop.f32.mrb[152].mxu1 }
 0x220   : > { %v2295_v19 = vadd.f32 %v2294_v4, %v5843_v47  ;;  %v2296_v8 = vpop.f32.mrb[153].mxu1 }
 0x221   : > { %v2297_v9 = vadd.f32 %v2296_v8, %v5847_v48  ;;  %v2298_v11 = vpop.f32.mrb[154].mxu1  ;;  %3930 = vmatprep.mubr.bf16.mxu0 %v2468_v27 }
 0x222   : > { %v2299_v18 = vadd.f32 %v2298_v11, %v5843_v47  ;;  %v2300_v6 = vpop.f32.mrb[155].mxu1  ;;  %3931 = vmatmul.mubr.bf16.gmra.mrb[84].mxu0 %v2467_v3  ;;  %v2417_v24 = vmax.f32 %v2295_v19, 0.0 }
 0x223   : > { %v2301_v22 = vadd.f32 %v2300_v6, %v5847_v48  ;;  %v2418_v25 = vmax.f32 %v2297_v9, 0.0 }
 0x224   : > { %v2419_v60 = vmax.f32 %v2299_v18, 0.0 }
 0x225   : > { %v2420_v49 = vmax.f32 %v2301_v22, 0.0 }
 0x226   : > { %v2469_v26 = vpack.c.bf16 %v2419_v60, %v2417_v24 }
 0x227   : > { %v2470_v21 = vpack.c.bf16 %v2420_v49, %v2418_v25  ;;  %v2304_v28 = vpop.f32.mrb[156].mxu1 }
 0x228   : > { %v2305_v34 = vadd.f32 %v2304_v28, %v5843_v47  ;;  %v2306_v31 = vpop.f32.mrb[157].mxu1 }
 0x229   : > { %v2307_v32 = vadd.f32 %v2306_v31, %v5847_v48  ;;  %v2308_v33 = vpop.f32.mrb[158].mxu1  ;;  %3940 = vmatprep.mubr.bf16.mxu0 %v2470_v21 }
 0x22a   : > { %v2309_v5 = vadd.f32 %v2308_v33, %v5843_v47  ;;  %v2310_v35 = vpop.f32.mrb[159].mxu1  ;;  %3941 = vmatmul.mubr.bf16.gmra.mrb[88].mxu0 %v2469_v26  ;;  %v2421_v57 = vmax.f32 %v2305_v34, 0.0 }
 0x22b   : > { %v2311_v37 = vadd.f32 %v2310_v35, %v5847_v48  ;;  %v2422_v16 = vmax.f32 %v2307_v32, 0.0 }
 0x22c   : > { %v2423_v39 = vmax.f32 %v2309_v5, 0.0 }
 0x22d   : > { %v2424_v43 = vmax.f32 %v2311_v37, 0.0 }
 0x22e   : > { %v2471_v53 = vpack.c.bf16 %v2423_v39, %v2421_v57 }
 0x22f   : > { %v2472_v15 = vpack.c.bf16 %v2424_v43, %v2422_v16  ;;  %v2314_v17 = vpop.f32.mrb[160].mxu1 }
 0x230   : > { %v2315_v41 = vadd.f32 %v2314_v17, %v5843_v47  ;;  %v2316_v29 = vpop.f32.mrb[161].mxu1 }
 0x231   : > { %v2317_v50 = vadd.f32 %v2316_v29, %v5847_v48  ;;  %v2318_v1 = vpop.f32.mrb[162].mxu1  ;;  %3950 = vmatprep.mubr.bf16.mxu0 %v2472_v15 }
 0x232   : > { %v2319_v23 = vadd.f32 %v2318_v1, %v5843_v47  ;;  %v2320_v51 = vpop.f32.mrb[163].mxu1  ;;  %3951 = vmatmul.mubr.bf16.gmra.mrb[92].mxu0 %v2471_v53  ;;  %v2425_v2 = vmax.f32 %v2315_v41, 0.0 }
 0x233   : > { %v2321_v54 = vadd.f32 %v2320_v51, %v5847_v48  ;;  %v2426_v13 = vmax.f32 %v2317_v50, 0.0 }
 0x234   : > { %v2427_v55 = vmax.f32 %v2319_v23, 0.0 }
 0x235   : > { %v2428_v45 = vmax.f32 %v2321_v54, 0.0 }
 0x236   : > { %v2473_v56 = vpack.c.bf16 %v2427_v55, %v2425_v2 }
 0x237   : > { %v2474_v14 = vpack.c.bf16 %v2428_v45, %v2426_v13  ;;  %v2324_v58 = vpop.f32.mrb[164].mxu1 }
 0x238   : > { %v2325_v38 = vadd.f32 %v2324_v58, %v5843_v47  ;;  %v2326_v59 = vpop.f32.mrb[165].mxu1 }
 0x239   : > { %v2327_v30 = vadd.f32 %v2326_v59, %v5847_v48  ;;  %v2328_v61 = vpop.f32.mrb[166].mxu1  ;;  %3960 = vmatprep.mubr.bf16.mxu0 %v2474_v14 }
 0x23a   : > { %v2329_v63 = vadd.f32 %v2328_v61, %v5843_v47  ;;  %v2330_v20 = vpop.f32.mrb[167].mxu1  ;;  %3961 = vmatmul.mubr.bf16.gmra.mrb[96].mxu0 %v2473_v56  ;;  %v2429_v0 = vmax.f32 %v2325_v38, 0.0 }
 0x23b   : > { %v2331_v62 = vadd.f32 %v2330_v20, %v5847_v48  ;;  %v2430_v40 = vmax.f32 %v2327_v30, 0.0 }
 0x23c   : > { %v2431_v10 = vmax.f32 %v2329_v63, 0.0 }
 0x23d   : > { %v2432_v52 = vmax.f32 %v2331_v62, 0.0 }
 0x23e   : > { %v2475_v12 = vpack.c.bf16 %v2431_v10, %v2429_v0 }
 0x23f   : > { %v2476_v36 = vpack.c.bf16 %v2432_v52, %v2430_v40  ;;  %v2334_v7 = vpop.f32.mrb[168].mxu1 }
 0x240   : > { %v2335_v3 = vadd.f32 %v2334_v7, %v5843_v47  ;;  %v2336_v27 = vpop.f32.mrb[169].mxu1 }
 0x241   : > { %v2337_v4 = vadd.f32 %v2336_v27, %v5847_v48  ;;  %v2338_v19 = vpop.f32.mrb[170].mxu1  ;;  %3970 = vmatprep.mubr.bf16.mxu0 %v2476_v36 }
 0x242   : > { %v2339_v8 = vadd.f32 %v2338_v19, %v5843_v47  ;;  %v2340_v9 = vpop.f32.mrb[171].mxu1  ;;  %3971 = vmatmul.mubr.bf16.gmra.mrb[100].mxu0 %v2475_v12  ;;  %v2433_v18 = vmax.f32 %v2335_v3, 0.0 }
 0x243   : > { %v2341_v11 = vadd.f32 %v2340_v9, %v5847_v48  ;;  %v2434_v22 = vmax.f32 %v2337_v4, 0.0 }
 0x244   : > { %v2435_v6 = vmax.f32 %v2339_v8, 0.0 }
 0x245   : > { %v2436_v24 = vmax.f32 %v2341_v11, 0.0 }
 0x246   : > { %v2477_v60 = vpack.c.bf16 %v2435_v6, %v2433_v18 }
 0x247   : > { %v2478_v25 = vpack.c.bf16 %v2436_v24, %v2434_v22  ;;  %v2344_v49 = vpop.f32.mrb[172].mxu1 }
 0x248   : > { %v2345_v26 = vadd.f32 %v2344_v49, %v5843_v47  ;;  %v2346_v21 = vpop.f32.mrb[173].mxu1 }
 0x249   : > { %v2347_v28 = vadd.f32 %v2346_v21, %v5847_v48  ;;  %v2348_v34 = vpop.f32.mrb[174].mxu1  ;;  %3980 = vmatprep.mubr.bf16.mxu0 %v2478_v25 }
 0x24a   : > { %v2349_v31 = vadd.f32 %v2348_v34, %v5843_v47  ;;  %v2350_v32 = vpop.f32.mrb[175].mxu1  ;;  %3981 = vmatmul.mubr.bf16.gmra.mrb[104].mxu0 %v2477_v60  ;;  %v2437_v5 = vmax.f32 %v2345_v26, 0.0 }
 0x24b   : > { %v2351_v33 = vadd.f32 %v2350_v32, %v5847_v48  ;;  %v2438_v37 = vmax.f32 %v2347_v28, 0.0 }
 0x24c   : > { %v2439_v35 = vmax.f32 %v2349_v31, 0.0 }
 0x24d   : > { %v2440_v57 = vmax.f32 %v2351_v33, 0.0 }
 0x24e   : > { %v2479_v39 = vpack.c.bf16 %v2439_v35, %v2437_v5 }
 0x24f   : > { %v2480_v16 = vpack.c.bf16 %v2440_v57, %v2438_v37  ;;  %v2354_v43 = vpop.f32.mrb[176].mxu1 }
 0x250   : > { %v2355_v53 = vadd.f32 %v2354_v43, %v5843_v47  ;;  %v2356_v15 = vpop.f32.mrb[177].mxu1 }
 0x251   : > { %v2357_v17 = vadd.f32 %v2356_v15, %v5847_v48  ;;  %v2358_v41 = vpop.f32.mrb[178].mxu1  ;;  %3990 = vmatprep.mubr.bf16.mxu0 %v2480_v16 }
 0x252   : > { %v2359_v29 = vadd.f32 %v2358_v41, %v5843_v47  ;;  %v2360_v50 = vpop.f32.mrb[179].mxu1  ;;  %3991 = vmatmul.mubr.bf16.gmra.mrb[108].mxu0 %v2479_v39  ;;  %v2441_v23 = vmax.f32 %v2355_v53, 0.0 }
 0x253   : > { %v2361_v1 = vadd.f32 %v2360_v50, %v5847_v48  ;;  %v2442_v54 = vmax.f32 %v2357_v17, 0.0 }
 0x254   : > { %v2443_v51 = vmax.f32 %v2359_v29, 0.0 }
 0x255   : > { %v2444_v2 = vmax.f32 %v2361_v1, 0.0 }
 0x256   : > { %v2481_v55 = vpack.c.bf16 %v2443_v51, %v2441_v23 }
 0x257   : > { %v2482_v13 = vpack.c.bf16 %v2444_v2, %v2442_v54  ;;  %v2364_v45 = vpop.f32.mrb[180].mxu1 }
 0x258   : > { %v2365_v56 = vadd.f32 %v2364_v45, %v5843_v47  ;;  %v2366_v14 = vpop.f32.mrb[181].mxu1 }
 0x259   : > { %v2367_v58 = vadd.f32 %v2366_v14, %v5847_v48  ;;  %v2368_v38 = vpop.f32.mrb[182].mxu1  ;;  %4000 = vmatprep.mubr.bf16.mxu0 %v2482_v13 }
 0x25a   : > { %v2369_v59 = vadd.f32 %v2368_v38, %v5843_v47  ;;  %v2370_v30 = vpop.f32.mrb[183].mxu1  ;;  %4001 = vmatmul.mubr.bf16.gmra.mrb[112].mxu0 %v2481_v55  ;;  %v2445_v63 = vmax.f32 %v2365_v56, 0.0 }
 0x25b   : > { %v2371_v61 = vadd.f32 %v2370_v30, %v5847_v48  ;;  %v2446_v62 = vmax.f32 %v2367_v58, 0.0 }
 0x25c   : > { %v2447_v20 = vmax.f32 %v2369_v59, 0.0 }
 0x25d   : > { %v2448_v0 = vmax.f32 %v2371_v61, 0.0 }
 0x25e   : > { %v2483_v10 = vpack.c.bf16 %v2447_v20, %v2445_v63 }
 0x25f   : > { %v2484_v40 = vpack.c.bf16 %v2448_v0, %v2446_v62  ;;  %v2374_v52 = vpop.f32.mrb[184].mxu1 }
 0x260   : > { %v2375_v12 = vadd.f32 %v2374_v52, %v5843_v47  ;;  %v2376_v36 = vpop.f32.mrb[185].mxu1 }
 0x261   : > { %v2377_v7 = vadd.f32 %v2376_v36, %v5847_v48  ;;  %v2378_v3 = vpop.f32.mrb[186].mxu1  ;;  %4010 = vmatprep.mubr.bf16.mxu0 %v2484_v40 }
 0x262   : > { %v2379_v27 = vadd.f32 %v2378_v3, %v5843_v47  ;;  %v2380_v4 = vpop.f32.mrb[187].mxu1  ;;  %4011 = vmatmul.mubr.bf16.gmra.mrb[116].mxu0 %v2483_v10  ;;  %v2449_v8 = vmax.f32 %v2375_v12, 0.0 }
 0x263   : > { %v2381_v19 = vadd.f32 %v2380_v4, %v5847_v48  ;;  %v2450_v11 = vmax.f32 %v2377_v7, 0.0 }
 0x264   : > { %v2451_v9 = vmax.f32 %v2379_v27, 0.0 }
 0x265   : > { %v2452_v18 = vmax.f32 %v2381_v19, 0.0 }
 0x266   : > { %v2485_v6 = vpack.c.bf16 %v2451_v9, %v2449_v8 }
 0x267   : > { %v2486_v22 = vpack.c.bf16 %v2452_v18, %v2450_v11  ;;  %v2384_v24 = vpop.f32.mrb[188].mxu1  ;;  %v2617_v18 = vld [vmem:[%s541_s21] sm:$0x3] }
 0x268   : > { %v2385_v60 = vadd.f32 %v2384_v24, %v5843_v47  ;;  %v2386_v25 = vpop.f32.mrb[189].mxu1 }
 0x269   : > { %v2387_v49 = vadd.f32 %v2386_v25, %v5847_v48  ;;  %v2388_v26 = vpop.f32.mrb[190].mxu1  ;;  %4020 = vmatprep.mubr.bf16.mxu0 %v2486_v22  ;;  %v6634_v22 = vrot.slane %v2617_v18, %v591_v44 }
 0x26a   : > { %v2389_v21 = vadd.f32 %v2388_v26, %v5843_v47  ;;  %v2390_v28 = vpop.f32.mrb[191].mxu1  ;;  %4021 = vmatmul.mubr.bf16.gmra.mrb[120].mxu0 %v2485_v6  ;;  %v2453_v31 = vmax.f32 %v2385_v60, 0.0  ;;  %v6640_v60 = vrot.slane %v2617_v18, %v595_v46 }
 0x26b   : > { %v2391_v34 = vadd.f32 %v2390_v28, %v5847_v48  ;;  %v2454_v33 = vmax.f32 %v2387_v49, 0.0 }
 0x26c   : > { %v2455_v32 = vmax.f32 %v2389_v21, 0.0 }
 0x26d   : > { %v2456_v5 = vmax.f32 %v2391_v34, 0.0 }
 0x26e   : > { %v2487_v35 = vpack.c.bf16 %v2455_v32, %v2453_v31 }
 0x26f   : > { %v2488_v37 = vpack.c.bf16 %v2456_v5, %v2454_v33  ;;  %v3303_v57 = vpop.f32.mrb[192].mxu1 }
 0x270   : > { %v3305_v39 = vpop.f32.mrb[193].mxu1  ;;  %v3304_v26 = vadd.f32 %v3303_v57, %v6634_v22 }
 0x271   : > { %v3307_v16 = vpop.f32.mrb[194].mxu1  ;;  %4030 = vmatprep.mubr.bf16.mxu0 %v2488_v37  ;;  %v3306_v21 = vadd.f32 %v3305_v39, %v6640_v60 }
 0x272   : > { %v3309_v43 = vpop.f32.mrb[195].mxu1  ;;  %4031 = vmatmul.mubr.bf16.gmra.mrb[124].mxu0 %v2487_v35  ;;  %v3308_v34 = vadd.f32 %v3307_v16, %v6634_v22 }
 0x273   : > { %v3310_v32 = vadd.f32 %v3309_v43, %v6640_v60 }
 0x277   : > { %v6546_v53 = vpop.f32.mrb[196].mxu1 }
 0x278   : > { %v6548_v15 = vpop.f32.mrb[197].mxu1 }
 0x279   : > { %v6550_v47 = vpop.f32.mrb[198].mxu1 }
 0x27a   : > { %v6552_v17 = vpop.f32.mrb[199].mxu1 }
 0x27f   : > { %v6554_v48 = vpop.f32.mrb[200].mxu1 }
 0x280   : > { %v6556_v41 = vpop.f32.mrb[201].mxu1 }
 0x281   : > { %v6558_v29 = vpop.f32.mrb[202].mxu1 }
 0x282   : > { %v6560_v50 = vpop.f32.mrb[203].mxu1 }
 0x287   : > { %v6562_v1 = vpop.f32.mrb[204].mxu1 }
 0x288   : > { %v6564_v23 = vpop.f32.mrb[205].mxu1 }
 0x289   : > { %v6566_v51 = vpop.f32.mrb[206].mxu1 }
 0x28a   : > { %v6568_v54 = vpop.f32.mrb[207].mxu1 }
 0x28f   : > { %v6570_v2 = vpop.f32.mrb[208].mxu1 }
 0x290   : > { %v6572_v55 = vpop.f32.mrb[209].mxu1 }
 0x291   : > { %v6574_v13 = vpop.f32.mrb[210].mxu1 }
 0x292   : > { %v6576_v45 = vpop.f32.mrb[211].mxu1 }
 0x297   : > { %v6578_v56 = vpop.f32.mrb[212].mxu1 }
 0x298   : > { %v6580_v14 = vpop.f32.mrb[213].mxu1 }
 0x299   : > { %v6582_v58 = vpop.f32.mrb[214].mxu1 }
 0x29a   : > { %v6584_v38 = vpop.f32.mrb[215].mxu1 }
 0x29f   : > { %v6586_v59 = vpop.f32.mrb[216].mxu1 }
 0x2a0   : > { %v6588_v30 = vpop.f32.mrb[217].mxu1 }
 0x2a1   : > { %v6590_v61 = vpop.f32.mrb[218].mxu1 }
 0x2a2   : > { %v6592_v63 = vpop.f32.mrb[219].mxu1 }
 0x2a7   : > { %v6594_v20 = vpop.f32.mrb[220].mxu1 }
 0x2a8   : > { %v6596_v62 = vpop.f32.mrb[221].mxu1 }
 0x2a9   : > { %v6598_v0 = vpop.f32.mrb[222].mxu1 }
 0x2aa   : > { %v6600_v10 = vpop.f32.mrb[223].mxu1 }
 0x2af   : > { %v6602_v40 = vpop.f32.mrb[224].mxu1 }
 0x2b0   : > { %v6604_v52 = vpop.f32.mrb[225].mxu1 }
 0x2b1   : > { %v6606_v12 = vpop.f32.mrb[226].mxu1 }
 0x2b2   : > { %v6608_v36 = vpop.f32.mrb[227].mxu1 }
 0x2b7   : > { %v6610_v7 = vpop.f32.mrb[228].mxu1 }
 0x2b8   : > { %v6612_v3 = vpop.f32.mrb[229].mxu1 }
 0x2b9   : > { %v6614_v27 = vpop.f32.mrb[230].mxu1 }
 0x2ba   : > { %v6616_v4 = vpop.f32.mrb[231].mxu1 }
 0x2bf   : > { %v6619_v19 = vpop.f32.mrb[232].mxu1 }
 0x2c0   : > { %v6621_v8 = vpop.f32.mrb[233].mxu1 }
 0x2c1   : > { %v6623_v9 = vpop.f32.mrb[234].mxu1 }
 0x2c2   : > { %v6628_v11 = vpop.f32.mrb[235].mxu1 }
 0x2c7   : > { %v6630_v6 = vpop.f32.mrb[236].mxu1 }
 0x2c8   : > { %v6636_v24 = vpop.f32.mrb[237].mxu1 }
 0x2c9   : > { %v6642_v25 = vpop.f32.mrb[238].mxu1 }
 0x2ca   : > { %v6644_v49 = vpop.f32.mrb[239].mxu1 }
 0x2cb   : > { %6861 = vst [vmem:[#allocation2_spill] sm:$0xff] %v6644_v49 }
 0x2cd   : > { %v3882_v28 = vpop.f32.mrb[64].mxu0 }
 0x2ce   : > { %v4855_v31 = vadd.f32 %v3882_v28, %v3304_v26  ;;  %v3884_v44 = vpop.f32.mrb[65].mxu0  ;;  %v3314_v28 = vadd.f32 %v6546_v53, %v6634_v22 }
 0x2cf   : > { %v4857_v33 = vadd.f32 %v3884_v44, %v3306_v21  ;;  %v6651_v42 = vpop.f32.mrb[240].mxu1  ;;  %v3886_v46 = vpop.f32.mrb[66].mxu0 }
 0x2d0   : > { %v4041_v5 = vmax.f32 %v4855_v31, 0.0  ;;  %v4859_v35 = vadd.f32 %v3886_v46, %v3308_v34  ;;  %v6653_v37 = vpop.f32.mrb[241].mxu1  ;;  %v3888_v18 = vpop.f32.mrb[67].mxu0  ;;  %v3316_v34 = vadd.f32 %v6548_v15, %v6640_v60 }
 0x2d1   : > { %v4042_v57 = vmax.f32 %v4857_v33, 0.0  ;;  %v4861_v49 = vadd.f32 %v3888_v18, %v3310_v32  ;;  %v6655_v39 = vpop.f32.mrb[242].mxu1  ;;  %v3318_v32 = vadd.f32 %v6550_v47, %v6634_v22 }
 0x2d2   : > { %v4043_v16 = vmax.f32 %v4859_v35, 0.0  ;;  %v6662_v43 = vpop.f32.mrb[243].mxu1  ;;  %v3320_v35 = vadd.f32 %v6552_v17, %v6640_v60 }
 0x2d3   : > { %v4822_v26 = vpack.c.bf16 %v4042_v57, %v4041_v5  ;;  %v4044_v21 = vmax.f32 %v4861_v49, 0.0 }
 0x2d5   : > { %4297 = vst [vmem:[%s6660_s25] sm:$0xff] %v4822_v26  ;;  %v4823_v31 = vpack.c.bf16 %v4044_v21, %v4043_v16  ;;  %v3892_v44 = vpop.f32.mrb[68].mxu0 }
 0x2d6   : > { %v4863_v33 = vadd.f32 %v3892_v44, %v3314_v28  ;;  %v3894_v46 = vpop.f32.mrb[69].mxu0 }
 0x2d7   : > { %4298 = vst [vmem:[%s6660_s25 + $0x8] sm:$0xff] %v4823_v31  ;;  %v4865_v5 = vadd.f32 %v3894_v46, %v3316_v34  ;;  %v6674_v49 = vpop.f32.mrb[244].mxu1  ;;  %v3896_v53 = vpop.f32.mrb[70].mxu0  ;;  %v3324_v34 = vadd.f32 %v6554_v48, %v6634_v22 }
 0x2d8   : > { %v4045_v18 = vmax.f32 %v4863_v33, 0.0  ;;  %v4867_v57 = vadd.f32 %v3896_v53, %v3318_v32  ;;  %v6676_v15 = vpop.f32.mrb[245].mxu1  ;;  %v3898_v16 = vpop.f32.mrb[71].mxu0  ;;  %v3326_v33 = vadd.f32 %v6556_v41, %v6640_v60 }
 0x2d9   : > { %v4046_v26 = vmax.f32 %v4865_v5, 0.0  ;;  %v4869_v21 = vadd.f32 %v3898_v16, %v3320_v35  ;;  %v6678_v47 = vpop.f32.mrb[246].mxu1  ;;  %v3328_v5 = vadd.f32 %v6558_v29, %v6634_v22 }
 0x2da   : > { %v4047_v28 = vmax.f32 %v4867_v57, 0.0  ;;  %v6680_v44 = vpop.f32.mrb[247].mxu1  ;;  %v3330_v57 = vadd.f32 %v6560_v50, %v6640_v60 }
 0x2db   : > { %v4824_v17 = vpack.c.bf16 %v4046_v26, %v4045_v18  ;;  %v4048_v31 = vmax.f32 %v4869_v21, 0.0 }
 0x2dd   : > { %4299 = vst [vmem:[%s6660_s25 + $0x10] sm:$0xff] %v4824_v17  ;;  %v4825_v32 = vpack.c.bf16 %v4048_v31, %v4047_v28  ;;  %v3902_v46 = vpop.f32.mrb[72].mxu0 }
 0x2de   : > { %v4871_v35 = vadd.f32 %v3902_v46, %v3324_v34  ;;  %v3904_v53 = vpop.f32.mrb[73].mxu0 }
 0x2df   : > { %4300 = vst [vmem:[%s6660_s25 + $0x18] sm:$0xff] %v4825_v32  ;;  %v4873_v18 = vadd.f32 %v3904_v53, %v3326_v33  ;;  %v6692_v16 = vpop.f32.mrb[248].mxu1  ;;  %v3906_v48 = vpop.f32.mrb[74].mxu0  ;;  %v3334_v33 = vadd.f32 %v6562_v1, %v6634_v22 }
 0x2e0   : > { %v4049_v26 = vmax.f32 %v4871_v35, 0.0  ;;  %v4875_v21 = vadd.f32 %v3906_v48, %v3328_v5  ;;  %v6694_v41 = vpop.f32.mrb[249].mxu1  ;;  %v3908_v28 = vpop.f32.mrb[75].mxu0  ;;  %v3336_v35 = vadd.f32 %v6564_v23, %v6640_v60 }
 0x2e1   : > { %v4050_v17 = vmax.f32 %v4873_v18, 0.0  ;;  %v4877_v31 = vadd.f32 %v3908_v28, %v3330_v57  ;;  %v6696_v29 = vpop.f32.mrb[250].mxu1  ;;  %v3338_v18 = vadd.f32 %v6566_v51, %v6634_v22 }
 0x2e2   : > { %v4051_v34 = vmax.f32 %v4875_v21, 0.0  ;;  %v6698_v46 = vpop.f32.mrb[251].mxu1  ;;  %v3340_v21 = vadd.f32 %v6568_v54, %v6640_v60 }
 0x2e3   : > { %v4826_v50 = vpack.c.bf16 %v4050_v17, %v4049_v26  ;;  %v4052_v32 = vmax.f32 %v4877_v31, 0.0 }
 0x2e5   : > { %4301 = vst [vmem:[%s6660_s25 + $0x20] sm:$0xff] %v4826_v50  ;;  %v4827_v5 = vpack.c.bf16 %v4052_v32, %v4051_v34  ;;  %v3912_v53 = vpop.f32.mrb[76].mxu0 }
 0x2e6   : > { %v4879_v57 = vadd.f32 %v3912_v53, %v3334_v33  ;;  %v3914_v48 = vpop.f32.mrb[77].mxu0 }
 0x2e7   : > { %4302 = vst [vmem:[%s6660_s25 + $0x28] sm:$0xff] %v4827_v5  ;;  %v4881_v26 = vadd.f32 %v3914_v48, %v3336_v35  ;;  %v6710_v28 = vpop.f32.mrb[252].mxu1  ;;  %v3916_v1 = vpop.f32.mrb[78].mxu0  ;;  %v3344_v35 = vadd.f32 %v6570_v2, %v6634_v22 }
 0x2e8   : > { %v4053_v17 = vmax.f32 %v4879_v57, 0.0  ;;  %v4883_v31 = vadd.f32 %v3916_v1, %v3338_v18  ;;  %v6712_v23 = vpop.f32.mrb[253].mxu1  ;;  %v3918_v34 = vpop.f32.mrb[79].mxu0  ;;  %v3346_v57 = vadd.f32 %v6572_v55, %v6640_v60 }
 0x2e9   : > { %v4054_v50 = vmax.f32 %v4881_v26, 0.0  ;;  %v4885_v32 = vadd.f32 %v3918_v34, %v3340_v21  ;;  %v6714_v51 = vpop.f32.mrb[254].mxu1  ;;  %v3348_v26 = vadd.f32 %v6574_v13, %v6634_v22  ;;  %v3354_v13 = vadd.f32 %v6578_v56, %v6634_v22 }
 0x2ea   : > { %v4055_v33 = vmax.f32 %v4883_v31, 0.0  ;;  %v6716_v53 = vpop.f32.mrb[255].mxu1  ;;  %v3350_v31 = vadd.f32 %v6576_v45, %v6640_v60 }
 0x2eb   : > { %6862 = vst [vmem:[#allocation3_spill] sm:$0xff] %v6716_v53  ;;  %v4828_v54 = vpack.c.bf16 %v4054_v50, %v4053_v17  ;;  %v4056_v5 = vmax.f32 %v4885_v32, 0.0 }
 0x2ed   : > { %4303 = vst [vmem:[%s6660_s25 + $0x30] sm:$0xff] %v4828_v54  ;;  %v4829_v18 = vpack.c.bf16 %v4056_v5, %v4055_v33  ;;  %v3922_v48 = vpop.f32.mrb[80].mxu0 }
 0x2ee   : > { %v4887_v21 = vadd.f32 %v3922_v48, %v3344_v35  ;;  %v3924_v1 = vpop.f32.mrb[81].mxu0  ;;  %v3356_v35 = vadd.f32 %v6580_v14, %v6640_v60 }
 0x2ef   : > { %4304 = vst [vmem:[%s6660_s25 + $0x38] sm:$0xff] %v4829_v18  ;;  %v4889_v17 = vadd.f32 %v3924_v1, %v3346_v57  ;;  %v3926_v34 = vpop.f32.mrb[82].mxu0  ;;  %v3358_v57 = vadd.f32 %v6582_v58, %v6634_v22  ;;  %v3364_v58 = vadd.f32 %v6586_v59, %v6634_v22 }
 0x2f0   : > { %v4057_v50 = vmax.f32 %v4887_v21, 0.0  ;;  %v4891_v2 = vadd.f32 %v3926_v34, %v3348_v26  ;;  %v3928_v32 = vpop.f32.mrb[83].mxu0  ;;  %v3360_v21 = vadd.f32 %v6584_v38, %v6640_v60 }
 0x2f1   : > { %v4058_v55 = vmax.f32 %v4889_v17, 0.0  ;;  %v4893_v54 = vadd.f32 %v3928_v32, %v3350_v31 }
 0x2f2   : > { %v4059_v33 = vmax.f32 %v4891_v2, 0.0 }
 0x2f3   : > { %v4830_v5 = vpack.c.bf16 %v4058_v55, %v4057_v50  ;;  %v4060_v53 = vmax.f32 %v4893_v54, 0.0  ;;  %v3366_v55 = vadd.f32 %v6588_v30, %v6640_v60 }
 0x2f5   : > { %4305 = vst [vmem:[%s6660_s25 + $0x40] sm:$0xff] %v4830_v5  ;;  %v4831_v45 = vpack.c.bf16 %v4060_v53, %v4059_v33  ;;  %v3932_v18 = vpop.f32.mrb[84].mxu0  ;;  %v3368_v33 = vadd.f32 %v6590_v61, %v6634_v22  ;;  %v3374_v61 = vadd.f32 %v6594_v20, %v6634_v22 }
 0x2f6   : > { %v4895_v48 = vadd.f32 %v3932_v18, %v3354_v13  ;;  %v3934_v26 = vpop.f32.mrb[85].mxu0 }
 0x2f7   : > { %4306 = vst [vmem:[%s6660_s25 + $0x48] sm:$0xff] %v4831_v45  ;;  %v4897_v1 = vadd.f32 %v3934_v26, %v3356_v35  ;;  %v3936_v31 = vpop.f32.mrb[86].mxu0  ;;  %v3370_v35 = vadd.f32 %v6592_v63, %v6640_v60 }
 0x2f8   : > { %v4061_v17 = vmax.f32 %v4895_v48, 0.0  ;;  %v4899_v56 = vadd.f32 %v3936_v31, %v3358_v57  ;;  %v3938_v34 = vpop.f32.mrb[87].mxu0 }
 0x2f9   : > { %v4062_v14 = vmax.f32 %v4897_v1, 0.0  ;;  %v4901_v50 = vadd.f32 %v3938_v34, %v3360_v21  ;;  %v3378_v34 = vadd.f32 %v6598_v0, %v6634_v22  ;;  %v3384_v0 = vadd.f32 %v6602_v40, %v6634_v22 }
 0x2fa   : > { %v4063_v53 = vmax.f32 %v4899_v56, 0.0 }
 0x2fb   : > { %v4832_v2 = vpack.c.bf16 %v4062_v14, %v4061_v17  ;;  %v4064_v32 = vmax.f32 %v4901_v50, 0.0  ;;  %v3376_v17 = vadd.f32 %v6596_v62, %v6640_v60 }
 0x2fd   : > { %4307 = vst [vmem:[%s6660_s25 + $0x50] sm:$0xff] %v4832_v2  ;;  %v4833_v38 = vpack.c.bf16 %v4064_v32, %v4063_v53  ;;  %v3942_v54 = vpop.f32.mrb[88].mxu0  ;;  %v3380_v53 = vadd.f32 %v6600_v10, %v6640_v60 }
 0x2fe   : > { %v4903_v5 = vadd.f32 %v3942_v54, %v3364_v58  ;;  %v3944_v13 = vpop.f32.mrb[89].mxu0 }
 0x2ff   : > { %4308 = vst [vmem:[%s6660_s25 + $0x58] sm:$0xff] %v4833_v38  ;;  %v4905_v45 = vadd.f32 %v3944_v13, %v3366_v55  ;;  %v3946_v18 = vpop.f32.mrb[90].mxu0  ;;  %v3386_v13 = vadd.f32 %v6604_v52, %v6640_v60 }
 0x300   : > { %v4065_v57 = vmax.f32 %v4903_v5, 0.0  ;;  %v4907_v59 = vadd.f32 %v3946_v18, %v3368_v33  ;;  %v3948_v48 = vpop.f32.mrb[91].mxu0 }
 0x301   : > { %v4066_v30 = vmax.f32 %v4905_v45, 0.0  ;;  %v4909_v26 = vadd.f32 %v3948_v48, %v3370_v35  ;;  %v3388_v45 = vadd.f32 %v6606_v12, %v6634_v22  ;;  %v3394_v12 = vadd.f32 %v6610_v7, %v6634_v22 }
 0x302   : > { %v4067_v21 = vmax.f32 %v4907_v59, 0.0  ;;  %v3390_v59 = vadd.f32 %v6608_v36, %v6640_v60 }
 0x303   : > { %v4834_v1 = vpack.c.bf16 %v4066_v30, %v4065_v57  ;;  %v4068_v31 = vmax.f32 %v4909_v26, 0.0 }
 0x305   : > { %4309 = vst [vmem:[%s6660_s25 + $0x60] sm:$0xff] %v4834_v1  ;;  %v4835_v63 = vpack.c.bf16 %v4068_v31, %v4067_v21  ;;  %v3952_v56 = vpop.f32.mrb[92].mxu0 }
 0x306   : > { %v4911_v14 = vadd.f32 %v3952_v56, %v3374_v61  ;;  %v3954_v50 = vpop.f32.mrb[93].mxu0 }
 0x307   : > { %4310 = vst [vmem:[%s6660_s25 + $0x68] sm:$0xff] %v4835_v63  ;;  %v4913_v2 = vadd.f32 %v3954_v50, %v3376_v17  ;;  %v3956_v32 = vpop.f32.mrb[94].mxu0  ;;  %v3396_v63 = vadd.f32 %v6612_v3, %v6640_v60 }
 0x308   : > { %v4069_v58 = vmax.f32 %v4911_v14, 0.0  ;;  %v4915_v20 = vadd.f32 %v3956_v32, %v3378_v34  ;;  %v3958_v55 = vpop.f32.mrb[95].mxu0  ;;  %v3398_v34 = vadd.f32 %v6614_v27, %v6634_v22  ;;  %v3404_v27 = vadd.f32 %v6619_v19, %v6634_v22 }
 0x309   : > { %v4070_v62 = vmax.f32 %v4913_v2, 0.0  ;;  %v4917_v38 = vadd.f32 %v3958_v55, %v3380_v53  ;;  %v3400_v53 = vadd.f32 %v6616_v4, %v6640_v60 }
 0x30a   : > { %v4071_v54 = vmax.f32 %v4915_v20, 0.0 }
 0x30b   : > { %v4836_v33 = vpack.c.bf16 %v4070_v62, %v4069_v58  ;;  %v4072_v5 = vmax.f32 %v4917_v38, 0.0 }
 0x30d   : > { %4311 = vst [vmem:[%s6660_s25 + $0x70] sm:$0xff] %v4836_v33  ;;  %v4837_v10 = vpack.c.bf16 %v4072_v5, %v4071_v54  ;;  %v3962_v35 = vpop.f32.mrb[96].mxu0  ;;  %v3406_v33 = vadd.f32 %v6621_v8, %v6640_v60 }
 0x30e   : > { %v4919_v18 = vadd.f32 %v3962_v35, %v3384_v0  ;;  %v3964_v57 = vpop.f32.mrb[97].mxu0  ;;  %v3408_v0 = vadd.f32 %v6623_v9, %v6634_v22  ;;  %v3410_v35 = vadd.f32 %v6628_v11, %v6640_v60  ;;  %v3414_v9 = vadd.f32 %v6630_v6, %v6634_v22 }
 0x30f   : > { %4312 = vst [vmem:[%s6660_s25 + $0x78] sm:$0xff] %v4837_v10  ;;  %v4921_v48 = vadd.f32 %v3964_v57, %v3386_v13  ;;  %v3966_v30 = vpop.f32.mrb[98].mxu0 }
 0x310   : > { %v4073_v26 = vmax.f32 %v4919_v18, 0.0  ;;  %v4923_v40 = vadd.f32 %v3966_v30, %v3388_v45  ;;  %v3968_v21 = vpop.f32.mrb[99].mxu0 }
 0x311   : > { %v4074_v52 = vmax.f32 %v4921_v48, 0.0  ;;  %v4925_v1 = vadd.f32 %v3968_v21, %v3390_v59  ;;  %v3416_v21 = vadd.f32 %v6636_v24, %v6640_v60 }
 0x312   : > { %v4075_v31 = vmax.f32 %v4923_v40, 0.0 }
 0x313   : > { %v4838_v61 = vpack.c.bf16 %v4074_v52, %v4073_v26  ;;  %v4076_v17 = vmax.f32 %v4925_v1, 0.0  ;;  %v3418_v1 = vadd.f32 %v6642_v25, %v6634_v22  ;;  %v3424_v25 = vadd.f32 %v6651_v42, %v6634_v22 }
 0x315   : > { %4313 = vst [vmem:[%s6660_s25 + $0x80] sm:$0xff] %v4838_v61  ;;  %v4839_v36 = vpack.c.bf16 %v4076_v17, %v4075_v31  ;;  %v3972_v56 = vpop.f32.mrb[100].mxu0  ;;  %v6863_v17 = vld [vmem:[#allocation2_spill] sm:$0xff] }
 0x316   : > { %v4927_v14 = vadd.f32 %v3972_v56, %v3394_v12  ;;  %v3974_v50 = vpop.f32.mrb[101].mxu0  ;;  %v3420_v12 = vadd.f32 %v6863_v17, %v6640_v60  ;;  %v3450_v17 = vadd.f32 %v6698_v46, %v6640_v60 }
 0x317   : > { %4314 = vst [vmem:[%s6660_s25 + $0x88] sm:$0xff] %v4839_v36  ;;  %v4929_v2 = vadd.f32 %v3974_v50, %v3396_v63  ;;  %v3976_v32 = vpop.f32.mrb[102].mxu0 }
 0x318   : > { %v4077_v58 = vmax.f32 %v4927_v14, 0.0  ;;  %v4931_v7 = vadd.f32 %v3976_v32, %v3398_v34  ;;  %v3978_v20 = vpop.f32.mrb[103].mxu0  ;;  %v3426_v32 = vadd.f32 %v6653_v37, %v6640_v60 }
 0x319   : > { %v4078_v3 = vmax.f32 %v4929_v2, 0.0  ;;  %v4933_v55 = vadd.f32 %v3978_v20, %v3400_v53  ;;  %v3428_v20 = vadd.f32 %v6655_v39, %v6634_v22  ;;  %v3434_v39 = vadd.f32 %v6674_v49, %v6634_v22 }
 0x31a   : > { %v4079_v62 = vmax.f32 %v4931_v7, 0.0 }
 0x31b   : > { %v4840_v38 = vpack.c.bf16 %v4078_v3, %v4077_v58  ;;  %v4080_v54 = vmax.f32 %v4933_v55, 0.0 }
 0x31d   : > { %4315 = vst [vmem:[%s6660_s25 + $0x90] sm:$0xff] %v4840_v38  ;;  %v4841_v4 = vpack.c.bf16 %v4080_v54, %v4079_v62  ;;  %v3982_v5 = vpop.f32.mrb[104].mxu0  ;;  %v3430_v62 = vadd.f32 %v6662_v43, %v6640_v60 }
 0x31e   : > { %v4935_v13 = vadd.f32 %v3982_v5, %v3404_v27  ;;  %v3984_v10 = vpop.f32.mrb[105].mxu0 }
 0x31f   : > { %4316 = vst [vmem:[%s6660_s25 + $0x98] sm:$0xff] %v4841_v4  ;;  %v4937_v45 = vadd.f32 %v3984_v10, %v3406_v33  ;;  %v3986_v18 = vpop.f32.mrb[106].mxu0  ;;  %v3436_v10 = vadd.f32 %v6676_v15, %v6640_v60 }
 0x320   : > { %v4081_v57 = vmax.f32 %v4935_v13, 0.0  ;;  %v4939_v19 = vadd.f32 %v3986_v18, %v3408_v0  ;;  %v3988_v59 = vpop.f32.mrb[107].mxu0 }
 0x321   : > { %v4082_v8 = vmax.f32 %v4937_v45, 0.0  ;;  %v4941_v48 = vadd.f32 %v3988_v59, %v3410_v35  ;;  %v3438_v45 = vadd.f32 %v6678_v47, %v6634_v22  ;;  %v3444_v47 = vadd.f32 %v6692_v16, %v6634_v22 }
 0x322   : > { %v4083_v30 = vmax.f32 %v4939_v19, 0.0  ;;  %v3440_v19 = vadd.f32 %v6680_v44, %v6640_v60 }
 0x323   : > { %v4842_v26 = vpack.c.bf16 %v4082_v8, %v4081_v57  ;;  %v4084_v40 = vmax.f32 %v4941_v48, 0.0 }
 0x325   : > { %4317 = vst [vmem:[%s6660_s25 + $0xa0] sm:$0xff] %v4842_v26  ;;  %v4843_v11 = vpack.c.bf16 %v4084_v40, %v4083_v30  ;;  %v3992_v52 = vpop.f32.mrb[108].mxu0 }
 0x326   : > { %v4943_v31 = vadd.f32 %v3992_v52, %v3414_v9  ;;  %v3994_v61 = vpop.f32.mrb[109].mxu0 }
 0x327   : > { %4318 = vst [vmem:[%s6660_s25 + $0xa8] sm:$0xff] %v4843_v11  ;;  %v4945_v63 = vadd.f32 %v3994_v61, %v3416_v21  ;;  %v3996_v36 = vpop.f32.mrb[110].mxu0  ;;  %v3446_v11 = vadd.f32 %v6694_v41, %v6640_v60 }
 0x328   : > { %v4085_v56 = vmax.f32 %v4943_v31, 0.0  ;;  %v4947_v6 = vadd.f32 %v3996_v36, %v3418_v1  ;;  %v3998_v34 = vpop.f32.mrb[111].mxu0  ;;  %v3448_v1 = vadd.f32 %v6696_v29, %v6634_v22  ;;  %v3454_v29 = vadd.f32 %v6710_v28, %v6634_v22 }
 0x329   : > { %v4086_v24 = vmax.f32 %v4945_v63, 0.0  ;;  %v4949_v14 = vadd.f32 %v3998_v34, %v3420_v12 }
 0x32a   : > { %v4087_v50 = vmax.f32 %v4947_v6, 0.0 }
 0x32b   : > { %v4844_v53 = vpack.c.bf16 %v4086_v24, %v4085_v56  ;;  %v4088_v2 = vmax.f32 %v4949_v14, 0.0 }
 0x32d   : > { %4319 = vst [vmem:[%s6660_s25 + $0xb0] sm:$0xff] %v4844_v53  ;;  %v4845_v58 = vpack.c.bf16 %v4088_v2, %v4087_v50  ;;  %v4002_v7 = vpop.f32.mrb[112].mxu0  ;;  %v3456_v50 = vadd.f32 %v6712_v23, %v6640_v60  ;;  %v3458_v2 = vadd.f32 %v6714_v51, %v6634_v22 }
 0x32e   : > { %v4951_v3 = vadd.f32 %v4002_v7, %v3424_v25  ;;  %v4004_v55 = vpop.f32.mrb[113].mxu0 }
 0x32f   : > { %4320 = vst [vmem:[%s6660_s25 + $0xb8] sm:$0xff] %v4845_v58  ;;  %v4953_v38 = vadd.f32 %v4004_v55, %v3426_v32  ;;  %v4006_v54 = vpop.f32.mrb[114].mxu0  ;;  %v6864_v58 = vld [vmem:[#allocation3_spill] sm:$0xff] }
 0x330   : > { %v4089_v27 = vmax.f32 %v4951_v3, 0.0  ;;  %v4955_v42 = vadd.f32 %v4006_v54, %v3428_v20  ;;  %v4008_v33 = vpop.f32.mrb[115].mxu0  ;;  %v3460_v7 = vadd.f32 %v6864_v58, %v6640_v60 }
 0x331   : > { %v4090_v37 = vmax.f32 %v4953_v38, 0.0  ;;  %v4957_v4 = vadd.f32 %v4008_v33, %v3430_v62 }
 0x332   : > { %v4091_v5 = vmax.f32 %v4955_v42, 0.0 }
 0x333   : > { %v4846_v0 = vpack.c.bf16 %v4090_v37, %v4089_v27  ;;  %v4092_v13 = vmax.f32 %v4957_v4, 0.0 }
 0x335   : > { %4321 = vst [vmem:[%s6660_s25 + $0xc0] sm:$0xff] %v4846_v0  ;;  %v4847_v43 = vpack.c.bf16 %v4092_v13, %v4091_v5  ;;  %v4012_v35 = vpop.f32.mrb[116].mxu0 }
 0x336   : > { %v4959_v18 = vadd.f32 %v4012_v35, %v3434_v39  ;;  %v4014_v57 = vpop.f32.mrb[117].mxu0 }
 0x337   : > { %4322 = vst [vmem:[%s6660_s25 + $0xc8] sm:$0xff] %v4847_v43  ;;  %v4961_v59 = vadd.f32 %v4014_v57, %v3436_v10  ;;  %v4016_v8 = vpop.f32.mrb[118].mxu0 }
 0x338   : > { %v4093_v48 = vmax.f32 %v4959_v18, 0.0  ;;  %v4963_v49 = vadd.f32 %v4016_v8, %v3438_v45  ;;  %v4018_v30 = vpop.f32.mrb[119].mxu0 }
 0x339   : > { %v4094_v15 = vmax.f32 %v4961_v59, 0.0  ;;  %v4965_v26 = vadd.f32 %v4018_v30, %v3440_v19 }
 0x33a   : > { %v4095_v40 = vmax.f32 %v4963_v49, 0.0 }
 0x33b   : > { %v4848_v9 = vpack.c.bf16 %v4094_v15, %v4093_v48  ;;  %v4096_v21 = vmax.f32 %v4965_v26, 0.0 }
 0x33d   : > { %4323 = vst [vmem:[%s6660_s25 + $0xd0] sm:$0xff] %v4848_v9  ;;  %v4849_v44 = vpack.c.bf16 %v4096_v21, %v4095_v40  ;;  %v4022_v52 = vpop.f32.mrb[120].mxu0 }
 0x33e   : > { %v4967_v31 = vadd.f32 %v4022_v52, %v3444_v47  ;;  %v4024_v61 = vpop.f32.mrb[121].mxu0 }
 0x33f   : > { %4324 = vst [vmem:[%s6660_s25 + $0xd8] sm:$0xff] %v4849_v44  ;;  %v4969_v12 = vadd.f32 %v4024_v61, %v3446_v11  ;;  %v4026_v63 = vpop.f32.mrb[122].mxu0 }
 0x340   : > { %v4097_v36 = vmax.f32 %v4967_v31, 0.0  ;;  %v4971_v16 = vadd.f32 %v4026_v63, %v3448_v1  ;;  %v4028_v56 = vpop.f32.mrb[123].mxu0 }
 0x341   : > { %v4098_v41 = vmax.f32 %v4969_v12, 0.0  ;;  %v4973_v6 = vadd.f32 %v4028_v56, %v3450_v17 }
 0x342   : > { %v4099_v34 = vmax.f32 %v4971_v16, 0.0 }
 0x343   : > { %v4850_v24 = vpack.c.bf16 %v4098_v41, %v4097_v36  ;;  %v4100_v14 = vmax.f32 %v4973_v6, 0.0 }
 0x345   : > { %4325 = vst [vmem:[%s6660_s25 + $0xe0] sm:$0xff] %v4850_v24  ;;  %v4851_v46 = vpack.c.bf16 %v4100_v14, %v4099_v34  ;;  %v4032_v53 = vpop.f32.mrb[124].mxu0 }
 0x346   : > { %v4975_v25 = vadd.f32 %v4032_v53, %v3454_v29  ;;  %v4034_v32 = vpop.f32.mrb[125].mxu0 }
 0x347   : > { %4326 = vst [vmem:[%s6660_s25 + $0xe8] sm:$0xff] %v4851_v46  ;;  %v4977_v20 = vadd.f32 %v4034_v32, %v3456_v50  ;;  %v4036_v3 = vpop.f32.mrb[126].mxu0 }
 0x348   : > { %v4101_v28 = vmax.f32 %v4975_v25, 0.0  ;;  %v4979_v55 = vadd.f32 %v4036_v3, %v3458_v2  ;;  %v4038_v62 = vpop.f32.mrb[127].mxu0 }
 0x349   : > { %v4102_v23 = vmax.f32 %v4977_v20, 0.0  ;;  %v4981_v38 = vadd.f32 %v4038_v62, %v3460_v7 }
 0x34a   : > { %v4103_v54 = vmax.f32 %v4979_v55, 0.0 }
 0x34b   : > { %v4852_v27 = vpack.c.bf16 %v4102_v23, %v4101_v28  ;;  %v4104_v42 = vmax.f32 %v4981_v38, 0.0 }
 0x34d   : > { %4327 = vst [vmem:[%s6660_s25 + $0xf0] sm:$0xff] %v4852_v27  ;;  %v4853_v33 = vpack.c.bf16 %v4104_v42, %v4103_v54 }
 0x34f   : > { %4328 = vst [vmem:[%s6660_s25 + $0xf8] sm:$0xff] %v4853_v33 }
 0x350 PF: > { %s21_s19 = sadd.s32 1, %s5437_s19   ;;  %s6865_s17 = smov %s5433_s18 }
 0x351   : > { %p18_p5 = scmp.ge.s32.totalorder %s21_s19, 4   ;;  %s6866_s18 = smov %s6868_s20 }
 0x353   :  { %20 = sbr.rel (!%p18_p5) target bundleno = 2 (0x2), region = 106 }

// kernel: _lambda_.3
= control target key start
LH: loop header
LB: loop body
LE: loop exit
PB: predicated region body
PF: predicated region fallthrough
CT: control target
= control target key end

     0   :  { %s10221_s18 = smov 0   ;;  %s13019_s0 = inlined_call_operand.vmem [shape: bf16[2,18,18,256], index: 0, kind: input, shape index: {}]   ;;  %s13020_s1 = inlined_call_operand.vmem [shape: bf16[9,256,256], index: 1, kind: input, shape index: {}]   ;;  %s13021_s2 = inlined_call_operand.vmem [shape: f32[1,256], index: 2, kind: input, shape index: {}]   ;;  %s13022_s3 = inlined_call_operand.vmem [shape: bf16[256,128], index: 3, kind: input, shape index: {}]   ;;  %s13023_s4 = inlined_call_operand.vmem [shape: f32[1,128], index: 4, kind: input, shape index: {}]   ;;  %s13024_s5 = inlined_call_operand.vmem [shape: f32[2,256,128], index: 5, kind: output, shape index: {}]  }
   0x1 LB: > { %s7830_s19 = sadd.s32 4294967295, %s10189_s18   ;;  %p7834_p0 = scmp.ge.s32.totalorder %s10189_s18, 1  ;;  %s10189_s18 = sphi %s10221_s18, %s15_s18  }
   0x2   : > { %p187_p1 = scmp.lt.s32.totalorder %s10189_s18, 3 }
   0x4   : > { %p188_p2 = pnand %p7834_p0, %p187_p1 }
   0x6   : > { %191 = sbr.rel (%p188_p2) target bundleno = 1155 (0x483), region = 40 }
   0xd   : > { %v9563_v0 = vld [vmem:[%s13020_s1 + $0x104] ss:$8 sps:$4 sm:$0xff]   ;;  %v9567_v2 = vld [vmem:[%s13020_s1 + $0x100] ss:$8 sps:$4 sm:$0xff]   ;;  %v9569_v4 = vld [vmem:[%s13020_s1 + $0x114] ss:$8 sps:$4 sm:$0xff]  }
   0xe   : > { %v9565_v1 = vld [vmem:[%s13020_s1 + $0x404] ss:$8 sps:$4 sm:$0xff]   ;;  %1014 = vmatprep.subr.bf16.mxu1 %v9563_v0  ;;  %v9568_v3 = vld [vmem:[%s13020_s1 + $0x400] ss:$8 sps:$4 sm:$0xff]   ;;  %v9571_v5 = vld [vmem:[%s13020_s1 + $0x414] ss:$8 sps:$4 sm:$0xff]  }
   0xf   : > { %3857 = vmatprep.subr.bf16.mxu0 %v9565_v1  ;;  %1015 = vmatpush1.bf16.msra.mxu1 %v9567_v2  ;;  %v9573_v6 = vld [vmem:[%s13020_s1 + $0x110] ss:$8 sps:$4 sm:$0xff]   ;;  %v9575_v8 = vld [vmem:[%s13020_s1 + $0x124] ss:$8 sps:$4 sm:$0xff]   ;;  %v9579_v10 = vld [vmem:[%s13020_s1 + $0x120] ss:$8 sps:$4 sm:$0xff]  }
  0x10   : > { %3858 = vmatpush1.bf16.msra.mxu0 %v9568_v3  ;;  %1016 = vmatprep.subr.bf16.mxu1 %v9569_v4  ;;  %v9574_v7 = vld [vmem:[%s13020_s1 + $0x410] ss:$8 sps:$4 sm:$0xff]   ;;  %v9577_v9 = vld [vmem:[%s13020_s1 + $0x424] ss:$8 sps:$4 sm:$0xff]   ;;  %v9580_v11 = vld [vmem:[%s13020_s1 + $0x420] ss:$8 sps:$4 sm:$0xff]  }
  0x11   : > { %3859 = vmatprep.subr.bf16.mxu0 %v9571_v5  ;;  %v9581_v12 = vld [vmem:[%s13020_s1 + $0x134] ss:$8 sps:$4 sm:$0xff]   ;;  %v9585_v14 = vld [vmem:[%s13020_s1 + $0x130] ss:$8 sps:$4 sm:$0xff]   ;;  %v9587_v16 = vld [vmem:[%s13020_s1 + $0x144] ss:$8 sps:$4 sm:$0xff]  }
  0x12   : > { %v9583_v13 = vld [vmem:[%s13020_s1 + $0x434] ss:$8 sps:$4 sm:$0xff]   ;;  %v9586_v15 = vld [vmem:[%s13020_s1 + $0x430] ss:$8 sps:$4 sm:$0xff]   ;;  %v9589_v17 = vld [vmem:[%s13020_s1 + $0x444] ss:$8 sps:$4 sm:$0xff]  }
  0x13   : > { %1017 = vmatpush1.bf16.msra.mxu1 %v9573_v6  ;;  %v9591_v18 = vld [vmem:[%s13020_s1 + $0x140] ss:$8 sps:$4 sm:$0xff]   ;;  %v9593_v20 = vld [vmem:[%s13020_s1 + $0x154] ss:$8 sps:$4 sm:$0xff]   ;;  %v9597_v22 = vld [vmem:[%s13020_s1 + $0x150] ss:$8 sps:$4 sm:$0xff]  }
  0x14   : > { %3860 = vmatpush1.bf16.msra.mxu0 %v9574_v7  ;;  %1018 = vmatprep.subr.bf16.mxu1 %v9575_v8  ;;  %v9592_v19 = vld [vmem:[%s13020_s1 + $0x440] ss:$8 sps:$4 sm:$0xff]   ;;  %v9595_v21 = vld [vmem:[%s13020_s1 + $0x454] ss:$8 sps:$4 sm:$0xff]   ;;  %v9598_v23 = vld [vmem:[%s13020_s1 + $0x450] ss:$8 sps:$4 sm:$0xff]  }
  0x15   : > { %3861 = vmatprep.subr.bf16.mxu0 %v9577_v9  ;;  %v9599_v24 = vld [vmem:[%s13020_s1 + $0x164] ss:$8 sps:$4 sm:$0xff]   ;;  %v9603_v26 = vld [vmem:[%s13020_s1 + $0x160] ss:$8 sps:$4 sm:$0xff]   ;;  %v9605_v28 = vld [vmem:[%s13020_s1 + $0x174] ss:$8 sps:$4 sm:$0xff]  }
  0x16   : > { %v9601_v25 = vld [vmem:[%s13020_s1 + $0x464] ss:$8 sps:$4 sm:$0xff]   ;;  %v9604_v27 = vld [vmem:[%s13020_s1 + $0x460] ss:$8 sps:$4 sm:$0xff]   ;;  %v9607_v29 = vld [vmem:[%s13020_s1 + $0x474] ss:$8 sps:$4 sm:$0xff]  }
  0x17   : > { %1019 = vmatpush1.bf16.msra.mxu1 %v9579_v10  ;;  %v9609_v30 = vld [vmem:[%s13020_s1 + $0x170] ss:$8 sps:$4 sm:$0xff]   ;;  %p215_p3 = scmp.lt.s32.totalorder %s7830_s19, 1  ;;  %v9611_v32 = vld [vmem:[%s13020_s1 + $0x184] ss:$8 sps:$4 sm:$0xff]   ;;  %vm1768_vm3 = vcmask 1042432  }
  0x18   : > { %3862 = vmatpush1.bf16.msra.mxu0 %v9580_v11  ;;  %1020 = vmatprep.subr.bf16.mxu1 %v9581_v12  ;;  %v9610_v31 = vld [vmem:[%s13020_s1 + $0x470] ss:$8 sps:$4 sm:$0xff]   ;;  %v9613_v33 = vld [vmem:[%s13020_s1 + $0x484] ss:$8 sps:$4 sm:$0xff]   ;;  %v9615_v34 = vld [vmem:[%s13020_s1 + $0x180] ss:$8 sps:$4 sm:$0xff]  }
  0x19   : > { %3863 = vmatprep.subr.bf16.mxu0 %v9583_v13  ;;  %v9616_v35 = vld [vmem:[%s13020_s1 + $0x480] ss:$8 sps:$4 sm:$0xff]   ;;  %s13081_s19 = smov (!%p215_p3, %s7830_s19), 1  ;;  %v9617_v36 = vld [vmem:[%s13020_s1 + $0x194] ss:$8 sps:$4 sm:$0xff]   ;;  %vm1769_vm4 = vcmask 1046532  }
  0x1a   : > { %v9619_v37 = vld [vmem:[%s13020_s1 + $0x494] ss:$8 sps:$4 sm:$0xff]   ;;  %v9621_v38 = vld [vmem:[%s13020_s1 + $0x190] ss:$8 sps:$4 sm:$0xff]   ;;  %s9554_s29 = smul.u32 432, %s13081_s19  ;;  %vm11098_vm5 = vmor %vm1768_vm3, %vm1769_vm4  ;;  %s8929_s10 = sshll.u32 %s13081_s19, 8 }
  0x1b   : > { %1021 = vmatpush1.bf16.msra.mxu1 %v9585_v14  ;;  %v9622_v39 = vld [vmem:[%s13020_s1 + $0x490] ss:$8 sps:$4 sm:$0xff]   ;;  %v9623_v40 = vld [vmem:[%s13020_s1 + $0x1a4] ss:$8 sps:$4 sm:$0xff]   ;;  %v9627_v42 = vld [vmem:[%s13020_s1 + $0x1a0] ss:$8 sps:$4 sm:$0xff]   ;;  %s12950_s15 = scalar_lea.vmem %s13024_s5, %s8929_s10 }
  0x1c   : > { %3864 = vmatpush1.bf16.msra.mxu0 %v9586_v15  ;;  %1022 = vmatprep.subr.bf16.mxu1 %v9587_v16  ;;  %v9625_v41 = vld [vmem:[%s13020_s1 + $0x4a4] ss:$8 sps:$4 sm:$0xff]   ;;  %v9628_v43 = vld [vmem:[%s13020_s1 + $0x4a0] ss:$8 sps:$4 sm:$0xff]   ;;  %s10371_s17 = scalar_lea.vmem %s13019_s0, %s9554_s29  ;;  %v9629_v44 = vld [vmem:[%s13020_s1 + $0x1b4] ss:$8 sps:$4 sm:$0xff]  }
  0x1d   : > { %3865 = vmatprep.subr.bf16.mxu0 %v9589_v17  ;;  %vm306_vm0 = vsmask.f32 3328  ;;  %v9631_v45 = vld [vmem:[%s13020_s1 + $0x4b4] ss:$8 sps:$4 sm:$0xff]   ;;  %vm307_vm1 = vsmask.f32 7440 }
  0x1e   : > { %v9633_v46 = vld [vmem:[%s13020_s1 + $0x1b0] ss:$8 sps:$4 sm:$0xff]   ;;  %v226_v48 = vld [vmem:[%s10371_s17] sm:$0xff]  ;;  %v227_v51 = vld [vmem:[%s10371_s17 + $0x8] sm:$0xff] }
  0x1f   : > { %1023 = vmatpush1.bf16.msra.mxu1 %v9591_v18  ;;  %v9634_v47 = vld [vmem:[%s13020_s1 + $0x4b0] ss:$8 sps:$4 sm:$0xff]   ;;  %v9635_v49 = vld [vmem:[%s13020_s1 + $0x1c4] ss:$8 sps:$4 sm:$0xff]   ;;  %v310_v53 = vshrl.u32 %v226_v48, 16  ;;  %v313_v54 = vshll.u32 %v226_v48, 16  ;;  %vm10412_vm2 = vmor %vm306_vm0, %vm307_vm1 }
  0x20   : > { %3866 = vmatpush1.bf16.msra.mxu0 %v9592_v19  ;;  %1024 = vmatprep.subr.bf16.mxu1 %v9593_v20  ;;  %v9637_v50 = vld [vmem:[%s13020_s1 + $0x4c4] ss:$8 sps:$4 sm:$0xff]   ;;  %v290_v52 = vld [vmem:[%s10371_s17 + $0x10] sm:$0x11]  ;;  %v319_v55 = vshll.u32 %v227_v51, 16  ;;  %v323_v56 = vshrl.u32 %v227_v51, 16 }
  0x21   : > { %3867 = vmatprep.subr.bf16.mxu0 %v9595_v21  ;;  %v329_v57 = vshll.u32 %v290_v52, 16  ;;  %v8238_v58 = vld [vmem:[%s10371_s17 + $0x18] sm:$0xff]  ;;  %v8239_v59 = vld [vmem:[%s10371_s17 + $0x20] sm:$0xff]  ;;  %v312_v60 = vrot.slane %v310_v53, 4  ;;  %v315_v61 = vrot.slane %v313_v54, 5  ;;  %v8241_v11 = vld [vmem:[%s10371_s17 + $0x30] sm:$0xff] }
  0x22   : > { %v8240_v62 = vld [vmem:[%s10371_s17 + $0x28] sm:$0x11]  ;;  %v3153_v63 = vshrl.u32 %v8238_v58, 16  ;;  %v3156_v0 = vshll.u32 %v8238_v58, 16  ;;  %v321_v3 = vrot.slane %v319_v55, 5  ;;  %v325_v4 = vrot.slane %v323_v56, 4 }
  0x23   : > { %1025 = vmatpush1.bf16.msra.mxu1 %v9597_v22  ;;  %v9639_v1 = vld [vmem:[%s13020_s1 + $0x1c0] ss:$8 sps:$4 sm:$0xff]   ;;  %v3162_v5 = vshll.u32 %v8239_v59, 16  ;;  %v9641_v6 = vld [vmem:[%s13020_s1 + $0x1d4] ss:$8 sps:$4 sm:$0xff]   ;;  %v316_v7 = vor.u32 %v315_v61, %v312_v60  ;;  %v3166_v10 = vshrl.u32 %v8239_v59, 16 }
  0x24   : > { %3868 = vmatpush1.bf16.msra.mxu0 %v9598_v23  ;;  %1026 = vmatprep.subr.bf16.mxu1 %v9599_v24  ;;  %v9640_v2 = vld [vmem:[%s13020_s1 + $0x4c0] ss:$8 sps:$4 sm:$0xff]   ;;  %v3155_v8 = vrot.slane %v3153_v63, 4  ;;  %v3158_v9 = vrot.slane %v3156_v0, 5  ;;  %v9643_v12 = vld [vmem:[%s13020_s1 + $0x4d4] ss:$8 sps:$4 sm:$0xff]   ;;  %v326_v14 = vor.u32 %v325_v4, %v321_v3 }
  0x25   : > { %3869 = vmatprep.subr.bf16.mxu0 %v9601_v25  ;;  %v331_v15 = vrot.slane %v329_v57, 5  ;;  %v3164_v16 = vrot.slane %v3162_v5, 5  ;;  %v3172_v17 = vshll.u32 %v8240_v62, 16  ;;  %v317_v18 = vrot.slane %v316_v7, 4  ;;  %v291_v21 = vld [vmem:[%s10371_s17 + $0x28] sm:$0x11] }
  0x26   : > { %v3159_v19 = vor.u32 %v3158_v9, %v3155_v8  ;;  %v3168_v20 = vrot.slane %v3166_v10, 4  ;;  %v8242_v22 = vld [vmem:[%s10371_s17 + $0x38] sm:$0xff]  ;;  %v327_v23 = vrot.slane %v326_v14, 4  ;;  %v353_v25 = vshll.u32 %v291_v21, 16  ;;  %v8245_v52 = vld [vmem:[%s10371_s17 + $0x50] sm:$0xff]  ;;  %v10105_v13 = vld [vmem:[%s13022_s3 + $0x48] sm:$0xff]  }
  0x27   : > { %1027 = vmatpush1.bf16.msra.mxu1 %v9603_v26  ;;  %v3174_v24 = vrot.slane %v3172_v17, 5  ;;  %v3177_v26 = vshrl.u32 %v8241_v11, 16  ;;  %v9655_v54 = vld [vmem:[%s13020_s1 + $0x4f4] ss:$8 sps:$4 sm:$0xff]   ;;  %v292_v57 = vld [vmem:[%s10371_s17 + $0x40] sm:$0x11] }
  0x28   : > { %3870 = vmatpush1.bf16.msra.mxu0 %v9604_v27  ;;  %1028 = vmatprep.subr.bf16.mxu1 %v9605_v28  ;;  %v9645_v27 = vld [vmem:[%s13020_s1 + $0x1d0] ss:$8 sps:$4 sm:$0xff]   ;;  %v10423_v28 = vsel %vm10412_vm2, %v317_v18, %v321_v3  ;;  %v355_v51 = vrot.slane %v353_v25, 5  ;;  %v3214_v7 = vshrl.u32 %v8245_v52, 16  ;;  %v9659_v18 = vld [vmem:[%s13020_s1 + $0x500] ss:$8 sps:$4 sm:$0xff]  }
  0x29   : > { %3871 = vmatprep.subr.bf16.mxu0 %v9607_v29  ;;  %v3160_v29 = vrot.slane %v3159_v19, 4  ;;  %v8246_v60 = vld [vmem:[%s10371_s17 + $0x58] sm:$0x11] }
  0x2a   : > { %v9657_v61 = vld [vmem:[%s13020_s1 + $0x1f0] ss:$8 sps:$4 sm:$0xff]   ;;  %v3216_v14 = vrot.slane %v3214_v7, 4  ;;  %v9670_v7 = vld [vmem:[%s13020_s1 + $0x534] ss:$8 sps:$4 sm:$0xff]  }
  0x2b   : > { %1029 = vmatpush1.bf16.msra.mxu1 %v9609_v30  ;;  %v3169_v30 = vor.u32 %v3168_v20, %v3164_v16  ;;  %v9658_v3 = vld [vmem:[%s13020_s1 + $0x4f0] ss:$8 sps:$4 sm:$0xff]  }
  0x2c   : > { %3872 = vmatpush1.bf16.msra.mxu0 %v9610_v31  ;;  %1030 = vmatprep.subr.bf16.mxu1 %v9611_v32  ;;  %v8243_v31 = vld [vmem:[%s10371_s17 + $0x40] sm:$0x11]  ;;  %v3180_v32 = vshll.u32 %v8241_v11, 16  ;;  %v3220_v11 = vshll.u32 %v8246_v60, 16 }
  0x2d   : > { %3873 = vmatprep.subr.bf16.mxu0 %v9613_v33  ;;  %v9646_v33 = vld [vmem:[%s13020_s1 + $0x4d0] ss:$8 sps:$4 sm:$0xff]   ;;  %v3196_v48 = vshll.u32 %v8243_v31, 16 }
  0x2f   : > { %1031 = vmatpush1.bf16.msra.mxu1 %v9615_v34  ;;  %v9647_v34 = vld [vmem:[%s13020_s1 + $0x1e4] ss:$8 sps:$4 sm:$0xff]   ;;  %v3198_v59 = vrot.slane %v3196_v48, 5 }
  0x30   : > { %3874 = vmatpush1.bf16.msra.mxu0 %v9616_v35  ;;  %1032 = vmatprep.subr.bf16.mxu1 %v9617_v36  ;;  %v10434_v35 = vsel %vm10412_vm2, %v327_v23, %v331_v15  ;;  %v3186_v36 = vshll.u32 %v8242_v22, 16  ;;  %v8248_v15 = vld [vmem:[%s10371_s17 + $0x68] sm:$0xff] }
  0x31   : > { %3875 = vmatprep.subr.bf16.mxu0 %v9619_v37  ;;  %v8244_v37 = vld [vmem:[%s10371_s17 + $0x48] sm:$0xff]  ;;  %v7870_v17 = vcombine.low %v10423_v28, %v10434_v35  ;;  %v3234_v31 = vshll.u32 %v8248_v15, 16 }
  0x32   : > { %v3201_v53 = vshrl.u32 %v8244_v37, 16  ;;  %v3204_v0 = vshll.u32 %v8244_v37, 16  ;;  %v8250_v37 = vld [vmem:[%s10371_s17 + $0x78] sm:$0xff] }
  0x33   : > { %1033 = vmatpush1.bf16.msra.mxu1 %v9621_v38  ;;  %v9649_v38 = vld [vmem:[%s13020_s1 + $0x4e4] ss:$8 sps:$4 sm:$0xff]  }
  0x34   : > { %3876 = vmatpush1.bf16.msra.mxu0 %v9622_v39  ;;  %1034 = vmatprep.subr.bf16.mxu1 %v9623_v40  ;;  %v7871_v39 = vcombine.high %v10423_v28, %v10434_v35  ;;  %v10444_v40 = vsel %vm10412_vm2, %v3160_v29, %v3164_v16  ;;  %v3203_v63 = vrot.slane %v3201_v53, 4  ;;  %v3206_v9 = vrot.slane %v3204_v0, 5 }
  0x35   : > { %3877 = vmatprep.subr.bf16.mxu0 %v9625_v41  ;;  %v3170_v41 = vrot.slane %v3169_v30, 4  ;;  %v3222_v29 = vrot.slane %v3220_v11, 5 }
  0x36   : > { %1046 = vmatprep.mubr.bf16.mxu1 %v7871_v39  ;;  %v3207_v21 = vor.u32 %v3206_v9, %v3203_v63  ;;  %v8252_v9 = vld [vmem:[%s10371_s17 + $0x88] sm:$0x11] }
  0x37   : > { %1035 = vmatpush1.bf16.msra.mxu1 %v9627_v42  ;;  %v3179_v42 = vrot.slane %v3177_v26, 4  ;;  %v10476_v4 = vsel %vm10412_vm2, %v3170_v41, %v355_v51  ;;  %v293_v26 = vld [vmem:[%s10371_s17 + $0x58] sm:$0x11] }
  0x38   : > { %3878 = vmatpush1.bf16.msra.mxu0 %v9628_v43  ;;  %1036 = vmatprep.subr.bf16.mxu1 %v9629_v44  ;;  %v9651_v43 = vld [vmem:[%s13020_s1 + $0x1e0] ss:$8 sps:$4 sm:$0xff]   ;;  %v7873_v23 = vcombine.high %v10444_v40, %v10476_v4  ;;  %v3208_v28 = vrot.slane %v3207_v21, 4  ;;  %v9685_v21 = vld [vmem:[%s13020_s1 + $0x4] ss:$8 sps:$4 sm:$0xff]  }
  0x39   : > { %3879 = vmatprep.subr.bf16.mxu0 %v9631_v45  ;;  %v9652_v44 = vld [vmem:[%s13020_s1 + $0x4e0] ss:$8 sps:$4 sm:$0xff]   ;;  %v3182_v45 = vrot.slane %v3180_v32, 5 }
  0x3b   : > { %1037 = vmatpush1.bf16.msra.mxu1 %v9633_v46  ;;  %v3188_v46 = vrot.slane %v3186_v36, 5  ;;  %v3183_v58 = vor.u32 %v3182_v45, %v3179_v42  ;;  %v3238_v36 = vshrl.u32 %v8248_v15, 16  ;;  %v7872_v45 = vcombine.low %v10444_v40, %v10476_v4  ;;  %v9683_v15 = vld [vmem:[%s13020_s1] ss:$8 sps:$4 sm:$0xff]  }
  0x3c   : > { %3880 = vmatpush1.bf16.msra.mxu0 %v9634_v47  ;;  %1038 = vmatprep.subr.bf16.mxu1 %v9635_v49  ;;  %v3190_v47 = vshrl.u32 %v8242_v22, 16  ;;  %v9653_v49 = vld [vmem:[%s13020_s1 + $0x1f4] ss:$8 sps:$4 sm:$0xff]  }
  0x3d   : > { %3881 = vmatprep.subr.bf16.mxu0 %v9637_v50  ;;  %v10457_v50 = vsel %vm10412_vm2, %v3170_v41, %v3174_v24  ;;  %v3184_v5 = vrot.slane %v3183_v58, 4  ;;  %v3236_v41 = vrot.slane %v3234_v31, 5  ;;  %v3240_v42 = vrot.slane %v3238_v36, 4 }
  0x3e   : > { %v8319_v55 = vcombine.high %v10444_v40, %v10457_v50  ;;  %v3192_v56 = vrot.slane %v3190_v47, 4  ;;  %v8318_v22 = vcombine.low %v10444_v40, %v10457_v50  ;;  %v9667_v40 = vld [vmem:[%s13020_s1 + $0x524] ss:$8 sps:$4 sm:$0xff]  }
  0x3f   : > { %1039 = vmatpush1.bf16.msra.mxu1 %v9639_v1  ;;  %v3210_v1 = vshll.u32 %v8245_v52, 16  ;;  %v10489_v19 = vsel %vm10412_vm2, %v3184_v5, %v3188_v46  ;;  %v3241_v52 = vor.u32 %v3240_v42, %v3236_v41 }
  0x40   : > { %3882 = vmatpush1.bf16.msra.mxu0 %v9640_v2  ;;  %1040 = vmatprep.subr.bf16.mxu1 %v9641_v6  ;;  %v3193_v62 = vor.u32 %v3192_v56, %v3188_v46  ;;  %v8247_v2 = vld [vmem:[%s10371_s17 + $0x60] sm:$0xff]  ;;  %v377_v6 = vshll.u32 %v292_v57, 16  ;;  %v9662_v46 = vld [vmem:[%s13020_s1 + $0x510] ss:$8 sps:$4 sm:$0xff]  }
  0x41   : > { %3883 = vmatprep.subr.bf16.mxu0 %v9643_v12  ;;  %3889 = vmatprep.mubr.bf16.mxu0 %v8319_v55  ;;  %v3212_v10 = vrot.slane %v3210_v1, 5  ;;  %v9661_v12 = vld [vmem:[%s13020_s1 + $0x504] ss:$8 sps:$4 sm:$0xff]   ;;  %v3225_v16 = vshrl.u32 %v8247_v2, 16  ;;  %v3228_v30 = vshll.u32 %v8247_v2, 16  ;;  %v8253_v2 = vld [vmem:[%s10371_s17 + $0x90] sm:$0xff] }
  0x42   : > { %v3194_v8 = vrot.slane %v3193_v62, 4  ;;  %v379_v24 = vrot.slane %v377_v6, 5  ;;  %v8254_v6 = vld [vmem:[%s10371_s17 + $0x98] sm:$0xff] }
  0x43   : > { %1041 = vmatpush1.bf16.msra.mxu1 %v9645_v27  ;;  %v3217_v25 = vor.u32 %v3216_v14, %v3212_v10  ;;  %v8249_v27 = vld [vmem:[%s10371_s17 + $0x70] sm:$0x11]  ;;  %v3227_v35 = vrot.slane %v3225_v16, 4  ;;  %v3230_v39 = vrot.slane %v3228_v30, 5  ;;  %v10519_v48 = vsel %vm10412_vm2, %v3208_v28, %v3212_v10  ;;  %v295_v28 = vld [vmem:[%s10371_s17 + $0x88] sm:$0x11] }
  0x44   : > { %3884 = vmatpush1.bf16.msra.mxu0 %v9646_v33  ;;  %1042 = vmatprep.subr.bf16.mxu1 %v9647_v34  ;;  %v10493_v20 = vsel %vm10412_vm2, %v3194_v8, %v3198_v59  ;;  %v9664_v33 = vld [vmem:[%s13020_s1 + $0x514] ss:$8 sps:$4 sm:$0xff]   ;;  %v10515_v47 = vsel %vm10412_vm2, %v3194_v8, %v379_v24  ;;  %v10530_v59 = vrot.slane %v3241_v52, 4  ;;  %v3273_v14 = vshrl.u32 %v8253_v2, 16  ;;  %v9674_v52 = vld [vmem:[%s13020_s1 + $0x550] ss:$8 sps:$4 sm:$0xff]  }
  0x45   : > { %3885 = vmatprep.subr.bf16.mxu0 %v9649_v38  ;;  %v8321_v32 = vcombine.high %v10489_v19, %v10493_v20  ;;  %v3218_v34 = vrot.slane %v3217_v25, 4  ;;  %v401_v38 = vshll.u32 %v293_v26, 16  ;;  %v3231_v51 = vor.u32 %v3230_v39, %v3227_v35  ;;  %v9691_v39 = vld [vmem:[%s13020_s1 + $0x14] ss:$8 sps:$4 sm:$0xff]  }
  0x46   : > { %v8320_v57 = vcombine.low %v10489_v19, %v10493_v20  ;;  %v7875_v62 = vcombine.high %v10489_v19, %v10515_v47  ;;  %v3286_v20 = vshrl.u32 %v8254_v6, 16  ;;  %v3268_v24 = vshll.u32 %v8252_v9, 16  ;;  %v8260_v9 = vld [vmem:[%s10371_s17 + $0xc8] sm:$0xff] }
  0x47   : > { %1043 = vmatpush1.bf16.msra.mxu1 %v9651_v43  ;;  %v3244_v43 = vshll.u32 %v8249_v27, 16  ;;  %v10523_v50 = vsel %vm10412_vm2, %v3218_v34, %v3222_v29  ;;  %v403_v53 = vrot.slane %v401_v38, 5  ;;  %v3232_v58 = vrot.slane %v3231_v51, 4  ;;  %v9673_v27 = vld [vmem:[%s13020_s1 + $0x544] ss:$8 sps:$4 sm:$0xff]  }
  0x48   : > { %3886 = vmatpush1.bf16.msra.mxu0 %v9652_v44  ;;  %1044 = vmatprep.subr.bf16.mxu1 %v9653_v49  ;;  %v8251_v44 = vld [vmem:[%s10371_s17 + $0x80] sm:$0xff]  ;;  %v3249_v49 = vshrl.u32 %v8250_v37, 16  ;;  %v8323_v63 = vcombine.high %v10519_v48, %v10523_v50  ;;  %v7874_v25 = vcombine.low %v10489_v19, %v10515_v47  ;;  %v8322_v26 = vcombine.low %v10519_v48, %v10523_v50 }
  0x49   : > { %3887 = vmatprep.subr.bf16.mxu0 %v9655_v54  ;;  %v3252_v54 = vshll.u32 %v8250_v37, 16  ;;  %v3258_v55 = vshll.u32 %v8251_v44, 16  ;;  %v3262_v56 = vshrl.u32 %v8251_v44, 16  ;;  %v3246_v60 = vrot.slane %v3244_v43, 5  ;;  %v9671_v19 = vld [vmem:[%s13020_s1 + $0x540] ss:$8 sps:$4 sm:$0xff]  }
  0x4a   : > { %v3251_v0 = vrot.slane %v3249_v49, 4  ;;  %v10548_v10 = vsel %vm10412_vm2, %v3218_v34, %v403_v53  ;;  %v10552_v11 = vsel %vm10412_vm2, %v3232_v58, %v3236_v41  ;;  %v8256_v34 = vld [vmem:[%s10371_s17 + $0xa8] sm:$0xff]  ;;  %v3288_v38 = vrot.slane %v3286_v20, 4  ;;  %v9676_v43 = vld [vmem:[%s13020_s1 + $0x554] ss:$8 sps:$4 sm:$0xff]  }
  0x4b   : > { %1045 = vmatpush1.bf16.msra.mxu1 %v9657_v61  ;;  %v294_v61 = vld [vmem:[%s10371_s17 + $0x70] sm:$0x11]  ;;  %v3254_v1 = vrot.slane %v3252_v54, 5  ;;  %v3260_v4 = vrot.slane %v3258_v55, 5  ;;  %v3264_v5 = vrot.slane %v3262_v56, 4  ;;  %v7877_v29 = vcombine.high %v10519_v48, %v10548_v10 }
  0x4c   : > { %3888 = vmatpush1.bf16.msra.mxu0 %v9658_v3  ;;  %v9665_v3 = vld [vmem:[%s13020_s1 + $0x520] ss:$8 sps:$4 sm:$0xff]   ;;  %v425_v8 = vshll.u32 %v294_v61, 16  ;;  %1527 = vmatprep.subr.bf16.mxu1 %v9685_v21  ;;  %v3270_v42 = vrot.slane %v3268_v24, 5  ;;  %v8257_v44 = vld [vmem:[%s10371_s17 + $0xb0] sm:$0xff]  ;;  %v449_v47 = vshll.u32 %v295_v28, 16 }
  0x4d   : > { %4611 = vmatprep.subr.bf16.mxu0 %v9661_v12  ;;  %v10557_v12 = vsel %vm10412_vm2, %v10530_v59, %v3246_v60  ;;  %v3255_v16 = vor.u32 %v3254_v1, %v3251_v0  ;;  %v3297_v53 = vshrl.u32 %v8256_v34, 16  ;;  %v9694_v54 = vld [vmem:[%s13020_s1 + $0x24] ss:$8 sps:$4 sm:$0xff]   ;;  %v3300_v56 = vshll.u32 %v8256_v34, 16  ;;  %v9692_v61 = vld [vmem:[%s13020_s1 + $0x20] ss:$8 sps:$4 sm:$0xff]  }
  0x4e   : > { %1047 = vmatmul.mubr.bf16.vlgmr.msra.gmra.mrb[0].mxu1 %v7870_v17  ;;  %v3276_v17 = vshll.u32 %v8253_v2, 16  ;;  %v8325_v30 = vcombine.high %v10552_v11, %v10557_v12  ;;  %v427_v31 = vrot.slane %v425_v8, 5  ;;  %v3310_v58 = vshrl.u32 %v8257_v44, 16  ;;  %v9679_v60 = vld [vmem:[%s13020_s1 + $0x564] ss:$8 sps:$4 sm:$0xff]  }
  0x4f   : > { %3890 = vmatmul.mubr.bf16.vlgmr.msra.gmra.mrb[0].mxu0 %v8318_v22  ;;  %1056 = vmatprep.mubr.bf16.mxu1 %v7873_v23  ;;  %v9668_v22 = vld [vmem:[%s13020_s1 + $0x530] ss:$8 sps:$4 sm:$0xff]   ;;  %v3265_v23 = vor.u32 %v3264_v5, %v3260_v4  ;;  %v3256_v35 = vrot.slane %v3255_v16, 4  ;;  %v451_v0 = vrot.slane %v449_v47, 5  ;;  %v3299_v8 = vrot.slane %v3297_v53, 4 }
  0x50   : > { %4612 = vmatpush1.bf16.msra.mxu0 %v9659_v18  ;;  %3899 = vmatprep.mubr.bf16.mxu0 %v8321_v32  ;;  %v3282_v18 = vshll.u32 %v8254_v6, 16  ;;  %v8255_v32 = vld [vmem:[%s10371_s17 + $0xa0] sm:$0x11]  ;;  %v3278_v36 = vrot.slane %v3276_v17, 5  ;;  %v8258_v2 = vld [vmem:[%s10371_s17 + $0xb8] sm:$0x11] }
  0x51   : > { %4613 = vmatprep.subr.bf16.mxu0 %v9664_v33  ;;  %v3275_v33 = vrot.slane %v3273_v14, 4  ;;  %1528 = vmatpush1.bf16.msra.mxu1 %v9683_v15  ;;  %v10590_v41 = vrot.slane %v3265_v23, 4  ;;  %v3292_v49 = vshll.u32 %v8255_v32, 16  ;;  %v10606_v50 = vsel %vm10412_vm2, %v3256_v35, %v3260_v4  ;;  %v8259_v4 = vld [vmem:[%s10371_s17 + $0xc0] sm:$0xff]  ;;  %v9700_v16 = vld [vmem:[%s13020_s1 + $0x34] ss:$8 sps:$4 sm:$0xff]  }
  0x52   : > { %v10585_v37 = vrot.slane %v3282_v18, 5  ;;  %1529 = vmatprep.subr.bf16.mxu1 %v9691_v39  ;;  %v3312_v15 = vrot.slane %v3310_v58, 4  ;;  %v3321_v17 = vshrl.u32 %v8259_v4, 16  ;;  %v9698_v18 = vld [vmem:[%s13020_s1 + $0x30] ss:$8 sps:$4 sm:$0xff]   ;;  %v3324_v20 = vshll.u32 %v8259_v4, 16 }
  0x53   : > { %v10618_v55 = vsel %vm10412_vm2, %v10590_v41, %v3270_v42  ;;  %v3294_v1 = vrot.slane %v3292_v49, 5  ;;  %v3330_v21 = vshll.u32 %v8260_v9, 16  ;;  %v9703_v23 = vld [vmem:[%s13020_s1 + $0x44] ss:$8 sps:$4 sm:$0xff]   ;;  %v10660_v24 = vsel %vm10412_vm2, %v10590_v41, %v451_v0  ;;  %v8261_v34 = vld [vmem:[%s10371_s17 + $0xd0] sm:$0x11] }
  0x54   : > { %4614 = vmatpush1.bf16.msra.mxu0 %v9662_v46  ;;  %v10602_v46 = vsel %vm10412_vm2, %v10530_v59, %v427_v31  ;;  %v3289_v51 = vor.u32 %v3288_v38, %v10585_v37  ;;  %v7876_v59 = vcombine.low %v10519_v48, %v10548_v10  ;;  %v296_v48 = vld [vmem:[%s10371_s17 + $0xa0] sm:$0x11]  ;;  %v8327_v5 = vcombine.high %v10606_v50, %v10618_v55  ;;  %v9682_v10 = vld [vmem:[%s13020_s1 + $0x574] ss:$8 sps:$4 sm:$0xff]  }
  0x55   : > { %4615 = vmatprep.subr.bf16.mxu0 %v9667_v40  ;;  %v3279_v40 = vor.u32 %v3278_v36, %v3275_v33  ;;  %v297_v31 = vld [vmem:[%s10371_s17 + $0xb8] sm:$0x11]  ;;  %v7878_v32 = vcombine.low %v10552_v11, %v10602_v46  ;;  %v8326_v33 = vcombine.low %v10606_v50, %v10618_v55  ;;  %v9688_v35 = vld [vmem:[%s13020_s1 + $0x584] ss:$8 sps:$4 sm:$0xff]   ;;  %v9701_v36 = vld [vmem:[%s13020_s1 + $0x40] ss:$8 sps:$4 sm:$0xff]   ;;  %v7880_v4 = vcombine.low %v10606_v50, %v10660_v24 }
  0x56   : > { %1057 = vmatmul.mubr.bf16.gmra.mrb[4].mxu1 %v7872_v45  ;;  %v9689_v45 = vld [vmem:[%s13020_s1 + $0x10] ss:$8 sps:$4 sm:$0xff]   ;;  %v3326_v38 = vrot.slane %v3324_v20, 5  ;;  %v10688_v39 = vrot.slane %v3330_v21, 5  ;;  %v8263_v42 = vld [vmem:[%s10371_s17 + $0xe0] sm:$0xff]  ;;  %v497_v53 = vshll.u32 %v297_v31, 16 }
  0x57   : > { %3900 = vmatmul.mubr.bf16.gmra.mrb[4].mxu0 %v8320_v57  ;;  %1066 = vmatprep.mubr.bf16.mxu1 %v7875_v62  ;;  %v3306_v57 = vshll.u32 %v8257_v44, 16  ;;  %v8324_v62 = vcombine.low %v10552_v11, %v10557_v12  ;;  %v3280_v6 = vrot.slane %v3279_v40, 4  ;;  %v3302_v12 = vrot.slane %v3300_v56, 5  ;;  %v9686_v47 = vld [vmem:[%s13020_s1 + $0x580] ss:$8 sps:$4 sm:$0xff]   ;;  %v8266_v21 = vld [vmem:[%s10371_s17 + $0xf8] sm:$0xff] }
  0x58   : > { %3909 = vmatprep.mubr.bf16.mxu0 %v8323_v63  ;;  %4616 = vmatpush1.bf16.msra.mxu0 %v9665_v3  ;;  %v7879_v63 = vcombine.high %v10552_v11, %v10602_v46  ;;  %v9677_v3 = vld [vmem:[%s13020_s1 + $0x560] ss:$8 sps:$4 sm:$0xff]   ;;  %v8262_v11 = vld [vmem:[%s10371_s17 + $0xd8] sm:$0xff] }
  0x59   : > { %4617 = vmatprep.subr.bf16.mxu0 %v9670_v7  ;;  %1530 = vmatpush1.bf16.msra.mxu1 %v9689_v45  ;;  %v10640_v7 = vrot.slane %v3289_v51, 4  ;;  %v10646_v14 = vrot.slane %v3306_v57, 5  ;;  %v9697_v49 = vld [vmem:[%s13020_s1 + $0x594] ss:$8 sps:$4 sm:$0xff]   ;;  %v9707_v55 = vld [vmem:[%s13020_s1 + $0x50] ss:$8 sps:$4 sm:$0xff]  }
  0x5a   : > { %1531 = vmatprep.subr.bf16.mxu1 %v9694_v54  ;;  %v3340_v54 = vshll.u32 %v8261_v34, 16  ;;  %v3345_v58 = vshrl.u32 %v8262_v11, 16 }
  0x5b   : > { %v10670_v28 = vsel %vm10412_vm2, %v10640_v7, %v3294_v1 }
  0x5c   : > { %4618 = vmatpush1.bf16.msra.mxu0 %v9668_v22  ;;  %v3334_v22 = vshrl.u32 %v8260_v9, 16  ;;  %v9710_v9 = vld [vmem:[%s13020_s1 + $0x60] ss:$8 sps:$4 sm:$0xff]  }
  0x5d   : > { %4619 = vmatprep.subr.bf16.mxu0 %v9673_v27  ;;  %1532 = vmatpush1.bf16.msra.mxu1 %v9692_v61  ;;  %v3316_v27 = vshll.u32 %v8258_v2, 16  ;;  %v3354_v61 = vshll.u32 %v8263_v42, 16  ;;  %v8264_v2 = vld [vmem:[%s10371_s17 + $0xe8] sm:$0x11] }
  0x5e   : > { %1067 = vmatmul.mubr.bf16.gmra.mrb[8].mxu1 %v7874_v25  ;;  %v10665_v25 = vsel %vm10412_vm2, %v3280_v6, %v10585_v37  ;;  %1533 = vmatprep.subr.bf16.mxu1 %v9700_v16  ;;  %v3323_v37 = vrot.slane %v3321_v17, 4  ;;  %v3336_v41 = vrot.slane %v3334_v22, 4  ;;  %v499_v6 = vrot.slane %v497_v53, 5  ;;  %v9704_v22 = vld [vmem:[%s13020_s1 + $0x5a0] ss:$8 sps:$4 sm:$0xff]  }
  0x5f   : > { %3910 = vmatmul.mubr.bf16.gmra.mrb[8].mxu0 %v8322_v26  ;;  %1076 = vmatprep.mubr.bf16.mxu1 %v7877_v29  ;;  %v473_v26 = vshll.u32 %v296_v48, 16  ;;  %v3303_v29 = vor.u32 %v3302_v12, %v3299_v8  ;;  %v8329_v44 = vcombine.high %v10665_v25, %v10670_v28  ;;  %v3318_v46 = vrot.slane %v3316_v27, 5  ;;  %v298_v48 = vld [vmem:[%s10371_s17 + $0xd0] sm:$0x11]  ;;  %v9706_v8 = vld [vmem:[%s13020_s1 + $0x5a4] ss:$8 sps:$4 sm:$0xff]  }
  0x60   : > { %3919 = vmatprep.mubr.bf16.mxu0 %v8325_v30  ;;  %4620 = vmatpush1.bf16.msra.mxu0 %v9671_v19  ;;  %v3313_v30 = vor.u32 %v3312_v15, %v10646_v14  ;;  %v9680_v19 = vld [vmem:[%s13020_s1 + $0x570] ss:$8 sps:$4 sm:$0xff]   ;;  %v3327_v56 = vor.u32 %v3326_v38, %v3323_v37  ;;  %v3337_v57 = vor.u32 %v3336_v41, %v10688_v39  ;;  %v3382_v37 = vshrl.u32 %v8266_v21, 16  ;;  %v299_v38 = vld [vmem:[%s10371_s17 + $0xe8] sm:$0x11] }
  0x61   : > { %4621 = vmatprep.subr.bf16.mxu0 %v9676_v43  ;;  %1534 = vmatpush1.bf16.msra.mxu1 %v9698_v18  ;;  %v7881_v43 = vcombine.high %v10606_v50, %v10660_v24  ;;  %v475_v45 = vrot.slane %v473_v26, 5  ;;  %v3304_v40 = vrot.slane %v3303_v29, 4  ;;  %v3347_v50 = vrot.slane %v3345_v58, 4  ;;  %v8265_v15 = vld [vmem:[%s10371_s17 + $0xf0] sm:$0xff] }
  0x62   : > { %1535 = vmatprep.subr.bf16.mxu1 %v9703_v23  ;;  %v3314_v51 = vrot.slane %v3313_v30, 4  ;;  %v10741_v12 = vrot.slane %v3337_v57, 4  ;;  %v3356_v18 = vrot.slane %v3354_v61, 5  ;;  %v9715_v23 = vld [vmem:[%s13020_s1 + $0x5b4] ss:$8 sps:$4 sm:$0xff]   ;;  %v3364_v29 = vshll.u32 %v8264_v2, 16 }
  0x63   : > { %v10720_v0 = vsel %vm10412_vm2, %v3304_v40, %v10646_v14  ;;  %v9716_v24 = vld [vmem:[%s13020_s1 + $0x70] ss:$8 sps:$4 sm:$0xff]   ;;  %v9718_v26 = vld [vmem:[%s13020_s1 + $0x74] ss:$8 sps:$4 sm:$0xff]   ;;  %v8268_v40 = vld [vmem:[%s10371_s17 + $0x108] sm:$0xff]  ;;  %v545_v58 = vshll.u32 %v299_v38, 16 }
  0x64   : > { %4622 = vmatpush1.bf16.msra.mxu0 %v9674_v52  ;;  %v9709_v52 = vld [vmem:[%s13020_s1 + $0x54] ss:$8 sps:$4 sm:$0xff]   ;;  %v10724_v1 = vsel %vm10412_vm2, %v3314_v51, %v3318_v46  ;;  %v10763_v27 = vsel %vm10412_vm2, %v3314_v51, %v499_v6  ;;  %v9722_v57 = vld [vmem:[%s13020_s1 + $0x5c0] ss:$8 sps:$4 sm:$0xff]  }
  0x65   : > { %4623 = vmatprep.subr.bf16.mxu0 %v9679_v60  ;;  %1536 = vmatpush1.bf16.msra.mxu1 %v9701_v36  ;;  %v9712_v60 = vld [vmem:[%s13020_s1 + $0x64] ss:$8 sps:$4 sm:$0xff]   ;;  %v8331_v17 = vcombine.high %v10720_v0, %v10724_v1  ;;  %v3378_v36 = vshll.u32 %v8266_v21, 16 }
  0x66   : > { %1077 = vmatmul.mubr.bf16.gmra.mrb[12].mxu1 %v7876_v59  ;;  %v3348_v59 = vshll.u32 %v8262_v11, 16  ;;  %1537 = vmatprep.subr.bf16.mxu1 %v9709_v52  ;;  %v8330_v11 = vcombine.low %v10720_v0, %v10724_v1  ;;  %v3393_v1 = vshrl.u32 %v8268_v40, 16 }
  0x67   : > { %3920 = vmatmul.mubr.bf16.gmra.mrb[12].mxu0 %v8324_v62  ;;  %1086 = vmatprep.mubr.bf16.mxu1 %v7879_v63  ;;  %v3358_v62 = vshrl.u32 %v8263_v42, 16  ;;  %v10715_v63 = vsel %vm10412_vm2, %v10640_v7, %v475_v45  ;;  %v3342_v7 = vrot.slane %v3340_v54, 5  ;;  %v7885_v42 = vcombine.high %v10720_v0, %v10763_v27  ;;  %v9724_v45 = vld [vmem:[%s13020_s1 + $0x5c4] ss:$8 sps:$4 sm:$0xff]  }
  0x68   : > { %3929 = vmatprep.mubr.bf16.mxu0 %v8327_v5  ;;  %4624 = vmatpush1.bf16.msra.mxu0 %v9677_v3  ;;  %v9695_v3 = vld [vmem:[%s13020_s1 + $0x590] ss:$8 sps:$4 sm:$0xff]   ;;  %v8328_v5 = vcombine.low %v10665_v25, %v10670_v28  ;;  %v3350_v14 = vrot.slane %v3348_v59, 5  ;;  %v7883_v16 = vcombine.high %v10665_v25, %v10715_v63  ;;  %v521_v28 = vshll.u32 %v298_v48, 16  ;;  %v9727_v59 = vld [vmem:[%s13020_s1 + $0x94] ss:$8 sps:$4 sm:$0xff]  }
  0x69   : > { %4625 = vmatprep.subr.bf16.mxu0 %v9682_v10  ;;  %1538 = vmatpush1.bf16.msra.mxu1 %v9707_v55  ;;  %v3328_v10 = vrot.slane %v3327_v56, 4  ;;  %v3360_v20 = vrot.slane %v3358_v62, 4  ;;  %v10773_v31 = vsel %vm10412_vm2, %v10741_v12, %v3342_v7  ;;  %v7882_v41 = vcombine.low %v10665_v25, %v10715_v63  ;;  %v8269_v55 = vld [vmem:[%s10371_s17 + $0x110] sm:$0xff]  ;;  %v9719_v56 = vld [vmem:[%s13020_s1 + $0x80] ss:$8 sps:$4 sm:$0xff]  }
  0x6a   : > { %1539 = vmatprep.subr.bf16.mxu1 %v9712_v60  ;;  %v3366_v25 = vrot.slane %v3364_v29, 5  ;;  %v10797_v53 = vrot.slane %v3378_v36, 5  ;;  %v3384_v54 = vrot.slane %v3382_v37, 4  ;;  %v9733_v60 = vld [vmem:[%s13020_s1 + $0x5d4] ss:$8 sps:$4 sm:$0xff]   ;;  %v3406_v6 = vshrl.u32 %v8269_v55, 16 }
  0x6b   : > { %v10768_v30 = vsel %vm10412_vm2, %v3328_v10, %v10688_v39  ;;  %v3361_v34 = vor.u32 %v3360_v20, %v3356_v18  ;;  %v9713_v39 = vld [vmem:[%s13020_s1 + $0x5b0] ss:$8 sps:$4 sm:$0xff]   ;;  %v547_v10 = vrot.slane %v545_v58, 5  ;;  %v10850_v20 = vld [vmem:[%s10371_s17 + $0x128] sm:$0xff]  ;;  %v10910_v58 = vld [vmem:[%s10371_s17 + $0x140] sm:$0xff] }
  0x6c   : > { %4626 = vmatpush1.bf16.msra.mxu0 %v9680_v19  ;;  %v3351_v19 = vor.u32 %v3350_v14, %v3347_v50  ;;  %v8333_v46 = vcombine.high %v10768_v30, %v10773_v31  ;;  %v9725_v7 = vld [vmem:[%s13020_s1 + $0x90] ss:$8 sps:$4 sm:$0xff]   ;;  %v10837_v50 = vld [vmem:[%s10371_s17 + $0x120] sm:$0xff] }
  0x6d   : > { %4627 = vmatprep.subr.bf16.mxu0 %v9688_v35  ;;  %1540 = vmatpush1.bf16.msra.mxu1 %v9710_v9  ;;  %v3372_v35 = vshll.u32 %v8265_v15, 16  ;;  %v10795_v51 = vrot.slane %v3361_v34, 4  ;;  %v7884_v9 = vcombine.low %v10720_v0, %v10763_v27  ;;  %v9730_v14 = vld [vmem:[%s13020_s1 + $0xa4] ss:$8 sps:$4 sm:$0xff]   ;;  %v3408_v27 = vrot.slane %v3406_v6, 4 }
  0x6e   : > { %1087 = vmatmul.mubr.bf16.gmra.mrb[16].mxu1 %v7878_v32  ;;  %v3369_v32 = vshrl.u32 %v8265_v15, 16  ;;  %1541 = vmatprep.subr.bf16.mxu1 %v9718_v26  ;;  %v8332_v15 = vcombine.low %v10768_v30, %v10773_v31  ;;  %v9742_v29 = vld [vmem:[%s13020_s1 + $0x5e4] ss:$8 sps:$4 sm:$0xff]   ;;  %v3426_v34 = vshll.u32 %v10850_v20, 16  ;;  %v9740_v36 = vld [vmem:[%s13020_s1 + $0x5e0] ss:$8 sps:$4 sm:$0xff]  }
  0x6f   : > { %3930 = vmatmul.mubr.bf16.gmra.mrb[16].mxu0 %v8326_v33  ;;  %1096 = vmatprep.mubr.bf16.mxu1 %v7881_v43  ;;  %v9721_v33 = vld [vmem:[%s13020_s1 + $0x84] ss:$8 sps:$4 sm:$0xff]   ;;  %v523_v43 = vrot.slane %v521_v28, 5  ;;  %v3374_v52 = vrot.slane %v3372_v35, 5  ;;  %v10824_v48 = vsel %vm10412_vm2, %v10795_v51, %v3366_v25  ;;  %v9728_v28 = vld [vmem:[%s13020_s1 + $0xa0] ss:$8 sps:$4 sm:$0xff]   ;;  %v10875_v37 = vsel %vm10412_vm2, %v10795_v51, %v547_v10 }
  0x70   : > { %3939 = vmatprep.mubr.bf16.mxu0 %v8329_v44  ;;  %4628 = vmatpush1.bf16.msra.mxu0 %v9686_v47  ;;  %v8267_v44 = vld [vmem:[%s10371_s17 + $0x100] sm:$0x11]  ;;  %v3352_v47 = vrot.slane %v3351_v19, 4  ;;  %v9736_v19 = vld [vmem:[%s13020_s1 + $0xb4] ss:$8 sps:$4 sm:$0xff]   ;;  %v3430_v35 = vshrl.u32 %v10850_v20, 16 }
  0x71   : > { %4629 = vmatprep.subr.bf16.mxu0 %v9697_v49  ;;  %1542 = vmatpush1.bf16.msra.mxu1 %v9716_v24  ;;  %v3371_v49 = vrot.slane %v3369_v32, 4  ;;  %v10815_v61 = vsel %vm10412_vm2, %v10741_v12, %v523_v43  ;;  %v3388_v63 = vshll.u32 %v8267_v44, 16  ;;  %v300_v12 = vld [vmem:[%s10371_s17 + $0x100] sm:$0x11]  ;;  %v3417_v32 = vshrl.u32 %v10837_v50, 16 }
  0x72   : > { %1543 = vmatprep.subr.bf16.mxu1 %v9721_v33  ;;  %v10819_v62 = vsel %vm10412_vm2, %v3352_v47, %v3356_v18  ;;  %v8270_v18 = vld [vmem:[%s10371_s17 + $0x118] sm:$0x11]  ;;  %v569_v31 = vshll.u32 %v300_v12, 16  ;;  %v3420_v33 = vshll.u32 %v10837_v50, 16  ;;  %v8273_v44 = vld [vmem:[%s10371_s17 + $0x130] sm:$0x11] }
  0x73   : > { %v3375_v2 = vor.u32 %v3374_v52, %v3371_v49  ;;  %v3390_v0 = vrot.slane %v3388_v63, 5  ;;  %v301_v43 = vld [vmem:[%s10371_s17 + $0x118] sm:$0x11]  ;;  %v8334_v47 = vcombine.low %v10819_v62, %v10824_v48  ;;  %v9739_v49 = vld [vmem:[%s13020_s1 + $0xc4] ss:$8 sps:$4 sm:$0xff]   ;;  %v10900_v52 = vrot.slane %v3426_v34, 5 }
  0x74   : > { %4630 = vmatpush1.bf16.msra.mxu0 %v9695_v3  ;;  %v3385_v3 = vor.u32 %v3384_v54, %v10797_v53  ;;  %v571_v25 = vrot.slane %v569_v31, 5  ;;  %v3422_v51 = vrot.slane %v3420_v33, 5  ;;  %v10903_v54 = vld [vmem:[%s10371_s17 + $0x138] sm:$0xff]  ;;  %v9737_v63 = vld [vmem:[%s13020_s1 + $0xc0] ss:$8 sps:$4 sm:$0xff]  }
  0x75   : > { %4631 = vmatprep.subr.bf16.mxu0 %v9706_v8  ;;  %1544 = vmatpush1.bf16.msra.mxu1 %v9719_v56  ;;  %v9731_v8 = vld [vmem:[%s13020_s1 + $0x5d0] ss:$8 sps:$4 sm:$0xff]   ;;  %v3376_v21 = vrot.slane %v3375_v2, 4  ;;  %v9751_v2 = vld [vmem:[%s13020_s1 + $0x5f4] ss:$8 sps:$4 sm:$0xff]   ;;  %v3444_v6 = vshll.u32 %v10903_v54, 16 }
  0x76   : > { %1097 = vmatmul.mubr.bf16.gmra.mrb[20].mxu1 %v7880_v4  ;;  %v3396_v4 = vshll.u32 %v8268_v40, 16  ;;  %1545 = vmatprep.subr.bf16.mxu1 %v9727_v59  ;;  %v3419_v40 = vrot.slane %v3417_v32, 4  ;;  %v10963_v32 = vld [vmem:[%s10371_s17 + $0x150] sm:$0xff]  ;;  %v10966_v33 = vld [vmem:[%s10371_s17 + $0x158] sm:$0xff]  ;;  %v9746_v34 = vld [vmem:[%s13020_s1 + $0xe0] ss:$8 sps:$4 sm:$0xff]  }
  0x77   : > { %3940 = vmatmul.mubr.bf16.gmra.mrb[20].mxu0 %v8328_v5  ;;  %1106 = vmatprep.mubr.bf16.mxu1 %v7883_v16  ;;  %v3402_v5 = vshll.u32 %v8269_v55, 16  ;;  %v7887_v16 = vcombine.high %v10768_v30, %v10815_v61  ;;  %v10880_v38 = vsel %vm10412_vm2, %v3376_v21, %v10797_v53  ;;  %v3432_v53 = vrot.slane %v3430_v35, 4 }
  0x78   : > { %3949 = vmatprep.mubr.bf16.mxu0 %v8331_v17  ;;  %4632 = vmatpush1.bf16.msra.mxu0 %v9704_v22  ;;  %v8335_v17 = vcombine.high %v10819_v62, %v10824_v48  ;;  %v10852_v22 = vrot.slane %v3385_v3, 4  ;;  %v3398_v24 = vrot.slane %v3396_v4, 5  ;;  %v9749_v48 = vld [vmem:[%s13020_s1 + $0x5f0] ss:$8 sps:$4 sm:$0xff]   ;;  %v3423_v3 = vor.u32 %v3422_v51, %v3419_v40 }
  0x79   : > { %4633 = vmatprep.subr.bf16.mxu0 %v9715_v23  ;;  %v3395_v23 = vrot.slane %v3393_v1, 4  ;;  %v10854_v26 = vrot.slane %v3402_v5, 5  ;;  %1546 = vmatpush1.bf16.msra.mxu1 %v9725_v7  ;;  %v9745_v1 = vld [vmem:[%s13020_s1 + $0xd4] ss:$8 sps:$4 sm:$0xff]   ;;  %v3433_v4 = vor.u32 %v3432_v53, %v10900_v52  ;;  %v3441_v5 = vshrl.u32 %v10903_v54, 16 }
  0x7a   : > { %1547 = vmatprep.subr.bf16.mxu1 %v9730_v14  ;;  %v3450_v7 = vshll.u32 %v10910_v58, 16  ;;  %v10935_v10 = vsel %vm10412_vm2, %v10852_v22, %v571_v25  ;;  %v9752_v25 = vld [vmem:[%s13020_s1 + $0xf0] ss:$8 sps:$4 sm:$0xff]   ;;  %v303_v53 = vld [vmem:[%s10371_s17 + $0x148] sm:$0x11] }
  0x7c   : > { %4634 = vmatpush1.bf16.msra.mxu0 %v9713_v39  ;;  %v3412_v39 = vshll.u32 %v8270_v18, 16  ;;  %v3452_v31 = vrot.slane %v3450_v7, 5 }
  0x7d   : > { %4635 = vmatprep.subr.bf16.mxu0 %v9724_v45  ;;  %1548 = vmatpush1.bf16.msra.mxu1 %v9728_v28  ;;  %v9734_v45 = vld [vmem:[%s13020_s1 + $0xb0] ss:$8 sps:$4 sm:$0xff]   ;;  %v3446_v28 = vrot.slane %v3444_v6, 5 }
  0x7e   : > { %1107 = vmatmul.mubr.bf16.gmra.mrb[24].mxu1 %v7882_v41  ;;  %v10885_v41 = vsel %vm10412_vm2, %v10852_v22, %v3390_v0  ;;  %1549 = vmatprep.subr.bf16.mxu1 %v9736_v19  ;;  %v3414_v56 = vrot.slane %v3412_v39, 5  ;;  %v7888_v0 = vcombine.low %v10819_v62, %v10875_v37  ;;  %v9754_v39 = vld [vmem:[%s13020_s1 + $0xf4] ss:$8 sps:$4 sm:$0xff]  }
  0x7f   : > { %3950 = vmatmul.mubr.bf16.gmra.mrb[24].mxu0 %v8330_v11  ;;  %1116 = vmatprep.mubr.bf16.mxu1 %v7885_v42  ;;  %v3399_v11 = vor.u32 %v3398_v24, %v3395_v23  ;;  %v3409_v42 = vor.u32 %v3408_v27, %v10854_v26  ;;  %v8337_v55 = vcombine.high %v10880_v38, %v10885_v41  ;;  %v3424_v23 = vrot.slane %v3423_v3, 4 }
  0x80   : > { %3959 = vmatprep.mubr.bf16.mxu0 %v8333_v46  ;;  %4636 = vmatpush1.bf16.msra.mxu0 %v9722_v57  ;;  %v7886_v46 = vcombine.low %v10768_v30, %v10815_v61  ;;  %v7889_v30 = vcombine.high %v10819_v62, %v10875_v37  ;;  %v593_v57 = vshll.u32 %v301_v43, 16  ;;  %v3436_v61 = vshll.u32 %v8273_v44, 16 }
  0x81   : > { %4637 = vmatprep.subr.bf16.mxu0 %v9733_v60  ;;  %v3400_v59 = vrot.slane %v3399_v11, 4  ;;  %v3410_v60 = vrot.slane %v3409_v42, 4  ;;  %1550 = vmatpush1.bf16.msra.mxu1 %v9734_v45  ;;  %v8336_v18 = vcombine.low %v10880_v38, %v10885_v41  ;;  %v3434_v24 = vrot.slane %v3433_v4, 4 }
  0x82   : > { %1551 = vmatprep.subr.bf16.mxu1 %v9739_v49  ;;  %v595_v21 = vrot.slane %v593_v57, 5  ;;  %v3438_v22 = vrot.slane %v3436_v61, 5  ;;  %v3443_v27 = vrot.slane %v3441_v5, 4  ;;  %v10981_v41 = vsel %vm10412_vm2, %v3424_v23, %v10900_v52  ;;  %v8279_v57 = vld [vmem:[%s10371_s17 + $0x160] sm:$0x11] }
  0x83   : > { %v10940_v12 = vsel %vm10412_vm2, %v3400_v59, %v10854_v26  ;;  %v10944_v14 = vsel %vm10412_vm2, %v3410_v60, %v3414_v56  ;;  %v8276_v26 = vld [vmem:[%s10371_s17 + $0x148] sm:$0x11]  ;;  %v3465_v43 = vshrl.u32 %v10963_v32, 16  ;;  %v3468_v45 = vshll.u32 %v10963_v32, 16 }
  0x84   : > { %4638 = vmatpush1.bf16.msra.mxu0 %v9731_v8  ;;  %v3454_v8 = vshrl.u32 %v10910_v58, 16  ;;  %v8339_v62 = vcombine.high %v10940_v12, %v10944_v14  ;;  %v10973_v35 = vsel %vm10412_vm2, %v3410_v60, %v595_v21  ;;  %v3460_v37 = vshll.u32 %v8276_v26, 16  ;;  %v8282_v26 = vld [vmem:[%s10371_s17 + $0x178] sm:$0x11] }
  0x85   : > { %4639 = vmatprep.subr.bf16.mxu0 %v9742_v29  ;;  %1552 = vmatpush1.bf16.msra.mxu1 %v9737_v63  ;;  %v7891_v29 = vcombine.high %v10880_v38, %v10935_v10  ;;  %v10985_v11 = vsel %vm10412_vm2, %v3434_v24, %v3438_v22  ;;  %v3447_v42 = vor.u32 %v3446_v28, %v3443_v27  ;;  %v3467_v59 = vrot.slane %v3465_v43, 4 }
  0x86   : > { %1117 = vmatmul.mubr.bf16.gmra.mrb[28].mxu1 %v7884_v9  ;;  %v9759_v9 = vld [vmem:[%s13020_s1 + $0x604] ss:$8 sps:$4 sm:$0xff]   ;;  %1553 = vmatprep.subr.bf16.mxu1 %v9745_v1  ;;  %v3456_v19 = vrot.slane %v3454_v8, 4  ;;  %v7890_v49 = vcombine.low %v10880_v38, %v10935_v10  ;;  %v8338_v40 = vcombine.low %v10940_v12, %v10944_v14  ;;  %v7893_v51 = vcombine.high %v10940_v12, %v10973_v35 }
  0x87   : > { %3960 = vmatmul.mubr.bf16.gmra.mrb[28].mxu0 %v8332_v15  ;;  %1126 = vmatprep.mubr.bf16.mxu1 %v7887_v16  ;;  %v302_v15 = vld [vmem:[%s10371_s17 + $0x130] sm:$0x11]  ;;  %v3462_v56 = vrot.slane %v3460_v37, 5  ;;  %v3470_v61 = vrot.slane %v3468_v45, 5  ;;  %v11005_v1 = vld [vmem:[%s10371_s17 + $0x168] sm:$0xff]  ;;  %v3484_v5 = vshll.u32 %v8279_v57, 16 }
  0x88   : > { %3969 = vmatprep.mubr.bf16.mxu0 %v8335_v17  ;;  %4640 = vmatpush1.bf16.msra.mxu0 %v9740_v36  ;;  %v9743_v16 = vld [vmem:[%s13020_s1 + $0xd0] ss:$8 sps:$4 sm:$0xff]   ;;  %v9748_v17 = vld [vmem:[%s13020_s1 + $0xe4] ss:$8 sps:$4 sm:$0xff]   ;;  %v617_v36 = vshll.u32 %v302_v15, 16  ;;  %v3457_v44 = vor.u32 %v3456_v19, %v3452_v31  ;;  %v3489_v6 = vshrl.u32 %v11005_v1, 16 }
  0x89   : > { %4641 = vmatprep.subr.bf16.mxu0 %v9751_v2  ;;  %1554 = vmatpush1.bf16.msra.mxu1 %v9743_v16  ;;  %v11008_v2 = vld [vmem:[%s10371_s17 + $0x170] sm:$0xff]  ;;  %v3471_v8 = vor.u32 %v3470_v61, %v3467_v59  ;;  %v3492_v10 = vshll.u32 %v11005_v1, 16  ;;  %v9799_v16 = vld [vmem:[%s13020_s1 + $0x204] ss:$8 sps:$4 sm:$0xff]   ;;  %v3486_v23 = vrot.slane %v3484_v5, 5  ;;  %v3508_v37 = vshll.u32 %v8282_v26, 16 }
  0x8a   : > { %1555 = vmatprep.subr.bf16.mxu1 %v9748_v17  ;;  %v619_v52 = vrot.slane %v617_v36, 5  ;;  %v3458_v60 = vrot.slane %v3457_v44, 4  ;;  %v3498_v14 = vshll.u32 %v11008_v2, 16  ;;  %v3502_v15 = vshrl.u32 %v11008_v2, 16 }
  0x8b   : > { %v7892_v17 = vcombine.low %v10940_v12, %v10973_v35  ;;  %v3472_v27 = vrot.slane %v3471_v8, 4  ;;  %v8283_v12 = vld [vmem:[%s10371_s17 + $0x180] sm:$0xff] }
  0x8c   : > { %4642 = vmatpush1.bf16.msra.mxu0 %v9749_v48  ;;  %v641_v48 = vshll.u32 %v303_v53, 16  ;;  %v620_v3 = vsel %vm10412_vm2, %v3434_v24, %v619_v52  ;;  %v3463_v7 = vsel %vm10412_vm2, %v3458_v60, %v3462_v56  ;;  %v304_v24 = vld [vmem:[%s10371_s17 + $0x160] sm:$0x11]  ;;  %v3504_v19 = vrot.slane %v3502_v15, 4  ;;  %v305_v52 = vld [vmem:[%s10371_s17 + $0x178] sm:$0x11] }
  0x8d   : > { %5254 = vmatprep.subr.bf16.mxu0 %v9759_v9  ;;  %1556 = vmatpush1.bf16.msra.mxu1 %v9746_v34  ;;  %v7895_v21 = vcombine.high %v10981_v41, %v620_v3  ;;  %v11035_v34 = vld [vmem:[%s10371_s17 + $0x188] sm:$0xff]  ;;  %v665_v36 = vshll.u32 %v304_v24, 16  ;;  %v3513_v43 = vshrl.u32 %v8283_v12, 16  ;;  %v3516_v45 = vshll.u32 %v8283_v12, 16  ;;  %v11053_v56 = vld [vmem:[%s10371_s17 + $0x190] sm:$0x11] }
  0x8e   : > { %1127 = vmatmul.mubr.bf16.gmra.mrb[32].mxu1 %v7886_v46  ;;  %v3474_v46 = vshll.u32 %v10966_v33, 16  ;;  %1557 = vmatprep.subr.bf16.mxu1 %v9754_v39 }
  0x8f   : > { %3970 = vmatmul.mubr.bf16.gmra.mrb[32].mxu0 %v8334_v47  ;;  %1136 = vmatprep.mubr.bf16.mxu1 %v7889_v30  ;;  %v3478_v47 = vshrl.u32 %v10966_v33, 16  ;;  %v8341_v30 = vcombine.high %v10981_v41, %v10985_v11  ;;  %v3515_v57 = vrot.slane %v3513_v43, 4 }
  0x90   : > { %3979 = vmatprep.mubr.bf16.mxu0 %v8337_v55  ;;  %v3448_v55 = vrot.slane %v3447_v42, 4  ;;  %v3476_v38 = vrot.slane %v3474_v46, 5  ;;  %v3522_v46 = vshll.u32 %v11035_v34, 16 }
  0x91   : > { %v3480_v63 = vrot.slane %v3478_v47, 4  ;;  %1558 = vmatpush1.bf16.msra.mxu1 %v9752_v25  ;;  %v3526_v47 = vshrl.u32 %v11035_v34, 16  ;;  %v7894_v25 = vcombine.low %v10981_v41, %v620_v3 }
  0x92   : > { %v11014_v4 = vsel %vm10412_vm2, %v3448_v55, %v3452_v31  ;;  %2204 = vmatprep.subr.bf16.mxu1 %v9799_v16  ;;  %v3500_v31 = vrot.slane %v3498_v14, 5  ;;  %v11041_v39 = vsel %vm10412_vm2, %v3472_v27, %v3476_v38  ;;  %v3510_v55 = vrot.slane %v3508_v37, 5  ;;  %v11083_v27 = vld [vmem:[%s10371_s17 + $0x20] sm:$0xff]  ;;  %v10120_v37 = vld [vmem:[%s10371_s17 + $0x28] sm:$0x11] }
  0x93   : > { %v3481_v9 = vor.u32 %v3480_v63, %v3476_v38  ;;  %v8343_v22 = vcombine.high %v11014_v4, %v3463_v7  ;;  %v3524_v61 = vrot.slane %v3522_v46, 5  ;;  %v3528_v38 = vrot.slane %v3526_v47, 4 }
  0x94   : > { %v3505_v44 = vor.u32 %v3504_v19, %v3500_v31  ;;  %v689_v63 = vshll.u32 %v305_v52, 16  ;;  %v4285_v46 = vrot.slane %v11035_v34, 5  ;;  %v4288_v47 = vrot.slane %v11053_v56, 5 }
  0x95   : > { %v3482_v28 = vrot.slane %v3481_v9, 4 }
  0x96   : > { %1137 = vmatmul.mubr.bf16.gmra.mrb[36].mxu1 %v7888_v0  ;;  %v643_v0 = vrot.slane %v641_v48, 5  ;;  %v3506_v59 = vrot.slane %v3505_v44, 4  ;;  %v3532_v48 = vshll.u32 %v11053_v56, 16  ;;  %v691_v16 = vrot.slane %v689_v63, 5 }
  0x97   : > { %3980 = vmatmul.mubr.bf16.gmra.mrb[36].mxu0 %v8336_v18  ;;  %1146 = vmatprep.mubr.bf16.mxu1 %v7891_v29  ;;  %v8340_v18 = vcombine.low %v10981_v41, %v10985_v11  ;;  %v3491_v29 = vrot.slane %v3489_v6, 4  ;;  %v3487_v11 = vsel %vm10412_vm2, %v3482_v28, %v3486_v23 }
  0x98   : > { %3989 = vmatprep.mubr.bf16.mxu0 %v8339_v62  ;;  %v3494_v62 = vrot.slane %v3492_v10, 5  ;;  %v644_v35 = vsel %vm10412_vm2, %v3458_v60, %v643_v0  ;;  %v8345_v53 = vcombine.high %v11041_v39, %v3487_v11  ;;  %v3518_v60 = vrot.slane %v3516_v45, 5  ;;  %v8397_v45 = vld [vmem:[%s10371_s17 + $0x180] sm:$0xee] }
  0x99   : > { %v3511_v5 = vsel %vm10412_vm2, %v3506_v59, %v3510_v55  ;;  %v7896_v8 = vcombine.low %v11014_v4, %v644_v35  ;;  %v8344_v9 = vcombine.low %v11041_v39, %v3487_v11  ;;  %v7959_v10 = vcombine.high %v10837_v50, %v10850_v20 }
  0x9a   : > { %v3495_v42 = vor.u32 %v3494_v62, %v3491_v29  ;;  %v3519_v6 = vor.u32 %v3518_v60, %v3515_v57  ;;  %v692_v23 = vsel %vm10412_vm2, %v3506_v59, %v691_v16  ;;  %v7963_v29 = vcombine.high %v10963_v32, %v10966_v33  ;;  %v8382_v62 = vld [vmem:[%s10371_s17 + $0x18] sm:$0xee]  ;;  %v10122_v59 = vld [vmem:[%s10371_s17] sm:$0xff]  ;;  %v11130_v60 = vld [vmem:[%s10371_s17 + $0x8] sm:$0xff] }
  0x9b   : > { %v4183_v11 = vrot.slane %v10120_v37, 5  ;;  %v8413_v52 = vrot.slane %v8397_v45, 9  ;;  %v9805_v45 = vld [vmem:[%s13020_s1 + $0x214] ss:$8 sps:$4 sm:$0xff]  }
  0x9d   : > { %v11126_v57 = vsel %vm11098_vm5, %v8413_v52, %v4285_v46 }
  0x9e   : > { %1147 = vmatmul.mubr.bf16.gmra.mrb[40].mxu1 %v7890_v49  ;;  %v8342_v49 = vcombine.low %v11014_v4, %v3463_v7  ;;  %v3529_v7 = vor.u32 %v3528_v38, %v3524_v61 }
  0x9f   : > { %3990 = vmatmul.mubr.bf16.gmra.mrb[40].mxu0 %v8338_v40  ;;  %1156 = vmatprep.mubr.bf16.mxu1 %v7893_v51  ;;  %v7897_v40 = vcombine.high %v11014_v4, %v644_v35  ;;  %v667_v51 = vrot.slane %v665_v36, 5  ;;  %v7961_v4 = vcombine.high %v10903_v54, %v10910_v58 }
  0xa0   : > { %3999 = vmatprep.mubr.bf16.mxu0 %v8341_v30  ;;  %v3496_v30 = vrot.slane %v3495_v42, 4  ;;  %v3530_v0 = vrot.slane %v3529_v7, 4  ;;  %v8398_v42 = vrot.slane %v8382_v62, 9  ;;  %v9797_v62 = vld [vmem:[%s13020_s1 + $0x200] ss:$8 sps:$4 sm:$0xff]  }
  0xa1   : > { %v668_v41 = vsel %vm10412_vm2, %v3482_v28, %v667_v51  ;;  %v11086_v28 = vrot.slane %v11083_v27, 5  ;;  %v8383_v51 = vld [vmem:[%s10371_s17 + $0x30] sm:$0xee] }
  0xa2   : > { %v11060_v3 = vsel %vm10412_vm2, %v3496_v30, %v3500_v31  ;;  %v7899_v14 = vcombine.high %v11041_v39, %v668_v41  ;;  %v7962_v31 = vcombine.low %v10963_v32, %v10966_v33  ;;  %v7898_v19 = vcombine.low %v11041_v39, %v668_v41  ;;  %v11675_v32 = vld [vmem:[%s10371_s17 + $0x38] sm:$0xff] }
  0xa3   : > { %v8347_v15 = vcombine.high %v11060_v3, %v3511_v5  ;;  %v8346_v12 = vcombine.low %v11060_v3, %v3511_v5  ;;  %v7901_v35 = vcombine.high %v11060_v3, %v692_v23  ;;  %v4182_v43 = vrot.slane %v11086_v28, 4 }
  0xa4   : > { %v7965_v39 = vcombine.high %v11005_v1, %v11008_v2  ;;  %v4287_v30 = vrot.slane %v4285_v46, 4  ;;  %v7900_v55 = vcombine.low %v11060_v3, %v692_v23  ;;  %v8399_v3 = vrot.slane %v8383_v51, 9  ;;  %v9764_v23 = vld [vmem:[%s13020_s1 + $0x614] ss:$8 sps:$4 sm:$0xff]   ;;  %v8385_v46 = vld [vmem:[%s10371_s17 + $0x60] sm:$0xee] }
  0xa6   : > { %1157 = vmatmul.mubr.bf16.gmra.mrb[44].mxu1 %v7892_v17  ;;  %v3520_v17 = vrot.slane %v3519_v6, 4  ;;  %v11135_v41 = vsel %vm11098_vm5, %v4287_v30, %v4288_v47  ;;  %v10124_v6 = vld [vmem:[%s10371_s17 + $0x40] sm:$0x11]  ;;  %v9803_v47 = vld [vmem:[%s13020_s1 + $0x210] ss:$8 sps:$4 sm:$0xff]  }
  0xa7   : > { %4000 = vmatmul.mubr.bf16.gmra.mrb[44].mxu0 %v8340_v18  ;;  %1166 = vmatprep.mubr.bf16.mxu1 %v7895_v21  ;;  %v3534_v18 = vrot.slane %v3532_v48, 5  ;;  %v7958_v21 = vcombine.low %v10837_v50, %v10850_v20  ;;  %v8477_v63 = vcombine.high %v11126_v57, %v11135_v41  ;;  %v8476_v48 = vcombine.low %v11126_v57, %v11135_v41  ;;  %v1720_v20 = vld [vmem:[%s10371_s17] sm:$0xee]  ;;  %v9937_v41 = vld [vmem:[%s13020_s1 + $0x314] ss:$8 sps:$4 sm:$0xff]  }
  0xa8   : > { %4009 = vmatprep.mubr.bf16.mxu0 %v8343_v22  ;;  %v7960_v22 = vcombine.low %v10903_v54, %v10910_v58  ;;  %v3525_v24 = vsel %vm10412_vm2, %v3520_v17, %v3524_v61  ;;  %v7935_v61 = vcombine.high %v10122_v59, %v11130_v60  ;;  %v4190_v7 = vrot.slane %v10124_v6, 5  ;;  %v9767_v6 = vld [vmem:[%s13020_s1 + $0x620] ss:$8 sps:$4 sm:$0xff]  }
  0xa9   : > { %v3535_v26 = vsel %vm10412_vm2, %v3530_v0, %v3534_v18  ;;  %v7934_v18 = vcombine.low %v10122_v59, %v11130_v60  ;;  %v1773_v50 = vrot.slane %v11130_v60, 5  ;;  %v9928_v57 = vld [vmem:[%s13020_s1 + $0x300] ss:$8 sps:$4 sm:$0xff]  }
  0xaa   : > { %v8349_v36 = vcombine.high %v3525_v24, %v3535_v26  ;;  %v8348_v56 = vcombine.low %v3525_v24, %v3535_v26  ;;  %v10126_v24 = vld [vmem:[%s10371_s17 + $0x18] sm:$0xff] }
  0xab   : > { %v7937_v26 = vcombine.high %v10126_v24, %v11083_v27 }
  0xae   : > { %1167 = vmatmul.mubr.bf16.gmra.mrb[48].mxu1 %v7894_v25  ;;  %v7964_v25 = vcombine.low %v11005_v1, %v11008_v2  ;;  %v9885_v1 = vld [vmem:[%s13020_s1 + $0x700] ss:$8 sps:$4 sm:$0xff]  }
  0xaf   : > { %4010 = vmatmul.mubr.bf16.gmra.mrb[48].mxu0 %v8342_v49  ;;  %1176 = vmatprep.mubr.bf16.mxu1 %v7897_v40  ;;  %v4181_v49 = vsel %vm11098_vm5, %v8398_v42, %v11086_v28  ;;  %v4184_v40 = vsel %vm11098_vm5, %v4182_v43, %v4183_v11  ;;  %v9762_v11 = vld [vmem:[%s13020_s1 + $0x610] ss:$8 sps:$4 sm:$0xff]   ;;  %v9769_v42 = vld [vmem:[%s13020_s1 + $0x624] ss:$8 sps:$4 sm:$0xff]  }
  0xb0   : > { %4019 = vmatprep.mubr.bf16.mxu0 %v8345_v53  ;;  %v11118_v53 = vld [vmem:[%s10371_s17 + $0x38] sm:$0xff]  ;;  %v8447_v38 = vcombine.high %v4181_v49, %v4184_v40  ;;  %v8446_v0 = vcombine.low %v4181_v49, %v4184_v40  ;;  %v10128_v40 = vld [vmem:[%s10371_s17 + $0x28] sm:$0x11] }
  0xb1   : > { %v11121_v34 = vrot.slane %v11118_v53, 5  ;;  %v1721_v49 = vld [vmem:[%s10371_s17 + $0x18] sm:$0xee]  ;;  %v1783_v51 = vrot.slane %v10128_v40, 5  ;;  %v11262_v40 = vld [vmem:[%s10371_s17 + $0x80] sm:$0xff] }
  0xb2   : > { %v7999_v59 = vrot.slane %v1721_v49, 9 }
  0xb3   : > { %v4189_v5 = vrot.slane %v11121_v34, 4  ;;  %v4188_v16 = vsel %vm11098_vm5, %v8399_v3, %v11121_v34 }
  0xb5   : > { %v4191_v17 = vsel %vm11098_vm5, %v4189_v5, %v4190_v7  ;;  %v9810_v7 = vld [vmem:[%s13020_s1 + $0x224] ss:$8 sps:$4 sm:$0xff]  }
  0xb6   : > { %1177 = vmatmul.mubr.bf16.gmra.mrb[52].mxu1 %v7896_v8  ;;  %v8384_v8 = vld [vmem:[%s10371_s17 + $0x48] sm:$0xee]  ;;  %v8448_v3 = vcombine.low %v4188_v16, %v4191_v17 }
  0xb7   : > { %4020 = vmatmul.mubr.bf16.gmra.mrb[52].mxu0 %v8344_v9  ;;  %1186 = vmatprep.mubr.bf16.mxu1 %v7899_v14  ;;  %v11145_v9 = vld [vmem:[%s10371_s17 + $0x50] sm:$0xff] }
  0xb8   : > { %4029 = vmatprep.mubr.bf16.mxu0 %v8347_v15  ;;  %v11148_v14 = vrot.slane %v11145_v9, 5  ;;  %v9757_v15 = vld [vmem:[%s13020_s1 + $0x600] ss:$8 sps:$4 sm:$0xff]  }
  0xbe   : > { %1187 = vmatmul.mubr.bf16.gmra.mrb[56].mxu1 %v7898_v19  ;;  %v8449_v19 = vcombine.high %v4188_v16, %v4191_v17  ;;  %v9774_v16 = vld [vmem:[%s13020_s1 + $0x634] ss:$8 sps:$4 sm:$0xff]   ;;  %v9808_v17 = vld [vmem:[%s13020_s1 + $0x220] ss:$8 sps:$4 sm:$0xff]  }
  0xbf   : > { %4030 = vmatmul.mubr.bf16.gmra.mrb[56].mxu0 %v8346_v12  ;;  %1196 = vmatprep.mubr.bf16.mxu1 %v7901_v35  ;;  %v8400_v12 = vrot.slane %v8384_v8, 9  ;;  %v13029_v35 = vrot.slane %v11148_v14, 4  ;;  %v11219_v8 = vsel %vm11098_vm5, %v7999_v59, %v11086_v28 }
  0xc0   : > { %4039 = vmatprep.mubr.bf16.mxu0 %v8349_v36  ;;  %v10127_v36 = vld [vmem:[%s10371_s17 + $0x58] sm:$0x11] }
  0xc1   : > { %v4197_v37 = vrot.slane %v10127_v36, 5  ;;  %v11189_v52 = vsel %vm11098_vm5, %v8400_v12, %v11148_v14  ;;  %v1722_v12 = vld [vmem:[%s10371_s17 + $0x30] sm:$0xee]  ;;  %v8386_v36 = vld [vmem:[%s10371_s17 + $0x78] sm:$0xee] }
  0xc3   : > { %v11195_v30 = vsel %vm11098_vm5, %v13029_v35, %v4197_v37  ;;  %v9779_v37 = vld [vmem:[%s13020_s1 + $0x644] ss:$8 sps:$4 sm:$0xff]  }
  0xc4   : > { %v10146_v35 = vld [vmem:[%s10371_s17 + $0xe8] sm:$0x11] }
  0xc6   : > { %1197 = vmatmul.mubr.bf16.gmra.mrb[60].mxu1 %v7900_v55  ;;  %v11198_v55 = vld [vmem:[%s10371_s17 + $0x68] sm:$0xff] }
  0xc7   : > { %4040 = vmatmul.mubr.bf16.gmra.mrb[60].mxu0 %v8348_v56  ;;  %1559 = vmatprep.mubr.bf16.mxu1 %v7935_v61  ;;  %v11201_v56 = vrot.slane %v11198_v55, 5  ;;  %v11207_v61 = vsel %vm11098_vm5, %v4182_v43, %v1783_v51  ;;  %v10130_v43 = vld [vmem:[%s10371_s17 + $0x30] sm:$0xff]  ;;  %v11265_v51 = vrot.slane %v11262_v40, 5 }
  0xc8   : > { %4643 = vmatprep.mubr.bf16.mxu0 %v8447_v38  ;;  %v7936_v38 = vcombine.low %v10126_v24, %v11083_v27  ;;  %v7939_v27 = vcombine.high %v10130_v43, %v11118_v53  ;;  %v8049_v28 = vcombine.high %v11219_v8, %v11207_v61  ;;  %v10131_v24 = vld [vmem:[%s10371_s17 + $0x70] sm:$0x11] }
  0xce   : > { %1560 = vmatmul.mubr.bf16.vlgmr.msra.gmra.mrb[0].mxu1 %v7934_v18  ;;  %v8401_v18 = vrot.slane %v8385_v46, 9 }
  0xcf   : > { %4644 = vmatmul.mubr.bf16.vlgmr.msra.gmra.mrb[0].mxu0 %v8446_v0  ;;  %1569 = vmatprep.mubr.bf16.mxu1 %v7937_v26  ;;  %v4204_v26 = vrot.slane %v10131_v24, 5  ;;  %v9844_v0 = vld [vmem:[%s13020_s1 + $0x6c0] ss:$8 sps:$4 sm:$0xff]  }
  0xd0   : > { %5255 = vmatpush1.bf16.msra.mxu0 %v9757_v15  ;;  %4653 = vmatprep.mubr.bf16.mxu0 %v8449_v19  ;;  %v8451_v15 = vcombine.high %v11189_v52, %v11195_v30  ;;  %v9816_v19 = vld [vmem:[%s13020_s1 + $0x234] ss:$8 sps:$4 sm:$0xff]  }
  0xd1   : > { %5256 = vmatprep.subr.bf16.mxu0 %v9764_v23  ;;  %2205 = vmatpush1.bf16.msra.mxu1 %v9797_v62  ;;  %v13028_v23 = vrot.slane %v11201_v56, 4  ;;  %v9772_v62 = vld [vmem:[%s13020_s1 + $0x630] ss:$8 sps:$4 sm:$0xff]  }
  0xd2   : > { %2206 = vmatprep.subr.bf16.mxu1 %v9805_v45  ;;  %v10132_v45 = vld [vmem:[%s10371_s17 + $0x40] sm:$0x11] }
  0xd3   : > { %v1790_v46 = vrot.slane %v10132_v45, 5  ;;  %v4205_v49 = vsel %vm11098_vm5, %v13028_v23, %v4204_v26  ;;  %v9782_v26 = vld [vmem:[%s13020_s1 + $0x650] ss:$8 sps:$4 sm:$0xff]   ;;  %v9854_v23 = vld [vmem:[%s13020_s1 + $0x2a4] ss:$8 sps:$4 sm:$0xff]  }
  0xd4   : > { %5257 = vmatpush1.bf16.msra.mxu0 %v9762_v11  ;;  %v9814_v11 = vld [vmem:[%s13020_s1 + $0x230] ss:$8 sps:$4 sm:$0xff]  }
  0xd5   : > { %5258 = vmatprep.subr.bf16.mxu0 %v9769_v42  ;;  %2207 = vmatpush1.bf16.msra.mxu1 %v9803_v47  ;;  %v8000_v42 = vrot.slane %v1722_v12, 9  ;;  %v11255_v47 = vsel %vm11098_vm5, %v8401_v18, %v11201_v56  ;;  %v10135_v18 = vld [vmem:[%s10371_s17 + $0x88] sm:$0x11] }
  0xd6   : > { %1570 = vmatmul.mubr.bf16.gmra.mrb[4].mxu1 %v7936_v38  ;;  %2208 = vmatprep.subr.bf16.mxu1 %v9810_v7  ;;  %v11276_v38 = vsel %vm11098_vm5, %v4189_v5, %v1790_v46  ;;  %v9777_v7 = vld [vmem:[%s13020_s1 + $0x640] ss:$8 sps:$4 sm:$0xff]   ;;  %v4211_v24 = vrot.slane %v10135_v18, 5  ;;  %v9789_v12 = vld [vmem:[%s13020_s1 + $0x664] ss:$8 sps:$4 sm:$0xff]  }
  0xd7   : > { %4654 = vmatmul.mubr.bf16.gmra.mrb[4].mxu0 %v8448_v3  ;;  %1579 = vmatprep.mubr.bf16.mxu1 %v7939_v27  ;;  %v11270_v59 = vsel %vm11098_vm5, %v8000_v42, %v11121_v34  ;;  %v7938_v3 = vcombine.low %v10130_v43, %v11118_v53  ;;  %v9821_v27 = vld [vmem:[%s13020_s1 + $0x244] ss:$8 sps:$4 sm:$0xff]   ;;  %v9819_v43 = vld [vmem:[%s13020_s1 + $0x240] ss:$8 sps:$4 sm:$0xff]   ;;  %v11323_v42 = vld [vmem:[%s10371_s17 + $0x98] sm:$0xff]  ;;  %v4239_v34 = vrot.slane %v10146_v35, 5 }
  0xd8   : > { %4663 = vmatprep.mubr.bf16.mxu0 %v8451_v15  ;;  %5259 = vmatpush1.bf16.msra.mxu0 %v9767_v6  ;;  %v8450_v6 = vcombine.low %v11189_v52, %v11195_v30  ;;  %v10134_v15 = vld [vmem:[%s10371_s17 + $0x48] sm:$0xff]  ;;  %v8453_v52 = vcombine.high %v11255_v47, %v4205_v49  ;;  %v9784_v30 = vld [vmem:[%s13020_s1 + $0x654] ss:$8 sps:$4 sm:$0xff]   ;;  %v11326_v45 = vrot.slane %v11323_v42, 5 }
  0xd9   : > { %5260 = vmatprep.subr.bf16.mxu0 %v9774_v16  ;;  %2209 = vmatpush1.bf16.msra.mxu1 %v9808_v17  ;;  %v7941_v53 = vcombine.high %v10134_v15, %v11145_v9  ;;  %v8402_v16 = vrot.slane %v8386_v36, 9  ;;  %v13027_v17 = vrot.slane %v11265_v51, 4  ;;  %v9825_v36 = vld [vmem:[%s13020_s1 + $0x250] ss:$8 sps:$4 sm:$0xff]   ;;  %v7940_v46 = vcombine.low %v10134_v15, %v11145_v9  ;;  %v9794_v9 = vld [vmem:[%s13020_s1 + $0x674] ss:$8 sps:$4 sm:$0xff]  }
  0xda   : > { %2210 = vmatprep.subr.bf16.mxu1 %v9816_v19  ;;  %v9827_v19 = vld [vmem:[%s13020_s1 + $0x254] ss:$8 sps:$4 sm:$0xff]   ;;  %v10138_v15 = vld [vmem:[%s10371_s17 + $0xa0] sm:$0x11] }
  0xdb   : > { %v9838_v18 = vld [vmem:[%s13020_s1 + $0x274] ss:$8 sps:$4 sm:$0xff]   ;;  %v9846_v35 = vld [vmem:[%s13020_s1 + $0x6c4] ss:$8 sps:$4 sm:$0xff]  }
  0xdc   : > { %5261 = vmatpush1.bf16.msra.mxu0 %v9772_v62  ;;  %v8387_v62 = vld [vmem:[%s10371_s17 + $0x90] sm:$0xee] }
  0xdd   : > { %5262 = vmatprep.subr.bf16.mxu0 %v9779_v37  ;;  %2211 = vmatpush1.bf16.msra.mxu1 %v9814_v11  ;;  %v4209_v37 = vsel %vm11098_vm5, %v8402_v16, %v11265_v51  ;;  %v4212_v11 = vsel %vm11098_vm5, %v13027_v17, %v4211_v24  ;;  %v8388_v24 = vld [vmem:[%s10371_s17 + $0xa8] sm:$0xee]  ;;  %v10145_v17 = vld [vmem:[%s10371_s17 + $0xd0] sm:$0x11] }
  0xde   : > { %1580 = vmatmul.mubr.bf16.gmra.mrb[8].mxu1 %v7938_v3  ;;  %2212 = vmatprep.subr.bf16.mxu1 %v9821_v27  ;;  %v8452_v3 = vcombine.low %v11255_v47, %v4205_v49  ;;  %v8455_v16 = vcombine.high %v4209_v37, %v4212_v11  ;;  %v9830_v47 = vld [vmem:[%s13020_s1 + $0x260] ss:$8 sps:$4 sm:$0xff]   ;;  %v8403_v49 = vrot.slane %v8387_v62, 9  ;;  %v13025_v27 = vrot.slane %v11326_v45, 4 }
  0xdf   : > { %4664 = vmatmul.mubr.bf16.gmra.mrb[8].mxu0 %v8450_v6  ;;  %1589 = vmatprep.mubr.bf16.mxu1 %v7941_v53  ;;  %v9787_v6 = vld [vmem:[%s13020_s1 + $0x660] ss:$8 sps:$4 sm:$0xff]  }
  0xe0   : > { %4673 = vmatprep.mubr.bf16.mxu0 %v8453_v52  ;;  %5263 = vmatpush1.bf16.msra.mxu0 %v9777_v7  ;;  %v9832_v7 = vld [vmem:[%s13020_s1 + $0x264] ss:$8 sps:$4 sm:$0xff]   ;;  %v11362_v62 = vsel %vm11098_vm5, %v8403_v49, %v11326_v45 }
  0xe1   : > { %5264 = vmatprep.subr.bf16.mxu0 %v9784_v30  ;;  %2213 = vmatpush1.bf16.msra.mxu1 %v9819_v43  ;;  %v10137_v53 = vld [vmem:[%s10371_s17 + $0x60] sm:$0xff]  ;;  %v4218_v30 = vrot.slane %v10138_v15, 5  ;;  %v9792_v43 = vld [vmem:[%s13020_s1 + $0x670] ss:$8 sps:$4 sm:$0xff]  }
  0xe2   : > { %2214 = vmatprep.subr.bf16.mxu1 %v9827_v19  ;;  %v7943_v52 = vcombine.high %v10137_v53, %v11198_v55  ;;  %v9836_v19 = vld [vmem:[%s13020_s1 + $0x270] ss:$8 sps:$4 sm:$0xff]   ;;  %v9843_v49 = vld [vmem:[%s13020_s1 + $0x284] ss:$8 sps:$4 sm:$0xff]  }
  0xe3   : > { %v10140_v15 = vld [vmem:[%s10371_s17 + $0x78] sm:$0xff] }
  0xe4   : > { %5265 = vmatpush1.bf16.msra.mxu0 %v9782_v26  ;;  %v9802_v26 = vld [vmem:[%s13020_s1 + $0x684] ss:$8 sps:$4 sm:$0xff]  }
  0xe5   : > { %5266 = vmatprep.subr.bf16.mxu0 %v9789_v12  ;;  %2215 = vmatpush1.bf16.msra.mxu1 %v9825_v36  ;;  %v11368_v12 = vsel %vm11098_vm5, %v13025_v27, %v4218_v30  ;;  %v11371_v36 = vld [vmem:[%s10371_s17 + $0xb0] sm:$0xff]  ;;  %v8389_v30 = vld [vmem:[%s10371_s17 + $0xc0] sm:$0xee] }
  0xe6   : > { %1590 = vmatmul.mubr.bf16.gmra.mrb[12].mxu1 %v7940_v46  ;;  %v11374_v46 = vrot.slane %v11371_v36, 5  ;;  %2216 = vmatprep.subr.bf16.mxu1 %v9832_v7  ;;  %v8457_v7 = vcombine.high %v11362_v62, %v11368_v12  ;;  %v11432_v27 = vld [vmem:[%s10371_s17 + $0xe0] sm:$0xff] }
  0xe7   : > { %4674 = vmatmul.mubr.bf16.gmra.mrb[12].mxu0 %v8452_v3  ;;  %1599 = vmatprep.mubr.bf16.mxu1 %v7943_v52  ;;  %v7942_v3 = vcombine.low %v10137_v53, %v11198_v55  ;;  %v8454_v52 = vcombine.low %v4209_v37, %v4212_v11  ;;  %v9813_v55 = vld [vmem:[%s13020_s1 + $0x694] ss:$8 sps:$4 sm:$0xff]   ;;  %v9841_v37 = vld [vmem:[%s13020_s1 + $0x280] ss:$8 sps:$4 sm:$0xff]   ;;  %v8404_v11 = vrot.slane %v8388_v24, 9 }
  0xe8   : > { %4683 = vmatprep.mubr.bf16.mxu0 %v8455_v16  ;;  %5267 = vmatpush1.bf16.msra.mxu0 %v9787_v6  ;;  %v9800_v16 = vld [vmem:[%s13020_s1 + $0x680] ss:$8 sps:$4 sm:$0xff]   ;;  %v7945_v6 = vcombine.high %v10140_v15, %v11262_v40  ;;  %v13026_v53 = vrot.slane %v11374_v46, 4  ;;  %v9849_v24 = vld [vmem:[%s13020_s1 + $0x294] ss:$8 sps:$4 sm:$0xff]  }
  0xe9   : > { %5268 = vmatprep.subr.bf16.mxu0 %v9794_v9  ;;  %2217 = vmatpush1.bf16.msra.mxu1 %v9830_v47  ;;  %v10141_v9 = vld [vmem:[%s10371_s17 + $0xb8] sm:$0x11] }
  0xea   : > { %2218 = vmatprep.subr.bf16.mxu1 %v9838_v18  ;;  %v4225_v47 = vrot.slane %v10141_v9, 5  ;;  %v9811_v18 = vld [vmem:[%s13020_s1 + $0x690] ss:$8 sps:$4 sm:$0xff]   ;;  %v8456_v9 = vcombine.low %v11362_v62, %v11368_v12  ;;  %v8405_v62 = vrot.slane %v8389_v30, 9  ;;  %v9835_v12 = vld [vmem:[%s13020_s1 + $0x6b4] ss:$8 sps:$4 sm:$0xff]  }
  0xec   : > { %5269 = vmatpush1.bf16.msra.mxu0 %v9792_v43  ;;  %v9824_v43 = vld [vmem:[%s13020_s1 + $0x6a4] ss:$8 sps:$4 sm:$0xff]  }
  0xed   : > { %5270 = vmatprep.subr.bf16.mxu0 %v9802_v26  ;;  %2219 = vmatpush1.bf16.msra.mxu1 %v9836_v19  ;;  %v9847_v26 = vld [vmem:[%s13020_s1 + $0x290] ss:$8 sps:$4 sm:$0xff]   ;;  %v11411_v19 = vsel %vm11098_vm5, %v8404_v11, %v11374_v46  ;;  %v7944_v11 = vcombine.low %v10140_v15, %v11262_v40  ;;  %v9852_v15 = vld [vmem:[%s13020_s1 + $0x2a0] ss:$8 sps:$4 sm:$0xff]  }
  0xee   : > { %1600 = vmatmul.mubr.bf16.gmra.mrb[16].mxu1 %v7942_v3  ;;  %v11417_v3 = vsel %vm11098_vm5, %v13026_v53, %v4225_v47  ;;  %2220 = vmatprep.subr.bf16.mxu1 %v9843_v49  ;;  %v11435_v47 = vrot.slane %v11432_v27, 5  ;;  %v11438_v53 = vld [vmem:[%s10371_s17 + $0xf0] sm:$0xee] }
  0xef   : > { %4684 = vmatmul.mubr.bf16.gmra.mrb[16].mxu0 %v8454_v52  ;;  %1609 = vmatprep.mubr.bf16.mxu1 %v7945_v6  ;;  %v11420_v52 = vld [vmem:[%s10371_s17 + $0xc8] sm:$0xff]  ;;  %v10144_v49 = vld [vmem:[%s10371_s17 + $0x90] sm:$0xff]  ;;  %v8459_v40 = vcombine.high %v11411_v19, %v11417_v3 }
  0xf0   : > { %4693 = vmatprep.mubr.bf16.mxu0 %v8457_v7  ;;  %v11423_v6 = vrot.slane %v11420_v52, 5  ;;  %v11426_v7 = vld [vmem:[%s10371_s17 + $0xd8] sm:$0xee]  ;;  %5271 = vmatpush1.bf16.msra.mxu0 %v9800_v16  ;;  %v9822_v16 = vld [vmem:[%s13020_s1 + $0x6a0] ss:$8 sps:$4 sm:$0xff]   ;;  %v4238_v5 = vrot.slane %v11435_v47, 4 }
  0xf1   : > { %5272 = vmatprep.subr.bf16.mxu0 %v9813_v55  ;;  %2221 = vmatpush1.bf16.msra.mxu1 %v9841_v37  ;;  %v7947_v55 = vcombine.high %v10144_v49, %v11323_v42  ;;  %v8406_v30 = vrot.slane %v11426_v7, 9  ;;  %v8407_v7 = vrot.slane %v11438_v53, 9 }
  0xf2   : > { %2222 = vmatprep.subr.bf16.mxu1 %v9849_v24  ;;  %v13030_v37 = vrot.slane %v11423_v6, 4  ;;  %v4232_v24 = vrot.slane %v10145_v17, 5  ;;  %v9833_v17 = vld [vmem:[%s13020_s1 + $0x6b0] ss:$8 sps:$4 sm:$0xff]  }
  0xf4   : > { %5273 = vmatpush1.bf16.msra.mxu0 %v9811_v18  ;;  %v9860_v18 = vld [vmem:[%s13020_s1 + $0x2b4] ss:$8 sps:$4 sm:$0xff]   ;;  %v4233_v53 = vsel %vm11098_vm5, %v13030_v37, %v4232_v24  ;;  %v10148_v24 = vld [vmem:[%s10371_s17 + $0xa8] sm:$0xff] }
  0xf5   : > { %5274 = vmatprep.subr.bf16.mxu0 %v9824_v43  ;;  %2223 = vmatpush1.bf16.msra.mxu1 %v9847_v26  ;;  %v11469_v43 = vld [vmem:[%s10371_s17 + $0xf8] sm:$0xff] }
  0xf6   : > { %1610 = vmatmul.mubr.bf16.gmra.mrb[20].mxu1 %v7944_v11  ;;  %v11472_v26 = vrot.slane %v11469_v43, 5  ;;  %v9858_v11 = vld [vmem:[%s13020_s1 + $0x2b0] ss:$8 sps:$4 sm:$0xff]   ;;  %2224 = vmatprep.subr.bf16.mxu1 %v9854_v23  ;;  %v7949_v23 = vcombine.high %v10148_v24, %v11371_v36 }
  0xf7   : > { %4694 = vmatmul.mubr.bf16.gmra.mrb[20].mxu0 %v8456_v9  ;;  %1619 = vmatprep.mubr.bf16.mxu1 %v7947_v55  ;;  %v4230_v9 = vsel %vm11098_vm5, %v8405_v62, %v11423_v6  ;;  %v7946_v55 = vcombine.low %v10144_v49, %v11323_v42  ;;  %v9865_v62 = vld [vmem:[%s13020_s1 + $0x2c4] ss:$8 sps:$4 sm:$0xff]   ;;  %v9857_v42 = vld [vmem:[%s13020_s1 + $0x6d4] ss:$8 sps:$4 sm:$0xff]  }
  0xf8   : > { %4703 = vmatprep.mubr.bf16.mxu0 %v8459_v40  ;;  %5275 = vmatpush1.bf16.msra.mxu0 %v9822_v16  ;;  %v8458_v40 = vcombine.low %v11411_v19, %v11417_v3  ;;  %v8461_v16 = vcombine.high %v4230_v9, %v4233_v53  ;;  %v9863_v19 = vld [vmem:[%s13020_s1 + $0x2c0] ss:$8 sps:$4 sm:$0xff]   ;;  %v4245_v3 = vrot.slane %v11472_v26, 4 }
  0xf9   : > { %5276 = vmatprep.subr.bf16.mxu0 %v9835_v12  ;;  %2225 = vmatpush1.bf16.msra.mxu1 %v9852_v15  ;;  %v10149_v49 = vld [vmem:[%s10371_s17 + $0x100] sm:$0x11]  ;;  %v9855_v15 = vld [vmem:[%s13020_s1 + $0x6d0] ss:$8 sps:$4 sm:$0xff]  }
  0xfa   : > { %2226 = vmatprep.subr.bf16.mxu1 %v9860_v18  ;;  %v4246_v12 = vrot.slane %v10149_v49, 5  ;;  %v9868_v18 = vld [vmem:[%s13020_s1 + $0x6e4] ss:$8 sps:$4 sm:$0xff]  }
  0xfb   : > { %v10150_v49 = vld [vmem:[%s10371_s17 + $0xc0] sm:$0xff] }
  0xfc   : > { %5277 = vmatpush1.bf16.msra.mxu0 %v9833_v17  ;;  %v9871_v17 = vld [vmem:[%s13020_s1 + $0x2d4] ss:$8 sps:$4 sm:$0xff]  }
  0xfd   : > { %5278 = vmatprep.subr.bf16.mxu0 %v9846_v35  ;;  %2227 = vmatpush1.bf16.msra.mxu1 %v9858_v11  ;;  %v9869_v35 = vld [vmem:[%s13020_s1 + $0x2d0] ss:$8 sps:$4 sm:$0xff]   ;;  %v4237_v11 = vsel %vm11098_vm5, %v8406_v30, %v11435_v47  ;;  %v7951_v30 = vcombine.high %v10150_v49, %v11420_v52 }
  0xfe   : > { %1620 = vmatmul.mubr.bf16.gmra.mrb[24].mxu1 %v7946_v55  ;;  %v4240_v55 = vsel %vm11098_vm5, %v4238_v5, %v4239_v34  ;;  %2228 = vmatprep.subr.bf16.mxu1 %v9865_v62  ;;  %v9874_v34 = vld [vmem:[%s13020_s1 + $0x2e0] ss:$8 sps:$4 sm:$0xff]   ;;  %v4247_v62 = vsel %vm11098_vm5, %v4245_v3, %v4246_v12  ;;  %v9887_v12 = vld [vmem:[%s13020_s1 + $0x704] ss:$8 sps:$4 sm:$0xff]  }
  0xff   : > { %4704 = vmatmul.mubr.bf16.gmra.mrb[24].mxu0 %v8458_v40  ;;  %1629 = vmatprep.mubr.bf16.mxu1 %v7949_v23  ;;  %v7948_v40 = vcombine.low %v10148_v24, %v11371_v36  ;;  %v8460_v23 = vcombine.low %v4230_v9, %v4233_v53  ;;  %v8463_v37 = vcombine.high %v4237_v11, %v4240_v55  ;;  %v9879_v36 = vld [vmem:[%s13020_s1 + $0x6f4] ss:$8 sps:$4 sm:$0xff]  }
 0x100   : > { %4713 = vmatprep.mubr.bf16.mxu0 %v8461_v16  ;;  %5279 = vmatpush1.bf16.msra.mxu0 %v9844_v0  ;;  %v9866_v16 = vld [vmem:[%s13020_s1 + $0x6e0] ss:$8 sps:$4 sm:$0xff]   ;;  %v9876_v0 = vld [vmem:[%s13020_s1 + $0x2e4] ss:$8 sps:$4 sm:$0xff]   ;;  %v9882_v9 = vld [vmem:[%s13020_s1 + $0x2f4] ss:$8 sps:$4 sm:$0xff]   ;;  %v4244_v53 = vsel %vm11098_vm5, %v8407_v7, %v11472_v26 }
 0x101   : > { %5280 = vmatprep.subr.bf16.mxu0 %v9857_v42  ;;  %2229 = vmatpush1.bf16.msra.mxu1 %v9863_v19  ;;  %v11551_v24 = vld [vmem:[%s10371_s17 + $0x110] sm:$0xff]  ;;  %v8392_v19 = vld [vmem:[%s10371_s17 + $0x108] sm:$0xee] }
 0x102   : > { %2230 = vmatprep.subr.bf16.mxu1 %v9871_v17  ;;  %v11554_v42 = vrot.slane %v11551_v24, 5  ;;  %v9880_v7 = vld [vmem:[%s13020_s1 + $0x2f0] ss:$8 sps:$4 sm:$0xff]   ;;  %v8462_v17 = vcombine.low %v4237_v11, %v4240_v55  ;;  %v10154_v55 = vld [vmem:[%s10371_s17 + $0x128] sm:$0xff] }
 0x104   : > { %5281 = vmatpush1.bf16.msra.mxu0 %v9855_v15  ;;  %v7950_v15 = vcombine.low %v10150_v49, %v11420_v52  ;;  %v11582_v49 = vrot.slane %v10154_v55, 5 }
 0x105   : > { %5282 = vmatprep.subr.bf16.mxu0 %v9868_v18  ;;  %2231 = vmatpush1.bf16.msra.mxu1 %v9869_v35  ;;  %v10152_v18 = vld [vmem:[%s10371_s17 + $0xd8] sm:$0xff] }
 0x106   : > { %1630 = vmatmul.mubr.bf16.gmra.mrb[28].mxu1 %v7948_v40  ;;  %2232 = vmatprep.subr.bf16.mxu1 %v9876_v0  ;;  %v7953_v35 = vcombine.high %v10152_v18, %v11432_v27  ;;  %v8465_v40 = vcombine.high %v4244_v53, %v4247_v62 }
 0x107   : > { %4714 = vmatmul.mubr.bf16.gmra.mrb[28].mxu0 %v8460_v23  ;;  %1639 = vmatprep.mubr.bf16.mxu1 %v7951_v30  ;;  %v8408_v23 = vrot.slane %v8392_v19, 9  ;;  %v10153_v30 = vld [vmem:[%s10371_s17 + $0x118] sm:$0x11]  ;;  %v10155_v19 = vld [vmem:[%s10371_s17 + $0xf0] sm:$0xff] }
 0x108   : > { %4723 = vmatprep.mubr.bf16.mxu0 %v8463_v37  ;;  %5283 = vmatpush1.bf16.msra.mxu0 %v9866_v16  ;;  %v9877_v37 = vld [vmem:[%s13020_s1 + $0x6f0] ss:$8 sps:$4 sm:$0xff]   ;;  %v4252_v16 = vrot.slane %v11554_v42, 4  ;;  %v4253_v0 = vrot.slane %v10153_v30, 5  ;;  %v7954_v30 = vcombine.low %v10155_v19, %v11469_v43 }
 0x109   : > { %5284 = vmatprep.subr.bf16.mxu0 %v9879_v36  ;;  %2233 = vmatpush1.bf16.msra.mxu1 %v9874_v34  ;;  %v9930_v34 = vld [vmem:[%s13020_s1 + $0x304] ss:$8 sps:$4 sm:$0xff]   ;;  %v4251_v52 = vsel %vm11098_vm5, %v8408_v23, %v11554_v42  ;;  %v8394_v23 = vld [vmem:[%s10371_s17 + $0x138] sm:$0xee] }
 0x10a   : > { %2234 = vmatprep.subr.bf16.mxu1 %v9882_v9  ;;  %v4254_v11 = vsel %vm11098_vm5, %v4252_v16, %v4253_v0  ;;  %v8393_v36 = vld [vmem:[%s10371_s17 + $0x120] sm:$0xee]  ;;  %v7952_v9 = vcombine.low %v10152_v18, %v11432_v27 }
 0x10b   : > { %v8466_v0 = vcombine.low %v4251_v52, %v4254_v11 }
 0x10c   : > { %5285 = vmatpush1.bf16.msra.mxu0 %v9877_v37  ;;  %v8464_v37 = vcombine.low %v4244_v53, %v4247_v62  ;;  %v10157_v62 = vld [vmem:[%s10371_s17 + $0x140] sm:$0xff] }
 0x10d   : > { %2235 = vmatpush1.bf16.msra.mxu1 %v9880_v7  ;;  %6264 = vmatprep.subr.bf16.mxu0 %v9887_v12  ;;  %v7955_v7 = vcombine.high %v10155_v19, %v11469_v43  ;;  %v8467_v12 = vcombine.high %v4251_v52, %v4254_v11  ;;  %v11598_v18 = vrot.slane %v10157_v62, 5  ;;  %v10160_v11 = vld [vmem:[%s10371_s17 + $0x158] sm:$0xff] }
 0x10e   : > { %1640 = vmatmul.mubr.bf16.gmra.mrb[32].mxu1 %v7950_v15  ;;  %2847 = vmatprep.subr.bf16.mxu1 %v9930_v34  ;;  %v8409_v15 = vrot.slane %v8393_v36, 9  ;;  %v10158_v34 = vld [vmem:[%s10371_s17 + $0x108] sm:$0xff]  ;;  %v11614_v19 = vrot.slane %v10160_v11, 5 }
 0x10f   : > { %4724 = vmatmul.mubr.bf16.gmra.mrb[32].mxu0 %v8462_v17  ;;  %1649 = vmatprep.mubr.bf16.mxu1 %v7953_v35  ;;  %v4259_v17 = vrot.slane %v11582_v49, 4  ;;  %v10156_v35 = vld [vmem:[%s10371_s17 + $0x130] sm:$0x11]  ;;  %v7957_v55 = vcombine.high %v10158_v34, %v11551_v24 }
 0x110   : > { %4733 = vmatprep.mubr.bf16.mxu0 %v8465_v40  ;;  %v4260_v40 = vrot.slane %v10156_v35, 5  ;;  %v4258_v27 = vsel %vm11098_vm5, %v8409_v15, %v11582_v49  ;;  %v8395_v15 = vld [vmem:[%s10371_s17 + $0x150] sm:$0xee]  ;;  %v7956_v35 = vcombine.low %v10158_v34, %v11551_v24  ;;  %v8396_v34 = vld [vmem:[%s10371_s17 + $0x168] sm:$0xee] }
 0x112   : > { %v4261_v53 = vsel %vm11098_vm5, %v4259_v17, %v4260_v40 }
 0x113   : > { %v8469_v36 = vcombine.high %v4258_v27, %v4261_v53  ;;  %v8468_v40 = vcombine.low %v4258_v27, %v4261_v53  ;;  %v10162_v27 = vld [vmem:[%s10371_s17 + $0x170] sm:$0xff] }
 0x114   : > { %v11631_v53 = vrot.slane %v10162_v27, 5  ;;  %v1723_v27 = vld [vmem:[%s10371_s17 + $0x48] sm:$0xee] }
 0x116   : > { %1650 = vmatmul.mubr.bf16.gmra.mrb[36].mxu1 %v7952_v9  ;;  %v8410_v9 = vrot.slane %v8394_v23, 9  ;;  %v8411_v23 = vrot.slane %v8395_v15, 9  ;;  %v4280_v11 = vrot.slane %v11631_v53, 4 }
 0x117   : > { %4734 = vmatmul.mubr.bf16.gmra.mrb[36].mxu0 %v8464_v37  ;;  %1659 = vmatprep.mubr.bf16.mxu1 %v7955_v7  ;;  %v4266_v37 = vrot.slane %v11598_v18, 4  ;;  %v10159_v7 = vld [vmem:[%s10371_s17 + $0x148] sm:$0x11] }
 0x118   : > { %4743 = vmatprep.mubr.bf16.mxu0 %v8467_v12  ;;  %v4267_v12 = vrot.slane %v10159_v7, 5  ;;  %v4265_v43 = vsel %vm11098_vm5, %v8410_v9, %v11598_v18 }
 0x11a   : > { %v4268_v52 = vsel %vm11098_vm5, %v4266_v37, %v4267_v12  ;;  %v8412_v12 = vrot.slane %v8396_v34, 9 }
 0x11b   : > { %v8471_v62 = vcombine.high %v4265_v43, %v4268_v52  ;;  %v8470_v9 = vcombine.low %v4265_v43, %v4268_v52 }
 0x11c   : > { %v4279_v43 = vsel %vm11098_vm5, %v8412_v12, %v11631_v53  ;;  %v8001_v12 = vrot.slane %v1723_v27, 9  ;;  %v9952_v27 = vld [vmem:[%s13020_s1 + $0x340] ss:$8 sps:$4 sm:$0xff]  }
 0x11e   : > { %1660 = vmatmul.mubr.bf16.gmra.mrb[40].mxu1 %v7954_v30  ;;  %v4273_v30 = vrot.slane %v11614_v19, 4 }
 0x11f   : > { %4744 = vmatmul.mubr.bf16.gmra.mrb[40].mxu0 %v8466_v0  ;;  %1669 = vmatprep.mubr.bf16.mxu1 %v7957_v55  ;;  %v10161_v0 = vld [vmem:[%s10371_s17 + $0x160] sm:$0x11] }
 0x120   : > { %4753 = vmatprep.mubr.bf16.mxu0 %v8469_v36  ;;  %v4274_v55 = vrot.slane %v10161_v0, 5  ;;  %v4272_v36 = vsel %vm11098_vm5, %v8411_v23, %v11614_v19  ;;  %v7998_v23 = vrot.slane %v1720_v20, 9  ;;  %v1775_v0 = vrot.slane %v1773_v50, 4 }
 0x121   : > { %v13036_v20 = vcombine.high %v11270_v59, %v11276_v38 }
 0x122   : > { %v4275_v24 = vsel %vm11098_vm5, %v4273_v30, %v4274_v55  ;;  %v1774_v54 = vsel %vm11098_vm5, %v7998_v23, %v1773_v50  ;;  %v11723_v55 = vld [vmem:[%s10371_s17 + $0x60] sm:$0xff]  ;;  %v9949_v50 = vld [vmem:[%s13020_s1 + $0x334] ss:$8 sps:$4 sm:$0xff]   ;;  %v9900_v23 = vld [vmem:[%s13020_s1 + $0x730] ss:$8 sps:$4 sm:$0xff]  }
 0x123   : > { %v8473_v7 = vcombine.high %v4272_v36, %v4275_v24 }
 0x126   : > { %1670 = vmatmul.mubr.bf16.gmra.mrb[44].mxu1 %v7956_v35  ;;  %v8472_v35 = vcombine.low %v4272_v36, %v4275_v24  ;;  %v11726_v36 = vld [vmem:[%s10371_s17 + $0x68] sm:$0xff] }
 0x127   : > { %4754 = vmatmul.mubr.bf16.gmra.mrb[44].mxu0 %v8468_v40  ;;  %1679 = vmatprep.mubr.bf16.mxu1 %v7959_v10  ;;  %v10163_v10 = vld [vmem:[%s10371_s17 + $0x178] sm:$0x11]  ;;  %v9897_v24 = vld [vmem:[%s13020_s1 + $0x724] ss:$8 sps:$4 sm:$0xff]  }
 0x128   : > { %4763 = vmatprep.mubr.bf16.mxu0 %v8471_v62  ;;  %v4281_v15 = vrot.slane %v10163_v10, 5  ;;  %v10165_v10 = vld [vmem:[%s10371_s17 + $0x58] sm:$0x11] }
 0x12a   : > { %v4282_v52 = vsel %vm11098_vm5, %v4280_v11, %v4281_v15  ;;  %v1797_v15 = vrot.slane %v10165_v10, 5 }
 0x12b   : > { %v8475_v40 = vcombine.high %v4279_v43, %v4282_v52 }
 0x12e   : > { %1680 = vmatmul.mubr.bf16.gmra.mrb[48].mxu1 %v7958_v21  ;;  %v8474_v21 = vcombine.low %v4279_v43, %v4282_v52  ;;  %v9942_v43 = vld [vmem:[%s13020_s1 + $0x324] ss:$8 sps:$4 sm:$0xff]   ;;  %v9902_v52 = vld [vmem:[%s13020_s1 + $0x734] ss:$8 sps:$4 sm:$0xff]  }
 0x12f   : > { %4764 = vmatmul.mubr.bf16.gmra.mrb[48].mxu0 %v8470_v9  ;;  %1689 = vmatprep.mubr.bf16.mxu1 %v7961_v4  ;;  %v10164_v4 = vld [vmem:[%s10371_s17 + $0x10] sm:$0x11]  ;;  %v8579_v9 = vcombine.high %v11723_v55, %v11726_v36 }
 0x130   : > { %4773 = vmatprep.mubr.bf16.mxu0 %v8473_v7  ;;  %v1776_v62 = vrot.slane %v10164_v4, 5  ;;  %v9895_v7 = vld [vmem:[%s13020_s1 + $0x720] ss:$8 sps:$4 sm:$0xff]   ;;  %v13037_v4 = vrot.slane %v11148_v14, 4 }
 0x132   : > { %v1777_v58 = vsel %vm11098_vm5, %v1775_v0, %v1776_v62  ;;  %v11775_v62 = vld [vmem:[%s10371_s17 + $0x80] sm:$0xff] }
 0x133   : > { %v8047_v33 = vcombine.high %v1774_v54, %v1777_v58  ;;  %v8046_v60 = vcombine.low %v1774_v54, %v1777_v58  ;;  %v1724_v0 = vld [vmem:[%s10371_s17 + $0x60] sm:$0xee]  ;;  %v8578_v58 = vcombine.low %v11723_v55, %v11726_v36 }
 0x134   : > { %v9907_v54 = vld [vmem:[%s13020_s1 + $0x744] ss:$8 sps:$4 sm:$0xff]  }
 0x136   : > { %1690 = vmatmul.mubr.bf16.gmra.mrb[52].mxu1 %v7960_v22  ;;  %v11672_v22 = vld [vmem:[%s10371_s17 + $0x30] sm:$0xff] }
 0x137   : > { %4774 = vmatmul.mubr.bf16.gmra.mrb[52].mxu0 %v8472_v35  ;;  %1699 = vmatprep.mubr.bf16.mxu1 %v7963_v29  ;;  %v11679_v29 = vcombine.high %v11672_v22, %v11675_v32  ;;  %v9940_v35 = vld [vmem:[%s13020_s1 + $0x320] ss:$8 sps:$4 sm:$0xff]  }
 0x138   : > { %4783 = vmatprep.mubr.bf16.mxu0 %v8475_v40  ;;  %v13035_v40 = vcombine.low %v11219_v8, %v11207_v61  ;;  %v1798_v61 = vsel %vm11098_vm5, %v13037_v4, %v1797_v15  ;;  %v11772_v8 = vld [vmem:[%s10371_s17 + $0x78] sm:$0xff]  ;;  %v11818_v15 = vld [vmem:[%s10371_s17 + $0x90] sm:$0xff] }
 0x13e   : > { %1700 = vmatmul.mubr.bf16.gmra.mrb[56].mxu1 %v7962_v31  ;;  %v11689_v31 = vld [vmem:[%s10371_s17 + $0x48] sm:$0xff] }
 0x13f   : > { %4784 = vmatmul.mubr.bf16.gmra.mrb[56].mxu0 %v8474_v21  ;;  %1709 = vmatprep.mubr.bf16.mxu1 %v7965_v39  ;;  %v11692_v39 = vld [vmem:[%s10371_s17 + $0x50] sm:$0xff]  ;;  %v1795_v21 = vsel %vm11098_vm5, %v8001_v12, %v11148_v14  ;;  %v13039_v12 = vrot.slane %v11201_v56, 4 }
 0x140   : > { %4793 = vmatprep.mubr.bf16.mxu0 %v8477_v63  ;;  %v11696_v63 = vcombine.low %v11672_v22, %v11675_v32  ;;  %v11703_v2 = vcombine.high %v11689_v31, %v11692_v39  ;;  %v11737_v34 = vcombine.low %v11689_v31, %v11692_v39  ;;  %v9947_v14 = vld [vmem:[%s13020_s1 + $0x330] ss:$8 sps:$4 sm:$0xff]  }
 0x146   : > { %1710 = vmatmul.mubr.bf16.gmra.mrb[60].mxu1 %v7964_v25  ;;  %v9892_v25 = vld [vmem:[%s13020_s1 + $0x714] ss:$8 sps:$4 sm:$0xff]  }
 0x147   : > { %4794 = vmatmul.mubr.bf16.gmra.mrb[60].mxu0 %v8476_v48  ;;  %2236 = vmatprep.mubr.bf16.mxu1 %v8047_v33  ;;  %v9890_v48 = vld [vmem:[%s13020_s1 + $0x710] ss:$8 sps:$4 sm:$0xff]   ;;  %v8053_v33 = vcombine.high %v1795_v21, %v1798_v61 }
 0x148   : > { %5286 = vmatprep.mubr.bf16.mxu0 %v11679_v29 }
 0x14e   : > { %2237 = vmatmul.mubr.bf16.vlgmr.msra.gmra.mrb[0].mxu1 %v8046_v60  ;;  %v8581_v60 = vcombine.high %v11772_v8, %v11775_v62 }
 0x14f   : > { %5287 = vmatmul.mubr.bf16.vlgmr.msra.gmra.mrb[0].mxu0 %v11696_v63  ;;  %2246 = vmatprep.mubr.bf16.mxu1 %v8049_v28  ;;  %v9935_v28 = vld [vmem:[%s13020_s1 + $0x310] ss:$8 sps:$4 sm:$0xff]  }
 0x150   : > { %6265 = vmatpush1.bf16.msra.mxu0 %v9885_v1  ;;  %5296 = vmatprep.mubr.bf16.mxu0 %v11703_v2  ;;  %v8002_v1 = vrot.slane %v1724_v0, 9 }
 0x151   : > { %6266 = vmatprep.subr.bf16.mxu0 %v9892_v25  ;;  %2848 = vmatpush1.bf16.msra.mxu1 %v9928_v57  ;;  %v10166_v25 = vld [vmem:[%s10371_s17 + $0x70] sm:$0x11] }
 0x152   : > { %2849 = vmatprep.subr.bf16.mxu1 %v9937_v41  ;;  %v1804_v57 = vrot.slane %v10166_v25, 5  ;;  %v9905_v41 = vld [vmem:[%s13020_s1 + $0x740] ss:$8 sps:$4 sm:$0xff]   ;;  %v9923_v25 = vld [vmem:[%s13020_s1 + $0x770] ss:$8 sps:$4 sm:$0xff]  }
 0x154   : > { %6267 = vmatpush1.bf16.msra.mxu0 %v9890_v48  ;;  %v9954_v48 = vld [vmem:[%s13020_s1 + $0x344] ss:$8 sps:$4 sm:$0xff]   ;;  %v1805_v10 = vsel %vm11098_vm5, %v13039_v12, %v1804_v57  ;;  %v1726_v57 = vld [vmem:[%s10371_s17 + $0x90] sm:$0xee] }
 0x155   : > { %6268 = vmatprep.subr.bf16.mxu0 %v9897_v24  ;;  %2850 = vmatpush1.bf16.msra.mxu1 %v9935_v28  ;;  %v9913_v24 = vld [vmem:[%s13020_s1 + $0x754] ss:$8 sps:$4 sm:$0xff]   ;;  %v13038_v28 = vcombine.low %v11270_v59, %v11276_v38  ;;  %v9911_v38 = vld [vmem:[%s13020_s1 + $0x750] ss:$8 sps:$4 sm:$0xff]   ;;  %v10168_v12 = vld [vmem:[%s10371_s17 + $0xa0] sm:$0x11] }
 0x156   : > { %2247 = vmatmul.mubr.bf16.gmra.mrb[4].mxu1 %v13035_v40  ;;  %2851 = vmatprep.subr.bf16.mxu1 %v9942_v43  ;;  %v11821_v59 = vld [vmem:[%s10371_s17 + $0x98] sm:$0xff]  ;;  %v8580_v40 = vcombine.low %v11772_v8, %v11775_v62 }
 0x157   : > { %5297 = vmatmul.mubr.bf16.gmra.mrb[4].mxu0 %v11737_v34  ;;  %2256 = vmatprep.mubr.bf16.mxu1 %v13036_v20  ;;  %v1725_v43 = vld [vmem:[%s10371_s17 + $0x78] sm:$0xee]  ;;  %v8583_v20 = vcombine.high %v11818_v15, %v11821_v59 }
 0x158   : > { %5306 = vmatprep.mubr.bf16.mxu0 %v8579_v9  ;;  %6269 = vmatpush1.bf16.msra.mxu0 %v9895_v7  ;;  %v9961_v9 = vld [vmem:[%s13020_s1 + $0x354] ss:$8 sps:$4 sm:$0xff]   ;;  %v1802_v7 = vsel %vm11098_vm5, %v8002_v1, %v11201_v56  ;;  %v9919_v56 = vld [vmem:[%s13020_s1 + $0x764] ss:$8 sps:$4 sm:$0xff]   ;;  %v8003_v4 = vrot.slane %v1725_v43, 9 }
 0x159   : > { %6270 = vmatprep.subr.bf16.mxu0 %v9902_v52  ;;  %2852 = vmatpush1.bf16.msra.mxu1 %v9940_v35  ;;  %v9959_v52 = vld [vmem:[%s13020_s1 + $0x350] ss:$8 sps:$4 sm:$0xff]   ;;  %v8052_v35 = vcombine.low %v1795_v21, %v1798_v61  ;;  %v9966_v21 = vld [vmem:[%s13020_s1 + $0x364] ss:$8 sps:$4 sm:$0xff]   ;;  %v9925_v61 = vld [vmem:[%s13020_s1 + $0x774] ss:$8 sps:$4 sm:$0xff]  }
 0x15a   : > { %2853 = vmatprep.subr.bf16.mxu1 %v9949_v50  ;;  %v8055_v50 = vcombine.high %v1802_v7, %v1805_v10  ;;  %v9932_v43 = vld [vmem:[%s13020_s1 + $0x780] ss:$8 sps:$4 sm:$0xff]  }
 0x15c   : > { %6271 = vmatpush1.bf16.msra.mxu0 %v9900_v23  ;;  %v10167_v23 = vld [vmem:[%s10371_s17 + $0x88] sm:$0x11] }
 0x15d   : > { %6272 = vmatprep.subr.bf16.mxu0 %v9907_v54  ;;  %2854 = vmatpush1.bf16.msra.mxu1 %v9947_v14  ;;  %v1811_v0 = vrot.slane %v10167_v23, 5  ;;  %v9917_v54 = vld [vmem:[%s13020_s1 + $0x760] ss:$8 sps:$4 sm:$0xff]   ;;  %v9958_v23 = vld [vmem:[%s13020_s1 + $0x7a4] ss:$8 sps:$4 sm:$0xff]  }
 0x15e   : > { %2257 = vmatmul.mubr.bf16.gmra.mrb[8].mxu1 %v13038_v28  ;;  %2855 = vmatprep.subr.bf16.mxu1 %v9954_v48  ;;  %v9964_v14 = vld [vmem:[%s13020_s1 + $0x360] ss:$8 sps:$4 sm:$0xff]   ;;  %v8054_v48 = vcombine.low %v1802_v7, %v1805_v10  ;;  %v9908_v28 = vld [vmem:[%s10371_s17 + $0xac] ss:$8 sps:$4 sm:$0xff]  }
 0x15f   : > { %5307 = vmatmul.mubr.bf16.gmra.mrb[8].mxu0 %v8578_v58  ;;  %2266 = vmatprep.mubr.bf16.mxu1 %v8053_v33  ;;  %v9973_v58 = vld [vmem:[%s13020_s1 + $0x374] ss:$8 sps:$4 sm:$0xff]   ;;  %v1809_v33 = vsel %vm11098_vm5, %v8003_v4, %v11265_v51  ;;  %v9976_v10 = vld [vmem:[%s13020_s1 + $0x380] ss:$8 sps:$4 sm:$0xff]  }
 0x160   : > { %5316 = vmatprep.mubr.bf16.mxu0 %v8581_v60  ;;  %6273 = vmatpush1.bf16.msra.mxu0 %v9905_v41  ;;  %v13040_v60 = vrot.slane %v11265_v51, 4  ;;  %v9934_v41 = vld [vmem:[%s13020_s1 + $0x784] ss:$8 sps:$4 sm:$0xff]   ;;  %v9971_v51 = vld [vmem:[%s13020_s1 + $0x370] ss:$8 sps:$4 sm:$0xff]  }
 0x161   : > { %6274 = vmatprep.subr.bf16.mxu0 %v9913_v24  ;;  %2856 = vmatpush1.bf16.msra.mxu1 %v9952_v27  ;;  %v8582_v24 = vcombine.low %v11818_v15, %v11821_v59  ;;  %v9946_v7 = vld [vmem:[%s13020_s1 + $0x794] ss:$8 sps:$4 sm:$0xff]   ;;  %v1727_v4 = vld [vmem:[%s10371_s17 + $0xa8] sm:$0xee] }
 0x162   : > { %2857 = vmatprep.subr.bf16.mxu1 %v9961_v9  ;;  %v1812_v1 = vsel %vm11098_vm5, %v13040_v60, %v1811_v0  ;;  %v8004_v9 = vrot.slane %v1726_v57, 9  ;;  %v9990_v57 = vld [vmem:[%s13020_s1 + $0x3a4] ss:$8 sps:$4 sm:$0xff]  }
 0x163   : > { %v8057_v27 = vcombine.high %v1809_v33, %v1812_v1  ;;  %v8056_v0 = vcombine.low %v1809_v33, %v1812_v1  ;;  %v9970_v33 = vld [vmem:[%s13020_s1 + $0x7b4] ss:$8 sps:$4 sm:$0xff]   ;;  %v9988_v1 = vld [vmem:[%s13020_s1 + $0x3a0] ss:$8 sps:$4 sm:$0xff]  }
 0x164   : > { %6275 = vmatpush1.bf16.msra.mxu0 %v9911_v38  ;;  %v1818_v38 = vrot.slane %v10168_v12, 5 }
 0x165   : > { %6276 = vmatprep.subr.bf16.mxu0 %v9919_v56  ;;  %2858 = vmatpush1.bf16.msra.mxu1 %v9959_v52  ;;  %v9978_v56 = vld [vmem:[%s13020_s1 + $0x384] ss:$8 sps:$4 sm:$0xff]   ;;  %v9985_v52 = vld [vmem:[%s13020_s1 + $0x394] ss:$8 sps:$4 sm:$0xff]  }
 0x166   : > { %2267 = vmatmul.mubr.bf16.gmra.mrb[12].mxu1 %v8052_v35  ;;  %2859 = vmatprep.subr.bf16.mxu1 %v9966_v21  ;;  %v1816_v35 = vsel %vm11098_vm5, %v8004_v9, %v11326_v45  ;;  %v9982_v9 = vld [vmem:[%s13020_s1 + $0x7c4] ss:$8 sps:$4 sm:$0xff]  }
 0x167   : > { %5317 = vmatmul.mubr.bf16.gmra.mrb[12].mxu0 %v8580_v40  ;;  %2276 = vmatprep.mubr.bf16.mxu1 %v8055_v50  ;;  %v13041_v40 = vrot.slane %v11326_v45, 4  ;;  %v9983_v45 = vld [vmem:[%s13020_s1 + $0x390] ss:$8 sps:$4 sm:$0xff]  }
 0x168   : > { %5326 = vmatprep.mubr.bf16.mxu0 %v8583_v20  ;;  %6277 = vmatpush1.bf16.msra.mxu0 %v9917_v54  ;;  %v9944_v20 = vld [vmem:[%s13020_s1 + $0x790] ss:$8 sps:$4 sm:$0xff]  }
 0x169   : > { %6278 = vmatprep.subr.bf16.mxu0 %v9925_v61  ;;  %2860 = vmatpush1.bf16.msra.mxu1 %v9964_v14  ;;  %v1819_v50 = vsel %vm11098_vm5, %v13041_v40, %v1818_v38  ;;  %v9910_v54 = vld [vmem:[%s10371_s17 + $0xa8] ss:$8 sps:$4 sm:$0xff]   ;;  %v9914_v61 = vld [vmem:[%s10371_s17 + $0xc4] ss:$8 sps:$4 sm:$0xff]   ;;  %v8005_v14 = vrot.slane %v1727_v4, 9 }
 0x16a   : > { %2861 = vmatprep.subr.bf16.mxu1 %v9973_v58  ;;  %v8059_v21 = vcombine.high %v1816_v35, %v1819_v50  ;;  %v10169_v58 = vld [vmem:[%s10371_s17 + $0xb8] sm:$0x11]  ;;  %v8058_v12 = vcombine.low %v1816_v35, %v1819_v50  ;;  %v9916_v38 = vld [vmem:[%s10371_s17 + $0xc0] ss:$8 sps:$4 sm:$0xff]  }
 0x16b   : > { %v1825_v60 = vrot.slane %v10169_v58, 5  ;;  %v9980_v40 = vld [vmem:[%s13020_s1 + $0x7c0] ss:$8 sps:$4 sm:$0xff]   ;;  %v9994_v35 = vld [vmem:[%s13020_s1 + $0x7d4] ss:$8 sps:$4 sm:$0xff]  }
 0x16c   : > { %6279 = vmatpush1.bf16.msra.mxu0 %v9923_v25  ;;  %v9956_v25 = vld [vmem:[%s13020_s1 + $0x7a0] ss:$8 sps:$4 sm:$0xff]   ;;  %v10009_v4 = vld [vmem:[%s13020_s1 + $0x3d4] ss:$8 sps:$4 sm:$0xff]  }
 0x16d   : > { %6280 = vmatprep.subr.bf16.mxu0 %v9934_v41  ;;  %2862 = vmatpush1.bf16.msra.mxu1 %v9971_v51  ;;  %v9997_v41 = vld [vmem:[%s13020_s1 + $0x3b4] ss:$8 sps:$4 sm:$0xff]   ;;  %v1823_v51 = vsel %vm11098_vm5, %v8005_v14, %v11374_v46  ;;  %v10000_v50 = vld [vmem:[%s13020_s1 + $0x3c0] ss:$8 sps:$4 sm:$0xff]  }
 0x16e   : > { %2277 = vmatmul.mubr.bf16.gmra.mrb[16].mxu1 %v8054_v48  ;;  %2863 = vmatprep.subr.bf16.mxu1 %v9978_v56  ;;  %v13042_v48 = vrot.slane %v11374_v46, 4  ;;  %v9995_v46 = vld [vmem:[%s13020_s1 + $0x3b0] ss:$8 sps:$4 sm:$0xff]   ;;  %v9920_v56 = vld [vmem:[%s10371_s17 + $0xdc] ss:$8 sps:$4 sm:$0xff]  }
 0x16f   : > { %5327 = vmatmul.mubr.bf16.gmra.mrb[16].mxu0 %v8582_v24  ;;  %2286 = vmatprep.mubr.bf16.mxu1 %v8057_v27  ;;  %v9968_v27 = vld [vmem:[%s13020_s1 + $0x7b0] ss:$8 sps:$4 sm:$0xff]  }
 0x170   : > { %5336 = vmatprep.mubr.bf16.mxu0 %v9908_v28  ;;  %6281 = vmatpush1.bf16.msra.mxu0 %v9932_v43  ;;  %v1826_v24 = vsel %vm11098_vm5, %v13042_v48, %v1825_v60  ;;  %v1728_v28 = vld [vmem:[%s10371_s17 + $0xc0] sm:$0xee] }
 0x171   : > { %6282 = vmatprep.subr.bf16.mxu0 %v9946_v7  ;;  %2864 = vmatpush1.bf16.msra.mxu1 %v9976_v10  ;;  %v8061_v43 = vcombine.high %v1823_v51, %v1826_v24  ;;  %v8006_v7 = vrot.slane %v1728_v28, 9  ;;  %v10170_v10 = vld [vmem:[%s10371_s17 + $0xd0] sm:$0x11]  ;;  %v8060_v14 = vcombine.low %v1823_v51, %v1826_v24  ;;  %v9922_v58 = vld [vmem:[%s10371_s17 + $0xd8] ss:$8 sps:$4 sm:$0xff]  }
 0x172   : > { %2865 = vmatprep.subr.bf16.mxu1 %v9985_v52  ;;  %v1832_v52 = vrot.slane %v10170_v10, 5  ;;  %v10014_v48 = vld [vmem:[%s13020_s1 + $0x3e4] ss:$8 sps:$4 sm:$0xff]   ;;  %v10012_v51 = vld [vmem:[%s13020_s1 + $0x3e0] ss:$8 sps:$4 sm:$0xff]  }
 0x173   : > { %v10018_v24 = vld [vmem:[%s13020_s1 + $0x7f4] ss:$8 sps:$4 sm:$0xff]  }
 0x174   : > { %6283 = vmatpush1.bf16.msra.mxu0 %v9944_v20  ;;  %v10002_v20 = vld [vmem:[%s13020_s1 + $0x3c4] ss:$8 sps:$4 sm:$0xff]  }
 0x175   : > { %6284 = vmatprep.subr.bf16.mxu0 %v9958_v23  ;;  %2866 = vmatpush1.bf16.msra.mxu1 %v9983_v45  ;;  %v1830_v23 = vsel %vm11098_vm5, %v8006_v7, %v11423_v6  ;;  %v13043_v45 = vrot.slane %v11423_v6, 4  ;;  %v10007_v6 = vld [vmem:[%s13020_s1 + $0x3d0] ss:$8 sps:$4 sm:$0xff]   ;;  %v9938_v7 = vld [vmem:[%s10371_s17 + $0x10c] ss:$8 sps:$4 sm:$0xff]  }
 0x176   : > { %2287 = vmatmul.mubr.bf16.gmra.mrb[20].mxu1 %v8056_v0  ;;  %2867 = vmatprep.subr.bf16.mxu1 %v9990_v57 }
 0x177   : > { %5337 = vmatmul.mubr.bf16.gmra.mrb[20].mxu0 %v9910_v54  ;;  %2296 = vmatprep.mubr.bf16.mxu1 %v8059_v21  ;;  %v1833_v0 = vsel %vm11098_vm5, %v13043_v45, %v1832_v52  ;;  %v9992_v54 = vld [vmem:[%s13020_s1 + $0x7d0] ss:$8 sps:$4 sm:$0xff]   ;;  %v10172_v52 = vld [vmem:[%s10371_s17 + $0x100] sm:$0x11] }
 0x178   : > { %5346 = vmatprep.mubr.bf16.mxu0 %v9914_v61  ;;  %6285 = vmatpush1.bf16.msra.mxu0 %v9956_v25  ;;  %v1729_v21 = vld [vmem:[%s10371_s17 + $0xd8] sm:$0xee]  ;;  %v10006_v61 = vld [vmem:[%s13020_s1 + $0x7e4] ss:$8 sps:$4 sm:$0xff]   ;;  %v8063_v60 = vcombine.high %v1830_v23, %v1833_v0 }
 0x179   : > { %6286 = vmatprep.subr.bf16.mxu0 %v9970_v33  ;;  %2868 = vmatpush1.bf16.msra.mxu1 %v9988_v1  ;;  %v9926_v25 = vld [vmem:[%s10371_s17 + $0xf4] ss:$8 sps:$4 sm:$0xff]   ;;  %v8007_v57 = vrot.slane %v1729_v21, 9  ;;  %v10171_v33 = vld [vmem:[%s10371_s17 + $0xe8] sm:$0x11] }
 0x17a   : > { %2869 = vmatprep.subr.bf16.mxu1 %v9997_v41  ;;  %v1839_v1 = vrot.slane %v10171_v33, 5  ;;  %v10004_v41 = vld [vmem:[%s13020_s1 + $0x7e0] ss:$8 sps:$4 sm:$0xff]   ;;  %v10173_v21 = vld [vmem:[%s10371_s17 + $0x118] sm:$0x11] }
 0x17b   : > { %v1837_v28 = vsel %vm11098_vm5, %v8007_v57, %v11435_v47  ;;  %v10027_v47 = vld [vmem:[%s13020_s1 + $0x804] ss:$8 sps:$4 sm:$0xff]   ;;  %v10174_v33 = vld [vmem:[%s10371_s17 + $0x130] sm:$0x11] }
 0x17c   : > { %6287 = vmatpush1.bf16.msra.mxu0 %v9968_v27  ;;  %v10021_v27 = vld [vmem:[%s13020_s1 + $0x3f4] ss:$8 sps:$4 sm:$0xff]  }
 0x17d   : > { %6288 = vmatprep.subr.bf16.mxu0 %v9982_v9  ;;  %2870 = vmatpush1.bf16.msra.mxu1 %v9995_v46  ;;  %v1840_v9 = vsel %vm11098_vm5, %v4238_v5, %v1839_v1  ;;  %v10016_v46 = vld [vmem:[%s13020_s1 + $0x7f0] ss:$8 sps:$4 sm:$0xff]   ;;  %v1860_v1 = vrot.slane %v10174_v33, 5  ;;  %v5593_v33 = vshll.u32 %v11692_v39, 16 }
 0x17e   : > { %2297 = vmatmul.mubr.bf16.gmra.mrb[24].mxu1 %v8058_v12  ;;  %2871 = vmatprep.subr.bf16.mxu1 %v10002_v20  ;;  %v1730_v12 = vld [vmem:[%s10371_s17 + $0xf0] sm:$0xee]  ;;  %v8065_v5 = vcombine.high %v1837_v28, %v1840_v9 }
 0x17f   : > { %5347 = vmatmul.mubr.bf16.gmra.mrb[24].mxu0 %v9916_v38  ;;  %2306 = vmatprep.mubr.bf16.mxu1 %v8061_v43  ;;  %v10019_v38 = vld [vmem:[%s13020_s1 + $0x3f0] ss:$8 sps:$4 sm:$0xff]   ;;  %v8062_v43 = vcombine.low %v1830_v23, %v1833_v0  ;;  %v8008_v10 = vrot.slane %v1730_v12, 9  ;;  %v9950_v0 = vld [vmem:[%s10371_s17 + $0x124] ss:$8 sps:$4 sm:$0xff]  }
 0x180   : > { %5356 = vmatprep.mubr.bf16.mxu0 %v9920_v56  ;;  %6289 = vmatpush1.bf16.msra.mxu0 %v9980_v40  ;;  %v9931_v56 = vld [vmem:[%s10371_s17 + $0xf0] ss:$8 sps:$4 sm:$0xff]   ;;  %v1846_v40 = vrot.slane %v10172_v52, 5  ;;  %v1735_v52 = vld [vmem:[%s10371_s17 + $0x168] sm:$0xee] }
 0x181   : > { %6290 = vmatprep.subr.bf16.mxu0 %v9994_v35  ;;  %2872 = vmatpush1.bf16.msra.mxu1 %v10000_v50  ;;  %v1844_v20 = vsel %vm11098_vm5, %v8008_v10, %v11472_v26  ;;  %v1731_v50 = vld [vmem:[%s10371_s17 + $0x108] sm:$0xee]  ;;  %v1734_v12 = vld [vmem:[%s10371_s17 + $0x150] sm:$0xee] }
 0x182   : > { %2873 = vmatprep.subr.bf16.mxu1 %v10009_v4  ;;  %v1847_v35 = vsel %vm11098_vm5, %v4245_v3, %v1846_v40  ;;  %v8064_v4 = vcombine.low %v1837_v28, %v1840_v9  ;;  %v9943_v23 = vld [vmem:[%s10371_s17 + $0x108] ss:$8 sps:$4 sm:$0xff]   ;;  %v5560_v40 = vshrl.u32 %v11672_v22, 16 }
 0x183   : > { %v8067_v45 = vcombine.high %v1844_v20, %v1847_v35  ;;  %v10175_v9 = vld [vmem:[%s10371_s17 + $0x148] sm:$0x11] }
 0x184   : > { %6291 = vmatpush1.bf16.msra.mxu0 %v9992_v54  ;;  %v8009_v54 = vrot.slane %v1731_v50, 9  ;;  %v5573_v50 = vshrl.u32 %v11675_v32, 16 }
 0x185   : > { %6292 = vmatprep.subr.bf16.mxu0 %v10006_v61  ;;  %2874 = vmatpush1.bf16.msra.mxu1 %v10007_v6  ;;  %v1853_v61 = vrot.slane %v10173_v21, 5  ;;  %v1732_v6 = vld [vmem:[%s10371_s17 + $0x120] sm:$0xee]  ;;  %v10177_v21 = vld [vmem:[%s10371_s17 + $0x178] sm:$0x11] }
 0x186   : > { %2307 = vmatmul.mubr.bf16.gmra.mrb[28].mxu1 %v8060_v14  ;;  %2875 = vmatprep.subr.bf16.mxu1 %v10014_v48  ;;  %v1851_v26 = vsel %vm11098_vm5, %v8009_v54, %v11554_v42  ;;  %v8066_v14 = vcombine.low %v1844_v20, %v1847_v35  ;;  %v8010_v57 = vrot.slane %v1732_v6, 9  ;;  %v5563_v20 = vshll.u32 %v11672_v22, 16  ;;  %v12074_v6 = vld [vmem:[%s10371_s17 + $0x40] sm:$0x11] }
 0x187   : > { %5357 = vmatmul.mubr.bf16.gmra.mrb[28].mxu0 %v9922_v58  ;;  %2316 = vmatprep.mubr.bf16.mxu1 %v8063_v60  ;;  %v1854_v3 = vsel %vm11098_vm5, %v4252_v16, %v1853_v61  ;;  %v9955_v58 = vld [vmem:[%s10371_s17 + $0x120] ss:$8 sps:$4 sm:$0xff]   ;;  %v1861_v16 = vsel %vm11098_vm5, %v4259_v17, %v1860_v1  ;;  %v5569_v35 = vshll.u32 %v11675_v32, 16  ;;  %v8013_v54 = vrot.slane %v1735_v52, 9 }
 0x188   : > { %5366 = vmatprep.mubr.bf16.mxu0 %v9926_v25  ;;  %6293 = vmatpush1.bf16.msra.mxu0 %v10004_v41  ;;  %v8069_v60 = vcombine.high %v1851_v26, %v1854_v3  ;;  %v9962_v25 = vld [vmem:[%s10371_s17 + $0x13c] ss:$8 sps:$4 sm:$0xff]   ;;  %v1858_v42 = vsel %vm11098_vm5, %v8010_v57, %v11582_v49  ;;  %v8068_v48 = vcombine.low %v1851_v26, %v1854_v3  ;;  %v5562_v61 = vrot.slane %v5560_v40, 4  ;;  %v12105_v40 = vld [vmem:[%s10371_s17 + $0x70] sm:$0x11] }
 0x189   : > { %6294 = vmatprep.subr.bf16.mxu0 %v10018_v24  ;;  %2876 = vmatpush1.bf16.msra.mxu1 %v10012_v51  ;;  %v1733_v41 = vld [vmem:[%s10371_s17 + $0x138] sm:$0xee]  ;;  %v8071_v24 = vcombine.high %v1858_v42, %v1861_v16  ;;  %v5565_v26 = vrot.slane %v5563_v20, 5  ;;  %v5575_v3 = vrot.slane %v5573_v50, 4  ;;  %v1879_v32 = vsel %vm11098_vm5, %v8013_v54, %v11631_v53 }
 0x18a   : > { %2877 = vmatprep.subr.bf16.mxu1 %v10021_v27  ;;  %v9967_v51 = vld [vmem:[%s10371_s17 + $0x138] ss:$8 sps:$4 sm:$0xff]   ;;  %v9974_v27 = vld [vmem:[%s10371_s17 + $0x154] ss:$8 sps:$4 sm:$0xff]   ;;  %v8011_v28 = vrot.slane %v1733_v41, 9  ;;  %v5587_v57 = vshll.u32 %v11689_v31, 16 }
 0x18b   : > { %v5597_v1 = vshrl.u32 %v11692_v39, 16  ;;  %v10010_v41 = vld [vmem:[%s10371_s17 + $0x19c] ss:$8 sps:$4 sm:$0xff]   ;;  %v5611_v39 = vshll.u32 %v11723_v55, 16  ;;  %v5635_v54 = vshll.u32 %v11772_v8, 16 }
 0x18c   : > { %6295 = vmatpush1.bf16.msra.mxu0 %v10016_v46  ;;  %v1867_v46 = vrot.slane %v10175_v9, 5  ;;  %v1865_v49 = vsel %vm11098_vm5, %v8011_v28, %v11598_v18  ;;  %v5595_v28 = vrot.slane %v5593_v33, 5  ;;  %v10030_v33 = vld [vmem:[%s13020_s1 + $0x814] ss:$8 sps:$4 sm:$0xff]  }
 0x18d   : > { %2878 = vmatpush1.bf16.msra.mxu1 %v10019_v38  ;;  %7018 = vmatprep.subr.bf16.mxu0 %v10027_v47  ;;  %v8070_v38 = vcombine.low %v1858_v42, %v1861_v16  ;;  %v9979_v47 = vld [vmem:[%s10371_s17 + $0x150] ss:$8 sps:$4 sm:$0xff]   ;;  %v10003_v16 = vld [vmem:[%s10371_s17 + $0x180] ss:$8 sps:$4 sm:$0xff]   ;;  %v5599_v9 = vrot.slane %v5597_v1, 4 }
 0x18e   : > { %2317 = vmatmul.mubr.bf16.gmra.mrb[32].mxu1 %v8062_v43  ;;  %v1868_v17 = vsel %vm11098_vm5, %v4266_v37, %v1867_v46  ;;  %v5608_v46 = vshrl.u32 %v11723_v55, 16  ;;  %v10015_v55 = vld [vmem:[%s10371_s17 + $0x198] ss:$8 sps:$4 sm:$0xff]   ;;  %v12124_v1 = vld [vmem:[%s10371_s17 + $0x88] sm:$0x11] }
 0x18f   : > { %5367 = vmatmul.mubr.bf16.gmra.mrb[32].mxu0 %v9931_v56  ;;  %2326 = vmatprep.mubr.bf16.mxu1 %v8065_v5  ;;  %v8073_v43 = vcombine.high %v1865_v49, %v1868_v17  ;;  %v9986_v56 = vld [vmem:[%s10371_s17 + $0x16c] ss:$8 sps:$4 sm:$0xff]   ;;  %v8012_v5 = vrot.slane %v1734_v12, 9 }
 0x190   : > { %5376 = vmatprep.mubr.bf16.mxu0 %v9938_v7  ;;  %v10176_v7 = vld [vmem:[%s10371_s17 + $0x160] sm:$0x11] }
 0x191   : > { %v1874_v10 = vrot.slane %v10176_v7, 5  ;;  %v1872_v18 = vsel %vm11098_vm5, %v8012_v5, %v11614_v19  ;;  %v1881_v19 = vrot.slane %v10177_v21, 5  ;;  %v5610_v7 = vrot.slane %v5608_v46, 4  ;;  %v12147_v46 = vld [vmem:[%s10371_s17 + $0xa8] sm:$0xff] }
 0x192   : > { %v5641_v21 = vshll.u32 %v11775_v62, 16 }
 0x193   : > { %v1875_v37 = vsel %vm11098_vm5, %v4273_v30, %v1874_v10  ;;  %v5571_v30 = vrot.slane %v5569_v35, 5  ;;  %v1882_v22 = vsel %vm11098_vm5, %v4280_v11, %v1881_v19  ;;  %v5613_v10 = vrot.slane %v5611_v39, 5 }
 0x194   : > { %v8074_v42 = vcombine.low %v1872_v18, %v1875_v37  ;;  %v8077_v11 = vcombine.high %v1879_v32, %v1882_v22  ;;  %v5645_v19 = vshrl.u32 %v11775_v62, 16 }
 0x196   : > { %2327 = vmatmul.mubr.bf16.gmra.mrb[36].mxu1 %v8064_v4  ;;  %v8072_v4 = vcombine.low %v1865_v49, %v1868_v17  ;;  %v5617_v49 = vshll.u32 %v11726_v36, 16  ;;  %v5621_v17 = vshrl.u32 %v11726_v36, 16  ;;  %v10024_v36 = vld [vmem:[%s10371_s17 + $0x1c] ss:$8 sps:$4 sm:$0xff]  }
 0x197   : > { %5377 = vmatmul.mubr.bf16.gmra.mrb[36].mxu0 %v9943_v23  ;;  %2336 = vmatprep.mubr.bf16.mxu1 %v8067_v45  ;;  %v9991_v23 = vld [vmem:[%s10371_s17 + $0x168] ss:$8 sps:$4 sm:$0xff]   ;;  %v8075_v45 = vcombine.high %v1872_v18, %v1875_v37 }
 0x198   : > { %5386 = vmatprep.mubr.bf16.mxu0 %v9950_v0  ;;  %v9998_v0 = vld [vmem:[%s10371_s17 + $0x184] ss:$8 sps:$4 sm:$0xff]   ;;  %v5619_v18 = vrot.slane %v5617_v49, 5  ;;  %v5623_v37 = vrot.slane %v5621_v17, 4 }
 0x19e   : > { %2337 = vmatmul.mubr.bf16.gmra.mrb[40].mxu1 %v8066_v14  ;;  %v5566_v14 = vor.u32 %v5565_v26, %v5562_v61 }
 0x19f   : > { %5387 = vmatmul.mubr.bf16.gmra.mrb[40].mxu0 %v9955_v58  ;;  %2346 = vmatprep.mubr.bf16.mxu1 %v8069_v60  ;;  %v5576_v58 = vor.u32 %v5575_v3, %v5571_v30  ;;  %v5579_v60 = vshll.u32 %v12074_v6, 16 }
 0x1a0   : > { %5396 = vmatprep.mubr.bf16.mxu0 %v9962_v25  ;;  %v5584_v25 = vshrl.u32 %v11689_v31, 16  ;;  %v12091_v31 = vld [vmem:[%s10371_s17 + $0x58] sm:$0x11] }
 0x1a1   : > { %v5581_v53 = vrot.slane %v5579_v60, 5  ;;  %v5603_v5 = vshll.u32 %v12091_v31, 16  ;;  %v5637_v60 = vrot.slane %v5635_v54, 5 }
 0x1a3   : > { %v5605_v50 = vrot.slane %v5603_v5, 5  ;;  %v10040_v5 = vld [vmem:[%s13020_s1 + $0x834] ss:$8 sps:$4 sm:$0xff]  }
 0x1a6   : > { %2347 = vmatmul.mubr.bf16.gmra.mrb[44].mxu1 %v8068_v48  ;;  %v5567_v48 = vrot.slane %v5566_v14, 4 }
 0x1a7   : > { %5397 = vmatmul.mubr.bf16.gmra.mrb[44].mxu0 %v9967_v51  ;;  %2356 = vmatprep.mubr.bf16.mxu1 %v8071_v24  ;;  %v5577_v51 = vrot.slane %v5576_v58, 4  ;;  %v5586_v24 = vrot.slane %v5584_v25, 4  ;;  %v5643_v25 = vrot.slane %v5641_v21, 5  ;;  %v10035_v21 = vld [vmem:[%s10371_s17 + $0x64] ss:$8 sps:$4 sm:$0xff]  }
 0x1a8   : > { %5406 = vmatprep.mubr.bf16.mxu0 %v9974_v27  ;;  %v5589_v27 = vrot.slane %v5587_v57, 5  ;;  %v5572_v12 = vsel %vm10412_vm2, %v5567_v48, %v5571_v30  ;;  %v10022_v30 = vld [vmem:[%s10371_s17 + $0x18] ss:$8 sps:$4 sm:$0xff]   ;;  %v5647_v57 = vrot.slane %v5645_v19, 4 }
 0x1aa   : > { %v5648_v48 = vor.u32 %v5647_v57, %v5643_v25 }
 0x1ac   : > { %v5649_v17 = vrot.slane %v5648_v48, 4 }
 0x1ae   : > { %2357 = vmatmul.mubr.bf16.gmra.mrb[48].mxu1 %v8070_v38  ;;  %v5582_v38 = vsel %vm10412_vm2, %v5577_v51, %v5581_v53  ;;  %v5651_v51 = vshll.u32 %v12124_v1, 16  ;;  %v10034_v53 = vld [vmem:[%s13020_s1 + $0x824] ss:$8 sps:$4 sm:$0xff]  }
 0x1af   : > { %5407 = vmatmul.mubr.bf16.gmra.mrb[48].mxu0 %v9979_v47  ;;  %2366 = vmatprep.mubr.bf16.mxu1 %v8073_v43  ;;  %v8076_v47 = vcombine.low %v1879_v32, %v1882_v22  ;;  %v5590_v43 = vor.u32 %v5589_v27, %v5586_v24  ;;  %v8719_v52 = vcombine.high %v5572_v12, %v5582_v38  ;;  %v5659_v24 = vshll.u32 %v11818_v15, 16 }
 0x1b0   : > { %5416 = vmatprep.mubr.bf16.mxu0 %v9986_v56  ;;  %v5600_v56 = vor.u32 %v5599_v9, %v5595_v28  ;;  %v8718_v3 = vcombine.low %v5572_v12, %v5582_v38  ;;  %v5665_v27 = vshll.u32 %v11821_v59, 16  ;;  %v5653_v12 = vrot.slane %v5651_v51, 5  ;;  %v12152_v38 = vld [vmem:[%s10371_s17 + $0xb0] sm:$0xff]  ;;  %v10057_v51 = vld [vmem:[%s13020_s1 + $0x864] ss:$8 sps:$4 sm:$0xff]  }
 0x1b1   : > { %v5591_v20 = vrot.slane %v5590_v43, 4 }
 0x1b2   : > { %v5601_v35 = vrot.slane %v5600_v56, 4  ;;  %v5667_v43 = vrot.slane %v5665_v27, 5 }
 0x1b3   : > { %v5596_v61 = vsel %vm10412_vm2, %v5591_v20, %v5595_v28  ;;  %v5669_v28 = vshrl.u32 %v11821_v59, 16  ;;  %v5661_v59 = vrot.slane %v5659_v24, 5 }
 0x1b4   : > { %v5606_v26 = vsel %vm10412_vm2, %v5601_v35, %v5605_v50 }
 0x1b5   : > { %v8721_v62 = vcombine.high %v5596_v61, %v5606_v26  ;;  %v8720_v9 = vcombine.low %v5596_v61, %v5606_v26  ;;  %v5671_v56 = vrot.slane %v5669_v28, 4  ;;  %v12184_v61 = vld [vmem:[%s10371_s17 + $0xb8] sm:$0x11]  ;;  %v12187_v26 = vld [vmem:[%s10371_s17 + $0xc0] sm:$0xff] }
 0x1b6   : > { %2367 = vmatmul.mubr.bf16.gmra.mrb[52].mxu1 %v8072_v4  ;;  %v5614_v4 = vor.u32 %v5613_v10, %v5610_v7  ;;  %v5680_v7 = vshrl.u32 %v12147_v46, 16  ;;  %v5683_v10 = vshll.u32 %v12147_v46, 16  ;;  %v5704_v57 = vshrl.u32 %v12187_v26, 16 }
 0x1b7   : > { %5417 = vmatmul.mubr.bf16.gmra.mrb[52].mxu0 %v9991_v23  ;;  %2376 = vmatprep.mubr.bf16.mxu1 %v8075_v45  ;;  %v5624_v23 = vor.u32 %v5623_v37, %v5619_v18  ;;  %v5627_v45 = vshll.u32 %v12105_v40, 16  ;;  %v5693_v37 = vshrl.u32 %v12152_v38, 16  ;;  %v5672_v35 = vor.u32 %v5671_v56, %v5667_v43 }
 0x1b8   : > { %5426 = vmatprep.mubr.bf16.mxu0 %v9998_v0  ;;  %v5632_v0 = vshrl.u32 %v11772_v8, 16  ;;  %v5615_v22 = vrot.slane %v5614_v4, 4  ;;  %v10025_v8 = vld [vmem:[%s13020_s1 + $0x800] ss:$8 sps:$4 sm:$0xff]   ;;  %v5682_v4 = vrot.slane %v5680_v7, 4  ;;  %v5706_v27 = vrot.slane %v5704_v57, 4 }
 0x1b9   : > { %v5625_v32 = vrot.slane %v5624_v23, 4  ;;  %v5629_v14 = vrot.slane %v5627_v45, 5  ;;  %v5685_v23 = vrot.slane %v5683_v10, 5  ;;  %v5695_v54 = vrot.slane %v5693_v37, 4 }
 0x1ba   : > { %v5634_v58 = vrot.slane %v5632_v0, 4 }
 0x1be   : > { %2377 = vmatmul.mubr.bf16.gmra.mrb[56].mxu1 %v8074_v42  ;;  %v12128_v42 = vsel %vm10412_vm2, %v5615_v22, %v5619_v18  ;;  %v5689_v18 = vshll.u32 %v12152_v38, 16 }
 0x1bf   : > { %5427 = vmatmul.mubr.bf16.gmra.mrb[56].mxu0 %v10003_v16  ;;  %2386 = vmatprep.mubr.bf16.mxu1 %v8077_v11  ;;  %v10028_v16 = vld [vmem:[%s13020_s1 + $0x810] ss:$8 sps:$4 sm:$0xff]   ;;  %v12136_v11 = vsel %vm10412_vm2, %v5625_v32, %v5629_v14  ;;  %v10044_v32 = vld [vmem:[%s13020_s1 + $0x840] ss:$8 sps:$4 sm:$0xff]  }
 0x1c0   : > { %5436 = vmatprep.mubr.bf16.mxu0 %v10010_v41  ;;  %v5638_v41 = vor.u32 %v5637_v60, %v5634_v58  ;;  %v8723_v39 = vcombine.high %v12128_v42, %v12136_v11  ;;  %v8722_v45 = vcombine.low %v12128_v42, %v12136_v11  ;;  %v5691_v0 = vrot.slane %v5689_v18, 5  ;;  %v12193_v14 = vld [vmem:[%s10371_s17 + $0xc8] sm:$0xff]  ;;  %v10052_v58 = vld [vmem:[%s13020_s1 + $0x854] ss:$8 sps:$4 sm:$0xff]   ;;  %v10050_v11 = vld [vmem:[%s13020_s1 + $0x850] ss:$8 sps:$4 sm:$0xff]  }
 0x1c1   : > { %v5717_v42 = vshrl.u32 %v12193_v14, 16 }
 0x1c2   : > { %v5639_v49 = vrot.slane %v5638_v41, 4  ;;  %v5696_v60 = vor.u32 %v5695_v54, %v5691_v0  ;;  %v10047_v54 = vld [vmem:[%s10371_s17 + $0x94] ss:$8 sps:$4 sm:$0xff]  }
 0x1c6   : > { %2387 = vmatmul.mubr.bf16.gmra.mrb[60].mxu1 %v8076_v47 }
 0x1c7   : > { %5437 = vmatmul.mubr.bf16.gmra.mrb[60].mxu0 %v10015_v55  ;;  %2879 = vmatprep.mubr.bf16.mxu1 %v10024_v36  ;;  %v12161_v55 = vld [vmem:[%s10371_s17 + $0xa0] sm:$0x11]  ;;  %v5644_v36 = vsel %vm10412_vm2, %v5639_v49, %v5643_v25  ;;  %v5699_v25 = vshll.u32 %v12184_v61, 16 }
 0x1c8   : > { %6296 = vmatprep.mubr.bf16.mxu0 %v8719_v52  ;;  %v5654_v52 = vsel %vm10412_vm2, %v5649_v17, %v5653_v12  ;;  %v5675_v50 = vshll.u32 %v12161_v55, 16  ;;  %v5719_v17 = vrot.slane %v5717_v42, 4  ;;  %v12223_v12 = vld [vmem:[%s10371_s17 + $0xd0] sm:$0x11] }
 0x1c9   : > { %v8725_v19 = vcombine.high %v5644_v36, %v5654_v52  ;;  %v8724_v41 = vcombine.low %v5644_v36, %v5654_v52  ;;  %v5701_v24 = vrot.slane %v5699_v25, 5  ;;  %v5723_v18 = vshll.u32 %v12223_v12, 16 }
 0x1ca   : > { %v5677_v22 = vrot.slane %v5675_v50, 5  ;;  %v10043_v50 = vld [vmem:[%s10371_s17 + $0x78] ss:$8 sps:$4 sm:$0xff]  }
 0x1ce   : > { %2880 = vmatmul.mubr.bf16.vlgmr.msra.gmra.mrb[0].mxu1 %v10022_v30 }
 0x1cf   : > { %6297 = vmatmul.mubr.bf16.vlgmr.msra.gmra.mrb[0].mxu0 %v8718_v3  ;;  %2889 = vmatprep.mubr.bf16.mxu1 %v11679_v29  ;;  %v5656_v29 = vshrl.u32 %v11818_v15, 16  ;;  %v10032_v15 = vld [vmem:[%s13020_s1 + $0x820] ss:$8 sps:$4 sm:$0xff]   ;;  %v5673_v3 = vrot.slane %v5672_v35, 4  ;;  %v10067_v35 = vld [vmem:[%s13020_s1 + $0x884] ss:$8 sps:$4 sm:$0xff]  }
 0x1d0   : > { %7019 = vmatpush1.bf16.msra.mxu0 %v10025_v8  ;;  %6306 = vmatprep.mubr.bf16.mxu0 %v8721_v62  ;;  %v5686_v8 = vor.u32 %v5685_v23, %v5682_v4  ;;  %v5707_v62 = vshll.u32 %v12187_v26, 16 }
 0x1d1   : > { %7020 = vmatprep.subr.bf16.mxu0 %v10030_v33  ;;  %v5658_v47 = vrot.slane %v5656_v29, 4  ;;  %v5713_v33 = vshll.u32 %v12193_v14, 16  ;;  %v5697_v29 = vrot.slane %v5696_v60, 4 }
 0x1d2   : > { %v5687_v48 = vrot.slane %v5686_v8, 4  ;;  %v5709_v28 = vrot.slane %v5707_v62, 5 }
 0x1d3   : > { %v5662_v20 = vor.u32 %v5661_v59, %v5658_v47  ;;  %v5715_v49 = vrot.slane %v5713_v33, 5  ;;  %v12229_v47 = vld [vmem:[%s10371_s17 + $0xd8] sm:$0xff]  ;;  %v12232_v59 = vld [vmem:[%s10371_s17 + $0xe0] sm:$0xff] }
 0x1d4   : > { %7021 = vmatpush1.bf16.msra.mxu0 %v10028_v16  ;;  %v12239_v56 = vsel %vm10412_vm2, %v5687_v48, %v5691_v0  ;;  %v5710_v7 = vor.u32 %v5709_v28, %v5706_v27  ;;  %v5728_v37 = vshrl.u32 %v12229_v47, 16  ;;  %v5731_v36 = vshll.u32 %v12229_v47, 16  ;;  %v12265_v0 = vld [vmem:[%s10371_s17 + $0xf8] sm:$0xff]  ;;  %v10077_v27 = vld [vmem:[%s13020_s1 + $0x8a4] ss:$8 sps:$4 sm:$0xff]  }
 0x1d5   : > { %7022 = vmatprep.subr.bf16.mxu0 %v10034_v53  ;;  %v5663_v30 = vrot.slane %v5662_v20, 4  ;;  %v10037_v53 = vld [vmem:[%s10371_s17 + $0x60] ss:$8 sps:$4 sm:$0xff]   ;;  %v5720_v10 = vor.u32 %v5719_v17, %v5715_v49  ;;  %v5737_v52 = vshll.u32 %v12232_v59, 16  ;;  %v10060_v20 = vld [vmem:[%s13020_s1 + $0x870] ss:$8 sps:$4 sm:$0xff]  }
 0x1d6   : > { %2890 = vmatmul.mubr.bf16.gmra.mrb[4].mxu1 %v11696_v63  ;;  %v10038_v63 = vld [vmem:[%s13020_s1 + $0x830] ss:$8 sps:$4 sm:$0xff]   ;;  %v5711_v23 = vrot.slane %v5710_v7, 4  ;;  %v5761_v57 = vshll.u32 %v12265_v0, 16  ;;  %v5765_v62 = vshrl.u32 %v12265_v0, 16 }
 0x1d7   : > { %6307 = vmatmul.mubr.bf16.gmra.mrb[4].mxu0 %v8720_v9  ;;  %2899 = vmatprep.mubr.bf16.mxu1 %v11703_v2  ;;  %v10046_v2 = vld [vmem:[%s13020_s1 + $0x844] ss:$8 sps:$4 sm:$0xff]   ;;  %v12206_v16 = vsel %vm10412_vm2, %v5663_v30, %v5667_v43  ;;  %v10062_v43 = vld [vmem:[%s13020_s1 + $0x874] ss:$8 sps:$4 sm:$0xff]   ;;  %v5730_v30 = vrot.slane %v5728_v37, 4 }
 0x1d8   : > { %6316 = vmatprep.mubr.bf16.mxu0 %v8723_v39  ;;  %7023 = vmatpush1.bf16.msra.mxu0 %v10032_v15  ;;  %v10041_v9 = vld [vmem:[%s10371_s17 + $0x7c] ss:$8 sps:$4 sm:$0xff]   ;;  %v10055_v15 = vld [vmem:[%s13020_s1 + $0x860] ss:$8 sps:$4 sm:$0xff]   ;;  %v12283_v42 = vsel %vm10412_vm2, %v5711_v23, %v5715_v49  ;;  %v10070_v48 = vld [vmem:[%s13020_s1 + $0x890] ss:$8 sps:$4 sm:$0xff]   ;;  %v8187_v49 = vcombine.high %v12147_v46, %v12152_v38 }
 0x1d9   : > { %7024 = vmatprep.subr.bf16.mxu0 %v10040_v5  ;;  %v12243_v5 = vsel %vm10412_vm2, %v5697_v29, %v5701_v24  ;;  %v10072_v33 = vld [vmem:[%s13020_s1 + $0x894] ss:$8 sps:$4 sm:$0xff]   ;;  %v5763_v29 = vrot.slane %v5761_v57, 5  ;;  %v5767_v24 = vrot.slane %v5765_v62, 4  ;;  %v10049_v28 = vld [vmem:[%s10371_s17 + $0x90] ss:$8 sps:$4 sm:$0xff]  }
 0x1da   : > { %v8729_v4 = vcombine.high %v12239_v56, %v12243_v5  ;;  %v12340_v62 = vld [vmem:[%s10371_s17 + $0x118] sm:$0x11] }
 0x1db   : > { %v5768_v37 = vor.u32 %v5767_v24, %v5763_v29 }
 0x1dc   : > { %7025 = vmatpush1.bf16.msra.mxu0 %v10038_v63  ;;  %v5741_v63 = vshrl.u32 %v12232_v59, 16 }
 0x1dd   : > { %7026 = vmatprep.subr.bf16.mxu0 %v10046_v2 }
 0x1de   : > { %2900 = vmatmul.mubr.bf16.gmra.mrb[8].mxu1 %v11737_v34  ;;  %v12210_v34 = vsel %vm10412_vm2, %v5673_v3, %v5677_v22  ;;  %v5733_v3 = vrot.slane %v5731_v36, 5  ;;  %v12269_v22 = vld [vmem:[%s10371_s17 + $0xe8] sm:$0x11]  ;;  %v5743_v8 = vrot.slane %v5741_v63, 4 }
 0x1df   : > { %6317 = vmatmul.mubr.bf16.gmra.mrb[8].mxu0 %v8722_v45  ;;  %2909 = vmatprep.mubr.bf16.mxu1 %v10035_v21  ;;  %v8727_v39 = vcombine.high %v12206_v16, %v12210_v34  ;;  %v8726_v2 = vcombine.low %v12206_v16, %v12210_v34  ;;  %v12262_v45 = vld [vmem:[%s10371_s17 + $0xf0] sm:$0xff]  ;;  %v5721_v21 = vrot.slane %v5720_v10, 4 }
 0x1e0   : > { %6326 = vmatprep.mubr.bf16.mxu0 %v8725_v19  ;;  %7027 = vmatpush1.bf16.msra.mxu0 %v10044_v32  ;;  %v5725_v19 = vrot.slane %v5723_v18, 5  ;;  %v5739_v32 = vrot.slane %v5737_v52, 5  ;;  %v5752_v60 = vshrl.u32 %v12262_v45, 16  ;;  %v5755_v25 = vshll.u32 %v12262_v45, 16  ;;  %v10082_v52 = vld [vmem:[%s13020_s1 + $0x8b4] ss:$8 sps:$4 sm:$0xff]  }
 0x1e1   : > { %7028 = vmatprep.subr.bf16.mxu0 %v10052_v58  ;;  %v10065_v58 = vld [vmem:[%s13020_s1 + $0x880] ss:$8 sps:$4 sm:$0xff]   ;;  %v5734_v34 = vor.u32 %v5733_v3, %v5730_v30  ;;  %v5769_v30 = vrot.slane %v5768_v37, 4  ;;  %v10087_v3 = vld [vmem:[%s13020_s1 + $0x8c4] ss:$8 sps:$4 sm:$0xff]  }
 0x1e2   : > { %v12287_v16 = vsel %vm10412_vm2, %v5721_v21, %v5725_v19 }
 0x1e3   : > { %v8731_v17 = vcombine.high %v12283_v42, %v12287_v16  ;;  %v5735_v7 = vrot.slane %v5734_v34, 4  ;;  %v8730_v21 = vcombine.low %v12283_v42, %v12287_v16  ;;  %v12346_v42 = vld [vmem:[%s10371_s17 + $0x128] sm:$0xff] }
 0x1e4   : > { %7029 = vmatpush1.bf16.msra.mxu0 %v10050_v11  ;;  %v5744_v11 = vor.u32 %v5743_v8, %v5739_v32  ;;  %v10085_v16 = vld [vmem:[%s13020_s1 + $0x8c0] ss:$8 sps:$4 sm:$0xff]  }
 0x1e5   : > { %7030 = vmatprep.subr.bf16.mxu0 %v10057_v51  ;;  %v5754_v51 = vrot.slane %v5752_v60, 4 }
 0x1e6   : > { %2910 = vmatmul.mubr.bf16.gmra.mrb[12].mxu1 %v10037_v53  ;;  %v5757_v53 = vrot.slane %v5755_v25, 5  ;;  %v5745_v10 = vrot.slane %v5744_v11, 4  ;;  %v8189_v25 = vcombine.high %v12187_v26, %v12193_v14  ;;  %v10092_v11 = vld [vmem:[%s13020_s1 + $0x8d4] ss:$8 sps:$4 sm:$0xff]  }
 0x1e7   : > { %6327 = vmatmul.mubr.bf16.gmra.mrb[12].mxu0 %v8724_v41  ;;  %2919 = vmatprep.mubr.bf16.mxu1 %v10041_v9  ;;  %v5747_v41 = vshll.u32 %v12269_v22, 16  ;;  %v8728_v9 = vcombine.low %v12239_v56, %v12243_v5  ;;  %v10075_v56 = vld [vmem:[%s13020_s1 + $0x8a0] ss:$8 sps:$4 sm:$0xff]  }
 0x1e8   : > { %6336 = vmatprep.mubr.bf16.mxu0 %v8727_v39  ;;  %7031 = vmatpush1.bf16.msra.mxu0 %v10055_v15  ;;  %v12300_v39 = vld [vmem:[%s10371_s17 + $0x100] sm:$0x11]  ;;  %v12307_v15 = vld [vmem:[%s10371_s17 + $0x108] sm:$0xff]  ;;  %v5758_v5 = vor.u32 %v5757_v53, %v5754_v51  ;;  %v5795_v53 = vshll.u32 %v12340_v62, 16 }
 0x1e9   : > { %7032 = vmatprep.subr.bf16.mxu0 %v10062_v43  ;;  %v12310_v43 = vld [vmem:[%s10371_s17 + $0x110] sm:$0xff]  ;;  %v5749_v18 = vrot.slane %v5747_v41, 5  ;;  %v5771_v36 = vshll.u32 %v12300_v39, 16  ;;  %v5776_v63 = vshrl.u32 %v12307_v15, 16 }
 0x1ea   : > { %v5759_v19 = vrot.slane %v5758_v5, 4  ;;  %v5797_v37 = vrot.slane %v5795_v53, 5 }
 0x1eb   : > { %v5750_v23 = vsel %vm10412_vm2, %v5745_v10, %v5749_v18  ;;  %v10097_v10 = vld [vmem:[%s13020_s1 + $0x8e4] ss:$8 sps:$4 sm:$0xff]  }
 0x1ec   : > { %7033 = vmatpush1.bf16.msra.mxu0 %v10060_v20  ;;  %v5779_v20 = vshll.u32 %v12307_v15, 16  ;;  %v12353_v34 = vsel %vm10412_vm2, %v5759_v19, %v5763_v29 }
 0x1ed   : > { %7034 = vmatprep.subr.bf16.mxu0 %v10067_v35  ;;  %v5785_v35 = vshll.u32 %v12310_v43, 16 }
 0x1ee   : > { %2920 = vmatmul.mubr.bf16.gmra.mrb[16].mxu1 %v10043_v50  ;;  %v5789_v50 = vshrl.u32 %v12310_v43, 16  ;;  %v5781_v8 = vrot.slane %v5779_v20, 5  ;;  %v12380_v20 = vld [vmem:[%s10371_s17 + $0x130] sm:$0x11] }
 0x1ef   : > { %6337 = vmatmul.mubr.bf16.gmra.mrb[16].mxu0 %v8726_v2  ;;  %2929 = vmatprep.mubr.bf16.mxu1 %v10047_v54  ;;  %v8186_v2 = vcombine.low %v12147_v46, %v12152_v38  ;;  %v10080_v54 = vld [vmem:[%s13020_s1 + $0x8b0] ss:$8 sps:$4 sm:$0xff]   ;;  %v5773_v46 = vrot.slane %v5771_v36, 5 }
 0x1f0   : > { %6346 = vmatprep.mubr.bf16.mxu0 %v8729_v4  ;;  %7035 = vmatpush1.bf16.msra.mxu0 %v10065_v58  ;;  %v5740_v4 = vsel %vm10412_vm2, %v5735_v7, %v5739_v32  ;;  %v5778_v32 = vrot.slane %v5776_v63, 4  ;;  %v5787_v58 = vrot.slane %v5785_v35, 5  ;;  %v5791_v60 = vrot.slane %v5789_v50, 4  ;;  %v10095_v35 = vld [vmem:[%s13020_s1 + $0x8e0] ss:$8 sps:$4 sm:$0xff]   ;;  %v12386_v50 = vld [vmem:[%s10371_s17 + $0x138] sm:$0xff] }
 0x1f1   : > { %7036 = vmatprep.subr.bf16.mxu0 %v10072_v33  ;;  %v8733_v57 = vcombine.high %v5740_v4, %v5750_v23  ;;  %v12343_v33 = vld [vmem:[%s10371_s17 + $0x120] sm:$0xff]  ;;  %v12360_v41 = vsel %vm10412_vm2, %v5769_v30, %v5773_v46  ;;  %v8191_v7 = vcombine.high %v12229_v47, %v12232_v59  ;;  %v5819_v30 = vshll.u32 %v12380_v20, 16 }
 0x1f2   : > { %v5792_v51 = vor.u32 %v5791_v60, %v5787_v58  ;;  %v5800_v29 = vshrl.u32 %v12343_v33, 16  ;;  %v5803_v24 = vshll.u32 %v12343_v33, 16  ;;  %v8735_v18 = vcombine.high %v12353_v34, %v12360_v41 }
 0x1f3   : > { %v5824_v46 = vshrl.u32 %v12386_v50, 16  ;;  %v8190_v60 = vcombine.low %v12229_v47, %v12232_v59  ;;  %v12419_v47 = vld [vmem:[%s10371_s17 + $0x148] sm:$0x11] }
 0x1f4   : > { %7037 = vmatpush1.bf16.msra.mxu0 %v10070_v48  ;;  %v5782_v48 = vor.u32 %v5781_v8, %v5778_v32  ;;  %v5793_v5 = vrot.slane %v5792_v51, 4  ;;  %v5802_v36 = vrot.slane %v5800_v29, 4  ;;  %v5821_v29 = vrot.slane %v5819_v30, 5  ;;  %v12438_v30 = vld [vmem:[%s10371_s17 + $0x168] sm:$0xff] }
 0x1f5   : > { %7038 = vmatprep.subr.bf16.mxu0 %v10077_v27  ;;  %v5809_v27 = vshll.u32 %v12346_v42, 16 }
 0x1f6   : > { %2930 = vmatmul.mubr.bf16.gmra.mrb[20].mxu1 %v10049_v28  ;;  %v5813_v28 = vshrl.u32 %v12346_v42, 16 }
 0x1f7   : > { %6347 = vmatmul.mubr.bf16.gmra.mrb[20].mxu0 %v8728_v9  ;;  %2939 = vmatprep.mubr.bf16.mxu1 %v8187_v49  ;;  %v10090_v9 = vld [vmem:[%s13020_s1 + $0x8d0] ss:$8 sps:$4 sm:$0xff]   ;;  %v8188_v49 = vcombine.low %v12187_v26, %v12193_v14  ;;  %v5811_v26 = vrot.slane %v5809_v27, 5 }
 0x1f8   : > { %6356 = vmatprep.mubr.bf16.mxu0 %v8731_v17  ;;  %7039 = vmatpush1.bf16.msra.mxu0 %v10075_v56  ;;  %v8732_v17 = vcombine.low %v5740_v4, %v5750_v23  ;;  %v5783_v56 = vrot.slane %v5782_v48, 4  ;;  %v5815_v63 = vrot.slane %v5813_v28, 4  ;;  %v10102_v4 = vld [vmem:[%s13020_s1 + $0x8f4] ss:$8 sps:$4 sm:$0xff]  }
 0x1f9   : > { %7040 = vmatprep.subr.bf16.mxu0 %v10082_v52  ;;  %v5805_v52 = vrot.slane %v5803_v24, 5  ;;  %v5826_v24 = vrot.slane %v5824_v46, 4  ;;  %v12441_v46 = vld [vmem:[%s10371_s17 + $0x170] sm:$0xff] }
 0x1fa   : > { %v5788_v23 = vsel %vm10412_vm2, %v5783_v56, %v5787_v58  ;;  %v5816_v19 = vor.u32 %v5815_v63, %v5811_v26  ;;  %v10100_v58 = vld [vmem:[%s13020_s1 + $0x8f0] ss:$8 sps:$4 sm:$0xff]  }
 0x1fc   : > { %7041 = vmatpush1.bf16.msra.mxu0 %v10080_v54  ;;  %v5798_v54 = vsel %vm10412_vm2, %v5793_v5, %v5797_v37  ;;  %v5817_v53 = vrot.slane %v5816_v19, 4  ;;  %v5843_v5 = vshll.u32 %v12419_v47, 16 }
 0x1fd   : > { %7042 = vmatprep.subr.bf16.mxu0 %v10087_v3  ;;  %v5827_v3 = vshll.u32 %v12386_v50, 16  ;;  %v8737_v48 = vcombine.high %v5788_v23, %v5798_v54 }
 0x1fe   : > { %2940 = vmatmul.mubr.bf16.gmra.mrb[24].mxu1 %v8186_v2  ;;  %v12389_v2 = vld [vmem:[%s10371_s17 + $0x140] sm:$0xff] }
 0x1ff   : > { %6357 = vmatmul.mubr.bf16.gmra.mrb[24].mxu0 %v8730_v21  ;;  %2949 = vmatprep.mubr.bf16.mxu1 %v8189_v25  ;;  %v5806_v21 = vor.u32 %v5805_v52, %v5802_v36  ;;  %v5833_v32 = vshll.u32 %v12389_v2, 16  ;;  %v5837_v8 = vshrl.u32 %v12389_v2, 16  ;;  %v8734_v25 = vcombine.low %v12353_v34, %v12360_v41 }
 0x200   : > { %6366 = vmatprep.mubr.bf16.mxu0 %v8733_v57  ;;  %7043 = vmatpush1.bf16.msra.mxu0 %v10085_v16  ;;  %v8193_v57 = vcombine.high %v12262_v45, %v12265_v0  ;;  %v12413_v16 = vld [vmem:[%s10371_s17 + $0x150] sm:$0xff]  ;;  %v5829_v27 = vrot.slane %v5827_v3, 5 }
 0x201   : > { %7044 = vmatprep.subr.bf16.mxu0 %v10092_v11  ;;  %v12416_v11 = vld [vmem:[%s10371_s17 + $0x158] sm:$0xff]  ;;  %v5807_v51 = vrot.slane %v5806_v21, 4  ;;  %v5835_v28 = vrot.slane %v5833_v32, 5  ;;  %v5848_v34 = vshrl.u32 %v12413_v16, 16  ;;  %v5851_v41 = vshll.u32 %v12413_v16, 16 }
 0x202   : > { %v12433_v21 = vld [vmem:[%s10371_s17 + $0x160] sm:$0x11] }
 0x203   : > { %v5850_v37 = vrot.slane %v5848_v34, 4  ;;  %v5853_v36 = vrot.slane %v5851_v41, 5 }
 0x204   : > { %7045 = vmatpush1.bf16.msra.mxu0 %v10090_v9  ;;  %v5839_v9 = vrot.slane %v5837_v8, 4  ;;  %v5845_v8 = vrot.slane %v5843_v5, 5  ;;  %v12457_v5 = vld [vmem:[%s10371_s17 + $0x178] sm:$0x11] }
 0x205   : > { %7046 = vmatprep.subr.bf16.mxu0 %v10097_v10  ;;  %v5822_v10 = vsel %vm10412_vm2, %v5817_v53, %v5821_v29 }
 0x206   : > { %2950 = vmatmul.mubr.bf16.gmra.mrb[28].mxu1 %v8188_v49  ;;  %v5857_v49 = vshll.u32 %v12416_v11, 16  ;;  %v5840_v56 = vor.u32 %v5839_v9, %v5835_v28 }
 0x207   : > { %6367 = vmatmul.mubr.bf16.gmra.mrb[28].mxu0 %v8732_v17  ;;  %2959 = vmatprep.mubr.bf16.mxu1 %v8191_v7  ;;  %v5861_v17 = vshrl.u32 %v12416_v11, 16  ;;  %v5812_v7 = vsel %vm10412_vm2, %v5807_v51, %v5811_v26  ;;  %v8195_v26 = vcombine.high %v12307_v15, %v12310_v43 }
 0x208   : > { %6376 = vmatprep.mubr.bf16.mxu0 %v8735_v18  ;;  %7047 = vmatpush1.bf16.msra.mxu0 %v10095_v35  ;;  %v5830_v18 = vor.u32 %v5829_v27, %v5826_v24  ;;  %v5859_v52 = vrot.slane %v5857_v49, 5  ;;  %v8192_v35 = vcombine.low %v12262_v45, %v12265_v0  ;;  %v8739_v19 = vcombine.high %v5812_v7, %v5822_v10 }
 0x209   : > { %7048 = vmatprep.subr.bf16.mxu0 %v10102_v4  ;;  %v5863_v63 = vrot.slane %v5861_v17, 4  ;;  %v8736_v4 = vcombine.low %v5788_v23, %v5798_v54  ;;  %v5841_v32 = vrot.slane %v5840_v56, 4  ;;  %v5872_v45 = vshrl.u32 %v12438_v30, 16 }
 0x20a   : > { %v5831_v3 = vrot.slane %v5830_v18, 4  ;;  %v5875_v23 = vshll.u32 %v12438_v30, 16  ;;  %v5881_v54 = vshll.u32 %v12441_v46, 16  ;;  %v8738_v29 = vcombine.low %v5812_v7, %v5822_v10 }
 0x20b   : > { %v5846_v53 = vsel %vm10412_vm2, %v5841_v32, %v5845_v8  ;;  %v5874_v34 = vrot.slane %v5872_v45, 4  ;;  %v8197_v18 = vcombine.high %v12343_v33, %v12346_v42  ;;  %v8199_v32 = vcombine.high %v12386_v50, %v12389_v2 }
 0x20c   : > { %7049 = vmatpush1.bf16.msra.mxu0 %v10100_v58  ;;  %v5854_v58 = vor.u32 %v5853_v36, %v5850_v37  ;;  %v5836_v51 = vsel %vm10412_vm2, %v5831_v3, %v5835_v28  ;;  %v5877_v41 = vrot.slane %v5875_v23, 5  ;;  %v5883_v49 = vrot.slane %v5881_v54, 5  ;;  %v12463_v28 = vld [vmem:[%s10371_s17 + $0x188] sm:$0xff] }
 0x20d   : > { %v8741_v56 = vcombine.high %v5836_v51, %v5846_v53  ;;  %v8740_v3 = vcombine.low %v5836_v51, %v5846_v53 }
 0x20e   : > { %2960 = vmatmul.mubr.bf16.gmra.mrb[32].mxu1 %v8190_v60  ;;  %v5864_v60 = vor.u32 %v5863_v63, %v5859_v52  ;;  %v5855_v24 = vrot.slane %v5854_v58, 4  ;;  %v5878_v37 = vor.u32 %v5877_v41, %v5874_v34  ;;  %v5891_v63 = vshll.u32 %v12457_v5, 16 }
 0x20f   : > { %6377 = vmatmul.mubr.bf16.gmra.mrb[32].mxu0 %v8734_v25  ;;  %2969 = vmatprep.mubr.bf16.mxu1 %v8193_v57  ;;  %v5867_v25 = vshll.u32 %v12433_v21, 16  ;;  %v5885_v57 = vshrl.u32 %v12441_v46, 16 }
 0x210   : > { %6386 = vmatprep.mubr.bf16.mxu0 %v8737_v48  ;;  %v8194_v48 = vcombine.low %v12307_v15, %v12310_v43  ;;  %v5865_v27 = vrot.slane %v5864_v60, 4  ;;  %v12460_v15 = vld [vmem:[%s10371_s17 + $0x180] sm:$0xff]  ;;  %v5860_v7 = vsel %vm10412_vm2, %v5855_v24, %v5859_v52  ;;  %v5905_v52 = vshll.u32 %v12463_v28, 16 }
 0x211   : > { %v5869_v9 = vrot.slane %v5867_v25, 5  ;;  %v5887_v17 = vrot.slane %v5885_v57, 4  ;;  %v5879_v58 = vrot.slane %v5878_v37, 4  ;;  %v5893_v25 = vrot.slane %v5891_v63, 5  ;;  %v12483_v24 = vld [vmem:[%s10371_s17 + $0x1a0] sm:$0xff] }
 0x212   : > { %v5907_v54 = vrot.slane %v5905_v52, 5  ;;  %v8201_v37 = vcombine.high %v12413_v16, %v12416_v11 }
 0x213   : > { %v5870_v10 = vsel %vm10412_vm2, %v5865_v27, %v5869_v9  ;;  %v5888_v36 = vor.u32 %v5887_v17, %v5883_v49  ;;  %v5929_v17 = vshll.u32 %v12483_v24, 16 }
 0x214   : > { %v8743_v8 = vcombine.high %v5860_v7, %v5870_v10 }
 0x215   : > { %v5889_v60 = vrot.slane %v5888_v36, 4 }
 0x216   : > { %2970 = vmatmul.mubr.bf16.gmra.mrb[36].mxu1 %v8192_v35  ;;  %v5896_v35 = vshrl.u32 %v12460_v15, 16 }
 0x217   : > { %6387 = vmatmul.mubr.bf16.gmra.mrb[36].mxu0 %v8736_v4  ;;  %2979 = vmatprep.mubr.bf16.mxu1 %v8195_v26  ;;  %v5899_v4 = vshll.u32 %v12460_v15, 16  ;;  %v5909_v26 = vshrl.u32 %v12463_v28, 16  ;;  %v5894_v51 = vsel %vm10412_vm2, %v5889_v60, %v5893_v25 }
 0x218   : > { %6396 = vmatprep.mubr.bf16.mxu0 %v8739_v19  ;;  %v8196_v19 = vcombine.low %v12343_v33, %v12346_v42  ;;  %v5898_v45 = vrot.slane %v5896_v35, 4  ;;  %v5884_v33 = vsel %vm10412_vm2, %v5879_v58, %v5883_v49  ;;  %v8742_v49 = vcombine.low %v5860_v7, %v5870_v10  ;;  %v10104_v7 = vld [vmem:[%s13022_s3] sm:$0xff]  }
 0x219   : > { %v5901_v23 = vrot.slane %v5899_v4, 5  ;;  %v5911_v57 = vrot.slane %v5909_v26, 4  ;;  %v8745_v36 = vcombine.high %v5884_v33, %v5894_v51 }
 0x21b   : > { %v5902_v53 = vor.u32 %v5901_v23, %v5898_v45  ;;  %v5912_v27 = vor.u32 %v5911_v57, %v5907_v54  ;;  %v8200_v45 = vcombine.low %v12413_v16, %v12416_v11  ;;  %v8744_v23 = vcombine.low %v5884_v33, %v5894_v51  ;;  %v8782_v33 = vld [vmem:[%s10371_s17 + $0x30] sm:$0xee] }
 0x21c   : > { %v8203_v57 = vcombine.high %v12438_v30, %v12441_v46  ;;  %v8202_v51 = vcombine.low %v12438_v30, %v12441_v46  ;;  %v10106_v30 = vld [vmem:[%s13022_s3 + $0x8] sm:$0xff]  }
 0x21d   : > { %v5903_v63 = vrot.slane %v5902_v53, 4  ;;  %v5913_v35 = vrot.slane %v5912_v27, 4 }
 0x21e   : > { %2980 = vmatmul.mubr.bf16.gmra.mrb[40].mxu1 %v8194_v48  ;;  %v12479_v48 = vld [vmem:[%s10371_s17 + $0x190] sm:$0x11] }
 0x21f   : > { %6397 = vmatmul.mubr.bf16.gmra.mrb[40].mxu0 %v8738_v29  ;;  %2989 = vmatprep.mubr.bf16.mxu1 %v8197_v18  ;;  %v8683_v29 = vld [vmem:[%s10371_s17 + $0x198] sm:$0xff]  ;;  %v5915_v9 = vshll.u32 %v12479_v48, 16  ;;  %v5933_v18 = vshrl.u32 %v12483_v24, 16  ;;  %v5908_v10 = vsel %vm10412_vm2, %v5903_v63, %v5907_v54 }
 0x220   : > { %6406 = vmatprep.mubr.bf16.mxu0 %v8741_v56  ;;  %v5920_v34 = vshrl.u32 %v8683_v29, 16  ;;  %v5923_v41 = vshll.u32 %v8683_v29, 16  ;;  %v8198_v56 = vcombine.low %v12386_v50, %v12389_v2  ;;  %v10103_v50 = vld [vmem:[%s13022_s3 + $0x40] sm:$0xff]  }
 0x221   : > { %v5917_v4 = vrot.slane %v5915_v9, 5  ;;  %8930 = vmatprep.subr.bf16.mxu1 %v10103_v50 }
 0x222   : > { %v5922_v52 = vrot.slane %v5920_v34, 4  ;;  %v5925_v26 = vrot.slane %v5923_v41, 5  ;;  %8931 = vmatpush3.bf16.msra.mxu1 %v10104_v7  ;;  %v10178_v41 = vld [vmem:[%s10371_s17 + $0x38] sm:$0xff] }
 0x223   : > { %v6587_v16 = vrot.slane %v10178_v41, 5  ;;  %8932 = vmatprep.subr.bf16.mxu1 %v10105_v13  ;;  %v8785_v41 = vld [vmem:[%s10371_s17 + $0x78] sm:$0xee]  ;;  %v8786_v13 = vld [vmem:[%s10371_s17 + $0x90] sm:$0xee] }
 0x224   : > { %v5926_v58 = vor.u32 %v5925_v26, %v5922_v52  ;;  %v8783_v52 = vld [vmem:[%s10371_s17 + $0x48] sm:$0xee]  ;;  %v8204_v26 = vcombine.low %v12460_v15, %v12463_v28 }
 0x225   : > { %v8799_v50 = vrot.slane %v8783_v52, 9  ;;  %v10110_v52 = vld [vmem:[%s13022_s3 + $0x18] sm:$0xff]  }
 0x226   : > { %2990 = vmatmul.mubr.bf16.gmra.mrb[44].mxu1 %v8196_v19  ;;  %v5931_v19 = vrot.slane %v5929_v17, 5  ;;  %v5927_v54 = vrot.slane %v5926_v58, 4 }
 0x227   : > { %6407 = vmatmul.mubr.bf16.gmra.mrb[44].mxu0 %v8740_v3  ;;  %2999 = vmatprep.mubr.bf16.mxu1 %v8199_v32  ;;  %v5935_v3 = vrot.slane %v5933_v18, 4  ;;  %v12497_v32 = vld [vmem:[%s10371_s17 + $0x1a8] sm:$0x11]  ;;  %v8205_v18 = vcombine.high %v12460_v15, %v12463_v28 }
 0x228   : > { %6416 = vmatprep.mubr.bf16.mxu0 %v8743_v8  ;;  %v5918_v8 = vsel %vm10412_vm2, %v5913_v35, %v5917_v4  ;;  %v5939_v25 = vshll.u32 %v12497_v32, 16  ;;  %v5932_v9 = vsel %vm10412_vm2, %v5927_v54, %v5931_v19  ;;  %v10179_v4 = vld [vmem:[%s10371_s17 + $0x50] sm:$0xff]  ;;  %8933 = vmatpush3.bf16.msra.mxu1 %v10106_v30 }
 0x229   : > { %v5936_v60 = vor.u32 %v5935_v3, %v5931_v19  ;;  %v8747_v29 = vcombine.high %v5908_v10, %v5918_v8  ;;  %v8746_v17 = vcombine.low %v5908_v10, %v5918_v8  ;;  %v6597_v10 = vrot.slane %v12091_v31, 5  ;;  %v10107_v54 = vld [vmem:[%s13022_s3 + $0x50] sm:$0xff]  }
 0x22a   : > { %v5941_v27 = vrot.slane %v5939_v25, 5  ;;  %v6604_v31 = vrot.slane %v12105_v40, 5  ;;  %8934 = vmatprep.subr.bf16.mxu1 %v10107_v54  ;;  %v10112_v54 = vld [vmem:[%s13022_s3 + $0x20] sm:$0xff]  }
 0x22b   : > { %v5937_v53 = vrot.slane %v5936_v60, 4  ;;  %v10180_v60 = vld [vmem:[%s10371_s17 + $0x68] sm:$0xff] }
 0x22c   : > { %v6601_v25 = vrot.slane %v10180_v60, 5 }
 0x22d   : > { %v5942_v34 = vsel %vm10412_vm2, %v5937_v53, %v5941_v27  ;;  %v10108_v53 = vld [vmem:[%s13022_s3 + $0x10] sm:$0xff]  }
 0x22e   : > { %3000 = vmatmul.mubr.bf16.gmra.mrb[48].mxu1 %v8198_v56  ;;  %v8749_v56 = vcombine.high %v5932_v9, %v5942_v34  ;;  %v8748_v19 = vcombine.low %v5932_v9, %v5942_v34  ;;  %v10181_v9 = vld [vmem:[%s10371_s17 + $0x80] sm:$0xff] }
 0x22f   : > { %6417 = vmatmul.mubr.bf16.gmra.mrb[48].mxu0 %v8742_v49  ;;  %3009 = vmatprep.mubr.bf16.mxu1 %v8201_v37  ;;  %v8798_v49 = vrot.slane %v8782_v33, 9  ;;  %v6589_v37 = vrot.slane %v6587_v16, 4  ;;  %v6608_v34 = vrot.slane %v10181_v9, 5 }
 0x230   : > { %6426 = vmatprep.mubr.bf16.mxu0 %v8745_v36  ;;  %v6590_v36 = vrot.slane %v12074_v6, 5  ;;  %v6594_v6 = vrot.slane %v10179_v4, 5  ;;  %8935 = vmatpush3.bf16.msra.mxu1 %v10108_v53 }
 0x231   : > { %v6588_v63 = vsel %vm11098_vm5, %v8798_v49, %v6587_v16 }
 0x232   : > { %v6591_v35 = vsel %vm11098_vm5, %v6589_v37, %v6590_v36  ;;  %v6596_v7 = vrot.slane %v6594_v6, 4  ;;  %v6595_v8 = vsel %vm11098_vm5, %v8799_v50, %v6594_v6  ;;  %v10182_v37 = vld [vmem:[%s10371_s17 + $0x98] sm:$0xff]  ;;  %v6618_v6 = vrot.slane %v12161_v55, 5 }
 0x233   : > { %v8847_v3 = vcombine.high %v6588_v63, %v6591_v35  ;;  %v8846_v15 = vcombine.low %v6588_v63, %v6591_v35  ;;  %v6615_v36 = vrot.slane %v10182_v37, 5  ;;  %v8802_v35 = vrot.slane %v8786_v13, 9  ;;  %v10114_v13 = vld [vmem:[%s13022_s3 + $0x28] sm:$0xff]  }
 0x234   : > { %v6598_v58 = vsel %vm11098_vm5, %v6596_v7, %v6597_v10  ;;  %v6622_v55 = vrot.slane %v12152_v38, 5 }
 0x235   : > { %v8848_v16 = vcombine.low %v6595_v8, %v6598_v58  ;;  %v6617_v4 = vrot.slane %v6615_v36, 4 }
 0x236   : > { %3010 = vmatmul.mubr.bf16.gmra.mrb[52].mxu1 %v8200_v45  ;;  %v8784_v45 = vld [vmem:[%s10371_s17 + $0x60] sm:$0xee] }
 0x237   : > { %6427 = vmatmul.mubr.bf16.gmra.mrb[52].mxu0 %v8744_v23  ;;  %3019 = vmatprep.mubr.bf16.mxu1 %v8203_v57  ;;  %v8849_v23 = vcombine.high %v6595_v8, %v6598_v58  ;;  %v8800_v57 = vrot.slane %v8784_v45, 9  ;;  %v6624_v8 = vrot.slane %v6622_v55, 4  ;;  %v6625_v58 = vrot.slane %v12184_v61, 5  ;;  %v10111_v61 = vld [vmem:[%s13022_s3 + $0x60] sm:$0xff]  }
 0x238   : > { %6436 = vmatprep.mubr.bf16.mxu0 %v8747_v29  ;;  %v6603_v29 = vrot.slane %v6601_v25, 4  ;;  %v6629_v45 = vrot.slane %v12193_v14, 5 }
 0x239   : > { %v6602_v27 = vsel %vm11098_vm5, %v8800_v57, %v6601_v25  ;;  %v6626_v25 = vsel %vm11098_vm5, %v6624_v8, %v6625_v58  ;;  %v6660_v8 = vrot.slane %v12380_v20, 5  ;;  %v10116_v58 = vld [vmem:[%s13022_s3 + $0x30] sm:$0xff]   ;;  %v6664_v20 = vrot.slane %v12389_v2, 5 }
 0x23a   : > { %v6605_v40 = vsel %vm11098_vm5, %v6603_v29, %v6604_v31  ;;  %v6631_v29 = vrot.slane %v6629_v45, 4  ;;  %v6632_v31 = vrot.slane %v12223_v12, 5  ;;  %v6636_v12 = vrot.slane %v12232_v59, 5 }
 0x23b   : > { %v8851_v33 = vcombine.high %v6602_v27, %v6605_v40  ;;  %v8850_v30 = vcombine.low %v6602_v27, %v6605_v40  ;;  %v8789_v27 = vld [vmem:[%s10371_s17 + $0xd8] sm:$0xee] }
 0x23c   : > { %v6633_v53 = vsel %vm11098_vm5, %v6631_v29, %v6632_v31 }
 0x23e   : > { %3020 = vmatmul.mubr.bf16.gmra.mrb[56].mxu1 %v8202_v51  ;;  %v8801_v51 = vrot.slane %v8785_v41, 9  ;;  %v6638_v41 = vrot.slane %v6636_v12, 4 }
 0x23f   : > { %6437 = vmatmul.mubr.bf16.gmra.mrb[56].mxu0 %v8746_v17  ;;  %3029 = vmatprep.mubr.bf16.mxu1 %v8205_v18  ;;  %v6610_v17 = vrot.slane %v6608_v34, 4  ;;  %v6611_v18 = vrot.slane %v12124_v1, 5  ;;  %v10109_v1 = vld [vmem:[%s13022_s3 + $0x58] sm:$0xff]  }
 0x240   : > { %6446 = vmatprep.mubr.bf16.mxu0 %v8749_v56  ;;  %v6609_v56 = vsel %vm11098_vm5, %v8801_v51, %v6608_v34  ;;  %8936 = vmatprep.subr.bf16.mxu1 %v10109_v1  ;;  %v8805_v34 = vrot.slane %v8789_v27, 9  ;;  %v6674_v27 = vrot.slane %v12433_v21, 5  ;;  %v6678_v21 = vrot.slane %v12441_v46, 5 }
 0x241   : > { %v6612_v49 = vsel %vm11098_vm5, %v6610_v17, %v6611_v18  ;;  %8937 = vmatpush3.bf16.msra.mxu1 %v10110_v52  ;;  %v6643_v17 = vrot.slane %v12265_v0, 5  ;;  %v8790_v18 = vld [vmem:[%s10371_s17 + $0xf0] sm:$0xee]  ;;  %v6653_v52 = vrot.slane %v12340_v62, 5 }
 0x242   : > { %v8853_v63 = vcombine.high %v6609_v56, %v6612_v49  ;;  %v8852_v50 = vcombine.low %v6609_v56, %v6612_v49  ;;  %8938 = vmatprep.subr.bf16.mxu1 %v10111_v61  ;;  %v8806_v49 = vrot.slane %v8790_v18, 9  ;;  %v10115_v62 = vld [vmem:[%s13022_s3 + $0x70] sm:$0xff]   ;;  %v6671_v61 = vrot.slane %v12416_v11, 5 }
 0x243   : > { %v6645_v37 = vrot.slane %v6643_v17, 4 }
 0x244   : > { %v6644_v0 = vsel %vm11098_vm5, %v8806_v49, %v6643_v17  ;;  %v6681_v49 = vrot.slane %v12457_v5, 5 }
 0x245   : > { %8939 = vmatpush3.bf16.msra.mxu1 %v10112_v54  ;;  %v8794_v54 = vld [vmem:[%s10371_s17 + $0x150] sm:$0xee] }
 0x246   : > { %3030 = vmatmul.mubr.bf16.gmra.mrb[60].mxu1 %v8204_v26  ;;  %v6616_v26 = vsel %vm11098_vm5, %v8802_v35, %v6615_v36  ;;  %v6646_v36 = vrot.slane %v12300_v39, 5  ;;  %v6650_v39 = vrot.slane %v12310_v43, 5 }
 0x247   : > { %6447 = vmatmul.mubr.bf16.gmra.mrb[60].mxu0 %v8748_v19  ;;  %v6619_v19 = vsel %vm11098_vm5, %v6617_v4, %v6618_v6 }
 0x248   : > { %7050 = vmatprep.mubr.bf16.mxu0 %v8847_v3  ;;  %v8787_v3 = vld [vmem:[%s10371_s17 + $0xa8] sm:$0xee]  ;;  %v8855_v7 = vcombine.high %v6616_v26, %v6619_v19  ;;  %v8854_v38 = vcombine.low %v6616_v26, %v6619_v19  ;;  %v6652_v1 = vrot.slane %v6650_v39, 4 }
 0x249   : > { %v8803_v10 = vrot.slane %v8787_v3, 9  ;;  %v8792_v3 = vld [vmem:[%s10371_s17 + $0x120] sm:$0xee] }
 0x24a   : > { %v6654_v19 = vsel %vm11098_vm5, %v6652_v1, %v6653_v52  ;;  %v6692_v52 = vrot.slane %v12483_v24, 5 }
 0x24b   : > { %v6623_v60 = vsel %vm11098_vm5, %v8803_v10, %v6622_v55  ;;  %v6657_v55 = vrot.slane %v12346_v42, 5 }
 0x24c   : > { %v8856_v40 = vcombine.low %v6623_v60, %v6626_v25 }
 0x24d   : > { %v6659_v10 = vrot.slane %v6657_v55, 4 }
 0x24f   : > { %7051 = vmatmul.mubr.bf16.vlgmr.msra.gmra.mrb[0].mxu0 %v8846_v15  ;;  %v8788_v15 = vld [vmem:[%s10371_s17 + $0xc0] sm:$0xee] }
 0x250   : > { %7060 = vmatprep.mubr.bf16.mxu0 %v8849_v23  ;;  %v8857_v23 = vcombine.high %v6623_v60, %v6626_v25  ;;  %v8804_v57 = vrot.slane %v8788_v15, 9  ;;  %v6661_v60 = vsel %vm11098_vm5, %v6659_v10, %v6660_v8  ;;  %v8793_v25 = vld [vmem:[%s10371_s17 + $0x138] sm:$0xee]  ;;  %v6694_v10 = vrot.slane %v6692_v52, 4 }
 0x251   : > { %v6695_v8 = vrot.slane %v12497_v32, 5 }
 0x252   : > { %v6630_v14 = vsel %vm11098_vm5, %v8804_v57, %v6629_v45  ;;  %v6667_v57 = vrot.slane %v12419_v47, 5  ;;  %v10117_v47 = vld [vmem:[%s13022_s3 + $0x78] sm:$0xff]  }
 0x253   : > { %v8859_v9 = vcombine.high %v6630_v14, %v6633_v53  ;;  %v8858_v59 = vcombine.low %v6630_v14, %v6633_v53  ;;  %v8810_v53 = vrot.slane %v8794_v54, 9 }
 0x255   : > { %v6672_v11 = vsel %vm11098_vm5, %v8810_v53, %v6671_v61 }
 0x257   : > { %7061 = vmatmul.mubr.bf16.gmra.mrb[4].mxu0 %v8848_v16  ;;  %v6639_v16 = vrot.slane %v12269_v22, 5  ;;  %v10113_v22 = vld [vmem:[%s13022_s3 + $0x68] sm:$0xff]  }
 0x258   : > { %7070 = vmatprep.mubr.bf16.mxu0 %v8851_v33  ;;  %v6637_v33 = vsel %vm11098_vm5, %v8805_v34, %v6636_v12  ;;  %8940 = vmatprep.subr.bf16.mxu1 %v10113_v22  ;;  %v6673_v12 = vrot.slane %v6671_v61, 4 }
 0x259   : > { %v6640_v51 = vsel %vm11098_vm5, %v6638_v41, %v6639_v16  ;;  %8941 = vmatpush3.bf16.msra.mxu1 %v10114_v13  ;;  %v8795_v41 = vld [vmem:[%s10371_s17 + $0x168] sm:$0xee]  ;;  %v8796_v13 = vld [vmem:[%s10371_s17 + $0x180] sm:$0xee] }
 0x25a   : > { %v8861_v56 = vcombine.high %v6637_v33, %v6640_v51  ;;  %v8860_v35 = vcombine.low %v6637_v33, %v6640_v51  ;;  %8942 = vmatprep.subr.bf16.mxu1 %v10115_v62  ;;  %v6696_v62 = vsel %vm11098_vm5, %v6694_v10, %v6695_v8 }
 0x25d   : > { %8943 = vmatpush3.bf16.msra.mxu1 %v10116_v58 }
 0x25e   : > { %8944 = vmatprep.subr.bf16.mxu1 %v10117_v47 }
 0x25f   : > { %7071 = vmatmul.mubr.bf16.gmra.mrb[8].mxu0 %v8850_v30  ;;  %v6647_v30 = vsel %vm11098_vm5, %v6645_v37, %v6646_v36  ;;  %v6685_v36 = vrot.slane %v12463_v28, 5 }
 0x260   : > { %7080 = vmatprep.mubr.bf16.mxu0 %v8853_v63  ;;  %v8791_v63 = vld [vmem:[%s10371_s17 + $0x108] sm:$0xee]  ;;  %v8863_v4 = vcombine.high %v6644_v0, %v6647_v30  ;;  %v8862_v43 = vcombine.low %v6644_v0, %v6647_v30 }
 0x261   : > { %v8807_v6 = vrot.slane %v8791_v63, 9 }
 0x263   : > { %v6651_v26 = vsel %vm11098_vm5, %v8807_v6, %v6650_v39  ;;  %v6688_v6 = vrot.slane %v12479_v48, 5 }
 0x264   : > { %v8864_v45 = vcombine.low %v6651_v26, %v6654_v19 }
 0x267   : > { %7081 = vmatmul.mubr.bf16.gmra.mrb[12].mxu0 %v8852_v50  ;;  %v8865_v50 = vcombine.high %v6651_v26, %v6654_v19  ;;  %v8797_v19 = vld [vmem:[%s10371_s17 + $0x198] sm:$0xee] }
 0x268   : > { %7090 = vmatprep.mubr.bf16.mxu0 %v8855_v7  ;;  %v8808_v7 = vrot.slane %v8792_v3, 9 }
 0x26a   : > { %v6658_v42 = vsel %vm11098_vm5, %v8808_v7, %v6657_v55  ;;  %v8813_v7 = vrot.slane %v8797_v19, 9 }
 0x26b   : > { %v8867_v15 = vcombine.high %v6658_v42, %v6661_v60  ;;  %v8866_v2 = vcombine.low %v6658_v42, %v6661_v60 }
 0x26c   : > { %v6693_v24 = vsel %vm11098_vm5, %v8813_v7, %v6692_v52 }
 0x26f   : > { %7091 = vmatmul.mubr.bf16.gmra.mrb[16].mxu0 %v8854_v38  ;;  %v8809_v38 = vrot.slane %v8793_v25, 9  ;;  %v8877_v25 = vcombine.high %v6693_v24, %v6696_v62 }
 0x270   : > { %7100 = vmatprep.mubr.bf16.mxu0 %v8857_v23  ;;  %v6666_v23 = vrot.slane %v6664_v20, 4 }
 0x271   : > { %v6665_v29 = vsel %vm11098_vm5, %v8809_v38, %v6664_v20  ;;  %v8876_v38 = vcombine.low %v6693_v24, %v6696_v62  ;;  %v7277_v62 = vlaneseq }
 0x272   : > { %v6668_v31 = vsel %vm11098_vm5, %v6666_v23, %v6667_v57 }
 0x273   : > { %v8869_v14 = vcombine.high %v6665_v29, %v6668_v31  ;;  %v8868_v33 = vcombine.low %v6665_v29, %v6668_v31 }
 0x277   : > { %7101 = vmatmul.mubr.bf16.gmra.mrb[20].mxu0 %v8856_v40  ;;  %v10118_v40 = vld [vmem:[%s13022_s3 + $0x38] sm:$0xff]  }
 0x278   : > { %7110 = vmatprep.mubr.bf16.mxu0 %v8859_v9  ;;  %8945 = vmatpush3.bf16.msra.mxu1 %v10118_v40  ;;  %v6675_v9 = vsel %vm11098_vm5, %v6673_v12, %v6674_v27 }
 0x279   : > { %v8871_v17 = vcombine.high %v6672_v11, %v6675_v9  ;;  %v8870_v30 = vcombine.low %v6672_v11, %v6675_v9 }
 0x27f   : > { %7111 = vmatmul.mubr.bf16.gmra.mrb[24].mxu0 %v8858_v59  ;;  %v8811_v59 = vrot.slane %v8795_v41, 9 }
 0x280   : > { %7120 = vmatprep.mubr.bf16.mxu0 %v8861_v56  ;;  %v6680_v56 = vrot.slane %v6678_v21, 4 }
 0x281   : > { %v6679_v46 = vsel %vm11098_vm5, %v8811_v59, %v6678_v21 }
 0x282   : > { %v6682_v37 = vsel %vm11098_vm5, %v6680_v56, %v6681_v49 }
 0x283   : > { %v8873_v5 = vcombine.high %v6679_v46, %v6682_v37  ;;  %v8872_v3 = vcombine.low %v6679_v46, %v6682_v37 }
 0x287   : > { %7121 = vmatmul.mubr.bf16.gmra.mrb[28].mxu0 %v8860_v35  ;;  %v8812_v35 = vrot.slane %v8796_v13, 9 }
 0x288   : > { %7130 = vmatprep.mubr.bf16.mxu0 %v8863_v4  ;;  %v6687_v4 = vrot.slane %v6685_v36, 4 }
 0x289   : > { %v6686_v28 = vsel %vm11098_vm5, %v8812_v35, %v6685_v36 }
 0x28a   : > { %v6689_v1 = vsel %vm11098_vm5, %v6687_v4, %v6688_v6 }
 0x28b   : > { %v8874_v60 = vcombine.low %v6686_v28, %v6689_v1 }
 0x28f   : > { %7131 = vmatmul.mubr.bf16.gmra.mrb[32].mxu0 %v8862_v43 }
 0x290   : > { %7140 = vmatprep.mubr.bf16.mxu0 %v8865_v50  ;;  %v8875_v50 = vcombine.high %v6686_v28, %v6689_v1 }
 0x297   : > { %7141 = vmatmul.mubr.bf16.gmra.mrb[36].mxu0 %v8864_v45 }
 0x298   : > { %7150 = vmatprep.mubr.bf16.mxu0 %v8867_v15 }
 0x29f   : > { %7151 = vmatmul.mubr.bf16.gmra.mrb[40].mxu0 %v8866_v2 }
 0x2a0   : > { %7160 = vmatprep.mubr.bf16.mxu0 %v8869_v14 }
 0x2a1   : > { %v12658_v34 = vpop.f32.mrb[0].mxu1 }
 0x2a2   : > { %v12661_v16 = vpop.f32.mrb[1].mxu1 }
 0x2a3   : > { %v12663_v51 = vpop.f32.mrb[2].mxu1 }
 0x2a4   : > { %v12665_v18 = vpop.f32.mrb[3].mxu1 }
 0x2a7   : > { %7161 = vmatmul.mubr.bf16.gmra.mrb[44].mxu0 %v8868_v33 }
 0x2a8   : > { %7170 = vmatprep.mubr.bf16.mxu0 %v8871_v17 }
 0x2a9   : > { %v12673_v22 = vpop.f32.mrb[4].mxu1 }
 0x2aa   : > { %v12676_v0 = vpop.f32.mrb[5].mxu1 }
 0x2ab   : > { %v12678_v39 = vpop.f32.mrb[6].mxu1 }
 0x2ac   : > { %v12680_v63 = vpop.f32.mrb[7].mxu1 }
 0x2af   : > { %7171 = vmatmul.mubr.bf16.gmra.mrb[48].mxu0 %v8870_v30 }
 0x2b0   : > { %7180 = vmatprep.mubr.bf16.mxu0 %v8873_v5 }
 0x2b1   : > { %v12688_v26 = vpop.f32.mrb[8].mxu1 }
 0x2b2   : > { %v12691_v55 = vpop.f32.mrb[9].mxu1 }
 0x2b3   : > { %v12693_v43 = vpop.f32.mrb[10].mxu1 }
 0x2b4   : > { %v12695_v48 = vpop.f32.mrb[11].mxu1 }
 0x2b7   : > { %7181 = vmatmul.mubr.bf16.gmra.mrb[52].mxu0 %v8872_v3 }
 0x2b8   : > { %7190 = vmatprep.mubr.bf16.mxu0 %v8875_v50 }
 0x2b9   : > { %v12702_v58 = vpop.f32.mrb[12].mxu1 }
 0x2ba   : > { %v12704_v42 = vpop.f32.mrb[13].mxu1 }
 0x2bb   : > { %v12706_v20 = vpop.f32.mrb[14].mxu1 }
 0x2bc   : > { %v12708_v45 = vpop.f32.mrb[15].mxu1 }
 0x2bf   : > { %7191 = vmatmul.mubr.bf16.gmra.mrb[56].mxu0 %v8874_v60  ;;  %v7278_v60 = vshrl.u32 %v7277_v62, 7 }
 0x2c0   : > { %7200 = vmatprep.mubr.bf16.mxu0 %v8877_v25 }
 0x2c1   : > { %v12710_v32 = vpop.f32.mrb[16].mxu1 }
 0x2c2   : > { %v12712_v15 = vpop.f32.mrb[17].mxu1 }
 0x2c3   : > { %v12714_v23 = vpop.f32.mrb[18].mxu1 }
 0x2c4   : > { %v12716_v44 = vpop.f32.mrb[19].mxu1 }
 0x2c7   : > { %7201 = vmatmul.mubr.bf16.gmra.mrb[60].mxu0 %v8876_v38 }
 0x2c9   : > { %v12718_v57 = vpop.f32.mrb[20].mxu1 }
 0x2ca   : > { %v12720_v29 = vpop.f32.mrb[21].mxu1 }
 0x2cb   : > { %v12722_v31 = vpop.f32.mrb[22].mxu1 }
 0x2cc   : > { %v12724_v61 = vpop.f32.mrb[23].mxu1 }
 0x2d1   : > { %v12726_v54 = vpop.f32.mrb[24].mxu1 }
 0x2d2   : > { %v12728_v2 = vpop.f32.mrb[25].mxu1 }
 0x2d3   : > { %v12730_v14 = vpop.f32.mrb[26].mxu1 }
 0x2d4   : > { %v12732_v53 = vpop.f32.mrb[27].mxu1 }
 0x2d9   : > { %v12734_v12 = vpop.f32.mrb[28].mxu1 }
 0x2da   : > { %v12736_v27 = vpop.f32.mrb[29].mxu1 }
 0x2db   : > { %v12738_v47 = vpop.f32.mrb[30].mxu1 }
 0x2dc   : > { %v12740_v40 = vpop.f32.mrb[31].mxu1 }
 0x2e1   : > { %v12742_v11 = vpop.f32.mrb[32].mxu1 }
 0x2e2   : > { %v12744_v9 = vpop.f32.mrb[33].mxu1 }
 0x2e3   : > { %v12746_v21 = vpop.f32.mrb[34].mxu1 }
 0x2e4   : > { %v12748_v41 = vpop.f32.mrb[35].mxu1 }
 0x2e9   : > { %v12750_v33 = vpop.f32.mrb[36].mxu1 }
 0x2ea   : > { %v12752_v17 = vpop.f32.mrb[37].mxu1 }
 0x2eb   : > { %v12754_v59 = vpop.f32.mrb[38].mxu1 }
 0x2ec   : > { %v12756_v56 = vpop.f32.mrb[39].mxu1 }
 0x2f1   : > { %v12758_v49 = vpop.f32.mrb[40].mxu1 }
 0x2f2   : > { %v12760_v46 = vpop.f32.mrb[41].mxu1 }
 0x2f3   : > { %v12762_v37 = vpop.f32.mrb[42].mxu1 }
 0x2f4   : > { %v12764_v36 = vpop.f32.mrb[43].mxu1 }
 0x2f9   : > { %v12766_v13 = vpop.f32.mrb[44].mxu1 }
 0x2fa   : > { %v12768_v30 = vpop.f32.mrb[45].mxu1 }
 0x2fb   : > { %v12770_v5 = vpop.f32.mrb[46].mxu1 }
 0x2fc   : > { %13044 = vst [vmem:[#allocation2_spill] sm:$0xff] %v12770_v5  ;;  %v12772_v35 = vpop.f32.mrb[47].mxu1 }
 0x2fd   : > { %13045 = vst [vmem:[#allocation3_spill] sm:$0xff] %v12772_v35 }
 0x301   : > { %v12774_v4 = vpop.f32.mrb[48].mxu1 }
 0x302   : > { %13046 = vst [vmem:[#allocation4_spill] sm:$0xff] %v12774_v4  ;;  %v12776_v6 = vpop.f32.mrb[49].mxu1 }
 0x303   : > { %13047 = vst [vmem:[#allocation5_spill] sm:$0xff] %v12776_v6  ;;  %v12778_v28 = vpop.f32.mrb[50].mxu1 }
 0x304   : > { %13048 = vst [vmem:[#allocation6_spill] sm:$0xff] %v12778_v28  ;;  %v12780_v1 = vpop.f32.mrb[51].mxu1 }
 0x305   : > { %13049 = vst [vmem:[#allocation7_spill] sm:$0xff] %v12780_v1 }
 0x309   : > { %v12782_v52 = vpop.f32.mrb[52].mxu1 }
 0x30a   : > { %13050 = vst [vmem:[#allocation8_spill] sm:$0xff] %v12782_v52  ;;  %v12784_v19 = vpop.f32.mrb[53].mxu1 }
 0x30b   : > { %13051 = vst [vmem:[#allocation9_spill] sm:$0xff] %v12784_v19  ;;  %v12786_v3 = vpop.f32.mrb[54].mxu1 }
 0x30c   : > { %13052 = vst [vmem:[#allocation10_spill] sm:$0xff] %v12786_v3  ;;  %v12788_v50 = vpop.f32.mrb[55].mxu1  ;;  %v7279_v3 = vsub.s32 0, %v7278_v60 }
 0x30d   : > { %13053 = vst [vmem:[#allocation11_spill] sm:$0xff] %v12788_v50 }
 0x311   : > { %v12790_v7 = vpop.f32.mrb[56].mxu1 }
 0x312   : > { %13054 = vst [vmem:[#allocation12_spill] sm:$0xff] %v12790_v7  ;;  %v12792_v10 = vpop.f32.mrb[57].mxu1  ;;  %v7275_v7 = vld [vmem:[%s13021_s2] sm:$0x3] }
 0x313   : > { %13055 = vst [vmem:[#allocation13_spill] sm:$0xff] %v12792_v10  ;;  %v12794_v8 = vpop.f32.mrb[58].mxu1  ;;  %v7283_v10 = vsub.s32 1, %v7278_v60  ;;  %v12809_v50 = vrot.slane %v7275_v7, %v7279_v3 }
 0x314   : > { %13056 = vst [vmem:[#allocation14_spill] sm:$0xff] %v12794_v8  ;;  %v12796_v24 = vpop.f32.mrb[59].mxu1 }
 0x315   : > { %13057 = vst [vmem:[#allocation15_spill] sm:$0xff] %v12796_v24  ;;  %v12811_v24 = vrot.slane %v7275_v7, %v7283_v10 }
 0x319   : > { %v12798_v25 = vpop.f32.mrb[60].mxu1 }
 0x31a   : > { %13058 = vst [vmem:[#allocation16_spill] sm:$0xff] %v12798_v25  ;;  %v12800_v38 = vpop.f32.mrb[61].mxu1 }
 0x31b   : > { %13059 = vst [vmem:[#allocation17_spill] sm:$0xff] %v12800_v38  ;;  %v12802_v52 = vpop.f32.mrb[62].mxu1 }
 0x31c   : > { %13060 = vst [vmem:[#allocation18_spill] sm:$0xff] %v12802_v52  ;;  %v12804_v19 = vpop.f32.mrb[63].mxu1 }
 0x31d   : > { %13061 = vst [vmem:[#allocation19_spill] sm:$0xff] %v12804_v19 }
 0x322   : > { %v7052_v8 = vpop.f32.mrb[0].mxu0 }
 0x323   : > { %v9042_v62 = vadd.f32 %v7052_v8, %v12658_v34  ;;  %v7054_v25 = vpop.f32.mrb[1].mxu0 }
 0x324   : > { %v9043_v38 = vadd.f32 %v7054_v25, %v12661_v16  ;;  %v7056_v1 = vpop.f32.mrb[2].mxu0 }
 0x325   : > { %v7287_v52 = vadd.f32 %v9042_v62, %v12809_v50  ;;  %v9044_v19 = vadd.f32 %v7056_v1, %v12663_v51  ;;  %v7058_v28 = vpop.f32.mrb[3].mxu0 }
 0x326   : > { %v7288_v6 = vadd.f32 %v9043_v38, %v12811_v24  ;;  %v9045_v60 = vadd.f32 %v7058_v28, %v12665_v18 }
 0x327   : > { %v7289_v3 = vadd.f32 %v9044_v19, %v12809_v50  ;;  %v7351_v10 = vmax.f32 %v7287_v52, 0.0 }
 0x328   : > { %v7290_v7 = vadd.f32 %v9045_v60, %v12811_v24  ;;  %v7352_v34 = vmax.f32 %v7288_v6, 0.0 }
 0x329   : > { %v7353_v4 = vmax.f32 %v7289_v3, 0.0 }
 0x32a   : > { %v7354_v8 = vmax.f32 %v7290_v7, 0.0  ;;  %v7062_v35 = vpop.f32.mrb[4].mxu0 }
 0x32b   : > { %v7415_v16 = vpack.c.bf16 %v7353_v4, %v7351_v10  ;;  %v9046_v25 = vadd.f32 %v7062_v35, %v12673_v22  ;;  %v7064_v62 = vpop.f32.mrb[5].mxu0 }
 0x32c   : > { %v9047_v51 = vadd.f32 %v7064_v62, %v12676_v0  ;;  %v7066_v1 = vpop.f32.mrb[6].mxu0  ;;  %v7416_v5 = vpack.c.bf16 %v7354_v8, %v7352_v34 }
 0x32d   : > { %v7291_v38 = vadd.f32 %v9046_v25, %v12809_v50  ;;  %v9048_v18 = vadd.f32 %v7066_v1, %v12678_v39  ;;  %v7068_v28 = vpop.f32.mrb[7].mxu0 }
 0x32e   : > { %v7292_v19 = vadd.f32 %v9047_v51, %v12811_v24  ;;  %v9049_v52 = vadd.f32 %v7068_v28, %v12680_v63  ;;  %7614 = vmatprep.mubr.bf16.mxu1 %v7416_v5 }
 0x32f   : > { %v7293_v6 = vadd.f32 %v9048_v18, %v12809_v50  ;;  %7615 = vmatmul.mubr.bf16.vlgmr.msra.gmra.mrb[64].mxu1 %v7415_v16  ;;  %v7355_v35 = vmax.f32 %v7291_v38, 0.0 }
 0x330   : > { %v7294_v22 = vadd.f32 %v9049_v52, %v12811_v24  ;;  %v7356_v0 = vmax.f32 %v7292_v19, 0.0 }
 0x331   : > { %v7357_v4 = vmax.f32 %v7293_v6, 0.0 }
 0x332   : > { %v7358_v60 = vmax.f32 %v7294_v22, 0.0  ;;  %v7072_v3 = vpop.f32.mrb[8].mxu0 }
 0x333   : > { %v9050_v7 = vadd.f32 %v7072_v3, %v12688_v26  ;;  %v7074_v10 = vpop.f32.mrb[9].mxu0  ;;  %v7417_v39 = vpack.c.bf16 %v7357_v4, %v7355_v35 }
 0x334   : > { %v9051_v34 = vadd.f32 %v7074_v10, %v12691_v55  ;;  %v7076_v8 = vpop.f32.mrb[10].mxu0  ;;  %v7418_v25 = vpack.c.bf16 %v7358_v60, %v7356_v0 }
 0x335   : > { %v7295_v63 = vadd.f32 %v9050_v7, %v12809_v50  ;;  %v9052_v5 = vadd.f32 %v7076_v8, %v12693_v43  ;;  %v7078_v16 = vpop.f32.mrb[11].mxu0 }
 0x336   : > { %v7296_v62 = vadd.f32 %v9051_v34, %v12811_v24  ;;  %v9053_v51 = vadd.f32 %v7078_v16, %v12695_v48  ;;  %7622 = vmatprep.mubr.bf16.mxu1 %v7418_v25 }
 0x337   : > { %v7297_v1 = vadd.f32 %v9052_v5, %v12809_v50  ;;  %7623 = vmatmul.mubr.bf16.gmra.mrb[68].mxu1 %v7417_v39  ;;  %v7359_v38 = vmax.f32 %v7295_v63, 0.0 }
 0x338   : > { %v7298_v26 = vadd.f32 %v9053_v51, %v12811_v24  ;;  %v7360_v55 = vmax.f32 %v7296_v62, 0.0 }
 0x339   : > { %v7361_v18 = vmax.f32 %v7297_v1, 0.0 }
 0x33a   : > { %v7362_v28 = vmax.f32 %v7298_v26, 0.0  ;;  %v7082_v19 = vpop.f32.mrb[12].mxu0 }
 0x33b   : > { %v9054_v52 = vadd.f32 %v7082_v19, %v12702_v58  ;;  %v7084_v6 = vpop.f32.mrb[13].mxu0  ;;  %v7419_v43 = vpack.c.bf16 %v7361_v18, %v7359_v38 }
 0x33c   : > { %v9055_v22 = vadd.f32 %v7084_v6, %v12704_v42  ;;  %v7086_v35 = vpop.f32.mrb[14].mxu0  ;;  %v7420_v4 = vpack.c.bf16 %v7362_v28, %v7360_v55 }
 0x33d   : > { %v7299_v48 = vadd.f32 %v9054_v52, %v12809_v50  ;;  %v9056_v0 = vadd.f32 %v7086_v35, %v12706_v20  ;;  %v7088_v60 = vpop.f32.mrb[15].mxu0 }
 0x33e   : > { %v7300_v3 = vadd.f32 %v9055_v22, %v12811_v24  ;;  %v9057_v7 = vadd.f32 %v7088_v60, %v12708_v45  ;;  %7630 = vmatprep.mubr.bf16.mxu1 %v7420_v4 }
 0x33f   : > { %v7301_v10 = vadd.f32 %v9056_v0, %v12809_v50  ;;  %7631 = vmatmul.mubr.bf16.gmra.mrb[72].mxu1 %v7419_v43  ;;  %v7363_v39 = vmax.f32 %v7299_v48, 0.0 }
 0x340   : > { %v7302_v58 = vadd.f32 %v9057_v7, %v12811_v24  ;;  %v7364_v42 = vmax.f32 %v7300_v3, 0.0 }
 0x341   : > { %v7365_v34 = vmax.f32 %v7301_v10, 0.0 }
 0x342   : > { %v7366_v8 = vmax.f32 %v7302_v58, 0.0  ;;  %v7092_v25 = vpop.f32.mrb[16].mxu0 }
 0x343   : > { %v9058_v63 = vadd.f32 %v7092_v25, %v12710_v32  ;;  %v7094_v5 = vpop.f32.mrb[17].mxu0  ;;  %v7421_v20 = vpack.c.bf16 %v7365_v34, %v7363_v39 }
 0x344   : > { %v9059_v16 = vadd.f32 %v7094_v5, %v12712_v15  ;;  %v7096_v62 = vpop.f32.mrb[18].mxu0  ;;  %v7422_v51 = vpack.c.bf16 %v7366_v8, %v7364_v42 }
 0x345   : > { %v7303_v45 = vadd.f32 %v9058_v63, %v12809_v50  ;;  %v9060_v1 = vadd.f32 %v7096_v62, %v12714_v23  ;;  %v7098_v26 = vpop.f32.mrb[19].mxu0 }
 0x346   : > { %v7304_v38 = vadd.f32 %v9059_v16, %v12811_v24  ;;  %v9061_v18 = vadd.f32 %v7098_v26, %v12716_v44  ;;  %7638 = vmatprep.mubr.bf16.mxu1 %v7422_v51 }
 0x347   : > { %v7305_v55 = vadd.f32 %v9060_v1, %v12809_v50  ;;  %7639 = vmatmul.mubr.bf16.gmra.mrb[76].mxu1 %v7421_v20  ;;  %v7367_v28 = vmax.f32 %v7303_v45, 0.0 }
 0x348   : > { %v7306_v32 = vadd.f32 %v9061_v18, %v12811_v24  ;;  %v7368_v15 = vmax.f32 %v7304_v38, 0.0 }
 0x349   : > { %v7369_v19 = vmax.f32 %v7305_v55, 0.0 }
 0x34a   : > { %v7370_v52 = vmax.f32 %v7306_v32, 0.0  ;;  %v7102_v6 = vpop.f32.mrb[20].mxu0 }
 0x34b   : > { %v9062_v43 = vadd.f32 %v7102_v6, %v12718_v57  ;;  %v7104_v22 = vpop.f32.mrb[21].mxu0  ;;  %v7423_v23 = vpack.c.bf16 %v7369_v19, %v7367_v28 }
 0x34c   : > { %v9063_v35 = vadd.f32 %v7104_v22, %v12720_v29  ;;  %v7106_v4 = vpop.f32.mrb[22].mxu0  ;;  %v7424_v48 = vpack.c.bf16 %v7370_v52, %v7368_v15 }
 0x34d   : > { %v7307_v44 = vadd.f32 %v9062_v43, %v12809_v50  ;;  %v9064_v0 = vadd.f32 %v7106_v4, %v12722_v31  ;;  %v7108_v60 = vpop.f32.mrb[23].mxu0 }
 0x34e   : > { %v7308_v3 = vadd.f32 %v9063_v35, %v12811_v24  ;;  %v9065_v7 = vadd.f32 %v7108_v60, %v12724_v61  ;;  %7646 = vmatprep.mubr.bf16.mxu1 %v7424_v48 }
 0x34f   : > { %v7309_v10 = vadd.f32 %v9064_v0, %v12809_v50  ;;  %7647 = vmatmul.mubr.bf16.gmra.mrb[80].mxu1 %v7423_v23  ;;  %v7371_v58 = vmax.f32 %v7307_v44, 0.0 }
 0x350   : > { %v7310_v57 = vadd.f32 %v9065_v7, %v12811_v24  ;;  %v7372_v29 = vmax.f32 %v7308_v3, 0.0 }
 0x351   : > { %v7373_v39 = vmax.f32 %v7309_v10, 0.0 }
 0x352   : > { %v7374_v34 = vmax.f32 %v7310_v57, 0.0  ;;  %v7112_v42 = vpop.f32.mrb[24].mxu0 }
 0x353   : > { %v9066_v8 = vadd.f32 %v7112_v42, %v12726_v54  ;;  %v7114_v25 = vpop.f32.mrb[25].mxu0  ;;  %v7425_v31 = vpack.c.bf16 %v7373_v39, %v7371_v58 }
 0x354   : > { %v9067_v63 = vadd.f32 %v7114_v25, %v12728_v2  ;;  %v7116_v5 = vpop.f32.mrb[26].mxu0  ;;  %v7426_v20 = vpack.c.bf16 %v7374_v34, %v7372_v29 }
 0x355   : > { %v7311_v61 = vadd.f32 %v9066_v8, %v12809_v50  ;;  %v9068_v16 = vadd.f32 %v7116_v5, %v12730_v14  ;;  %v7118_v62 = vpop.f32.mrb[27].mxu0 }
 0x356   : > { %v7312_v51 = vadd.f32 %v9067_v63, %v12811_v24  ;;  %v9069_v45 = vadd.f32 %v7118_v62, %v12732_v53  ;;  %7654 = vmatprep.mubr.bf16.mxu1 %v7426_v20 }
 0x357   : > { %v7313_v1 = vadd.f32 %v9068_v16, %v12809_v50  ;;  %7655 = vmatmul.mubr.bf16.gmra.mrb[84].mxu1 %v7425_v31  ;;  %v7375_v26 = vmax.f32 %v7311_v61, 0.0 }
 0x358   : > { %v7314_v54 = vadd.f32 %v9069_v45, %v12811_v24  ;;  %v7376_v2 = vmax.f32 %v7312_v51, 0.0 }
 0x359   : > { %v7377_v38 = vmax.f32 %v7313_v1, 0.0 }
 0x35a   : > { %v7378_v18 = vmax.f32 %v7314_v54, 0.0  ;;  %v7122_v55 = vpop.f32.mrb[28].mxu0 }
 0x35b   : > { %v9070_v32 = vadd.f32 %v7122_v55, %v12734_v12  ;;  %v7124_v28 = vpop.f32.mrb[29].mxu0  ;;  %v7427_v14 = vpack.c.bf16 %v7377_v38, %v7375_v26 }
 0x35c   : > { %v9071_v19 = vadd.f32 %v7124_v28, %v12736_v27  ;;  %v7126_v15 = vpop.f32.mrb[30].mxu0  ;;  %v7428_v52 = vpack.c.bf16 %v7378_v18, %v7376_v2 }
 0x35d   : > { %v7315_v53 = vadd.f32 %v9070_v32, %v12809_v50  ;;  %v9072_v6 = vadd.f32 %v7126_v15, %v12738_v47  ;;  %v7128_v43 = vpop.f32.mrb[31].mxu0 }
 0x35e   : > { %v7316_v22 = vadd.f32 %v9071_v19, %v12811_v24  ;;  %v9073_v23 = vadd.f32 %v7128_v43, %v12740_v40  ;;  %7662 = vmatprep.mubr.bf16.mxu1 %v7428_v52 }
 0x35f   : > { %v7317_v35 = vadd.f32 %v9072_v6, %v12809_v50  ;;  %7663 = vmatmul.mubr.bf16.gmra.mrb[88].mxu1 %v7427_v14  ;;  %v7379_v4 = vmax.f32 %v7315_v53, 0.0 }
 0x360   : > { %v7318_v12 = vadd.f32 %v9073_v23, %v12811_v24  ;;  %v7380_v27 = vmax.f32 %v7316_v22, 0.0 }
 0x361   : > { %v7381_v48 = vmax.f32 %v7317_v35, 0.0 }
 0x362   : > { %v7382_v44 = vmax.f32 %v7318_v12, 0.0  ;;  %v7132_v0 = vpop.f32.mrb[32].mxu0 }
 0x363   : > { %v9074_v60 = vadd.f32 %v7132_v0, %v12742_v11  ;;  %v7134_v3 = vpop.f32.mrb[33].mxu0  ;;  %v7429_v47 = vpack.c.bf16 %v7381_v48, %v7379_v4 }
 0x364   : > { %v9075_v7 = vadd.f32 %v7134_v3, %v12744_v9  ;;  %v7136_v10 = vpop.f32.mrb[34].mxu0  ;;  %v7430_v57 = vpack.c.bf16 %v7382_v44, %v7380_v27  ;;  %v13062_v3 = vld [vmem:[#allocation2_spill] sm:$0xff] }
 0x365   : > { %v7319_v40 = vadd.f32 %v9074_v60, %v12809_v50  ;;  %v9076_v58 = vadd.f32 %v7136_v10, %v12746_v21  ;;  %v7138_v39 = vpop.f32.mrb[35].mxu0 }
 0x366   : > { %v7320_v29 = vadd.f32 %v9075_v7, %v12811_v24  ;;  %v9077_v34 = vadd.f32 %v7138_v39, %v12748_v41  ;;  %7670 = vmatprep.mubr.bf16.mxu1 %v7430_v57  ;;  %v13063_v57 = vld [vmem:[#allocation3_spill] sm:$0xff] }
 0x367   : > { %v7321_v42 = vadd.f32 %v9076_v58, %v12809_v50  ;;  %7671 = vmatmul.mubr.bf16.gmra.mrb[92].mxu1 %v7429_v47  ;;  %v7383_v8 = vmax.f32 %v7319_v40, 0.0 }
 0x368   : > { %v7322_v11 = vadd.f32 %v9077_v34, %v12811_v24  ;;  %v7384_v9 = vmax.f32 %v7320_v29, 0.0 }
 0x369   : > { %v7385_v25 = vmax.f32 %v7321_v42, 0.0 }
 0x36a   : > { %v7386_v31 = vmax.f32 %v7322_v11, 0.0  ;;  %v7142_v63 = vpop.f32.mrb[36].mxu0  ;;  %v13064_v11 = vld [vmem:[#allocation4_spill] sm:$0xff] }
 0x36b   : > { %v9078_v5 = vadd.f32 %v7142_v63, %v12750_v33  ;;  %v7144_v20 = vpop.f32.mrb[37].mxu0  ;;  %v7431_v21 = vpack.c.bf16 %v7385_v25, %v7383_v8 }
 0x36c   : > { %v9079_v61 = vadd.f32 %v7144_v20, %v12752_v17  ;;  %v7146_v16 = vpop.f32.mrb[38].mxu0  ;;  %v7432_v62 = vpack.c.bf16 %v7386_v31, %v7384_v9  ;;  %v13065_v31 = vld [vmem:[#allocation5_spill] sm:$0xff] }
 0x36d   : > { %v7323_v41 = vadd.f32 %v9078_v5, %v12809_v50  ;;  %v9080_v51 = vadd.f32 %v7146_v16, %v12754_v59  ;;  %v7148_v45 = vpop.f32.mrb[39].mxu0 }
 0x36e   : > { %v7324_v1 = vadd.f32 %v9079_v61, %v12811_v24  ;;  %v9081_v54 = vadd.f32 %v7148_v45, %v12756_v56  ;;  %7678 = vmatprep.mubr.bf16.mxu1 %v7432_v62  ;;  %v13066_v61 = vld [vmem:[#allocation6_spill] sm:$0xff] }
 0x36f   : > { %v7325_v26 = vadd.f32 %v9080_v51, %v12809_v50  ;;  %7679 = vmatmul.mubr.bf16.gmra.mrb[96].mxu1 %v7431_v21  ;;  %v7387_v38 = vmax.f32 %v7323_v41, 0.0  ;;  %v13067_v51 = vld [vmem:[#allocation7_spill] sm:$0xff] }
 0x370   : > { %v7326_v33 = vadd.f32 %v9081_v54, %v12811_v24  ;;  %v7388_v17 = vmax.f32 %v7324_v1, 0.0 }
 0x371   : > { %v7389_v2 = vmax.f32 %v7325_v26, 0.0 }
 0x372   : > { %v7390_v18 = vmax.f32 %v7326_v33, 0.0  ;;  %v7152_v55 = vpop.f32.mrb[40].mxu0 }
 0x373   : > { %v9082_v32 = vadd.f32 %v7152_v55, %v12758_v49  ;;  %v7154_v28 = vpop.f32.mrb[41].mxu0  ;;  %v7433_v59 = vpack.c.bf16 %v7389_v2, %v7387_v38 }
 0x374   : > { %v9083_v14 = vadd.f32 %v7154_v28, %v12760_v46  ;;  %v7156_v19 = vpop.f32.mrb[42].mxu0  ;;  %v7434_v15 = vpack.c.bf16 %v7390_v18, %v7388_v17  ;;  %v13068_v18 = vld [vmem:[#allocation8_spill] sm:$0xff] }
 0x375   : > { %v7327_v56 = vadd.f32 %v9082_v32, %v12809_v50  ;;  %v9084_v52 = vadd.f32 %v7156_v19, %v12762_v37  ;;  %v7158_v53 = vpop.f32.mrb[43].mxu0 }
 0x376   : > { %v7328_v6 = vadd.f32 %v9083_v14, %v12811_v24  ;;  %v9085_v43 = vadd.f32 %v7158_v53, %v12764_v36  ;;  %7686 = vmatprep.mubr.bf16.mxu1 %v7434_v15 }
 0x377   : > { %v7329_v22 = vadd.f32 %v9084_v52, %v12809_v50  ;;  %7687 = vmatmul.mubr.bf16.gmra.mrb[100].mxu1 %v7433_v59  ;;  %v7391_v23 = vmax.f32 %v7327_v56, 0.0  ;;  %v13069_v59 = vld [vmem:[#allocation9_spill] sm:$0xff]  ;;  %v13070_v52 = vld [vmem:[#allocation10_spill] sm:$0xff] }
 0x378   : > { %v7330_v49 = vadd.f32 %v9085_v43, %v12811_v24  ;;  %v7392_v46 = vmax.f32 %v7328_v6, 0.0 }
 0x379   : > { %v7393_v35 = vmax.f32 %v7329_v22, 0.0  ;;  %v13071_v22 = vld [vmem:[#allocation11_spill] sm:$0xff] }
 0x37a   : > { %v7394_v12 = vmax.f32 %v7330_v49, 0.0  ;;  %v7162_v4 = vpop.f32.mrb[44].mxu0 }
 0x37b   : > { %v9086_v48 = vadd.f32 %v7162_v4, %v12766_v13  ;;  %v7164_v27 = vpop.f32.mrb[45].mxu0  ;;  %v7435_v37 = vpack.c.bf16 %v7393_v35, %v7391_v23 }
 0x37c   : > { %v9087_v44 = vadd.f32 %v7164_v27, %v12768_v30  ;;  %v7166_v0 = vpop.f32.mrb[46].mxu0  ;;  %v7436_v60 = vpack.c.bf16 %v7394_v12, %v7392_v46 }
 0x37d   : > { %v7331_v36 = vadd.f32 %v9086_v48, %v12809_v50  ;;  %v9088_v47 = vadd.f32 %v7166_v0, %v13062_v3  ;;  %v7168_v7 = vpop.f32.mrb[47].mxu0 }
 0x37e   : > { %v7332_v10 = vadd.f32 %v9087_v44, %v12811_v24  ;;  %v9089_v40 = vadd.f32 %v7168_v7, %v13063_v57  ;;  %7694 = vmatprep.mubr.bf16.mxu1 %v7436_v60  ;;  %v13074_v57 = vld [vmem:[#allocation14_spill] sm:$0xff] }
 0x37f   : > { %v7333_v58 = vadd.f32 %v9088_v47, %v12809_v50  ;;  %7695 = vmatmul.mubr.bf16.gmra.mrb[104].mxu1 %v7435_v37  ;;  %v7395_v39 = vmax.f32 %v7331_v36, 0.0  ;;  %v13072_v37 = vld [vmem:[#allocation12_spill] sm:$0xff]  ;;  %v13073_v36 = vld [vmem:[#allocation13_spill] sm:$0xff] }
 0x380   : > { %v7334_v13 = vadd.f32 %v9089_v40, %v12811_v24  ;;  %v7396_v30 = vmax.f32 %v7332_v10, 0.0 }
 0x381   : > { %v7397_v29 = vmax.f32 %v7333_v58, 0.0 }
 0x382   : > { %v7398_v34 = vmax.f32 %v7334_v13, 0.0  ;;  %v7172_v42 = vpop.f32.mrb[48].mxu0 }
 0x383   : > { %v9090_v8 = vadd.f32 %v7172_v42, %v13064_v11  ;;  %v7174_v25 = vpop.f32.mrb[49].mxu0  ;;  %v7437_v9 = vpack.c.bf16 %v7397_v29, %v7395_v39  ;;  %v13075_v39 = vld [vmem:[#allocation15_spill] sm:$0xff] }
 0x384   : > { %v9091_v63 = vadd.f32 %v7174_v25, %v13065_v31  ;;  %v7176_v5 = vpop.f32.mrb[50].mxu0  ;;  %v7438_v20 = vpack.c.bf16 %v7398_v34, %v7396_v30  ;;  %v13076_v31 = vld [vmem:[#allocation16_spill] sm:$0xff] }
 0x385   : > { %v7335_v21 = vadd.f32 %v9090_v8, %v12809_v50  ;;  %v9092_v16 = vadd.f32 %v7176_v5, %v13066_v61  ;;  %v7178_v62 = vpop.f32.mrb[51].mxu0 }
 0x386   : > { %v7336_v41 = vadd.f32 %v9091_v63, %v12811_v24  ;;  %v9093_v45 = vadd.f32 %v7178_v62, %v13067_v51  ;;  %7702 = vmatprep.mubr.bf16.mxu1 %v7438_v20  ;;  %v13078_v51 = vld [vmem:[#allocation18_spill] sm:$0xff] }
 0x387   : > { %v7337_v1 = vadd.f32 %v9092_v16, %v12809_v50  ;;  %7703 = vmatmul.mubr.bf16.gmra.mrb[108].mxu1 %v7437_v9  ;;  %v7399_v26 = vmax.f32 %v7335_v21, 0.0  ;;  %v13077_v21 = vld [vmem:[#allocation17_spill] sm:$0xff] }
 0x388   : > { %v7338_v54 = vadd.f32 %v9093_v45, %v12811_v24  ;;  %v7400_v38 = vmax.f32 %v7336_v41, 0.0 }
 0x389   : > { %v7401_v33 = vmax.f32 %v7337_v1, 0.0 }
 0x38a   : > { %v7402_v2 = vmax.f32 %v7338_v54, 0.0  ;;  %v7182_v17 = vpop.f32.mrb[52].mxu0 }
 0x38b   : > { %v9094_v55 = vadd.f32 %v7182_v17, %v13068_v18  ;;  %v7184_v32 = vpop.f32.mrb[53].mxu0  ;;  %v7439_v28 = vpack.c.bf16 %v7401_v33, %v7399_v26  ;;  %v13079_v26 = vld [vmem:[#allocation19_spill] sm:$0xff] }
 0x38c   : > { %v9095_v14 = vadd.f32 %v7184_v32, %v13069_v59  ;;  %v7186_v19 = vpop.f32.mrb[54].mxu0  ;;  %v7440_v15 = vpack.c.bf16 %v7402_v2, %v7400_v38 }
 0x38d   : > { %v7339_v56 = vadd.f32 %v9094_v55, %v12809_v50  ;;  %v9096_v53 = vadd.f32 %v7186_v19, %v13070_v52  ;;  %v7188_v6 = vpop.f32.mrb[55].mxu0  ;;  %v12945_v19 = vld [vmem:[%s13023_s4] ss:$0 sm:$0xff] }
 0x38e   : > { %v7340_v43 = vadd.f32 %v9095_v14, %v12811_v24  ;;  %v9097_v49 = vadd.f32 %v7188_v6, %v13071_v22  ;;  %7710 = vmatprep.mubr.bf16.mxu1 %v7440_v15 }
 0x38f   : > { %v7341_v23 = vadd.f32 %v9096_v53, %v12809_v50  ;;  %7711 = vmatmul.mubr.bf16.gmra.mrb[112].mxu1 %v7439_v28  ;;  %v7403_v46 = vmax.f32 %v7339_v56, 0.0 }
 0x390   : > { %v7342_v35 = vadd.f32 %v9097_v49, %v12811_v24  ;;  %v7404_v4 = vmax.f32 %v7340_v43, 0.0 }
 0x391   : > { %v7405_v12 = vmax.f32 %v7341_v23, 0.0 }
 0x392   : > { %v7406_v48 = vmax.f32 %v7342_v35, 0.0  ;;  %v7192_v27 = vpop.f32.mrb[56].mxu0 }
 0x393   : > { %v9098_v44 = vadd.f32 %v7192_v27, %v13072_v37  ;;  %v7194_v0 = vpop.f32.mrb[57].mxu0  ;;  %v7441_v60 = vpack.c.bf16 %v7405_v12, %v7403_v46 }
 0x394   : > { %v9099_v3 = vadd.f32 %v7194_v0, %v13073_v36  ;;  %v7196_v47 = vpop.f32.mrb[58].mxu0  ;;  %v7442_v7 = vpack.c.bf16 %v7406_v48, %v7404_v4 }
 0x395   : > { %v7343_v10 = vadd.f32 %v9098_v44, %v12809_v50  ;;  %v9100_v40 = vadd.f32 %v7196_v47, %v13074_v57  ;;  %v7198_v58 = vpop.f32.mrb[59].mxu0 }
 0x396   : > { %v7344_v13 = vadd.f32 %v9099_v3, %v12811_v24  ;;  %v9101_v29 = vadd.f32 %v7198_v58, %v13075_v39  ;;  %7718 = vmatprep.mubr.bf16.mxu1 %v7442_v7 }
 0x397   : > { %v7345_v30 = vadd.f32 %v9100_v40, %v12809_v50  ;;  %7719 = vmatmul.mubr.bf16.gmra.mrb[116].mxu1 %v7441_v60  ;;  %v7407_v42 = vmax.f32 %v7343_v10, 0.0 }
 0x398   : > { %v7346_v34 = vadd.f32 %v9101_v29, %v12811_v24  ;;  %v7408_v8 = vmax.f32 %v7344_v13, 0.0 }
 0x399   : > { %v7409_v11 = vmax.f32 %v7345_v30, 0.0 }
 0x39a   : > { %v7410_v25 = vmax.f32 %v7346_v34, 0.0  ;;  %v7202_v9 = vpop.f32.mrb[60].mxu0 }
 0x39b   : > { %v9102_v63 = vadd.f32 %v7202_v9, %v13076_v31  ;;  %v7204_v5 = vpop.f32.mrb[61].mxu0  ;;  %v7443_v20 = vpack.c.bf16 %v7409_v11, %v7407_v42 }
 0x39c   : > { %v9103_v61 = vadd.f32 %v7204_v5, %v13077_v21  ;;  %v7206_v16 = vpop.f32.mrb[62].mxu0  ;;  %v7444_v62 = vpack.c.bf16 %v7410_v25, %v7408_v8 }
 0x39d   : > { %v7347_v41 = vadd.f32 %v9102_v63, %v12809_v50  ;;  %v9104_v45 = vadd.f32 %v7206_v16, %v13078_v51  ;;  %v7208_v1 = vpop.f32.mrb[63].mxu0 }
 0x39e   : > { %v7348_v54 = vadd.f32 %v9103_v61, %v12811_v24  ;;  %v9105_v33 = vadd.f32 %v7208_v1, %v13079_v26  ;;  %7726 = vmatprep.mubr.bf16.mxu1 %v7444_v62 }
 0x39f   : > { %v7349_v38 = vadd.f32 %v9104_v45, %v12809_v50  ;;  %7727 = vmatmul.mubr.bf16.gmra.mrb[120].mxu1 %v7443_v20  ;;  %v7411_v17 = vmax.f32 %v7347_v41, 0.0 }
 0x3a0   : > { %v7350_v2 = vadd.f32 %v9105_v33, %v12811_v24  ;;  %v7412_v55 = vmax.f32 %v7348_v54, 0.0 }
 0x3a1   : > { %v7413_v18 = vmax.f32 %v7349_v38, 0.0 }
 0x3a2   : > { %v7414_v32 = vmax.f32 %v7350_v2, 0.0 }
 0x3a3   : > { %v7445_v28 = vpack.c.bf16 %v7413_v18, %v7411_v17 }
 0x3a4   : > { %v7446_v59 = vpack.c.bf16 %v7414_v32, %v7412_v55 }
 0x3a6   : > { %7734 = vmatprep.mubr.bf16.mxu1 %v7446_v59 }
 0x3a7   : > { %7735 = vmatmul.mubr.bf16.gmra.mrb[124].mxu1 %v7445_v28 }
 0x402   : > { %v8946_v14 = vpop.f32.mrb[64].mxu1 }
 0x403   : > { %v8947_v15 = vpop.f32.mrb[65].mxu1 }
 0x404   : > { %v8948_v50 = vadd.f32 %v8947_v15, %v8946_v14  ;;  %v8949_v56 = vpop.f32.mrb[66].mxu1 }
 0x405   : > { %v8950_v24 = vpop.f32.mrb[67].mxu1 }
 0x406   : > { %v7617_v52 = vadd.f32 %v8948_v50, %v12945_v19  ;;  %v8951_v53 = vadd.f32 %v8950_v24, %v8949_v56 }
 0x408   : > { %7743 = vst [vmem:[%s12950_s15] sm:$0xff] %v7617_v52  ;;  %v7620_v6 = vadd.f32 %v8951_v53, %v12945_v19 }
 0x40a   : > { %7744 = vst [vmem:[%s12950_s15 + $0x8] sm:$0xff] %v7620_v6  ;;  %v8952_v43 = vpop.f32.mrb[68].mxu1 }
 0x40b   : > { %v8953_v22 = vpop.f32.mrb[69].mxu1 }
 0x40c   : > { %v8954_v49 = vadd.f32 %v8953_v22, %v8952_v43  ;;  %v8955_v23 = vpop.f32.mrb[70].mxu1 }
 0x40d   : > { %v8956_v35 = vpop.f32.mrb[71].mxu1 }
 0x40e   : > { %v7625_v46 = vadd.f32 %v8954_v49, %v12945_v19  ;;  %v8957_v12 = vadd.f32 %v8956_v35, %v8955_v23 }
 0x410   : > { %7745 = vst [vmem:[%s12950_s15 + $0x10] sm:$0xff] %v7625_v46  ;;  %v7628_v4 = vadd.f32 %v8957_v12, %v12945_v19 }
 0x412   : > { %7746 = vst [vmem:[%s12950_s15 + $0x18] sm:$0xff] %v7628_v4  ;;  %v8958_v48 = vpop.f32.mrb[72].mxu1 }
 0x413   : > { %v8959_v27 = vpop.f32.mrb[73].mxu1 }
 0x414   : > { %v8960_v37 = vadd.f32 %v8959_v27, %v8958_v48  ;;  %v8961_v44 = vpop.f32.mrb[74].mxu1 }
 0x415   : > { %v8962_v0 = vpop.f32.mrb[75].mxu1 }
 0x416   : > { %v7633_v60 = vadd.f32 %v8960_v37, %v12945_v19  ;;  %v8963_v36 = vadd.f32 %v8962_v0, %v8961_v44 }
 0x418   : > { %7747 = vst [vmem:[%s12950_s15 + $0x20] sm:$0xff] %v7633_v60  ;;  %v7636_v3 = vadd.f32 %v8963_v36, %v12945_v19 }
 0x41a   : > { %7748 = vst [vmem:[%s12950_s15 + $0x28] sm:$0xff] %v7636_v3  ;;  %v8964_v47 = vpop.f32.mrb[76].mxu1 }
 0x41b   : > { %v8965_v7 = vpop.f32.mrb[77].mxu1 }
 0x41c   : > { %v8966_v10 = vadd.f32 %v8965_v7, %v8964_v47  ;;  %v8967_v57 = vpop.f32.mrb[78].mxu1 }
 0x41d   : > { %v8968_v40 = vpop.f32.mrb[79].mxu1 }
 0x41e   : > { %v7641_v58 = vadd.f32 %v8966_v10, %v12945_v19  ;;  %v8969_v13 = vadd.f32 %v8968_v40, %v8967_v57 }
 0x420   : > { %7749 = vst [vmem:[%s12950_s15 + $0x30] sm:$0xff] %v7641_v58  ;;  %v7644_v39 = vadd.f32 %v8969_v13, %v12945_v19 }
 0x422   : > { %7750 = vst [vmem:[%s12950_s15 + $0x38] sm:$0xff] %v7644_v39  ;;  %v8970_v29 = vpop.f32.mrb[80].mxu1 }
 0x423   : > { %v8971_v30 = vpop.f32.mrb[81].mxu1 }
 0x424   : > { %v8972_v34 = vadd.f32 %v8971_v30, %v8970_v29  ;;  %v8973_v42 = vpop.f32.mrb[82].mxu1 }
 0x425   : > { %v8974_v11 = vpop.f32.mrb[83].mxu1 }
 0x426   : > { %v7649_v8 = vadd.f32 %v8972_v34, %v12945_v19  ;;  %v8975_v25 = vadd.f32 %v8974_v11, %v8973_v42 }
 0x428   : > { %7751 = vst [vmem:[%s12950_s15 + $0x40] sm:$0xff] %v7649_v8  ;;  %v7652_v9 = vadd.f32 %v8975_v25, %v12945_v19 }
 0x42a   : > { %7752 = vst [vmem:[%s12950_s15 + $0x48] sm:$0xff] %v7652_v9  ;;  %v8976_v31 = vpop.f32.mrb[84].mxu1 }
 0x42b   : > { %v8977_v63 = vpop.f32.mrb[85].mxu1 }
 0x42c   : > { %v8978_v5 = vadd.f32 %v8977_v63, %v8976_v31  ;;  %v8979_v20 = vpop.f32.mrb[86].mxu1 }
 0x42d   : > { %v8980_v21 = vpop.f32.mrb[87].mxu1 }
 0x42e   : > { %v7657_v61 = vadd.f32 %v8978_v5, %v12945_v19  ;;  %v8981_v16 = vadd.f32 %v8980_v21, %v8979_v20 }
 0x430   : > { %7753 = vst [vmem:[%s12950_s15 + $0x50] sm:$0xff] %v7657_v61  ;;  %v7660_v62 = vadd.f32 %v8981_v16, %v12945_v19 }
 0x432   : > { %7754 = vst [vmem:[%s12950_s15 + $0x58] sm:$0xff] %v7660_v62  ;;  %v8982_v41 = vpop.f32.mrb[88].mxu1 }
 0x433   : > { %v8983_v51 = vpop.f32.mrb[89].mxu1 }
 0x434   : > { %v8984_v45 = vadd.f32 %v8983_v51, %v8982_v41  ;;  %v8985_v1 = vpop.f32.mrb[90].mxu1 }
 0x435   : > { %v8986_v54 = vpop.f32.mrb[91].mxu1 }
 0x436   : > { %v7665_v26 = vadd.f32 %v8984_v45, %v12945_v19  ;;  %v8987_v33 = vadd.f32 %v8986_v54, %v8985_v1 }
 0x438   : > { %7755 = vst [vmem:[%s12950_s15 + $0x60] sm:$0xff] %v7665_v26  ;;  %v7668_v38 = vadd.f32 %v8987_v33, %v12945_v19 }
 0x43a   : > { %7756 = vst [vmem:[%s12950_s15 + $0x68] sm:$0xff] %v7668_v38  ;;  %v8988_v2 = vpop.f32.mrb[92].mxu1 }
 0x43b   : > { %v8989_v17 = vpop.f32.mrb[93].mxu1 }
 0x43c   : > { %v8990_v18 = vadd.f32 %v8989_v17, %v8988_v2  ;;  %v8991_v55 = vpop.f32.mrb[94].mxu1 }
 0x43d   : > { %v8992_v32 = vpop.f32.mrb[95].mxu1 }
 0x43e   : > { %v7673_v28 = vadd.f32 %v8990_v18, %v12945_v19  ;;  %v8993_v59 = vadd.f32 %v8992_v32, %v8991_v55 }
 0x440   : > { %7757 = vst [vmem:[%s12950_s15 + $0x70] sm:$0xff] %v7673_v28  ;;  %v7676_v14 = vadd.f32 %v8993_v59, %v12945_v19 }
 0x442   : > { %7758 = vst [vmem:[%s12950_s15 + $0x78] sm:$0xff] %v7676_v14  ;;  %v8994_v15 = vpop.f32.mrb[96].mxu1 }
 0x443   : > { %v8995_v50 = vpop.f32.mrb[97].mxu1 }
 0x444   : > { %v8996_v56 = vadd.f32 %v8995_v50, %v8994_v15  ;;  %v8997_v24 = vpop.f32.mrb[98].mxu1 }
 0x445   : > { %v8998_v52 = vpop.f32.mrb[99].mxu1 }
 0x446   : > { %v7681_v53 = vadd.f32 %v8996_v56, %v12945_v19  ;;  %v8999_v6 = vadd.f32 %v8998_v52, %v8997_v24 }
 0x448   : > { %7759 = vst [vmem:[%s12950_s15 + $0x80] sm:$0xff] %v7681_v53  ;;  %v7684_v43 = vadd.f32 %v8999_v6, %v12945_v19 }
 0x44a   : > { %7760 = vst [vmem:[%s12950_s15 + $0x88] sm:$0xff] %v7684_v43  ;;  %v9000_v22 = vpop.f32.mrb[100].mxu1 }
 0x44b   : > { %v9001_v49 = vpop.f32.mrb[101].mxu1 }
 0x44c   : > { %v9002_v23 = vadd.f32 %v9001_v49, %v9000_v22  ;;  %v9003_v35 = vpop.f32.mrb[102].mxu1 }
 0x44d   : > { %v9004_v46 = vpop.f32.mrb[103].mxu1 }
 0x44e   : > { %v7689_v12 = vadd.f32 %v9002_v23, %v12945_v19  ;;  %v9005_v4 = vadd.f32 %v9004_v46, %v9003_v35 }
 0x450   : > { %7761 = vst [vmem:[%s12950_s15 + $0x90] sm:$0xff] %v7689_v12  ;;  %v7692_v48 = vadd.f32 %v9005_v4, %v12945_v19 }
 0x452   : > { %7762 = vst [vmem:[%s12950_s15 + $0x98] sm:$0xff] %v7692_v48  ;;  %v9006_v27 = vpop.f32.mrb[104].mxu1 }
 0x453   : > { %v9007_v37 = vpop.f32.mrb[105].mxu1 }
 0x454   : > { %v9008_v44 = vadd.f32 %v9007_v37, %v9006_v27  ;;  %v9009_v0 = vpop.f32.mrb[106].mxu1 }
 0x455   : > { %v9010_v60 = vpop.f32.mrb[107].mxu1 }
 0x456   : > { %v7697_v36 = vadd.f32 %v9008_v44, %v12945_v19  ;;  %v9011_v3 = vadd.f32 %v9010_v60, %v9009_v0 }
 0x458   : > { %7763 = vst [vmem:[%s12950_s15 + $0xa0] sm:$0xff] %v7697_v36  ;;  %v7700_v47 = vadd.f32 %v9011_v3, %v12945_v19 }
 0x45a   : > { %7764 = vst [vmem:[%s12950_s15 + $0xa8] sm:$0xff] %v7700_v47  ;;  %v9012_v7 = vpop.f32.mrb[108].mxu1 }
 0x45b   : > { %v9013_v10 = vpop.f32.mrb[109].mxu1 }
 0x45c   : > { %v9014_v57 = vadd.f32 %v9013_v10, %v9012_v7  ;;  %v9015_v40 = vpop.f32.mrb[110].mxu1 }
 0x45d   : > { %v9016_v58 = vpop.f32.mrb[111].mxu1 }
 0x45e   : > { %v7705_v13 = vadd.f32 %v9014_v57, %v12945_v19  ;;  %v9017_v39 = vadd.f32 %v9016_v58, %v9015_v40 }
 0x460   : > { %7765 = vst [vmem:[%s12950_s15 + $0xb0] sm:$0xff] %v7705_v13  ;;  %v7708_v29 = vadd.f32 %v9017_v39, %v12945_v19 }
 0x462   : > { %7766 = vst [vmem:[%s12950_s15 + $0xb8] sm:$0xff] %v7708_v29  ;;  %v9018_v30 = vpop.f32.mrb[112].mxu1 }
 0x463   : > { %v9019_v34 = vpop.f32.mrb[113].mxu1 }
 0x464   : > { %v9020_v42 = vadd.f32 %v9019_v34, %v9018_v30  ;;  %v9021_v11 = vpop.f32.mrb[114].mxu1 }
 0x465   : > { %v9022_v8 = vpop.f32.mrb[115].mxu1 }
 0x466   : > { %v7713_v25 = vadd.f32 %v9020_v42, %v12945_v19  ;;  %v9023_v9 = vadd.f32 %v9022_v8, %v9021_v11 }
 0x468   : > { %7767 = vst [vmem:[%s12950_s15 + $0xc0] sm:$0xff] %v7713_v25  ;;  %v7716_v31 = vadd.f32 %v9023_v9, %v12945_v19 }
 0x46a   : > { %7768 = vst [vmem:[%s12950_s15 + $0xc8] sm:$0xff] %v7716_v31  ;;  %v9024_v63 = vpop.f32.mrb[116].mxu1 }
 0x46b   : > { %v9025_v5 = vpop.f32.mrb[117].mxu1 }
 0x46c   : > { %v9026_v20 = vadd.f32 %v9025_v5, %v9024_v63  ;;  %v9027_v21 = vpop.f32.mrb[118].mxu1 }
 0x46d   : > { %v9028_v61 = vpop.f32.mrb[119].mxu1 }
 0x46e   : > { %v7721_v16 = vadd.f32 %v9026_v20, %v12945_v19  ;;  %v9029_v62 = vadd.f32 %v9028_v61, %v9027_v21 }
 0x470   : > { %7769 = vst [vmem:[%s12950_s15 + $0xd0] sm:$0xff] %v7721_v16  ;;  %v7724_v41 = vadd.f32 %v9029_v62, %v12945_v19 }
 0x472   : > { %7770 = vst [vmem:[%s12950_s15 + $0xd8] sm:$0xff] %v7724_v41  ;;  %v9030_v51 = vpop.f32.mrb[120].mxu1 }
 0x473   : > { %v9031_v45 = vpop.f32.mrb[121].mxu1 }
 0x474   : > { %v9032_v1 = vadd.f32 %v9031_v45, %v9030_v51  ;;  %v9033_v54 = vpop.f32.mrb[122].mxu1 }
 0x475   : > { %v9034_v26 = vpop.f32.mrb[123].mxu1 }
 0x476   : > { %v7729_v33 = vadd.f32 %v9032_v1, %v12945_v19  ;;  %v9035_v38 = vadd.f32 %v9034_v26, %v9033_v54 }
 0x478   : > { %7771 = vst [vmem:[%s12950_s15 + $0xe0] sm:$0xff] %v7729_v33  ;;  %v7732_v2 = vadd.f32 %v9035_v38, %v12945_v19 }
 0x47a   : > { %7772 = vst [vmem:[%s12950_s15 + $0xe8] sm:$0xff] %v7732_v2  ;;  %v9036_v17 = vpop.f32.mrb[124].mxu1 }
 0x47b   : > { %v9037_v18 = vpop.f32.mrb[125].mxu1 }
 0x47c   : > { %v9038_v55 = vadd.f32 %v9037_v18, %v9036_v17  ;;  %v9039_v32 = vpop.f32.mrb[126].mxu1 }
 0x47d   : > { %v9040_v28 = vpop.f32.mrb[127].mxu1 }
 0x47e   : > { %v7737_v59 = vadd.f32 %v9038_v55, %v12945_v19  ;;  %v9041_v14 = vadd.f32 %v9040_v28, %v9039_v32 }
 0x480   : > { %7773 = vst [vmem:[%s12950_s15 + $0xf0] sm:$0xff] %v7737_v59  ;;  %v7740_v15 = vadd.f32 %v9041_v14, %v12945_v19 }
 0x482   : > { %7774 = vst [vmem:[%s12950_s15 + $0xf8] sm:$0xff] %v7740_v15 }
 0x483 PF: > { %s15_s18 = sadd.s32 1, %s10189_s18  }
 0x484   : > { %p12_p4 = scmp.ge.s32.totalorder %s15_s18, 4  }
 0x486   :  { %14 = sbr.rel (!%p12_p4) target bundleno = 1 (0x1), region = 80 }

</bundles_post_ra>
